<compile_context>
chip_gen: v7x
topology: tpu7x:2x2x1
jax: 0.10.0
libtpu: 0.0.40
codegen_flags: <defaults>
</compile_context>

<pallas_src>
import jax
import jax.numpy as jnp
from jax.experimental import pallas as pl
from jax.experimental.pallas import tpu as pltpu

LANE = 128
EPS = 1e-5

# VMEM budgeting: keep block buffers under ~36 MiB and hand Mosaic a 48 MiB
# scoped limit.  Fits every generation (v7x physical VMEM is 64 MiB/TC;
# v5e/v6e have 128 MiB physical but only 16/32 MiB *default* scoped, so the
# explicit limit is what allows tiles bigger than the old 256-row cap).
_VMEM_BLOCK_BUDGET = 36 * 1024 * 1024
_VMEM_LIMIT_BYTES = 48 * 1024 * 1024


def _round_up(x, m):
    return -(-x // m) * m


def _choose_tm(m, per_row_bytes, resident_bytes, cap=1024):
    """Largest power-of-two row tile (>=16 for bf16 sublane packing) whose
    double-buffered blocks fit the VMEM budget, capped at `cap` and at the
    16-padded row count."""
    avail = max(_VMEM_BLOCK_BUDGET - resident_bytes, 16 * per_row_bytes)
    limit = min(cap, max(avail // per_row_bytes, 16), _round_up(m, 16))
    tm = 16
    while tm * 2 <= limit:
        tm *= 2
    return tm


def _pad_rows(a, multiple):
    m = a.shape[0]
    mp = _round_up(m, multiple)
    if mp != m:
        a = jnp.pad(a, ((0, mp - m), (0, 0)))
    return a, m


# ------------------------- Pallas kernels -------------------------

def _matmul_kernel(a_ref, b_ref, o_ref):
    o_ref[...] = jnp.dot(a_ref[...], b_ref[...],
                         preferred_element_type=jnp.float32).astype(o_ref.dtype)


def pallas_matmul(a, b):
    """(M, K) @ (K, N) -> (M, N) bf16; bf16 operands on the MXU, f32 accumulate."""
    a = a.astype(jnp.bfloat16)
    b = b.astype(jnp.bfloat16)
    M0, K = a.shape
    _, N = b.shape
    tm = _choose_tm(M0, per_row_bytes=4 * (K + N), resident_bytes=4 * K * N)
    a, _ = _pad_rows(a, tm)
    M = a.shape[0]
    out = pl.pallas_call(
        _matmul_kernel,
        out_shape=jax.ShapeDtypeStruct((M, N), jnp.bfloat16),
        grid=(M // tm,),
        in_specs=[pl.BlockSpec((tm, K), lambda i: (i, 0)),
                  pl.BlockSpec((K, N), lambda i: (0, 0))],
        out_specs=pl.BlockSpec((tm, N), lambda i: (i, 0)),
        compiler_params=pltpu.CompilerParams(
            dimension_semantics=("parallel",),
            vmem_limit_bytes=_VMEM_LIMIT_BYTES),
    )(a, b)
    return out[:M0]


def _bn_lrelu_matmul_kernel(x_ref, scale_ref, shift_ref, b_ref, o_ref):
    # Fused BatchNorm affine + LeakyReLU(0.2) prologue (f32), then bf16 MXU matmul.
    y = x_ref[...].astype(jnp.float32) * scale_ref[...] + shift_ref[...]
    y = jnp.where(y > 0, y, 0.2 * y)
    o_ref[...] = jnp.dot(y.astype(jnp.bfloat16), b_ref[...],
                         preferred_element_type=jnp.float32).astype(o_ref.dtype)


def pallas_bn_lrelu_matmul(x, scale, shift, b):
    """leaky_relu(x*scale + shift, 0.2) @ b -> bf16, with x bf16, b bf16."""
    x = x.astype(jnp.bfloat16)
    b = b.astype(jnp.bfloat16)
    M0, K = x.shape
    _, N = b.shape
    tm = _choose_tm(M0, per_row_bytes=4 * (K + N),
                    resident_bytes=4 * K * N + 16 * K)
    x, _ = _pad_rows(x, tm)
    M = x.shape[0]
    out = pl.pallas_call(
        _bn_lrelu_matmul_kernel,
        out_shape=jax.ShapeDtypeStruct((M, N), jnp.bfloat16),
        grid=(M // tm,),
        in_specs=[pl.BlockSpec((tm, K), lambda i: (i, 0)),
                  pl.BlockSpec((1, K), lambda i: (0, 0)),
                  pl.BlockSpec((1, K), lambda i: (0, 0)),
                  pl.BlockSpec((K, N), lambda i: (0, 0))],
        out_specs=pl.BlockSpec((tm, N), lambda i: (i, 0)),
        compiler_params=pltpu.CompilerParams(
            dimension_semantics=("parallel",),
            vmem_limit_bytes=_VMEM_LIMIT_BYTES),
    )(x, scale.reshape(1, K).astype(jnp.float32),
      shift.reshape(1, K).astype(jnp.float32), b)
    return out[:M0]


def _bn_stats_kernel(x_ref, sum_ref, ssq_ref):
    @pl.when(pl.program_id(1) == 0)
    def _():
        sum_ref[...] = jnp.zeros_like(sum_ref)
        ssq_ref[...] = jnp.zeros_like(ssq_ref)
    x = x_ref[...].astype(jnp.float32)
    xr = x.reshape(-1, 8, x.shape[-1])          # keep 8 sublane partial sums
    sum_ref[...] += jnp.sum(xr, axis=0)
    ssq_ref[...] += jnp.sum(xr * xr, axis=0)


def pallas_bn_stats(x):
    """x: (M, C) -> per-channel (sum, sum_sq) as (C,) f32 vectors.

    Leading grid axis is "parallel" (2-way when the step count allows) so the
    purely mem-bound reduction can shard across both v7x TensorCores; partial
    (8, C) accumulators are combined in the wrapper."""
    M0, C = x.shape
    tm = _choose_tm(M0, per_row_bytes=2 * x.dtype.itemsize * C,
                    resident_bytes=128 * C)
    x, _ = _pad_rows(x, tm)              # zero rows contribute 0 to sum/sumsq
    M = x.shape[0]
    steps = M // tm
    split = 2 if (steps % 2 == 0 and steps >= 2) else 1
    inner = steps // split
    s, ssq = pl.pallas_call(
        _bn_stats_kernel,
        out_shape=(jax.ShapeDtypeStruct((8 * split, C), jnp.float32),
                   jax.ShapeDtypeStruct((8 * split, C), jnp.float32)),
        grid=(split, inner),
        in_specs=[pl.BlockSpec((tm, C), lambda p, i: (p * inner + i, 0))],
        out_specs=(pl.BlockSpec((8, C), lambda p, i: (p, 0)),
                   pl.BlockSpec((8, C), lambda p, i: (p, 0))),
        compiler_params=pltpu.CompilerParams(
            dimension_semantics=("parallel", "arbitrary"),
            vmem_limit_bytes=_VMEM_LIMIT_BYTES),
    )(x)
    return s.sum(axis=0), ssq.sum(axis=0)


# ---------------- col2im (scatter-free overlap-add) glue ----------------

def col2im_nhwc(y, N, H, W, Cout, K, stride, pad):
    """ConvTranspose2d overlap-add for y: (N*H*W, K*Cout*K) with columns in
    (kw, cout, kh) order (weights are pre-permuted), so the W-axis overlap-add
    runs on the natural matmul layout and only one transpose of the already
    W-reduced intermediate (not the full y) is needed.  Pure pad+add+reshape."""
    Q = K // stride                      # exact for 4x4 kernels, stride 1 or 2
    LW = (W - 1) * stride + K
    LH = (H - 1) * stride + K
    y = y.reshape(N, H, W, Q, stride, Cout, K)
    # overlap-add along W: ow = w*stride + kw, kw = q*stride + r
    acc = None
    for q in range(Q):
        piece = jnp.pad(y[:, :, :, q],
                        ((0, 0), (0, 0), (q, Q - 1 - q), (0, 0), (0, 0), (0, 0)))
        acc = piece if acc is None else acc + piece
    z = acc.reshape(N, H, LW, Cout, K)
    # overlap-add along H: bring (H, KH) adjacent (one transpose, on LW-reduced data)
    z = jnp.transpose(z, (0, 2, 3, 1, 4)).reshape(N, LW, Cout, H, Q, stride)
    acc = None
    for q in range(Q):
        piece = jnp.pad(z[:, :, :, :, q],
                        ((0, 0), (0, 0), (0, 0), (q, Q - 1 - q), (0, 0)))
        acc = piece if acc is None else acc + piece
    o = acc.reshape(N, LW, Cout, LH)
    o = jnp.transpose(o, (0, 3, 1, 2))                   # NHWC (pre-crop)
    return o[:, pad:pad + (LH - 2 * pad), pad:pad + (LW - 2 * pad), :]


# ------------------------- Decoder -------------------------

def init_decoder_params(key, nc, ngf, nz):
    """Deterministic synthetic init matching the PyTorch module's shapes."""
    cfg = [
        (nz,      ngf * 8, 1, 0, True),   # ConvT 4x4 s1 p0 -> BN -> LReLU
        (ngf * 8, ngf * 4, 2, 1, True),
        (ngf * 4, ngf * 2, 2, 1, True),
        (ngf * 2, ngf,     2, 1, True),
        (ngf,     nc,      2, 1, False),  # ConvT -> Tanh
    ]
    params = []
    for (cin, cout, s, p, bn) in cfg:
        key, kw = jax.random.split(key)
        layer = {
            "w": jax.random.normal(kw, (cin, cout, 4, 4), jnp.float32) * 0.05,
            "stride": s,
            "pad": p,
            "bn": bn,
        }
        if bn:
            layer["gamma"] = jnp.ones((cout,), jnp.float32)
            layer["beta"] = jnp.zeros((cout,), jnp.float32)
        params.append(layer)
    return params


def decoder_forward(x_nchw, params):
    K = 4
    # NCHW -> NHWC once; intermediate activations stay NHWC / (M, C) in bf16.
    h = jnp.transpose(x_nchw, (0, 2, 3, 1))
    scale = shift = None        # pending BN+LeakyReLU, fused into next matmul
    for layer in params:
        n, H, W, Cin = h.shape
        Cout = layer["w"].shape[1]
        # Columns ordered (kw, cout, kh) -> no transpose of y inside col2im.
        wmat = jnp.transpose(layer["w"], (0, 3, 1, 2)).reshape(Cin, K * Cout * K)
        ncol = wmat.shape[1]
        if ncol % LANE:          # lane-pad (final layer: 48 -> 128 columns)
            wmat = jnp.pad(wmat, ((0, 0), (0, _round_up(ncol, LANE) - ncol)))
        x_mat = h.reshape(n * H * W, Cin)
        if scale is None:
            y = pallas_matmul(x_mat, wmat)
        else:
            y = pallas_bn_lrelu_matmul(x_mat, scale, shift, wmat)
        y = y[:, :ncol]                                   # drop lane padding
        h = col2im_nhwc(y, n, H, W, Cout, K, layer["stride"], layer["pad"])
        if layer["bn"]:
            # TODO(synk): BatchNorm running_mean/var buffers (momentum=0.9) are
            # not tracked; forward uses batch statistics (PyTorch train mode).
            M2 = h.shape[0] * h.shape[1] * h.shape[2]
            s_, ssq = pallas_bn_stats(h.reshape(M2, Cout))
            mean = s_ / M2
            var = jnp.maximum(ssq / M2 - mean * mean, 0.0)
            scale = layer["gamma"] * jax.lax.rsqrt(var + EPS)
            shift = layer["beta"] - mean * scale
        else:
            # Final Tanh fused into the col2im epilogue / NHWC->NCHW transpose
            # (per perf review: a standalone elementwise kernel only adds an
            # HBM round trip).
            scale = shift = None
            h = jnp.tanh(h.astype(jnp.float32))
    return jnp.transpose(h, (0, 3, 1, 2))                 # back to NCHW once


if __name__ == "__main__":
    nc, ngf, nz = 3, 8, 16
    batch = 2
    key = jax.random.PRNGKey(0)
    key, kx = jax.random.split(key)
    x = jax.random.normal(kx, (batch, nz, 1, 1), jnp.float32)   # NCHW latent
    params = init_decoder_params(key, nc, ngf, nz)

    fwd = jax.jit(lambda inp: decoder_forward(inp, params))
    out = jax.block_until_ready(fwd(x))
    assert out.shape == (batch, nc, 64, 64), out.shape
    assert bool(jnp.all(jnp.isfinite(out)))
    print("KERNEL_OK")
</pallas_src>

<mosaic_0001>
module attributes {stable_mosaic.version = 11 : i64} {
  func.func @_matmul_kernel(%arg0: i32, %arg1: memref<16x16xbf16, #tpu.memory_space<vmem>>, %arg2: memref<16x1024xbf16, #tpu.memory_space<vmem>>, %arg3: memref<16x1024xbf16, #tpu.memory_space<vmem>>) attributes {dimension_semantics = [#tpu.dimension_semantics<parallel>], iteration_bounds = array<i64: 1>, scalar_prefetch = 0 : i64, scratch_operands = 0 : i64, tpu.core_type = #tpu.core_type<tc>, window_params = [{transform_indices = @transform_0, window_bounds = array<i64: 16, 16>}, {pipeline_mode = #tpu.pipeline_mode<synchronous>, transform_indices = @transform_1, window_bounds = array<i64: 16, 1024>}, {transform_indices = @transform_2, window_bounds = array<i64: 16, 1024>}]} {
    %c0 = arith.constant 0 : index
    %c0_0 = arith.constant 0 : index
    %0 = vector.load %arg1[%c0, %c0_0] : memref<16x16xbf16, #tpu.memory_space<vmem>>, vector<16x16xbf16>
    %c0_1 = arith.constant 0 : index
    %c0_2 = arith.constant 0 : index
    %1 = vector.load %arg2[%c0_1, %c0_2] : memref<16x1024xbf16, #tpu.memory_space<vmem>>, vector<16x1024xbf16>
    %cst = arith.constant dense<0.000000e+00> : vector<16x1024xf32>
    %2 = tpu.matmul %0, %1, %cst {dimension_numbers = #tpu.dot_dimension_numbers<[1], [0], [0], [1], [0, 0, 1, 1], [], []>} : vector<16x16xbf16>, vector<16x1024xbf16>, vector<16x1024xf32> -> vector<16x1024xf32>
    %3 = arith.truncf %2 : vector<16x1024xf32> to vector<16x1024xbf16>
    %c0_3 = arith.constant 0 : index
    %c0_4 = arith.constant 0 : index
    %4 = vector.load %arg3[%c0_3, %c0_4] : memref<16x1024xbf16, #tpu.memory_space<vmem>>, vector<16x1024xbf16>
    tpu.vector_store %arg3[%c0_3, %c0_4], %3 {strides = array<i32>} : memref<16x1024xbf16, #tpu.memory_space<vmem>>, vector<16x1024xbf16>,
    return
  }
  func.func @transform_0(%arg0: i32) -> (i32, i32) {
    %c0_i32 = arith.constant 0 : i32
    %c0_i32_0 = arith.constant 0 : i32
    return %arg0, %c0_i32 : i32, i32
  }
  func.func @transform_1(%arg0: i32) -> (i32, i32) {
    %c0_i32 = arith.constant 0 : i32
    %c0_i32_0 = arith.constant 0 : i32
    %c0_i32_1 = arith.constant 0 : i32
    return %c0_i32, %c0_i32_0 : i32, i32
  }
  func.func @transform_2(%arg0: i32) -> (i32, i32) {
    %c0_i32 = arith.constant 0 : i32
    %c0_i32_0 = arith.constant 0 : i32
    return %arg0, %c0_i32 : i32, i32
  }
}

module attributes {stable_mosaic.version = 11 : i64} {
  func.func @_bn_stats_kernel(%arg0: i32, %arg1: i32, %arg2: memref<32x64xbf16, #tpu.memory_space<vmem>>, %arg3: memref<8x64xf32, #tpu.memory_space<vmem>>, %arg4: memref<8x64xf32, #tpu.memory_space<vmem>>) attributes {dimension_semantics = [#tpu.dimension_semantics<parallel>, #tpu.dimension_semantics<arbitrary>], iteration_bounds = array<i64: 1, 1>, scalar_prefetch = 0 : i64, scratch_operands = 0 : i64, tpu.core_type = #tpu.core_type<tc>, window_params = [{transform_indices = @transform_0, window_bounds = array<i64: 32, 64>}, {transform_indices = @transform_1, window_bounds = array<i64: 8, 64>}, {transform_indices = @transform_2, window_bounds = array<i64: 8, 64>}]} {
    %c0_i32 = arith.constant 0 : i32
    %0 = arith.cmpi eq, %arg1, %c0_i32 : i32
    %1 = arith.extui %0 : i1 to i32
    %c0_i32_0 = arith.constant 0 : i32
    %2 = arith.cmpi ne, %1, %c0_i32_0 : i32
    scf.if %2 {
      %cst_11 = arith.constant 0.000000e+00 : f32
      %15 = vector.broadcast %cst_11 : f32 to vector<8x64xf32>
      %c0_12 = arith.constant 0 : index
      %c0_13 = arith.constant 0 : index
      %16 = vector.load %arg3[%c0_12, %c0_13] : memref<8x64xf32, #tpu.memory_space<vmem>>, vector<8x64xf32>
      tpu.vector_store %arg3[%c0_12, %c0_13], %15 {strides = array<i32>} : memref<8x64xf32, #tpu.memory_space<vmem>>, vector<8x64xf32>,
      %cst_14 = arith.constant 0.000000e+00 : f32
      %17 = vector.broadcast %cst_14 : f32 to vector<8x64xf32>
      %c0_15 = arith.constant 0 : index
      %c0_16 = arith.constant 0 : index
      %18 = vector.load %arg4[%c0_15, %c0_16] : memref<8x64xf32, #tpu.memory_space<vmem>>, vector<8x64xf32>
      tpu.vector_store %arg4[%c0_15, %c0_16], %17 {strides = array<i32>} : memref<8x64xf32, #tpu.memory_space<vmem>>, vector<8x64xf32>,
    } else {
    }
    %c0 = arith.constant 0 : index
    %c0_1 = arith.constant 0 : index
    %3 = vector.load %arg2[%c0, %c0_1] : memref<32x64xbf16, #tpu.memory_space<vmem>>, vector<32x64xbf16>
    %4 = arith.extf %3 : vector<32x64xbf16> to vector<32x64xf32>
    %5 = vector.shape_cast %4 : vector<32x64xf32> to vector<4x8x64xf32>
    %c0_2 = arith.constant 0 : index
    %c0_3 = arith.constant 0 : index
    %6 = vector.load %arg3[%c0_2, %c0_3] : memref<8x64xf32, #tpu.memory_space<vmem>>, vector<8x64xf32>
    %cst = arith.constant dense<0.000000e+00> : vector<8x64xf32>
    %7 = vector.multi_reduction <add>, %5, %cst [0] : vector<4x8x64xf32> to vector<8x64xf32>
    %8 = arith.addf %6, %7 : vector<8x64xf32>
    %c0_4 = arith.constant 0 : index
    %c0_5 = arith.constant 0 : index
    %9 = vector.load %arg3[%c0_4, %c0_5] : memref<8x64xf32, #tpu.memory_space<vmem>>, vector<8x64xf32>
    tpu.vector_store %arg3[%c0_4, %c0_5], %8 {strides = array<i32>} : memref<8x64xf32, #tpu.memory_space<vmem>>, vector<8x64xf32>,
    %c0_6 = arith.constant 0 : index
    %c0_7 = arith.constant 0 : index
    %10 = vector.load %arg4[%c0_6, %c0_7] : memref<8x64xf32, #tpu.memory_space<vmem>>, vector<8x64xf32>
    %11 = arith.mulf %5, %5 : vector<4x8x64xf32>
    %cst_8 = arith.constant dense<0.000000e+00> : vector<8x64xf32>
    %12 = vector.multi_reduction <add>, %11, %cst_8 [0] : vector<4x8x64xf32> to vector<8x64xf32>
    %13 = arith.addf %10, %12 : vector<8x64xf32>
    %c0_9 = arith.constant 0 : index
    %c0_10 = arith.constant 0 : index
    %14 = vector.load %arg4[%c0_9, %c0_10] : memref<8x64xf32, #tpu.memory_space<vmem>>, vector<8x64xf32>
    tpu.vector_store %arg4[%c0_9, %c0_10], %13 {strides = array<i32>} : memref<8x64xf32, #tpu.memory_space<vmem>>, vector<8x64xf32>,
    return
  }
  func.func @transform_0(%arg0: i32, %arg1: i32) -> (i32, i32) {
    %c1_i32 = arith.constant 1 : i32
    %0 = arith.muli %arg0, %c1_i32 : i32
    %1 = arith.addi %0, %arg1 : i32
    %c0_i32 = arith.constant 0 : i32
    %c0_i32_0 = arith.constant 0 : i32
    return %1, %c0_i32 : i32, i32
  }
  func.func @transform_1(%arg0: i32, %arg1: i32) -> (i32, i32) {
    %c0_i32 = arith.constant 0 : i32
    %c0_i32_0 = arith.constant 0 : i32
    return %arg0, %c0_i32 : i32, i32
  }
  func.func @transform_2(%arg0: i32, %arg1: i32) -> (i32, i32) {
    %c0_i32 = arith.constant 0 : i32
    %c0_i32_0 = arith.constant 0 : i32
    return %arg0, %c0_i32 : i32, i32
  }
}

module attributes {stable_mosaic.version = 11 : i64} {
  func.func @_bn_lrelu_matmul_kernel(%arg0: i32, %arg1: memref<32x64xbf16, #tpu.memory_space<vmem>>, %arg2: memref<1x64xf32, #tpu.memory_space<vmem>>, %arg3: memref<1x64xf32, #tpu.memory_space<vmem>>, %arg4: memref<64x512xbf16, #tpu.memory_space<vmem>>, %arg5: memref<32x512xbf16, #tpu.memory_space<vmem>>) attributes {dimension_semantics = [#tpu.dimension_semantics<parallel>], iteration_bounds = array<i64: 1>, scalar_prefetch = 0 : i64, scratch_operands = 0 : i64, tpu.core_type = #tpu.core_type<tc>, window_params = [{transform_indices = @transform_0, window_bounds = array<i64: 32, 64>}, {pipeline_mode = #tpu.pipeline_mode<synchronous>, transform_indices = @transform_1, window_bounds = array<i64: 1, 64>}, {pipeline_mode = #tpu.pipeline_mode<synchronous>, transform_indices = @transform_2, window_bounds = array<i64: 1, 64>}, {pipeline_mode = #tpu.pipeline_mode<synchronous>, transform_indices = @transform_3, window_bounds = array<i64: 64, 512>}, {transform_indices = @transform_4, window_bounds = array<i64: 32, 512>}]} {
    %c0 = arith.constant 0 : index
    %c0_0 = arith.constant 0 : index
    %0 = vector.load %arg1[%c0, %c0_0] : memref<32x64xbf16, #tpu.memory_space<vmem>>, vector<32x64xbf16>
    %1 = arith.extf %0 : vector<32x64xbf16> to vector<32x64xf32>
    %c0_1 = arith.constant 0 : index
    %c0_2 = arith.constant 0 : index
    %2 = vector.load %arg2[%c0_1, %c0_2] : memref<1x64xf32, #tpu.memory_space<vmem>>, vector<1x64xf32>
    %3 = vector.broadcast %2 : vector<1x64xf32> to vector<32x64xf32>
    %4 = arith.mulf %1, %3 : vector<32x64xf32>
    %c0_3 = arith.constant 0 : index
    %c0_4 = arith.constant 0 : index
    %5 = vector.load %arg3[%c0_3, %c0_4] : memref<1x64xf32, #tpu.memory_space<vmem>>, vector<1x64xf32>
    %6 = vector.broadcast %5 : vector<1x64xf32> to vector<32x64xf32>
    %7 = arith.addf %4, %6 : vector<32x64xf32>
    %cst = arith.constant 0.000000e+00 : f32
    %8 = vector.broadcast %cst : f32 to vector<32x64xf32>
    %9 = arith.cmpf ogt, %7, %8 : vector<32x64xf32>
    %cst_5 = arith.constant 2.000000e-01 : f32
    %10 = vector.broadcast %cst_5 : f32 to vector<32x64xf32>
    %11 = arith.mulf %10, %7 : vector<32x64xf32>
    %12 = arith.select %9, %7, %11 : vector<32x64xi1>, vector<32x64xf32>
    %13 = arith.truncf %12 : vector<32x64xf32> to vector<32x64xbf16>
    %c0_6 = arith.constant 0 : index
    %c0_7 = arith.constant 0 : index
    %14 = vector.load %arg4[%c0_6, %c0_7] : memref<64x512xbf16, #tpu.memory_space<vmem>>, vector<64x512xbf16>
    %cst_8 = arith.constant dense<0.000000e+00> : vector<32x512xf32>
    %15 = tpu.matmul %13, %14, %cst_8 {dimension_numbers = #tpu.dot_dimension_numbers<[1], [0], [0], [1], [0, 0, 1, 1], [], []>} : vector<32x64xbf16>, vector<64x512xbf16>, vector<32x512xf32> -> vector<32x512xf32>
    %16 = arith.truncf %15 : vector<32x512xf32> to vector<32x512xbf16>
    %c0_9 = arith.constant 0 : index
    %c0_10 = arith.constant 0 : index
    %17 = vector.load %arg5[%c0_9, %c0_10] : memref<32x512xbf16, #tpu.memory_space<vmem>>, vector<32x512xbf16>
    tpu.vector_store %arg5[%c0_9, %c0_10], %16 {strides = array<i32>} : memref<32x512xbf16, #tpu.memory_space<vmem>>, vector<32x512xbf16>,
    return
  }
  func.func @transform_0(%arg0: i32) -> (i32, i32) {
    %c0_i32 = arith.constant 0 : i32
    %c0_i32_0 = arith.constant 0 : i32
    return %arg0, %c0_i32 : i32, i32
  }
  func.func @transform_1(%arg0: i32) -> (i32, i32) {
    %c0_i32 = arith.constant 0 : i32
    %c0_i32_0 = arith.constant 0 : i32
    %c0_i32_1 = arith.constant 0 : i32
    return %c0_i32, %c0_i32_0 : i32, i32
  }
  func.func @transform_2(%arg0: i32) -> (i32, i32) {
    %c0_i32 = arith.constant 0 : i32
    %c0_i32_0 = arith.constant 0 : i32
    %c0_i32_1 = arith.constant 0 : i32
    return %c0_i32, %c0_i32_0 : i32, i32
  }
  func.func @transform_3(%arg0: i32) -> (i32, i32) {
    %c0_i32 = arith.constant 0 : i32
    %c0_i32_0 = arith.constant 0 : i32
    %c0_i32_1 = arith.constant 0 : i32
    return %c0_i32, %c0_i32_0 : i32, i32
  }
  func.func @transform_4(%arg0: i32) -> (i32, i32) {
    %c0_i32 = arith.constant 0 : i32
    %c0_i32_0 = arith.constant 0 : i32
    return %arg0, %c0_i32 : i32, i32
  }
}

module attributes {stable_mosaic.version = 11 : i64} {
  func.func @_bn_stats_kernel(%arg0: i32, %arg1: i32, %arg2: memref<128x32xbf16, #tpu.memory_space<vmem>>, %arg3: memref<8x32xf32, #tpu.memory_space<vmem>>, %arg4: memref<8x32xf32, #tpu.memory_space<vmem>>) attributes {dimension_semantics = [#tpu.dimension_semantics<parallel>, #tpu.dimension_semantics<arbitrary>], iteration_bounds = array<i64: 1, 1>, scalar_prefetch = 0 : i64, scratch_operands = 0 : i64, tpu.core_type = #tpu.core_type<tc>, window_params = [{transform_indices = @transform_0, window_bounds = array<i64: 128, 32>}, {transform_indices = @transform_1, window_bounds = array<i64: 8, 32>}, {transform_indices = @transform_2, window_bounds = array<i64: 8, 32>}]} {
    %c0_i32 = arith.constant 0 : i32
    %0 = arith.cmpi eq, %arg1, %c0_i32 : i32
    %1 = arith.extui %0 : i1 to i32
    %c0_i32_0 = arith.constant 0 : i32
    %2 = arith.cmpi ne, %1, %c0_i32_0 : i32
    scf.if %2 {
      %cst_11 = arith.constant 0.000000e+00 : f32
      %15 = vector.broadcast %cst_11 : f32 to vector<8x32xf32>
      %c0_12 = arith.constant 0 : index
      %c0_13 = arith.constant 0 : index
      %16 = vector.load %arg3[%c0_12, %c0_13] : memref<8x32xf32, #tpu.memory_space<vmem>>, vector<8x32xf32>
      tpu.vector_store %arg3[%c0_12, %c0_13], %15 {strides = array<i32>} : memref<8x32xf32, #tpu.memory_space<vmem>>, vector<8x32xf32>,
      %cst_14 = arith.constant 0.000000e+00 : f32
      %17 = vector.broadcast %cst_14 : f32 to vector<8x32xf32>
      %c0_15 = arith.constant 0 : index
      %c0_16 = arith.constant 0 : index
      %18 = vector.load %arg4[%c0_15, %c0_16] : memref<8x32xf32, #tpu.memory_space<vmem>>, vector<8x32xf32>
      tpu.vector_store %arg4[%c0_15, %c0_16], %17 {strides = array<i32>} : memref<8x32xf32, #tpu.memory_space<vmem>>, vector<8x32xf32>,
    } else {
    }
    %c0 = arith.constant 0 : index
    %c0_1 = arith.constant 0 : index
    %3 = vector.load %arg2[%c0, %c0_1] : memref<128x32xbf16, #tpu.memory_space<vmem>>, vector<128x32xbf16>
    %4 = arith.extf %3 : vector<128x32xbf16> to vector<128x32xf32>
    %5 = vector.shape_cast %4 : vector<128x32xf32> to vector<16x8x32xf32>
    %c0_2 = arith.constant 0 : index
    %c0_3 = arith.constant 0 : index
    %6 = vector.load %arg3[%c0_2, %c0_3] : memref<8x32xf32, #tpu.memory_space<vmem>>, vector<8x32xf32>
    %cst = arith.constant dense<0.000000e+00> : vector<8x32xf32>
    %7 = vector.multi_reduction <add>, %5, %cst [0] : vector<16x8x32xf32> to vector<8x32xf32>
    %8 = arith.addf %6, %7 : vector<8x32xf32>
    %c0_4 = arith.constant 0 : index
    %c0_5 = arith.constant 0 : index
    %9 = vector.load %arg3[%c0_4, %c0_5] : memref<8x32xf32, #tpu.memory_space<vmem>>, vector<8x32xf32>
    tpu.vector_store %arg3[%c0_4, %c0_5], %8 {strides = array<i32>} : memref<8x32xf32, #tpu.memory_space<vmem>>, vector<8x32xf32>,
    %c0_6 = arith.constant 0 : index
    %c0_7 = arith.constant 0 : index
    %10 = vector.load %arg4[%c0_6, %c0_7] : memref<8x32xf32, #tpu.memory_space<vmem>>, vector<8x32xf32>
    %11 = arith.mulf %5, %5 : vector<16x8x32xf32>
    %cst_8 = arith.constant dense<0.000000e+00> : vector<8x32xf32>
    %12 = vector.multi_reduction <add>, %11, %cst_8 [0] : vector<16x8x32xf32> to vector<8x32xf32>
    %13 = arith.addf %10, %12 : vector<8x32xf32>
    %c0_9 = arith.constant 0 : index
    %c0_10 = arith.constant 0 : index
    %14 = vector.load %arg4[%c0_9, %c0_10] : memref<8x32xf32, #tpu.memory_space<vmem>>, vector<8x32xf32>
    tpu.vector_store %arg4[%c0_9, %c0_10], %13 {strides = array<i32>} : memref<8x32xf32, #tpu.memory_space<vmem>>, vector<8x32xf32>,
    return
  }
  func.func @transform_0(%arg0: i32, %arg1: i32) -> (i32, i32) {
    %c1_i32 = arith.constant 1 : i32
    %0 = arith.muli %arg0, %c1_i32 : i32
    %1 = arith.addi %0, %arg1 : i32
    %c0_i32 = arith.constant 0 : i32
    %c0_i32_0 = arith.constant 0 : i32
    return %1, %c0_i32 : i32, i32
  }
  func.func @transform_1(%arg0: i32, %arg1: i32) -> (i32, i32) {
    %c0_i32 = arith.constant 0 : i32
    %c0_i32_0 = arith.constant 0 : i32
    return %arg0, %c0_i32 : i32, i32
  }
  func.func @transform_2(%arg0: i32, %arg1: i32) -> (i32, i32) {
    %c0_i32 = arith.constant 0 : i32
    %c0_i32_0 = arith.constant 0 : i32
    return %arg0, %c0_i32 : i32, i32
  }
}

module attributes {stable_mosaic.version = 11 : i64} {
  func.func @_bn_lrelu_matmul_kernel(%arg0: i32, %arg1: memref<128x32xbf16, #tpu.memory_space<vmem>>, %arg2: memref<1x32xf32, #tpu.memory_space<vmem>>, %arg3: memref<1x32xf32, #tpu.memory_space<vmem>>, %arg4: memref<32x256xbf16, #tpu.memory_space<vmem>>, %arg5: memref<128x256xbf16, #tpu.memory_space<vmem>>) attributes {dimension_semantics = [#tpu.dimension_semantics<parallel>], iteration_bounds = array<i64: 1>, scalar_prefetch = 0 : i64, scratch_operands = 0 : i64, tpu.core_type = #tpu.core_type<tc>, window_params = [{transform_indices = @transform_0, window_bounds = array<i64: 128, 32>}, {pipeline_mode = #tpu.pipeline_mode<synchronous>, transform_indices = @transform_1, window_bounds = array<i64: 1, 32>}, {pipeline_mode = #tpu.pipeline_mode<synchronous>, transform_indices = @transform_2, window_bounds = array<i64: 1, 32>}, {pipeline_mode = #tpu.pipeline_mode<synchronous>, transform_indices = @transform_3, window_bounds = array<i64: 32, 256>}, {transform_indices = @transform_4, window_bounds = array<i64: 128, 256>}]} {
    %c0 = arith.constant 0 : index
    %c0_0 = arith.constant 0 : index
    %0 = vector.load %arg1[%c0, %c0_0] : memref<128x32xbf16, #tpu.memory_space<vmem>>, vector<128x32xbf16>
    %1 = arith.extf %0 : vector<128x32xbf16> to vector<128x32xf32>
    %c0_1 = arith.constant 0 : index
    %c0_2 = arith.constant 0 : index
    %2 = vector.load %arg2[%c0_1, %c0_2] : memref<1x32xf32, #tpu.memory_space<vmem>>, vector<1x32xf32>
    %3 = vector.broadcast %2 : vector<1x32xf32> to vector<128x32xf32>
    %4 = arith.mulf %1, %3 : vector<128x32xf32>
    %c0_3 = arith.constant 0 : index
    %c0_4 = arith.constant 0 : index
    %5 = vector.load %arg3[%c0_3, %c0_4] : memref<1x32xf32, #tpu.memory_space<vmem>>, vector<1x32xf32>
    %6 = vector.broadcast %5 : vector<1x32xf32> to vector<128x32xf32>
    %7 = arith.addf %4, %6 : vector<128x32xf32>
    %cst = arith.constant 0.000000e+00 : f32
    %8 = vector.broadcast %cst : f32 to vector<128x32xf32>
    %9 = arith.cmpf ogt, %7, %8 : vector<128x32xf32>
    %cst_5 = arith.constant 2.000000e-01 : f32
    %10 = vector.broadcast %cst_5 : f32 to vector<128x32xf32>
    %11 = arith.mulf %10, %7 : vector<128x32xf32>
    %12 = arith.select %9, %7, %11 : vector<128x32xi1>, vector<128x32xf32>
    %13 = arith.truncf %12 : vector<128x32xf32> to vector<128x32xbf16>
    %c0_6 = arith.constant 0 : index
    %c0_7 = arith.constant 0 : index
    %14 = vector.load %arg4[%c0_6, %c0_7] : memref<32x256xbf16, #tpu.memory_space<vmem>>, vector<32x256xbf16>
    %cst_8 = arith.constant dense<0.000000e+00> : vector<128x256xf32>
    %15 = tpu.matmul %13, %14, %cst_8 {dimension_numbers = #tpu.dot_dimension_numbers<[1], [0], [0], [1], [0, 0, 1, 1], [], []>} : vector<128x32xbf16>, vector<32x256xbf16>, vector<128x256xf32> -> vector<128x256xf32>
    %16 = arith.truncf %15 : vector<128x256xf32> to vector<128x256xbf16>
    %c0_9 = arith.constant 0 : index
    %c0_10 = arith.constant 0 : index
    %17 = vector.load %arg5[%c0_9, %c0_10] : memref<128x256xbf16, #tpu.memory_space<vmem>>, vector<128x256xbf16>
    tpu.vector_store %arg5[%c0_9, %c0_10], %16 {strides = array<i32>} : memref<128x256xbf16, #tpu.memory_space<vmem>>, vector<128x256xbf16>,
    return
  }
  func.func @transform_0(%arg0: i32) -> (i32, i32) {
    %c0_i32 = arith.constant 0 : i32
    %c0_i32_0 = arith.constant 0 : i32
    return %arg0, %c0_i32 : i32, i32
  }
  func.func @transform_1(%arg0: i32) -> (i32, i32) {
    %c0_i32 = arith.constant 0 : i32
    %c0_i32_0 = arith.constant 0 : i32
    %c0_i32_1 = arith.constant 0 : i32
    return %c0_i32, %c0_i32_0 : i32, i32
  }
  func.func @transform_2(%arg0: i32) -> (i32, i32) {
    %c0_i32 = arith.constant 0 : i32
    %c0_i32_0 = arith.constant 0 : i32
    %c0_i32_1 = arith.constant 0 : i32
    return %c0_i32, %c0_i32_0 : i32, i32
  }
  func.func @transform_3(%arg0: i32) -> (i32, i32) {
    %c0_i32 = arith.constant 0 : i32
    %c0_i32_0 = arith.constant 0 : i32
    %c0_i32_1 = arith.constant 0 : i32
    return %c0_i32, %c0_i32_0 : i32, i32
  }
  func.func @transform_4(%arg0: i32) -> (i32, i32) {
    %c0_i32 = arith.constant 0 : i32
    %c0_i32_0 = arith.constant 0 : i32
    return %arg0, %c0_i32 : i32, i32
  }
}

module attributes {stable_mosaic.version = 11 : i64} {
  func.func @_bn_stats_kernel(%arg0: i32, %arg1: i32, %arg2: memref<512x16xbf16, #tpu.memory_space<vmem>>, %arg3: memref<8x16xf32, #tpu.memory_space<vmem>>, %arg4: memref<8x16xf32, #tpu.memory_space<vmem>>) attributes {dimension_semantics = [#tpu.dimension_semantics<parallel>, #tpu.dimension_semantics<arbitrary>], iteration_bounds = array<i64: 1, 1>, scalar_prefetch = 0 : i64, scratch_operands = 0 : i64, tpu.core_type = #tpu.core_type<tc>, window_params = [{transform_indices = @transform_0, window_bounds = array<i64: 512, 16>}, {transform_indices = @transform_1, window_bounds = array<i64: 8, 16>}, {transform_indices = @transform_2, window_bounds = array<i64: 8, 16>}]} {
    %c0_i32 = arith.constant 0 : i32
    %0 = arith.cmpi eq, %arg1, %c0_i32 : i32
    %1 = arith.extui %0 : i1 to i32
    %c0_i32_0 = arith.constant 0 : i32
    %2 = arith.cmpi ne, %1, %c0_i32_0 : i32
    scf.if %2 {
      %cst_11 = arith.constant 0.000000e+00 : f32
      %15 = vector.broadcast %cst_11 : f32 to vector<8x16xf32>
      %c0_12 = arith.constant 0 : index
      %c0_13 = arith.constant 0 : index
      %16 = vector.load %arg3[%c0_12, %c0_13] : memref<8x16xf32, #tpu.memory_space<vmem>>, vector<8x16xf32>
      tpu.vector_store %arg3[%c0_12, %c0_13], %15 {strides = array<i32>} : memref<8x16xf32, #tpu.memory_space<vmem>>, vector<8x16xf32>,
      %cst_14 = arith.constant 0.000000e+00 : f32
      %17 = vector.broadcast %cst_14 : f32 to vector<8x16xf32>
      %c0_15 = arith.constant 0 : index
      %c0_16 = arith.constant 0 : index
      %18 = vector.load %arg4[%c0_15, %c0_16] : memref<8x16xf32, #tpu.memory_space<vmem>>, vector<8x16xf32>
      tpu.vector_store %arg4[%c0_15, %c0_16], %17 {strides = array<i32>} : memref<8x16xf32, #tpu.memory_space<vmem>>, vector<8x16xf32>,
    } else {
    }
    %c0 = arith.constant 0 : index
    %c0_1 = arith.constant 0 : index
    %3 = vector.load %arg2[%c0, %c0_1] : memref<512x16xbf16, #tpu.memory_space<vmem>>, vector<512x16xbf16>
    %4 = arith.extf %3 : vector<512x16xbf16> to vector<512x16xf32>
    %5 = vector.shape_cast %4 : vector<512x16xf32> to vector<64x8x16xf32>
    %c0_2 = arith.constant 0 : index
    %c0_3 = arith.constant 0 : index
    %6 = vector.load %arg3[%c0_2, %c0_3] : memref<8x16xf32, #tpu.memory_space<vmem>>, vector<8x16xf32>
    %cst = arith.constant dense<0.000000e+00> : vector<8x16xf32>
    %7 = vector.multi_reduction <add>, %5, %cst [0] : vector<64x8x16xf32> to vector<8x16xf32>
    %8 = arith.addf %6, %7 : vector<8x16xf32>
    %c0_4 = arith.constant 0 : index
    %c0_5 = arith.constant 0 : index
    %9 = vector.load %arg3[%c0_4, %c0_5] : memref<8x16xf32, #tpu.memory_space<vmem>>, vector<8x16xf32>
    tpu.vector_store %arg3[%c0_4, %c0_5], %8 {strides = array<i32>} : memref<8x16xf32, #tpu.memory_space<vmem>>, vector<8x16xf32>,
    %c0_6 = arith.constant 0 : index
    %c0_7 = arith.constant 0 : index
    %10 = vector.load %arg4[%c0_6, %c0_7] : memref<8x16xf32, #tpu.memory_space<vmem>>, vector<8x16xf32>
    %11 = arith.mulf %5, %5 : vector<64x8x16xf32>
    %cst_8 = arith.constant dense<0.000000e+00> : vector<8x16xf32>
    %12 = vector.multi_reduction <add>, %11, %cst_8 [0] : vector<64x8x16xf32> to vector<8x16xf32>
    %13 = arith.addf %10, %12 : vector<8x16xf32>
    %c0_9 = arith.constant 0 : index
    %c0_10 = arith.constant 0 : index
    %14 = vector.load %arg4[%c0_9, %c0_10] : memref<8x16xf32, #tpu.memory_space<vmem>>, vector<8x16xf32>
    tpu.vector_store %arg4[%c0_9, %c0_10], %13 {strides = array<i32>} : memref<8x16xf32, #tpu.memory_space<vmem>>, vector<8x16xf32>,
    return
  }
  func.func @transform_0(%arg0: i32, %arg1: i32) -> (i32, i32) {
    %c1_i32 = arith.constant 1 : i32
    %0 = arith.muli %arg0, %c1_i32 : i32
    %1 = arith.addi %0, %arg1 : i32
    %c0_i32 = arith.constant 0 : i32
    %c0_i32_0 = arith.constant 0 : i32
    return %1, %c0_i32 : i32, i32
  }
  func.func @transform_1(%arg0: i32, %arg1: i32) -> (i32, i32) {
    %c0_i32 = arith.constant 0 : i32
    %c0_i32_0 = arith.constant 0 : i32
    return %arg0, %c0_i32 : i32, i32
  }
  func.func @transform_2(%arg0: i32, %arg1: i32) -> (i32, i32) {
    %c0_i32 = arith.constant 0 : i32
    %c0_i32_0 = arith.constant 0 : i32
    return %arg0, %c0_i32 : i32, i32
  }
}

module attributes {stable_mosaic.version = 11 : i64} {
  func.func @_bn_lrelu_matmul_kernel(%arg0: i32, %arg1: memref<512x16xbf16, #tpu.memory_space<vmem>>, %arg2: memref<1x16xf32, #tpu.memory_space<vmem>>, %arg3: memref<1x16xf32, #tpu.memory_space<vmem>>, %arg4: memref<16x128xbf16, #tpu.memory_space<vmem>>, %arg5: memref<512x128xbf16, #tpu.memory_space<vmem>>) attributes {dimension_semantics = [#tpu.dimension_semantics<parallel>], iteration_bounds = array<i64: 1>, scalar_prefetch = 0 : i64, scratch_operands = 0 : i64, tpu.core_type = #tpu.core_type<tc>, window_params = [{transform_indices = @transform_0, window_bounds = array<i64: 512, 16>}, {pipeline_mode = #tpu.pipeline_mode<synchronous>, transform_indices = @transform_1, window_bounds = array<i64: 1, 16>}, {pipeline_mode = #tpu.pipeline_mode<synchronous>, transform_indices = @transform_2, window_bounds = array<i64: 1, 16>}, {pipeline_mode = #tpu.pipeline_mode<synchronous>, transform_indices = @transform_3, window_bounds = array<i64: 16, 128>}, {transform_indices = @transform_4, window_bounds = array<i64: 512, 128>}]} {
    %c0 = arith.constant 0 : index
    %c0_0 = arith.constant 0 : index
    %0 = vector.load %arg1[%c0, %c0_0] : memref<512x16xbf16, #tpu.memory_space<vmem>>, vector<512x16xbf16>
    %1 = arith.extf %0 : vector<512x16xbf16> to vector<512x16xf32>
    %c0_1 = arith.constant 0 : index
    %c0_2 = arith.constant 0 : index
    %2 = vector.load %arg2[%c0_1, %c0_2] : memref<1x16xf32, #tpu.memory_space<vmem>>, vector<1x16xf32>
    %3 = vector.broadcast %2 : vector<1x16xf32> to vector<512x16xf32>
    %4 = arith.mulf %1, %3 : vector<512x16xf32>
    %c0_3 = arith.constant 0 : index
    %c0_4 = arith.constant 0 : index
    %5 = vector.load %arg3[%c0_3, %c0_4] : memref<1x16xf32, #tpu.memory_space<vmem>>, vector<1x16xf32>
    %6 = vector.broadcast %5 : vector<1x16xf32> to vector<512x16xf32>
    %7 = arith.addf %4, %6 : vector<512x16xf32>
    %cst = arith.constant 0.000000e+00 : f32
    %8 = vector.broadcast %cst : f32 to vector<512x16xf32>
    %9 = arith.cmpf ogt, %7, %8 : vector<512x16xf32>
    %cst_5 = arith.constant 2.000000e-01 : f32
    %10 = vector.broadcast %cst_5 : f32 to vector<512x16xf32>
    %11 = arith.mulf %10, %7 : vector<512x16xf32>
    %12 = arith.select %9, %7, %11 : vector<512x16xi1>, vector<512x16xf32>
    %13 = arith.truncf %12 : vector<512x16xf32> to vector<512x16xbf16>
    %c0_6 = arith.constant 0 : index
    %c0_7 = arith.constant 0 : index
    %14 = vector.load %arg4[%c0_6, %c0_7] : memref<16x128xbf16, #tpu.memory_space<vmem>>, vector<16x128xbf16>
    %cst_8 = arith.constant dense<0.000000e+00> : vector<512x128xf32>
    %15 = tpu.matmul %13, %14, %cst_8 {dimension_numbers = #tpu.dot_dimension_numbers<[1], [0], [0], [1], [0, 0, 1, 1], [], []>} : vector<512x16xbf16>, vector<16x128xbf16>, vector<512x128xf32> -> vector<512x128xf32>
    %16 = arith.truncf %15 : vector<512x128xf32> to vector<512x128xbf16>
    %c0_9 = arith.constant 0 : index
    %c0_10 = arith.constant 0 : index
    %17 = vector.load %arg5[%c0_9, %c0_10] : memref<512x128xbf16, #tpu.memory_space<vmem>>, vector<512x128xbf16>
    tpu.vector_store %arg5[%c0_9, %c0_10], %16 {strides = array<i32>} : memref<512x128xbf16, #tpu.memory_space<vmem>>, vector<512x128xbf16>,
    return
  }
  func.func @transform_0(%arg0: i32) -> (i32, i32) {
    %c0_i32 = arith.constant 0 : i32
    %c0_i32_0 = arith.constant 0 : i32
    return %arg0, %c0_i32 : i32, i32
  }
  func.func @transform_1(%arg0: i32) -> (i32, i32) {
    %c0_i32 = arith.constant 0 : i32
    %c0_i32_0 = arith.constant 0 : i32
    %c0_i32_1 = arith.constant 0 : i32
    return %c0_i32, %c0_i32_0 : i32, i32
  }
  func.func @transform_2(%arg0: i32) -> (i32, i32) {
    %c0_i32 = arith.constant 0 : i32
    %c0_i32_0 = arith.constant 0 : i32
    %c0_i32_1 = arith.constant 0 : i32
    return %c0_i32, %c0_i32_0 : i32, i32
  }
  func.func @transform_3(%arg0: i32) -> (i32, i32) {
    %c0_i32 = arith.constant 0 : i32
    %c0_i32_0 = arith.constant 0 : i32
    %c0_i32_1 = arith.constant 0 : i32
    return %c0_i32, %c0_i32_0 : i32, i32
  }
  func.func @transform_4(%arg0: i32) -> (i32, i32) {
    %c0_i32 = arith.constant 0 : i32
    %c0_i32_0 = arith.constant 0 : i32
    return %arg0, %c0_i32 : i32, i32
  }
}

module attributes {stable_mosaic.version = 11 : i64} {
  func.func @_bn_stats_kernel(%arg0: i32, %arg1: i32, %arg2: memref<1024x8xbf16, #tpu.memory_space<vmem>>, %arg3: memref<8x8xf32, #tpu.memory_space<vmem>>, %arg4: memref<8x8xf32, #tpu.memory_space<vmem>>) attributes {dimension_semantics = [#tpu.dimension_semantics<parallel>, #tpu.dimension_semantics<arbitrary>], iteration_bounds = array<i64: 2, 1>, scalar_prefetch = 0 : i64, scratch_operands = 0 : i64, tpu.core_type = #tpu.core_type<tc>, window_params = [{transform_indices = @transform_0, window_bounds = array<i64: 1024, 8>}, {transform_indices = @transform_1, window_bounds = array<i64: 8, 8>}, {transform_indices = @transform_2, window_bounds = array<i64: 8, 8>}]} {
    %c0_i32 = arith.constant 0 : i32
    %0 = arith.cmpi eq, %arg1, %c0_i32 : i32
    %1 = arith.extui %0 : i1 to i32
    %c0_i32_0 = arith.constant 0 : i32
    %2 = arith.cmpi ne, %1, %c0_i32_0 : i32
    scf.if %2 {
      %cst_11 = arith.constant 0.000000e+00 : f32
      %15 = vector.broadcast %cst_11 : f32 to vector<8x8xf32>
      %c0_12 = arith.constant 0 : index
      %c0_13 = arith.constant 0 : index
      %16 = vector.load %arg3[%c0_12, %c0_13] : memref<8x8xf32, #tpu.memory_space<vmem>>, vector<8x8xf32>
      tpu.vector_store %arg3[%c0_12, %c0_13], %15 {strides = array<i32>} : memref<8x8xf32, #tpu.memory_space<vmem>>, vector<8x8xf32>,
      %cst_14 = arith.constant 0.000000e+00 : f32
      %17 = vector.broadcast %cst_14 : f32 to vector<8x8xf32>
      %c0_15 = arith.constant 0 : index
      %c0_16 = arith.constant 0 : index
      %18 = vector.load %arg4[%c0_15, %c0_16] : memref<8x8xf32, #tpu.memory_space<vmem>>, vector<8x8xf32>
      tpu.vector_store %arg4[%c0_15, %c0_16], %17 {strides = array<i32>} : memref<8x8xf32, #tpu.memory_space<vmem>>, vector<8x8xf32>,
    } else {
    }
    %c0 = arith.constant 0 : index
    %c0_1 = arith.constant 0 : index
    %3 = vector.load %arg2[%c0, %c0_1] : memref<1024x8xbf16, #tpu.memory_space<vmem>>, vector<1024x8xbf16>
    %4 = arith.extf %3 : vector<1024x8xbf16> to vector<1024x8xf32>
    %5 = vector.shape_cast %4 : vector<1024x8xf32> to vector<128x8x8xf32>
    %c0_2 = arith.constant 0 : index
    %c0_3 = arith.constant 0 : index
    %6 = vector.load %arg3[%c0_2, %c0_3] : memref<8x8xf32, #tpu.memory_space<vmem>>, vector<8x8xf32>
    %cst = arith.constant dense<0.000000e+00> : vector<8x8xf32>
    %7 = vector.multi_reduction <add>, %5, %cst [0] : vector<128x8x8xf32> to vector<8x8xf32>
    %8 = arith.addf %6, %7 : vector<8x8xf32>
    %c0_4 = arith.constant 0 : index
    %c0_5 = arith.constant 0 : index
    %9 = vector.load %arg3[%c0_4, %c0_5] : memref<8x8xf32, #tpu.memory_space<vmem>>, vector<8x8xf32>
    tpu.vector_store %arg3[%c0_4, %c0_5], %8 {strides = array<i32>} : memref<8x8xf32, #tpu.memory_space<vmem>>, vector<8x8xf32>,
    %c0_6 = arith.constant 0 : index
    %c0_7 = arith.constant 0 : index
    %10 = vector.load %arg4[%c0_6, %c0_7] : memref<8x8xf32, #tpu.memory_space<vmem>>, vector<8x8xf32>
    %11 = arith.mulf %5, %5 : vector<128x8x8xf32>
    %cst_8 = arith.constant dense<0.000000e+00> : vector<8x8xf32>
    %12 = vector.multi_reduction <add>, %11, %cst_8 [0] : vector<128x8x8xf32> to vector<8x8xf32>
    %13 = arith.addf %10, %12 : vector<8x8xf32>
    %c0_9 = arith.constant 0 : index
    %c0_10 = arith.constant 0 : index
    %14 = vector.load %arg4[%c0_9, %c0_10] : memref<8x8xf32, #tpu.memory_space<vmem>>, vector<8x8xf32>
    tpu.vector_store %arg4[%c0_9, %c0_10], %13 {strides = array<i32>} : memref<8x8xf32, #tpu.memory_space<vmem>>, vector<8x8xf32>,
    return
  }
  func.func @transform_0(%arg0: i32, %arg1: i32) -> (i32, i32) {
    %c1_i32 = arith.constant 1 : i32
    %0 = arith.muli %arg0, %c1_i32 : i32
    %1 = arith.addi %0, %arg1 : i32
    %c0_i32 = arith.constant 0 : i32
    %c0_i32_0 = arith.constant 0 : i32
    return %1, %c0_i32 : i32, i32
  }
  func.func @transform_1(%arg0: i32, %arg1: i32) -> (i32, i32) {
    %c0_i32 = arith.constant 0 : i32
    %c0_i32_0 = arith.constant 0 : i32
    return %arg0, %c0_i32 : i32, i32
  }
  func.func @transform_2(%arg0: i32, %arg1: i32) -> (i32, i32) {
    %c0_i32 = arith.constant 0 : i32
    %c0_i32_0 = arith.constant 0 : i32
    return %arg0, %c0_i32 : i32, i32
  }
}

module attributes {stable_mosaic.version = 11 : i64} {
  func.func @_bn_lrelu_matmul_kernel(%arg0: i32, %arg1: memref<1024x8xbf16, #tpu.memory_space<vmem>>, %arg2: memref<1x8xf32, #tpu.memory_space<vmem>>, %arg3: memref<1x8xf32, #tpu.memory_space<vmem>>, %arg4: memref<8x128xbf16, #tpu.memory_space<vmem>>, %arg5: memref<1024x128xbf16, #tpu.memory_space<vmem>>) attributes {dimension_semantics = [#tpu.dimension_semantics<parallel>], iteration_bounds = array<i64: 2>, scalar_prefetch = 0 : i64, scratch_operands = 0 : i64, tpu.core_type = #tpu.core_type<tc>, window_params = [{transform_indices = @transform_0, window_bounds = array<i64: 1024, 8>}, {pipeline_mode = #tpu.pipeline_mode<synchronous>, transform_indices = @transform_1, window_bounds = array<i64: 1, 8>}, {pipeline_mode = #tpu.pipeline_mode<synchronous>, transform_indices = @transform_2, window_bounds = array<i64: 1, 8>}, {pipeline_mode = #tpu.pipeline_mode<synchronous>, transform_indices = @transform_3, window_bounds = array<i64: 8, 128>}, {transform_indices = @transform_4, window_bounds = array<i64: 1024, 128>}]} {
    %c0 = arith.constant 0 : index
    %c0_0 = arith.constant 0 : index
    %0 = vector.load %arg1[%c0, %c0_0] : memref<1024x8xbf16, #tpu.memory_space<vmem>>, vector<1024x8xbf16>
    %1 = arith.extf %0 : vector<1024x8xbf16> to vector<1024x8xf32>
    %c0_1 = arith.constant 0 : index
    %c0_2 = arith.constant 0 : index
    %2 = vector.load %arg2[%c0_1, %c0_2] : memref<1x8xf32, #tpu.memory_space<vmem>>, vector<1x8xf32>
    %3 = vector.broadcast %2 : vector<1x8xf32> to vector<1024x8xf32>
    %4 = arith.mulf %1, %3 : vector<1024x8xf32>
    %c0_3 = arith.constant 0 : index
    %c0_4 = arith.constant 0 : index
    %5 = vector.load %arg3[%c0_3, %c0_4] : memref<1x8xf32, #tpu.memory_space<vmem>>, vector<1x8xf32>
    %6 = vector.broadcast %5 : vector<1x8xf32> to vector<1024x8xf32>
    %7 = arith.addf %4, %6 : vector<1024x8xf32>
    %cst = arith.constant 0.000000e+00 : f32
    %8 = vector.broadcast %cst : f32 to vector<1024x8xf32>
    %9 = arith.cmpf ogt, %7, %8 : vector<1024x8xf32>
    %cst_5 = arith.constant 2.000000e-01 : f32
    %10 = vector.broadcast %cst_5 : f32 to vector<1024x8xf32>
    %11 = arith.mulf %10, %7 : vector<1024x8xf32>
    %12 = arith.select %9, %7, %11 : vector<1024x8xi1>, vector<1024x8xf32>
    %13 = arith.truncf %12 : vector<1024x8xf32> to vector<1024x8xbf16>
    %c0_6 = arith.constant 0 : index
    %c0_7 = arith.constant 0 : index
    %14 = vector.load %arg4[%c0_6, %c0_7] : memref<8x128xbf16, #tpu.memory_space<vmem>>, vector<8x128xbf16>
    %cst_8 = arith.constant dense<0.000000e+00> : vector<1024x128xf32>
    %15 = tpu.matmul %13, %14, %cst_8 {dimension_numbers = #tpu.dot_dimension_numbers<[1], [0], [0], [1], [0, 0, 1, 1], [], []>} : vector<1024x8xbf16>, vector<8x128xbf16>, vector<1024x128xf32> -> vector<1024x128xf32>
    %16 = arith.truncf %15 : vector<1024x128xf32> to vector<1024x128xbf16>
    %c0_9 = arith.constant 0 : index
    %c0_10 = arith.constant 0 : index
    %17 = vector.load %arg5[%c0_9, %c0_10] : memref<1024x128xbf16, #tpu.memory_space<vmem>>, vector<1024x128xbf16>
    tpu.vector_store %arg5[%c0_9, %c0_10], %16 {strides = array<i32>} : memref<1024x128xbf16, #tpu.memory_space<vmem>>, vector<1024x128xbf16>,
    return
  }
  func.func @transform_0(%arg0: i32) -> (i32, i32) {
    %c0_i32 = arith.constant 0 : i32
    %c0_i32_0 = arith.constant 0 : i32
    return %arg0, %c0_i32 : i32, i32
  }
  func.func @transform_1(%arg0: i32) -> (i32, i32) {
    %c0_i32 = arith.constant 0 : i32
    %c0_i32_0 = arith.constant 0 : i32
    %c0_i32_1 = arith.constant 0 : i32
    return %c0_i32, %c0_i32_0 : i32, i32
  }
  func.func @transform_2(%arg0: i32) -> (i32, i32) {
    %c0_i32 = arith.constant 0 : i32
    %c0_i32_0 = arith.constant 0 : i32
    %c0_i32_1 = arith.constant 0 : i32
    return %c0_i32, %c0_i32_0 : i32, i32
  }
  func.func @transform_3(%arg0: i32) -> (i32, i32) {
    %c0_i32 = arith.constant 0 : i32
    %c0_i32_0 = arith.constant 0 : i32
    %c0_i32_1 = arith.constant 0 : i32
    return %c0_i32, %c0_i32_0 : i32, i32
  }
  func.func @transform_4(%arg0: i32) -> (i32, i32) {
    %c0_i32 = arith.constant 0 : i32
    %c0_i32_0 = arith.constant 0 : i32
    return %arg0, %c0_i32 : i32, i32
  }
}

</mosaic_0001>

<bundles_post_ra>
// kernel: _lambda_.9
= control target key start
LH: loop header
LB: loop body
LE: loop exit
PB: predicated region body
PF: predicated region fallthrough
CT: control target
= control target key end

     0   :  { %v334_v3 = vmov 0   ;;  %vm67_vm0 = vcmask 130048   ;;  %s401_s1 = inlined_call_operand.vmem [shape: bf16[16,1024], index: 1, kind: input, shape index: {}]   ;;  %s402_s0 = inlined_call_operand.vmem [shape: bf16[16,16], index: 0, kind: input, shape index: {}]   ;;  %s403_s2 = inlined_call_operand.vmem [shape: bf16[16,1024], index: 2, kind: output, shape index: {}]  }
   0x1   :  { %v14_v0 = vld [vmem:[%s401_s1] sm:$0xff]  ;;  %v15_v2 = vld [vmem:[%s401_s1 + $0x8] sm:$0xff]  ;;  %103 = vmatprep.mubr.bf16.mxu0 %v334_v3  ;;  %146 = vmatprep.mubr.bf16.mxu1 %v334_v3  ;;  %v16_v9 = vld [vmem:[%s401_s1 + $0x10] sm:$0xff] }
   0x2   :  { %v18_v1 = vld [vmem:[%s401_s1 + $0x20] sm:$0xff]  ;;  %v19_v5 = vld [vmem:[%s401_s1 + $0x28] sm:$0xff]  ;;  %v20_v10 = vld [vmem:[%s401_s1 + $0x30] sm:$0xff] }
   0x3   :  { %v305_v4 = vcombine.high %v14_v0, %v18_v1  ;;  %v304_v6 = vcombine.low %v14_v0, %v18_v1  ;;  %v307_v7 = vcombine.high %v15_v2, %v19_v5  ;;  %v306_v8 = vcombine.low %v15_v2, %v19_v5  ;;  %v333_v11 = vld [vmem:[%s402_s0] sm:$0xff]   ;;  %v17_v13 = vld [vmem:[%s401_s1 + $0x18] sm:$0xff] }
   0x4   :  { %v309_v12 = vcombine.high %v16_v9, %v20_v10  ;;  %v21_v14 = vld [vmem:[%s401_s1 + $0x38] sm:$0xff]  ;;  %v308_v15 = vcombine.low %v16_v9, %v20_v10 }
   0x5   :  { %71 = vmatprep.subr.bf16.mxu0 %v305_v4  ;;  %114 = vmatprep.subr.bf16.mxu1 %v307_v7  ;;  %v311_v16 = vcombine.high %v17_v13, %v21_v14  ;;  %v310_v17 = vcombine.low %v17_v13, %v21_v14 }
   0x6   :  { %72 = vmatpush1.bf16.msra.mxu0 %v304_v6  ;;  %115 = vmatpush1.bf16.msra.mxu1 %v306_v8 }
   0x7   :  { %157 = vmatprep.subr.bf16.mxu0 %v309_v12  ;;  %200 = vmatprep.subr.bf16.mxu1 %v311_v16 }
   0x9   :  { %312 = vmatmul.mubr.msk.bf16.vlgmr.msra.gmra.mrb[0].mxu0 %vm67_vm0, %v333_v11  ;;  %313 = vmatmul.mubr.msk.bf16.vlgmr.msra.gmra.mrb[0].mxu1 %vm67_vm0, %v333_v11 }
   0xa   :  { %158 = vmatpush1.bf16.msra.mxu0 %v308_v15  ;;  %201 = vmatpush1.bf16.msra.mxu1 %v310_v17 }
   0xb   :  { %189 = vmatprep.mubr.bf16.mxu0 %v334_v3  ;;  %232 = vmatprep.mubr.bf16.mxu1 %v334_v3 }
  0x11   :  { %314 = vmatmul.mubr.msk.bf16.vlgmr.msra.gmra.mrb[4].mxu0 %vm67_vm0, %v333_v11  ;;  %315 = vmatmul.mubr.msk.bf16.vlgmr.msra.gmra.mrb[4].mxu1 %vm67_vm0, %v333_v11 }
  0xdc   :  { %v105_v18 = vpop.f32.mrb[0].mxu0  ;;  %v148_v19 = vpop.f32.mrb[0].mxu1 }
  0xdd   :  { %v107_v20 = vpop.f32.mrb[1].mxu0  ;;  %v150_v22 = vpop.f32.mrb[1].mxu1 }
  0xde   :  { %v324_v21 = vpack.c.bf16 %v107_v20, %v105_v18  ;;  %v109_v23 = vpop.f32.mrb[2].mxu0  ;;  %v325_v24 = vpack.c.bf16 %v150_v22, %v148_v19  ;;  %v152_v25 = vpop.f32.mrb[2].mxu1 }
  0xdf   :  { %v111_v26 = vpop.f32.mrb[3].mxu0  ;;  %v154_v28 = vpop.f32.mrb[3].mxu1 }
  0xe0   :  { %291 = vst [vmem:[%s403_s2] sm:$0xff] %v324_v21  ;;  %v328_v27 = vpack.c.bf16 %v111_v26, %v109_v23  ;;  %292 = vst [vmem:[%s403_s2 + $0x8] sm:$0xff] %v325_v24  ;;  %v329_v29 = vpack.c.bf16 %v154_v28, %v152_v25 }
  0xe2   :  { %295 = vst [vmem:[%s403_s2 + $0x20] sm:$0xff] %v328_v27  ;;  %296 = vst [vmem:[%s403_s2 + $0x28] sm:$0xff] %v329_v29 }
  0xe4   :  { %v191_v30 = vpop.f32.mrb[4].mxu0  ;;  %v234_v31 = vpop.f32.mrb[4].mxu1 }
  0xe5   :  { %v193_v32 = vpop.f32.mrb[5].mxu0  ;;  %v236_v34 = vpop.f32.mrb[5].mxu1 }
  0xe6   :  { %v326_v33 = vpack.c.bf16 %v193_v32, %v191_v30  ;;  %v195_v35 = vpop.f32.mrb[6].mxu0  ;;  %v327_v36 = vpack.c.bf16 %v236_v34, %v234_v31  ;;  %v238_v37 = vpop.f32.mrb[6].mxu1 }
  0xe7   :  { %v197_v38 = vpop.f32.mrb[7].mxu0  ;;  %v240_v40 = vpop.f32.mrb[7].mxu1 }
  0xe8   :  { %293 = vst [vmem:[%s403_s2 + $0x10] sm:$0xff] %v326_v33  ;;  %v330_v39 = vpack.c.bf16 %v197_v38, %v195_v35  ;;  %294 = vst [vmem:[%s403_s2 + $0x18] sm:$0xff] %v327_v36  ;;  %v331_v41 = vpack.c.bf16 %v240_v40, %v238_v37 }
  0xea   :  { %297 = vst [vmem:[%s403_s2 + $0x30] sm:$0xff] %v330_v39  ;;  %298 = vst [vmem:[%s403_s2 + $0x38] sm:$0xff] %v331_v41 }

// kernel: _lambda_.10
= control target key start
LH: loop header
LB: loop body
LE: loop exit
PB: predicated region body
PF: predicated region fallthrough
CT: control target
= control target key end

     0   :  { %vm36_vm0 = vcmask 523264   ;;  %v96_v0 = vmov 0.0   ;;  %s148_s0 = inlined_call_operand.vmem [shape: bf16[32,64], index: 0, kind: input, shape index: {}]   ;;  %s149_s1 = inlined_call_operand.vmem [shape: f32[8,64], index: 1, kind: output, shape index: {0}]   ;;  %s150_s2 = inlined_call_operand.vmem [shape: f32[8,64], index: 2, kind: output, shape index: {1}]  }
   0x1   :  { %37 = vst.msk [vmem:[%s149_s1] sm:$0xff] %vm36_vm0, %v96_v0  ;;  %v87_v1 = vld [vmem:[%s148_s0] sm:$0xff]   ;;  %v94_v2 = vld [vmem:[%s148_s0 + $0x8] sm:$0xff]   ;;  %38 = vst.msk [vmem:[%s150_s2] sm:$0xff] %vm36_vm0, %v96_v0 }
   0x2   :  { %v88_v3 = vunpack.c.l.bf16 %v87_v1  ;;  %v89_v4 = vunpack.c.h.bf16 %v87_v1  ;;  %v92_v5 = vunpack.c.l.bf16 %v94_v2  ;;  %v93_v6 = vunpack.c.h.bf16 %v94_v2 }
   0x4   :  { %v49_v7 = vsel %vm36_vm0, %v88_v3, 0.0  ;;  %v50_v8 = vsel %vm36_vm0, %v89_v4, 0.0  ;;  %v52_v9 = vsel %vm36_vm0, %v92_v5, 0.0  ;;  %v59_v11 = vmul.f32 %v88_v3, %v88_v3 }
   0x5   :  { %v51_v10 = vadd.f32 %v50_v8, %v49_v7  ;;  %v60_v12 = vmul.f32 %v89_v4, %v89_v4  ;;  %v61_v13 = vmul.f32 %v92_v5, %v92_v5  ;;  %v54_v14 = vsel %vm36_vm0, %v93_v6, 0.0 }
   0x6   :  { %v62_v15 = vmul.f32 %v93_v6, %v93_v6  ;;  %v63_v17 = vsel %vm36_vm0, %v59_v11, 0.0 }
   0x7   :  { %v53_v16 = vadd.f32 %v52_v9, %v51_v10  ;;  %v64_v18 = vsel %vm36_vm0, %v60_v12, 0.0  ;;  %v66_v19 = vsel %vm36_vm0, %v61_v13, 0.0 }
   0x8   :  { %v47_v20 = vld [vmem:[%s149_s1] sm:$0xff]  ;;  %v65_v21 = vadd.f32 %v64_v18, %v63_v17  ;;  %v68_v23 = vsel %vm36_vm0, %v62_v15, 0.0 }
   0x9   :  { %v55_v22 = vadd.f32 %v54_v14, %v53_v16  ;;  %v58_v26 = vld [vmem:[%s150_s2] sm:$0xff] }
   0xa   :  { %v67_v24 = vadd.f32 %v66_v19, %v65_v21 }
   0xb   :  { %v56_v25 = vadd.f32 %v55_v22, %v47_v20 }
   0xc   :  { %v69_v27 = vadd.f32 %v68_v23, %v67_v24 }
   0xd   :  { %57 = vst.msk [vmem:[%s149_s1] sm:$0xff] %vm36_vm0, %v56_v25 }
   0xe   :  { %v70_v28 = vadd.f32 %v69_v27, %v58_v26 }
  0x10   :  { %71 = vst.msk [vmem:[%s150_s2] sm:$0xff] %vm36_vm0, %v70_v28 }

// kernel: _lambda_.11
= control target key start
LH: loop header
LB: loop body
LE: loop exit
PB: predicated region body
PF: predicated region fallthrough
CT: control target
= control target key end

     0   :  { %v403_v1 = vmov 0   ;;  %vm158_vm2 = vcmask 523264   ;;  %s521_s3 = inlined_call_operand.vmem [shape: bf16[64,512], index: 3, kind: input, shape index: {}]   ;;  %s522_s0 = inlined_call_operand.vmem [shape: bf16[32,64], index: 0, kind: input, shape index: {}]   ;;  %s523_s1 = inlined_call_operand.vmem [shape: f32[1,64], index: 1, kind: input, shape index: {}]   ;;  %s524_s2 = inlined_call_operand.vmem [shape: f32[1,64], index: 2, kind: input, shape index: {}]   ;;  %s525_s4 = inlined_call_operand.vmem [shape: bf16[32,512], index: 4, kind: output, shape index: {}]  }
   0x1   :  { %v379_v0 = vld [vmem:[%s521_s3 + $0x4] ss:$16 sps:$4 sm:$0xff]   ;;  %197 = vmatprep.mubr.bf16.mxu0 %v403_v1  ;;  %250 = vmatprep.mubr.bf16.mxu1 %v403_v1  ;;  %v381_v2 = vld [vmem:[%s521_s3 + $0xc] ss:$16 sps:$4 sm:$0xff]   ;;  %v383_v3 = vld [vmem:[%s521_s3] ss:$16 sps:$4 sm:$0xff]  }
   0x2   :  { %165 = vmatprep.subr.bf16.mxu0 %v379_v0  ;;  %v384_v4 = vld [vmem:[%s521_s3 + $0x8] ss:$16 sps:$4 sm:$0xff]   ;;  %218 = vmatprep.subr.bf16.mxu1 %v381_v2  ;;  %v385_v5 = vld [vmem:[%s521_s3 + $0x24] ss:$16 sps:$4 sm:$0xff]   ;;  %v387_v6 = vld [vmem:[%s521_s3 + $0x2c] ss:$16 sps:$4 sm:$0xff]  }
   0x3   :  { %166 = vmatpush1.bf16.msra.mxu0 %v383_v3  ;;  %219 = vmatpush1.bf16.msra.mxu1 %v384_v4  ;;  %v389_v7 = vld [vmem:[%s521_s3 + $0x20] ss:$16 sps:$4 sm:$0xff]   ;;  %v390_v8 = vld [vmem:[%s521_s3 + $0x28] ss:$16 sps:$4 sm:$0xff]   ;;  %v391_v9 = vld [vmem:[%s521_s3 + $0x44] ss:$16 sps:$4 sm:$0xff]  }
   0x4   :  { %167 = vmatprep.subr.bf16.mxu0 %v385_v5  ;;  %220 = vmatprep.subr.bf16.mxu1 %v387_v6  ;;  %v393_v10 = vld [vmem:[%s521_s3 + $0x4c] ss:$16 sps:$4 sm:$0xff]   ;;  %v395_v11 = vld [vmem:[%s521_s3 + $0x40] ss:$16 sps:$4 sm:$0xff]   ;;  %v396_v12 = vld [vmem:[%s521_s3 + $0x48] ss:$16 sps:$4 sm:$0xff]  }
   0x5   :  { %v397_v13 = vld [vmem:[%s521_s3 + $0x64] ss:$16 sps:$4 sm:$0xff]   ;;  %v399_v14 = vld [vmem:[%s521_s3 + $0x6c] ss:$16 sps:$4 sm:$0xff]   ;;  %v331_v18 = vld [vmem:[%s523_s1] ss:$0 sm:$0xff] }
   0x6   :  { %v370_v15 = vld [vmem:[%s522_s0] sm:$0xff]   ;;  %v377_v19 = vld [vmem:[%s522_s0 + $0x8] sm:$0xff]  }
   0x7   :  { %168 = vmatpush1.bf16.msra.mxu0 %v389_v7  ;;  %221 = vmatpush1.bf16.msra.mxu1 %v390_v8  ;;  %v371_v16 = vunpack.c.l.bf16 %v370_v15  ;;  %v372_v17 = vunpack.c.h.bf16 %v370_v15  ;;  %v401_v20 = vld [vmem:[%s521_s3 + $0x60] ss:$16 sps:$4 sm:$0xff]   ;;  %v402_v21 = vld [vmem:[%s521_s3 + $0x68] ss:$16 sps:$4 sm:$0xff]   ;;  %v375_v23 = vunpack.c.l.bf16 %v377_v19  ;;  %v376_v24 = vunpack.c.h.bf16 %v377_v19 }
   0x8   :  { %169 = vmatprep.subr.bf16.mxu0 %v391_v9  ;;  %222 = vmatprep.subr.bf16.mxu1 %v393_v10  ;;  %v332_v22 = vld [vmem:[%s524_s2] ss:$0 sm:$0xff] }
   0x9   :  { %v33_v25 = vmul.f32 %v371_v16, %v331_v18  ;;  %v34_v26 = vmul.f32 %v372_v17, %v331_v18  ;;  %v35_v27 = vmul.f32 %v375_v23, %v331_v18  ;;  %v36_v28 = vmul.f32 %v376_v24, %v331_v18 }
   0xb   :  { %170 = vmatpush1.bf16.msra.mxu0 %v395_v11  ;;  %223 = vmatpush1.bf16.msra.mxu1 %v396_v12  ;;  %v44_v29 = vadd.f32 %v332_v22, %v33_v25  ;;  %v45_v30 = vadd.f32 %v332_v22, %v34_v26  ;;  %v46_v31 = vadd.f32 %v332_v22, %v35_v27 }
   0xc   :  { %171 = vmatprep.subr.bf16.mxu0 %v397_v13  ;;  %224 = vmatprep.subr.bf16.mxu1 %v399_v14  ;;  %v47_v32 = vadd.f32 %v332_v22, %v36_v28 }
   0xd   :  { %vm48_vm0 = vcmp.gt.f32.partialorder %v44_v29, 0.0  ;;  %vm49_vm1 = vcmp.gt.f32.partialorder %v45_v30, 0.0  ;;  %v52_v33 = vmul.f32 0.2, %v44_v29  ;;  %v53_v34 = vmul.f32 0.2, %v45_v30 }
   0xe   :  { %v54_v37 = vmul.f32 0.2, %v46_v31  ;;  %v55_v38 = vmul.f32 0.2, %v47_v32  ;;  %vm50_vm3 = vcmp.gt.f32.partialorder %v46_v31, 0.0  ;;  %vm51_vm4 = vcmp.gt.f32.partialorder %v47_v32, 0.0 }
   0xf   :  { %172 = vmatpush1.bf16.msra.mxu0 %v401_v20  ;;  %225 = vmatpush1.bf16.msra.mxu1 %v402_v21  ;;  %v56_v35 = vsel %vm48_vm0, %v44_v29, %v52_v33  ;;  %v57_v36 = vsel %vm49_vm1, %v45_v30, %v53_v34 }
  0x10   :  { %v60_v39 = vpack.c.bf16 %v57_v36, %v56_v35  ;;  %v58_v40 = vsel %vm50_vm3, %v46_v31, %v54_v37  ;;  %v59_v41 = vsel %vm51_vm4, %v47_v32, %v55_v38 }
  0x11   :  { %v61_v42 = vpack.c.bf16 %v59_v41, %v58_v40 }
  0x12   :  { %349 = vmatmul.mubr.msk.bf16.vlgmr.msra.gmra.mrb[0].mxu0 %vm158_vm2, %v60_v39  ;;  %351 = vmatmul.mubr.msk.bf16.vlgmr.msra.gmra.mrb[0].mxu1 %vm158_vm2, %v60_v39 }
  0x13   :  { %207 = vmatprep.mubr.bf16.mxu0 %v403_v1  ;;  %260 = vmatprep.mubr.bf16.mxu1 %v403_v1 }
  0x1a   :  { %350 = vmatmul.mubr.msk.bf16.gmra.mrb[4].mxu0 %vm158_vm2, %v61_v42  ;;  %352 = vmatmul.mubr.msk.bf16.gmra.mrb[4].mxu1 %vm158_vm2, %v61_v42 }
  0xe5   :  { %v199_v43 = vpop.f32.mrb[0].mxu0  ;;  %v252_v44 = vpop.f32.mrb[0].mxu1 }
  0xe6   :  { %v201_v45 = vpop.f32.mrb[1].mxu0  ;;  %v254_v46 = vpop.f32.mrb[1].mxu1 }
  0xe7   :  { %v361_v47 = vpack.c.bf16 %v201_v45, %v199_v43  ;;  %v362_v48 = vpack.c.bf16 %v254_v46, %v252_v44  ;;  %v203_v49 = vpop.f32.mrb[2].mxu0  ;;  %v256_v50 = vpop.f32.mrb[2].mxu1 }
  0xe8   :  { %v205_v51 = vpop.f32.mrb[3].mxu0  ;;  %v258_v52 = vpop.f32.mrb[3].mxu1 }
  0xe9   :  { %319 = vst [vmem:[%s525_s4] sm:$0xff] %v361_v47  ;;  %320 = vst [vmem:[%s525_s4 + $0x8] sm:$0xff] %v362_v48  ;;  %v363_v53 = vpack.c.bf16 %v205_v51, %v203_v49  ;;  %v364_v54 = vpack.c.bf16 %v258_v52, %v256_v50 }
  0xeb   :  { %321 = vst [vmem:[%s525_s4 + $0x10] sm:$0xff] %v363_v53  ;;  %322 = vst [vmem:[%s525_s4 + $0x18] sm:$0xff] %v364_v54 }
  0xed   :  { %v209_v55 = vpop.f32.mrb[4].mxu0  ;;  %v262_v56 = vpop.f32.mrb[4].mxu1 }
  0xee   :  { %v211_v57 = vpop.f32.mrb[5].mxu0  ;;  %v264_v58 = vpop.f32.mrb[5].mxu1 }
  0xef   :  { %v365_v59 = vpack.c.bf16 %v211_v57, %v209_v55  ;;  %v366_v60 = vpack.c.bf16 %v264_v58, %v262_v56  ;;  %v213_v61 = vpop.f32.mrb[6].mxu0  ;;  %v266_v62 = vpop.f32.mrb[6].mxu1 }
  0xf0   :  { %v215_v63 = vpop.f32.mrb[7].mxu0  ;;  %v268_v0 = vpop.f32.mrb[7].mxu1 }
  0xf1   :  { %323 = vst [vmem:[%s525_s4 + $0x20] sm:$0xff] %v365_v59  ;;  %324 = vst [vmem:[%s525_s4 + $0x28] sm:$0xff] %v366_v60  ;;  %v367_v1 = vpack.c.bf16 %v215_v63, %v213_v61  ;;  %v368_v2 = vpack.c.bf16 %v268_v0, %v266_v62 }
  0xf3   :  { %325 = vst [vmem:[%s525_s4 + $0x30] sm:$0xff] %v367_v1  ;;  %326 = vst [vmem:[%s525_s4 + $0x38] sm:$0xff] %v368_v2 }

// kernel: _lambda_.12
= control target key start
LH: loop header
LB: loop body
LE: loop exit
PB: predicated region body
PF: predicated region fallthrough
CT: control target
= control target key end

     0   :  { %vm36_vm0 = vcmask 261120   ;;  %v210_v0 = vmov 0.0   ;;  %s304_s0 = inlined_call_operand.vmem [shape: bf16[128,32], index: 0, kind: input, shape index: {}]   ;;  %s305_s1 = inlined_call_operand.vmem [shape: f32[8,32], index: 1, kind: output, shape index: {0}]   ;;  %s306_s2 = inlined_call_operand.vmem [shape: f32[8,32], index: 2, kind: output, shape index: {1}]  }
   0x1   :  { %37 = vst.msk [vmem:[%s305_s1] sm:$0xff] %vm36_vm0, %v210_v0  ;;  %v171_v1 = vld [vmem:[%s304_s0] sm:$0xff]   ;;  %v202_v2 = vld [vmem:[%s304_s0 + $0x8] sm:$0xff]   ;;  %38 = vst.msk [vmem:[%s306_s2] sm:$0xff] %vm36_vm0, %v210_v0 }
   0x2   :  { %v172_v3 = vunpack.c.l.bf16 %v171_v1  ;;  %v173_v4 = vunpack.c.h.bf16 %v171_v1  ;;  %v176_v5 = vunpack.c.l.bf16 %v202_v2  ;;  %v203_v6 = vld [vmem:[%s304_s0 + $0x10] sm:$0xff]   ;;  %v177_v7 = vunpack.c.h.bf16 %v202_v2  ;;  %v204_v14 = vld [vmem:[%s304_s0 + $0x18] sm:$0xff]   ;;  %v205_v24 = vld [vmem:[%s304_s0 + $0x20] sm:$0xff]  }
   0x3   :  { %v180_v12 = vunpack.c.l.bf16 %v203_v6  ;;  %v181_v16 = vunpack.c.h.bf16 %v203_v6  ;;  %v184_v22 = vunpack.c.l.bf16 %v204_v14  ;;  %v185_v27 = vunpack.c.h.bf16 %v204_v14  ;;  %v206_v37 = vld [vmem:[%s304_s0 + $0x28] sm:$0xff]   ;;  %v207_v50 = vld [vmem:[%s304_s0 + $0x30] sm:$0xff]   ;;  %v208_v63 = vld [vmem:[%s304_s0 + $0x38] sm:$0xff]  }
   0x4   :  { %v73_v8 = vsel %vm36_vm0, %v172_v3, 0.0  ;;  %v74_v9 = vsel %vm36_vm0, %v173_v4, 0.0  ;;  %v76_v10 = vsel %vm36_vm0, %v176_v5, 0.0  ;;  %v78_v13 = vsel %vm36_vm0, %v177_v7, 0.0 }
   0x5   :  { %v75_v11 = vadd.f32 %v74_v9, %v73_v8  ;;  %v80_v17 = vsel %vm36_vm0, %v180_v12, 0.0  ;;  %v107_v19 = vmul.f32 %v172_v3, %v172_v3  ;;  %v108_v20 = vmul.f32 %v173_v4, %v173_v4 }
   0x6   :  { %v109_v21 = vmul.f32 %v176_v5, %v176_v5  ;;  %v82_v23 = vsel %vm36_vm0, %v181_v16, 0.0  ;;  %v110_v26 = vmul.f32 %v177_v7, %v177_v7  ;;  %v84_v28 = vsel %vm36_vm0, %v184_v22, 0.0 }
   0x7   :  { %v77_v15 = vadd.f32 %v76_v10, %v75_v11  ;;  %v111_v29 = vmul.f32 %v180_v12, %v180_v12  ;;  %v123_v31 = vsel %vm36_vm0, %v107_v19, 0.0  ;;  %v124_v32 = vsel %vm36_vm0, %v108_v20, 0.0 }
   0x8   :  { %v126_v33 = vsel %vm36_vm0, %v109_v21, 0.0  ;;  %v188_v34 = vunpack.c.l.bf16 %v205_v24  ;;  %v86_v35 = vsel %vm36_vm0, %v185_v27, 0.0  ;;  %v125_v36 = vadd.f32 %v124_v32, %v123_v31 }
   0x9   :  { %v79_v18 = vadd.f32 %v78_v13, %v77_v15  ;;  %v112_v39 = vmul.f32 %v181_v16, %v181_v16  ;;  %v128_v40 = vsel %vm36_vm0, %v110_v26, 0.0  ;;  %v189_v41 = vunpack.c.h.bf16 %v205_v24  ;;  %v71_v26 = vld [vmem:[%s305_s1] sm:$0xff] }
   0xa   :  { %v88_v42 = vsel %vm36_vm0, %v188_v34, 0.0  ;;  %v127_v43 = vadd.f32 %v126_v33, %v125_v36  ;;  %v113_v45 = vmul.f32 %v184_v22, %v184_v22  ;;  %v130_v46 = vsel %vm36_vm0, %v111_v29, 0.0 }
   0xb   :  { %v81_v25 = vadd.f32 %v80_v17, %v79_v18  ;;  %v192_v47 = vunpack.c.l.bf16 %v206_v37  ;;  %v90_v48 = vsel %vm36_vm0, %v189_v41, 0.0  ;;  %v114_v52 = vmul.f32 %v185_v27, %v185_v27 }
   0xc   :  { %v129_v49 = vadd.f32 %v128_v40, %v127_v43  ;;  %v132_v53 = vsel %vm36_vm0, %v112_v39, 0.0  ;;  %v193_v54 = vunpack.c.h.bf16 %v206_v37  ;;  %v115_v58 = vmul.f32 %v188_v34, %v188_v34  ;;  %v106_v40 = vld [vmem:[%s306_s2] sm:$0xff] }
   0xd   :  { %v83_v30 = vadd.f32 %v82_v23, %v81_v25  ;;  %v92_v55 = vsel %vm36_vm0, %v192_v47, 0.0  ;;  %v134_v59 = vsel %vm36_vm0, %v113_v45, 0.0  ;;  %v196_v60 = vunpack.c.l.bf16 %v207_v50 }
   0xe   :  { %v131_v56 = vadd.f32 %v130_v46, %v129_v49  ;;  %v94_v61 = vsel %vm36_vm0, %v193_v54, 0.0  ;;  %v116_v1 = vmul.f32 %v189_v41, %v189_v41  ;;  %v136_v2 = vsel %vm36_vm0, %v114_v52, 0.0 }
   0xf   :  { %v85_v38 = vadd.f32 %v84_v28, %v83_v30  ;;  %v197_v3 = vunpack.c.h.bf16 %v207_v50  ;;  %v96_v4 = vsel %vm36_vm0, %v196_v60, 0.0  ;;  %v117_v7 = vmul.f32 %v192_v47, %v192_v47 }
  0x10   :  { %v133_v62 = vadd.f32 %v132_v53, %v131_v56  ;;  %v138_v8 = vsel %vm36_vm0, %v115_v58, 0.0  ;;  %v200_v9 = vunpack.c.l.bf16 %v208_v63  ;;  %v118_v13 = vmul.f32 %v193_v54, %v193_v54 }
  0x11   :  { %v87_v44 = vadd.f32 %v86_v35, %v85_v38  ;;  %v98_v10 = vsel %vm36_vm0, %v197_v3, 0.0  ;;  %v140_v14 = vsel %vm36_vm0, %v116_v1, 0.0  ;;  %v201_v15 = vunpack.c.h.bf16 %v208_v63 }
  0x12   :  { %v135_v5 = vadd.f32 %v134_v59, %v133_v62  ;;  %v100_v16 = vsel %vm36_vm0, %v200_v9, 0.0  ;;  %v119_v19 = vmul.f32 %v196_v60, %v196_v60  ;;  %v142_v20 = vsel %vm36_vm0, %v117_v7, 0.0 }
  0x13   :  { %v89_v51 = vadd.f32 %v88_v42, %v87_v44  ;;  %v102_v21 = vsel %vm36_vm0, %v201_v15, 0.0  ;;  %v120_v24 = vmul.f32 %v197_v3, %v197_v3  ;;  %v144_v25 = vsel %vm36_vm0, %v118_v13, 0.0 }
  0x14   :  { %v137_v11 = vadd.f32 %v136_v2, %v135_v5  ;;  %v121_v29 = vmul.f32 %v200_v9, %v200_v9  ;;  %v146_v30 = vsel %vm36_vm0, %v119_v19, 0.0  ;;  %v122_v33 = vmul.f32 %v201_v15, %v201_v15 }
  0x15   :  { %v91_v57 = vadd.f32 %v90_v48, %v89_v51  ;;  %v148_v34 = vsel %vm36_vm0, %v120_v24, 0.0 }
  0x16   :  { %v139_v17 = vadd.f32 %v138_v8, %v137_v11  ;;  %v150_v36 = vsel %vm36_vm0, %v121_v29, 0.0  ;;  %v152_v38 = vsel %vm36_vm0, %v122_v33, 0.0 }
  0x17   :  { %v93_v0 = vadd.f32 %v92_v55, %v91_v57 }
  0x18   :  { %v141_v22 = vadd.f32 %v140_v14, %v139_v17 }
  0x19   :  { %v95_v6 = vadd.f32 %v94_v61, %v93_v0 }
  0x1a   :  { %v143_v27 = vadd.f32 %v142_v20, %v141_v22 }
  0x1b   :  { %v97_v12 = vadd.f32 %v96_v4, %v95_v6 }
  0x1c   :  { %v145_v31 = vadd.f32 %v144_v25, %v143_v27 }
  0x1d   :  { %v99_v18 = vadd.f32 %v98_v10, %v97_v12 }
  0x1e   :  { %v147_v35 = vadd.f32 %v146_v30, %v145_v31 }
  0x1f   :  { %v101_v23 = vadd.f32 %v100_v16, %v99_v18 }
  0x20   :  { %v149_v37 = vadd.f32 %v148_v34, %v147_v35 }
  0x21   :  { %v103_v28 = vadd.f32 %v102_v21, %v101_v23 }
  0x22   :  { %v151_v39 = vadd.f32 %v150_v36, %v149_v37 }
  0x23   :  { %v104_v32 = vadd.f32 %v103_v28, %v71_v26 }
  0x24   :  { %v153_v41 = vadd.f32 %v152_v38, %v151_v39 }
  0x25   :  { %105 = vst.msk [vmem:[%s305_s1] sm:$0xff] %vm36_vm0, %v104_v32 }
  0x26   :  { %v154_v42 = vadd.f32 %v153_v41, %v106_v40 }
  0x28   :  { %155 = vst.msk [vmem:[%s306_s2] sm:$0xff] %vm36_vm0, %v154_v42 }

// kernel: _lambda_.13
= control target key start
LH: loop header
LB: loop body
LE: loop exit
PB: predicated region body
PF: predicated region fallthrough
CT: control target
= control target key end

     0   :  { %v526_v1 = vmov 0   ;;  %vm176_vm0 = vcmask 261120   ;;  %s694_s3 = inlined_call_operand.vmem [shape: bf16[32,256], index: 3, kind: input, shape index: {}]   ;;  %s695_s0 = inlined_call_operand.vmem [shape: bf16[128,32], index: 0, kind: input, shape index: {}]   ;;  %s696_s1 = inlined_call_operand.vmem [shape: f32[1,32], index: 1, kind: input, shape index: {}]   ;;  %s697_s2 = inlined_call_operand.vmem [shape: f32[1,32], index: 2, kind: input, shape index: {}]   ;;  %s698_s4 = inlined_call_operand.vmem [shape: bf16[128,256], index: 4, kind: output, shape index: {}]  }
   0x1   :  { %v520_v0 = vld [vmem:[%s694_s3 + $0x4] ss:$8 sps:$4 sm:$0xff]   ;;  %233 = vmatprep.mubr.bf16.mxu0 %v526_v1  ;;  %273 = vmatprep.mubr.bf16.mxu1 %v526_v1  ;;  %v522_v2 = vld [vmem:[%s694_s3] ss:$8 sps:$4 sm:$0xff]   ;;  %v523_v3 = vld [vmem:[%s694_s3 + $0x14] ss:$8 sps:$4 sm:$0xff]  }
   0x2   :  { %201 = vmatprep.subr.bf16.mxu0 %v520_v0  ;;  %515 = vmatprep.subr.bf16.mxu1 %v520_v0  ;;  %v525_v4 = vld [vmem:[%s694_s3 + $0x10] ss:$8 sps:$4 sm:$0xff]   ;;  %v477_v5 = vld [vmem:[%s695_s0] sm:$0xff]   ;;  %v508_v13 = vld [vmem:[%s695_s0 + $0x8] sm:$0xff]  }
   0x3   :  { %202 = vmatpush1.bf16.msra.mxu0 %v522_v2  ;;  %517 = vmatpush1.bf16.msra.mxu1 %v522_v2  ;;  %v478_v6 = vunpack.c.l.bf16 %v477_v5  ;;  %v479_v7 = vunpack.c.h.bf16 %v477_v5  ;;  %v572_v8 = vld [vmem:[%s696_s1] ss:$0 sm:$0xff]  ;;  %v512_v14 = vld [vmem:[%s695_s0 + $0x28] sm:$0xff]   ;;  %v509_v15 = vld [vmem:[%s695_s0 + $0x10] sm:$0xff]   ;;  %v482_v18 = vunpack.c.l.bf16 %v508_v13  ;;  %v483_v19 = vunpack.c.h.bf16 %v508_v13 }
   0x4   :  { %v577_v9 = vld [vmem:[%s697_s2] ss:$0 sm:$0xff]  ;;  %203 = vmatprep.subr.bf16.mxu0 %v523_v3  ;;  %516 = vmatprep.subr.bf16.mxu1 %v523_v3  ;;  %v498_v22 = vunpack.c.l.bf16 %v512_v14  ;;  %v499_v23 = vunpack.c.h.bf16 %v512_v14  ;;  %v486_v27 = vunpack.c.l.bf16 %v509_v15  ;;  %v513_v44 = vld [vmem:[%s695_s0 + $0x30] sm:$0xff]   ;;  %v487_v50 = vunpack.c.h.bf16 %v509_v15  ;;  %v510_v55 = vld [vmem:[%s695_s0 + $0x18] sm:$0xff]  }
   0x5   :  { %v511_v10 = vld [vmem:[%s695_s0 + $0x20] sm:$0xff]   ;;  %v57_v16 = vmul.f32 %v478_v6, %v572_v8  ;;  %v58_v17 = vmul.f32 %v479_v7, %v572_v8  ;;  %v59_v26 = vmul.f32 %v482_v18, %v572_v8  ;;  %v60_v30 = vmul.f32 %v483_v19, %v572_v8 }
   0x6   :  { %v494_v11 = vunpack.c.l.bf16 %v511_v10  ;;  %v495_v12 = vunpack.c.h.bf16 %v511_v10  ;;  %v67_v31 = vmul.f32 %v498_v22, %v572_v8  ;;  %v68_v43 = vmul.f32 %v499_v23, %v572_v8 }
   0x7   :  { %204 = vmatpush1.bf16.msra.mxu0 %v525_v4  ;;  %518 = vmatpush1.bf16.msra.mxu1 %v525_v4  ;;  %v80_v24 = vadd.f32 %v577_v9, %v57_v16  ;;  %v81_v25 = vadd.f32 %v577_v9, %v58_v17  ;;  %v82_v38 = vadd.f32 %v577_v9, %v59_v26  ;;  %v502_v53 = vunpack.c.l.bf16 %v513_v44 }
   0x8   :  { %v65_v20 = vmul.f32 %v494_v11, %v572_v8  ;;  %v66_v21 = vmul.f32 %v495_v12, %v572_v8  ;;  %v83_v39 = vadd.f32 %v577_v9, %v60_v30  ;;  %v90_v48 = vadd.f32 %v577_v9, %v67_v31  ;;  %v514_v12 = vld [vmem:[%s695_s0 + $0x38] sm:$0xff]  }
   0x9   :  { %vm96_vm1 = vcmp.gt.f32.partialorder %v80_v24, 0.0  ;;  %vm97_vm2 = vcmp.gt.f32.partialorder %v81_v25, 0.0  ;;  %v112_v32 = vmul.f32 0.2, %v80_v24  ;;  %v113_v33 = vmul.f32 0.2, %v81_v25 }
   0xa   :  { %v88_v28 = vadd.f32 %v577_v9, %v65_v20  ;;  %v89_v29 = vadd.f32 %v577_v9, %v66_v21  ;;  %vm98_vm5 = vcmp.gt.f32.partialorder %v82_v38, 0.0  ;;  %vm99_vm6 = vcmp.gt.f32.partialorder %v83_v39, 0.0 }
   0xb   :  { %v128_v36 = vsel %vm96_vm1, %v80_v24, %v112_v32  ;;  %v129_v37 = vsel %vm97_vm2, %v81_v25, %v113_v33  ;;  %v114_v46 = vmul.f32 0.2, %v82_v38  ;;  %v115_v47 = vmul.f32 0.2, %v83_v39 }
   0xc   :  { %vm104_vm3 = vcmp.gt.f32.partialorder %v88_v28, 0.0  ;;  %vm105_vm4 = vcmp.gt.f32.partialorder %v89_v29, 0.0  ;;  %v120_v34 = vmul.f32 0.2, %v88_v28  ;;  %v121_v35 = vmul.f32 0.2, %v89_v29 }
   0xd   :  { %v144_v40 = vpack.c.bf16 %v129_v37, %v128_v36  ;;  %v91_v49 = vadd.f32 %v577_v9, %v68_v43  ;;  %v130_v51 = vsel %vm98_vm5, %v82_v38, %v114_v46  ;;  %v61_v52 = vmul.f32 %v486_v27, %v572_v8 }
   0xe   :  { %v136_v41 = vsel %vm104_vm3, %v88_v28, %v120_v34  ;;  %v137_v42 = vsel %vm105_vm4, %v89_v29, %v121_v35  ;;  %v503_v54 = vunpack.c.h.bf16 %v513_v44  ;;  %v131_v56 = vsel %vm99_vm6, %v83_v39, %v115_v47 }
   0xf   :  { %v148_v45 = vpack.c.bf16 %v137_v42, %v136_v41  ;;  %436 = vmatmul.mubr.msk.bf16.vlgmr.msra.gmra.mrb[0].mxu0 %vm176_vm0, %v144_v40  ;;  %vm106_vm7 = vcmp.gt.f32.partialorder %v90_v48, 0.0  ;;  %vm107_vm8 = vcmp.gt.f32.partialorder %v91_v49, 0.0  ;;  %v122_v57 = vmul.f32 0.2, %v90_v48 }
  0x10   :  { %243 = vmatprep.mubr.bf16.mxu0 %v526_v1  ;;  %v145_v58 = vpack.c.bf16 %v131_v56, %v130_v51  ;;  %v123_v59 = vmul.f32 0.2, %v91_v49  ;;  %v62_v60 = vmul.f32 %v487_v50, %v572_v8  ;;  %v84_v61 = vadd.f32 %v577_v9, %v61_v52 }
  0x11   :  { %440 = vmatmul.mubr.msk.bf16.vlgmr.msra.gmra.mrb[0].mxu1 %vm176_vm0, %v148_v45  ;;  %v138_v62 = vsel %vm106_vm7, %v90_v48, %v122_v57  ;;  %v69_v63 = vmul.f32 %v502_v53, %v572_v8  ;;  %v70_v0 = vmul.f32 %v503_v54, %v572_v8  ;;  %v490_v2 = vunpack.c.l.bf16 %v510_v55 }
  0x12   :  { %283 = vmatprep.mubr.bf16.mxu1 %v526_v1  ;;  %v139_v3 = vsel %vm107_vm8, %v91_v49, %v123_v59  ;;  %v85_v4 = vadd.f32 %v577_v9, %v62_v60  ;;  %vm100_vm9 = vcmp.gt.f32.partialorder %v84_v61, 0.0  ;;  %v116_v5 = vmul.f32 0.2, %v84_v61 }
  0x13   :  { %v149_v6 = vpack.c.bf16 %v139_v3, %v138_v62  ;;  %v92_v7 = vadd.f32 %v577_v9, %v69_v63  ;;  %v93_v10 = vadd.f32 %v577_v9, %v70_v0  ;;  %v491_v11 = vunpack.c.h.bf16 %v510_v55 }
  0x14   :  { %vm101_vm10 = vcmp.gt.f32.partialorder %v85_v4, 0.0  ;;  %v117_v13 = vmul.f32 0.2, %v85_v4  ;;  %v132_v14 = vsel %vm100_vm9, %v84_v61, %v116_v5  ;;  %v63_v15 = vmul.f32 %v490_v2, %v572_v8 }
  0x15   :  { %vm108_vm11 = vcmp.gt.f32.partialorder %v92_v7, 0.0  ;;  %vm109_vm12 = vcmp.gt.f32.partialorder %v93_v10, 0.0  ;;  %v124_v16 = vmul.f32 0.2, %v92_v7  ;;  %v125_v17 = vmul.f32 0.2, %v93_v10 }
  0x16   :  { %v133_v18 = vsel %vm101_vm10, %v85_v4, %v117_v13  ;;  %v64_v19 = vmul.f32 %v491_v11, %v572_v8  ;;  %v86_v20 = vadd.f32 %v577_v9, %v63_v15  ;;  %v506_v21 = vunpack.c.l.bf16 %v514_v12 }
  0x17   :  { %437 = vmatmul.mubr.msk.bf16.gmra.mrb[4].mxu0 %vm176_vm0, %v145_v58  ;;  %v140_v22 = vsel %vm108_vm11, %v92_v7, %v124_v16  ;;  %v141_v23 = vsel %vm109_vm12, %v93_v10, %v125_v17  ;;  %v507_v24 = vunpack.c.h.bf16 %v514_v12  ;;  %v146_v26 = vpack.c.bf16 %v133_v18, %v132_v14 }
  0x18   :  { %253 = vmatprep.mubr.bf16.mxu0 %v526_v1  ;;  %v87_v25 = vadd.f32 %v577_v9, %v64_v19  ;;  %v71_v27 = vmul.f32 %v506_v21, %v572_v8  ;;  %v150_v29 = vpack.c.bf16 %v141_v23, %v140_v22  ;;  %v118_v30 = vmul.f32 0.2, %v86_v20 }
  0x19   :  { %441 = vmatmul.mubr.msk.bf16.gmra.mrb[4].mxu1 %vm176_vm0, %v149_v6  ;;  %v72_v28 = vmul.f32 %v507_v24, %v572_v8  ;;  %vm102_vm13 = vcmp.gt.f32.partialorder %v86_v20, 0.0 }
  0x1a   :  { %293 = vmatprep.mubr.bf16.mxu1 %v526_v1  ;;  %v119_v31 = vmul.f32 0.2, %v87_v25  ;;  %vm103_vm14 = vcmp.gt.f32.partialorder %v87_v25, 0.0  ;;  %v94_v32 = vadd.f32 %v577_v9, %v71_v27  ;;  %v134_v35 = vsel %vm102_vm13, %v86_v20, %v118_v30 }
  0x1b   :  { %v95_v33 = vadd.f32 %v577_v9, %v72_v28 }
  0x1c   :  { %vm110_vm15 = vcmp.gt.f32.partialorder %v94_v32, 0.0  ;;  %v126_v34 = vmul.f32 0.2, %v94_v32  ;;  %v135_v8 = vsel %vm103_vm14, %v87_v25, %v119_v31 }
  0x1d   :  { %vm111_vm1 = vcmp.gt.f32.partialorder %v95_v33, 0.0  ;;  %v127_v36 = vmul.f32 0.2, %v95_v33  ;;  %v147_v39 = vpack.c.bf16 %v135_v8, %v134_v35 }
  0x1e   :  { %v142_v37 = vsel %vm110_vm15, %v94_v32, %v126_v34 }
  0x1f   :  { %438 = vmatmul.mubr.msk.bf16.gmra.mrb[8].mxu0 %vm176_vm0, %v146_v26  ;;  %v143_v38 = vsel %vm111_vm1, %v95_v33, %v127_v36 }
  0x20   :  { %263 = vmatprep.mubr.bf16.mxu0 %v526_v1  ;;  %v151_v40 = vpack.c.bf16 %v143_v38, %v142_v37 }
  0x21   :  { %442 = vmatmul.mubr.msk.bf16.gmra.mrb[8].mxu1 %vm176_vm0, %v150_v29 }
  0x22   :  { %303 = vmatprep.mubr.bf16.mxu1 %v526_v1 }
  0x27   :  { %439 = vmatmul.mubr.msk.bf16.gmra.mrb[12].mxu0 %vm176_vm0, %v147_v39 }
  0x29   :  { %443 = vmatmul.mubr.msk.bf16.gmra.mrb[12].mxu1 %vm176_vm0, %v151_v40 }
  0xe2   :  { %v235_v9 = vpop.f32.mrb[0].mxu0 }
  0xe3   :  { %v237_v42 = vpop.f32.mrb[1].mxu0 }
  0xe4   :  { %v275_v41 = vpop.f32.mrb[0].mxu1  ;;  %v460_v43 = vpack.c.bf16 %v237_v42, %v235_v9  ;;  %v239_v45 = vpop.f32.mrb[2].mxu0 }
  0xe5   :  { %v277_v44 = vpop.f32.mrb[1].mxu1  ;;  %v241_v48 = vpop.f32.mrb[3].mxu0 }
  0xe6   :  { %v468_v46 = vpack.c.bf16 %v277_v44, %v275_v41  ;;  %v279_v47 = vpop.f32.mrb[2].mxu1  ;;  %410 = vst [vmem:[%s698_s4] sm:$0xff] %v460_v43  ;;  %v461_v1 = vpack.c.bf16 %v241_v48, %v239_v45 }
  0xe7   :  { %v281_v49 = vpop.f32.mrb[3].mxu1 }
  0xe8   :  { %418 = vst [vmem:[%s698_s4 + $0x40] sm:$0xff] %v468_v46  ;;  %v469_v50 = vpack.c.bf16 %v281_v49, %v279_v47  ;;  %411 = vst [vmem:[%s698_s4 + $0x8] sm:$0xff] %v461_v1 }
  0xea   :  { %419 = vst [vmem:[%s698_s4 + $0x48] sm:$0xff] %v469_v50  ;;  %v245_v51 = vpop.f32.mrb[4].mxu0 }
  0xeb   :  { %v247_v53 = vpop.f32.mrb[5].mxu0 }
  0xec   :  { %v285_v52 = vpop.f32.mrb[4].mxu1  ;;  %v462_v54 = vpack.c.bf16 %v247_v53, %v245_v51  ;;  %v249_v56 = vpop.f32.mrb[6].mxu0 }
  0xed   :  { %v287_v55 = vpop.f32.mrb[5].mxu1  ;;  %v251_v59 = vpop.f32.mrb[7].mxu0 }
  0xee   :  { %v470_v57 = vpack.c.bf16 %v287_v55, %v285_v52  ;;  %v289_v58 = vpop.f32.mrb[6].mxu1  ;;  %412 = vst [vmem:[%s698_s4 + $0x10] sm:$0xff] %v462_v54  ;;  %v463_v60 = vpack.c.bf16 %v251_v59, %v249_v56 }
  0xef   :  { %v291_v61 = vpop.f32.mrb[7].mxu1 }
  0xf0   :  { %420 = vst [vmem:[%s698_s4 + $0x50] sm:$0xff] %v470_v57  ;;  %v471_v62 = vpack.c.bf16 %v291_v61, %v289_v58  ;;  %413 = vst [vmem:[%s698_s4 + $0x18] sm:$0xff] %v463_v60 }
  0xf2   :  { %421 = vst [vmem:[%s698_s4 + $0x58] sm:$0xff] %v471_v62  ;;  %v255_v63 = vpop.f32.mrb[8].mxu0 }
  0xf3   :  { %v257_v2 = vpop.f32.mrb[9].mxu0 }
  0xf4   :  { %v295_v0 = vpop.f32.mrb[8].mxu1  ;;  %v464_v3 = vpack.c.bf16 %v257_v2, %v255_v63  ;;  %v259_v5 = vpop.f32.mrb[10].mxu0 }
  0xf5   :  { %v297_v4 = vpop.f32.mrb[9].mxu1  ;;  %v261_v10 = vpop.f32.mrb[11].mxu0 }
  0xf6   :  { %v472_v6 = vpack.c.bf16 %v297_v4, %v295_v0  ;;  %v299_v7 = vpop.f32.mrb[10].mxu1  ;;  %414 = vst [vmem:[%s698_s4 + $0x20] sm:$0xff] %v464_v3  ;;  %v465_v11 = vpack.c.bf16 %v261_v10, %v259_v5 }
  0xf7   :  { %v301_v12 = vpop.f32.mrb[11].mxu1 }
  0xf8   :  { %422 = vst [vmem:[%s698_s4 + $0x60] sm:$0xff] %v472_v6  ;;  %v473_v13 = vpack.c.bf16 %v301_v12, %v299_v7  ;;  %415 = vst [vmem:[%s698_s4 + $0x28] sm:$0xff] %v465_v11 }
  0xfa   :  { %423 = vst [vmem:[%s698_s4 + $0x68] sm:$0xff] %v473_v13  ;;  %v265_v14 = vpop.f32.mrb[12].mxu0 }
  0xfb   :  { %v267_v16 = vpop.f32.mrb[13].mxu0 }
  0xfc   :  { %v305_v15 = vpop.f32.mrb[12].mxu1  ;;  %v466_v17 = vpack.c.bf16 %v267_v16, %v265_v14  ;;  %v269_v19 = vpop.f32.mrb[14].mxu0 }
  0xfd   :  { %v307_v18 = vpop.f32.mrb[13].mxu1  ;;  %v271_v22 = vpop.f32.mrb[15].mxu0 }
  0xfe   :  { %v474_v20 = vpack.c.bf16 %v307_v18, %v305_v15  ;;  %v309_v21 = vpop.f32.mrb[14].mxu1  ;;  %416 = vst [vmem:[%s698_s4 + $0x30] sm:$0xff] %v466_v17  ;;  %v467_v23 = vpack.c.bf16 %v271_v22, %v269_v19 }
  0xff   :  { %v311_v24 = vpop.f32.mrb[15].mxu1 }
 0x100   :  { %424 = vst [vmem:[%s698_s4 + $0x70] sm:$0xff] %v474_v20  ;;  %v475_v25 = vpack.c.bf16 %v311_v24, %v309_v21  ;;  %417 = vst [vmem:[%s698_s4 + $0x38] sm:$0xff] %v467_v23 }
 0x102   :  { %425 = vst [vmem:[%s698_s4 + $0x78] sm:$0xff] %v475_v25 }

// kernel: _lambda_.14
= control target key start
LH: loop header
LB: loop body
LE: loop exit
PB: predicated region body
PF: predicated region fallthrough
CT: control target
= control target key end

     0   :  { %vm36_vm0 = vcmask 130048   ;;  %v666_v0 = vmov 0.0   ;;  %s1243_s1 = inlined_call_operand.vmem [shape: f32[8,16], index: 1, kind: output, shape index: {0}]   ;;  %s1244_s2 = inlined_call_operand.vmem [shape: f32[8,16], index: 2, kind: output, shape index: {1}]   ;;  %s1245_s0 = inlined_call_operand.vmem [shape: bf16[512,16], index: 0, kind: input, shape index: {}]  }
   0x1   :  { %37 = vst.msk [vmem:[%s1243_s1] sm:$0xff] %vm36_vm0, %v666_v0  ;;  %38 = vst.msk [vmem:[%s1244_s2] sm:$0xff] %vm36_vm0, %v666_v0  ;;  %v507_v1 = vld [vmem:[%s1245_s0] sm:$0xff]   ;;  %v634_v2 = vld [vmem:[%s1245_s0 + $0x8] sm:$0xff]  }
   0x2   :  { %v696_v3 = vunpack.c.l.bf16 %v507_v1  ;;  %v698_v4 = vunpack.c.h.bf16 %v507_v1  ;;  %v700_v5 = vunpack.c.l.bf16 %v634_v2  ;;  %v635_v6 = vld [vmem:[%s1245_s0 + $0x10] sm:$0xff]   ;;  %v705_v7 = vunpack.c.h.bf16 %v634_v2  ;;  %v636_v14 = vld [vmem:[%s1245_s0 + $0x18] sm:$0xff]   ;;  %v637_v21 = vld [vmem:[%s1245_s0 + $0x20] sm:$0xff]  }
   0x3   :  { %v713_v12 = vunpack.c.l.bf16 %v635_v6  ;;  %v720_v16 = vunpack.c.h.bf16 %v635_v6  ;;  %v724_v19 = vunpack.c.l.bf16 %v636_v14  ;;  %v731_v23 = vunpack.c.h.bf16 %v636_v14  ;;  %v638_v28 = vld [vmem:[%s1245_s0 + $0x28] sm:$0xff]   ;;  %v639_v35 = vld [vmem:[%s1245_s0 + $0x30] sm:$0xff]   ;;  %v640_v42 = vld [vmem:[%s1245_s0 + $0x38] sm:$0xff]  }
   0x4   :  { %v169_v8 = vsel %vm36_vm0, %v696_v3, 0.0  ;;  %v170_v9 = vsel %vm36_vm0, %v698_v4, 0.0  ;;  %v172_v10 = vsel %vm36_vm0, %v700_v5, 0.0  ;;  %v174_v13 = vsel %vm36_vm0, %v705_v7, 0.0  ;;  %v641_v49 = vld [vmem:[%s1245_s0 + $0x40] sm:$0xff]   ;;  %v642_v56 = vld [vmem:[%s1245_s0 + $0x48] sm:$0xff]  }
   0x5   :  { %v171_v11 = vadd.f32 %v170_v9, %v169_v8  ;;  %v176_v17 = vsel %vm36_vm0, %v713_v12, 0.0  ;;  %v178_v20 = vsel %vm36_vm0, %v720_v16, 0.0  ;;  %v180_v24 = vsel %vm36_vm0, %v724_v19, 0.0  ;;  %v643_v63 = vld [vmem:[%s1245_s0 + $0x50] sm:$0xff]  }
   0x6   :  { %v735_v26 = vunpack.c.l.bf16 %v637_v21  ;;  %v182_v27 = vsel %vm36_vm0, %v731_v23, 0.0  ;;  %v742_v30 = vunpack.c.h.bf16 %v637_v21  ;;  %v746_v33 = vunpack.c.l.bf16 %v638_v28 }
   0x7   :  { %v173_v15 = vadd.f32 %v172_v10, %v171_v11  ;;  %v753_v37 = vunpack.c.h.bf16 %v638_v28  ;;  %v757_v40 = vunpack.c.l.bf16 %v639_v35  ;;  %v764_v44 = vunpack.c.h.bf16 %v639_v35 }
   0x8   :  { %v184_v31 = vsel %vm36_vm0, %v735_v26, 0.0  ;;  %v186_v34 = vsel %vm36_vm0, %v742_v30, 0.0  ;;  %v188_v38 = vsel %vm36_vm0, %v746_v33, 0.0  ;;  %v768_v47 = vunpack.c.l.bf16 %v640_v42 }
   0x9   :  { %v175_v18 = vadd.f32 %v174_v13, %v173_v15  ;;  %v190_v41 = vsel %vm36_vm0, %v753_v37, 0.0  ;;  %v192_v45 = vsel %vm36_vm0, %v757_v40, 0.0  ;;  %v194_v48 = vsel %vm36_vm0, %v764_v44, 0.0 }
   0xa   :  { %v775_v51 = vunpack.c.h.bf16 %v640_v42  ;;  %v196_v52 = vsel %vm36_vm0, %v768_v47, 0.0  ;;  %v779_v54 = vunpack.c.l.bf16 %v641_v49  ;;  %v786_v58 = vunpack.c.h.bf16 %v641_v49 }
   0xb   :  { %v177_v22 = vadd.f32 %v176_v17, %v175_v18  ;;  %v790_v61 = vunpack.c.l.bf16 %v642_v56  ;;  %v797_v1 = vunpack.c.h.bf16 %v642_v56  ;;  %v299_v6 = vmul.f32 %v696_v3, %v696_v3  ;;  %v644_v3 = vld [vmem:[%s1245_s0 + $0x58] sm:$0xff]  }
   0xc   :  { %v198_v55 = vsel %vm36_vm0, %v775_v51, 0.0  ;;  %v200_v59 = vsel %vm36_vm0, %v779_v54, 0.0  ;;  %v202_v62 = vsel %vm36_vm0, %v786_v58, 0.0  ;;  %v300_v8 = vmul.f32 %v698_v4, %v698_v4 }
   0xd   :  { %v179_v25 = vadd.f32 %v178_v20, %v177_v22  ;;  %v204_v2 = vsel %vm36_vm0, %v790_v61, 0.0  ;;  %v301_v10 = vmul.f32 %v700_v5, %v700_v5  ;;  %v807_v11 = vunpack.c.l.bf16 %v643_v63 }
   0xe   :  { %v206_v13 = vsel %vm36_vm0, %v797_v1, 0.0  ;;  %v302_v14 = vmul.f32 %v705_v7, %v705_v7  ;;  %v813_v15 = vunpack.c.h.bf16 %v643_v63  ;;  %v303_v5 = vmul.f32 %v713_v12, %v713_v12  ;;  %v645_v12 = vld [vmem:[%s1245_s0 + $0x60] sm:$0xff]  }
   0xf   :  { %v181_v29 = vadd.f32 %v180_v24, %v179_v25  ;;  %v208_v4 = vsel %vm36_vm0, %v807_v11, 0.0  ;;  %v363_v18 = vsel %vm36_vm0, %v299_v6, 0.0  ;;  %v364_v20 = vsel %vm36_vm0, %v300_v8, 0.0 }
  0x10   :  { %v365_v22 = vadd.f32 %v364_v20, %v363_v18  ;;  %v366_v7 = vsel %vm36_vm0, %v301_v10, 0.0  ;;  %v825_v24 = vunpack.c.l.bf16 %v644_v3  ;;  %v210_v25 = vsel %vm36_vm0, %v813_v15, 0.0 }
  0x11   :  { %v183_v32 = vadd.f32 %v182_v27, %v181_v29  ;;  %v304_v27 = vmul.f32 %v720_v16, %v720_v16  ;;  %v368_v28 = vsel %vm36_vm0, %v302_v14, 0.0  ;;  %v305_v35 = vmul.f32 %v724_v19, %v724_v19 }
  0x12   :  { %v306_v42 = vmul.f32 %v731_v23, %v731_v23  ;;  %v311_v18 = vmul.f32 %v757_v40, %v757_v40 }
  0x13   :  { %v185_v36 = vadd.f32 %v184_v31, %v183_v32  ;;  %v367_v31 = vadd.f32 %v366_v7, %v365_v22  ;;  %v835_v32 = vunpack.c.h.bf16 %v644_v3  ;;  %v648_v3 = vld [vmem:[%s1245_s0 + $0x78] sm:$0xff]  }
  0x14   :  { %v893_v22 = vunpack.c.l.bf16 %v648_v3 }
  0x15   :  { %v187_v39 = vadd.f32 %v186_v34, %v185_v36  ;;  %v212_v34 = vsel %vm36_vm0, %v825_v24, 0.0  ;;  %v370_v36 = vsel %vm36_vm0, %v303_v5, 0.0  ;;  %v369_v16 = vadd.f32 %v368_v28, %v367_v31  ;;  %v649_v28 = vld [vmem:[%s1245_s0 + $0x80] sm:$0xff]  }
  0x16   :  { %v228_v31 = vsel %vm36_vm0, %v893_v22, 0.0 }
  0x17   :  { %v189_v43 = vadd.f32 %v188_v38, %v187_v39  ;;  %v842_v39 = vunpack.c.l.bf16 %v645_v12  ;;  %v371_v19 = vadd.f32 %v370_v36, %v369_v16 }
  0x19   :  { %v191_v46 = vadd.f32 %v190_v41, %v189_v43  ;;  %v214_v41 = vsel %vm36_vm0, %v835_v32, 0.0  ;;  %v372_v43 = vsel %vm36_vm0, %v304_v27, 0.0  ;;  %v216_v49 = vsel %vm36_vm0, %v842_v39, 0.0 }
  0x1a   :  { %v373_v23 = vadd.f32 %v372_v43, %v371_v19  ;;  %v650_v43 = vld [vmem:[%s1245_s0 + $0x88] sm:$0xff]  }
  0x1b   :  { %v193_v50 = vadd.f32 %v192_v45, %v191_v46  ;;  %v646_v45 = vld [vmem:[%s1245_s0 + $0x68] sm:$0xff]  }
  0x1c   :  { %v869_v63 = vunpack.c.h.bf16 %v646_v45 }
  0x1d   :  { %v195_v53 = vadd.f32 %v194_v48, %v193_v50  ;;  %v852_v48 = vunpack.c.h.bf16 %v645_v12  ;;  %v307_v50 = vmul.f32 %v735_v26, %v735_v26 }
  0x1e   :  { %v222_v10 = vsel %vm36_vm0, %v869_v63, 0.0 }
  0x1f   :  { %v197_v57 = vadd.f32 %v196_v52, %v195_v53  ;;  %v374_v52 = vsel %vm36_vm0, %v305_v35, 0.0  ;;  %v218_v56 = vsel %vm36_vm0, %v852_v48, 0.0  ;;  %v378_v6 = vsel %vm36_vm0, %v307_v50, 0.0 }
  0x20   :  { %v375_v26 = vadd.f32 %v374_v52, %v373_v23  ;;  %v386_v35 = vsel %vm36_vm0, %v311_v18, 0.0 }
  0x21   :  { %v199_v60 = vadd.f32 %v198_v55, %v197_v57  ;;  %v859_v55 = vunpack.c.l.bf16 %v646_v45  ;;  %v308_v57 = vmul.f32 %v742_v30, %v742_v30 }
  0x23   :  { %v201_v0 = vadd.f32 %v200_v59, %v199_v60  ;;  %v376_v59 = vsel %vm36_vm0, %v306_v42, 0.0  ;;  %v647_v60 = vld [vmem:[%s1245_s0 + $0x70] sm:$0xff]   ;;  %v380_v14 = vsel %vm36_vm0, %v308_v57, 0.0 }
  0x24   :  { %v377_v30 = vadd.f32 %v376_v59, %v375_v26  ;;  %v651_v59 = vld [vmem:[%s1245_s0 + $0x90] sm:$0xff]  }
  0x25   :  { %v203_v9 = vadd.f32 %v202_v62, %v201_v0  ;;  %v220_v0 = vsel %vm36_vm0, %v859_v55, 0.0 }
  0x27   :  { %v205_v17 = vadd.f32 %v204_v2, %v203_v9  ;;  %v309_v2 = vmul.f32 %v746_v33, %v746_v33  ;;  %v876_v9 = vunpack.c.l.bf16 %v647_v60  ;;  %v379_v33 = vadd.f32 %v378_v6, %v377_v30 }
  0x29   :  { %v207_v21 = vadd.f32 %v206_v13, %v205_v17  ;;  %v310_v13 = vmul.f32 %v753_v37, %v753_v37  ;;  %v224_v5 = vsel %vm36_vm0, %v876_v9, 0.0  ;;  %v382_v20 = vsel %vm36_vm0, %v309_v2, 0.0 }
  0x2a   :  { %v381_v37 = vadd.f32 %v380_v14, %v379_v33  ;;  %v652_v14 = vld [vmem:[%s1245_s0 + $0x98] sm:$0xff]  }
  0x2b   :  { %v209_v29 = vadd.f32 %v208_v4, %v207_v21  ;;  %v886_v4 = vunpack.c.h.bf16 %v647_v60  ;;  %v384_v27 = vsel %vm36_vm0, %v310_v13, 0.0 }
  0x2c   :  { %v383_v40 = vadd.f32 %v382_v20, %v381_v37 }
  0x2d   :  { %v211_v38 = vadd.f32 %v210_v25, %v209_v29  ;;  %v226_v7 = vsel %vm36_vm0, %v886_v4, 0.0  ;;  %v312_v25 = vmul.f32 %v764_v44, %v764_v44  ;;  %v903_v29 = vunpack.c.h.bf16 %v648_v3 }
  0x2e   :  { %v385_v44 = vadd.f32 %v384_v27, %v383_v40  ;;  %v653_v27 = vld [vmem:[%s1245_s0 + $0xa0] sm:$0xff]  }
  0x2f   :  { %v213_v46 = vadd.f32 %v212_v34, %v211_v38  ;;  %v313_v34 = vmul.f32 %v768_v47, %v768_v47  ;;  %v910_v38 = vunpack.c.l.bf16 %v649_v28  ;;  %v230_v16 = vsel %vm36_vm0, %v903_v29, 0.0 }
  0x30   :  { %v388_v42 = vsel %vm36_vm0, %v312_v25, 0.0  ;;  %v387_v47 = vadd.f32 %v386_v35, %v385_v44 }
  0x31   :  { %v215_v53 = vadd.f32 %v214_v41, %v213_v46  ;;  %v314_v41 = vmul.f32 %v775_v51, %v775_v51  ;;  %v920_v46 = vunpack.c.h.bf16 %v649_v28  ;;  %v232_v19 = vsel %vm36_vm0, %v910_v38, 0.0 }
  0x32   :  { %v390_v50 = vsel %vm36_vm0, %v313_v34, 0.0  ;;  %v389_v51 = vadd.f32 %v388_v42, %v387_v47  ;;  %v654_v42 = vld [vmem:[%s1245_s0 + $0xa8] sm:$0xff]  }
  0x33   :  { %v217_v62 = vadd.f32 %v216_v49, %v215_v53  ;;  %v315_v49 = vmul.f32 %v779_v54, %v779_v54  ;;  %v927_v53 = vunpack.c.l.bf16 %v650_v43  ;;  %v234_v23 = vsel %vm36_vm0, %v920_v46, 0.0 }
  0x34   :  { %v392_v57 = vsel %vm36_vm0, %v314_v41, 0.0  ;;  %v391_v54 = vadd.f32 %v390_v50, %v389_v51 }
  0x35   :  { %v219_v8 = vadd.f32 %v218_v56, %v217_v62  ;;  %v316_v56 = vmul.f32 %v786_v58, %v786_v58  ;;  %v937_v62 = vunpack.c.h.bf16 %v650_v43  ;;  %v236_v26 = vsel %vm36_vm0, %v927_v53, 0.0 }
  0x36   :  { %v394_v2 = vsel %vm36_vm0, %v315_v49, 0.0  ;;  %v393_v58 = vadd.f32 %v392_v57, %v391_v54  ;;  %v655_v57 = vld [vmem:[%s1245_s0 + $0xb0] sm:$0xff]  }
  0x37   :  { %v221_v17 = vadd.f32 %v220_v0, %v219_v8  ;;  %v317_v0 = vmul.f32 %v790_v61, %v790_v61  ;;  %v944_v8 = vunpack.c.l.bf16 %v651_v59  ;;  %v238_v30 = vsel %vm36_vm0, %v937_v62, 0.0 }
  0x38   :  { %v396_v13 = vsel %vm36_vm0, %v316_v56, 0.0  ;;  %v395_v61 = vadd.f32 %v394_v2, %v393_v58 }
  0x39   :  { %v223_v21 = vadd.f32 %v222_v10, %v221_v17  ;;  %v318_v10 = vmul.f32 %v797_v1, %v797_v1  ;;  %v954_v17 = vunpack.c.h.bf16 %v651_v59  ;;  %v240_v33 = vsel %vm36_vm0, %v944_v8, 0.0 }
  0x3a   :  { %v398_v18 = vsel %vm36_vm0, %v317_v0, 0.0  ;;  %v397_v1 = vadd.f32 %v396_v13, %v395_v61  ;;  %v656_v13 = vld [vmem:[%s1245_s0 + $0xb8] sm:$0xff]  }
  0x3b   :  { %v225_v12 = vadd.f32 %v224_v5, %v223_v21  ;;  %v319_v5 = vmul.f32 %v807_v11, %v807_v11  ;;  %v961_v21 = vunpack.c.l.bf16 %v652_v14  ;;  %v242_v37 = vsel %vm36_vm0, %v954_v17, 0.0 }
  0x3c   :  { %v400_v25 = vsel %vm36_vm0, %v318_v10, 0.0  ;;  %v399_v11 = vadd.f32 %v398_v18, %v397_v1 }
  0x3d   :  { %v227_v36 = vadd.f32 %v226_v7, %v225_v12  ;;  %v320_v7 = vmul.f32 %v813_v15, %v813_v15  ;;  %v971_v12 = vunpack.c.h.bf16 %v652_v14  ;;  %v244_v40 = vsel %vm36_vm0, %v961_v21, 0.0 }
  0x3e   :  { %v402_v34 = vsel %vm36_vm0, %v319_v5, 0.0  ;;  %v401_v15 = vadd.f32 %v400_v25, %v399_v11  ;;  %v657_v25 = vld [vmem:[%s1245_s0 + $0xc0] sm:$0xff]  }
  0x3f   :  { %v229_v45 = vadd.f32 %v228_v31, %v227_v36  ;;  %v321_v31 = vmul.f32 %v825_v24, %v825_v24  ;;  %v978_v36 = vunpack.c.l.bf16 %v653_v27  ;;  %v246_v44 = vsel %vm36_vm0, %v971_v12, 0.0 }
  0x40   :  { %v404_v41 = vsel %vm36_vm0, %v320_v7, 0.0  ;;  %v403_v24 = vadd.f32 %v402_v34, %v401_v15 }
  0x41   :  { %v231_v52 = vadd.f32 %v230_v16, %v229_v45  ;;  %v322_v16 = vmul.f32 %v835_v32, %v835_v32  ;;  %v988_v45 = vunpack.c.h.bf16 %v653_v27  ;;  %v248_v47 = vsel %vm36_vm0, %v978_v36, 0.0 }
  0x42   :  { %v406_v49 = vsel %vm36_vm0, %v321_v31, 0.0  ;;  %v405_v32 = vadd.f32 %v404_v41, %v403_v24  ;;  %v658_v41 = vld [vmem:[%s1245_s0 + $0xc8] sm:$0xff]  }
  0x43   :  { %v233_v60 = vadd.f32 %v232_v19, %v231_v52  ;;  %v323_v19 = vmul.f32 %v842_v39, %v842_v39  ;;  %v995_v52 = vunpack.c.l.bf16 %v654_v42  ;;  %v250_v51 = vsel %vm36_vm0, %v988_v45, 0.0 }
  0x44   :  { %v408_v56 = vsel %vm36_vm0, %v322_v16, 0.0  ;;  %v407_v39 = vadd.f32 %v406_v49, %v405_v32 }
  0x45   :  { %v235_v6 = vadd.f32 %v234_v23, %v233_v60  ;;  %v324_v23 = vmul.f32 %v852_v48, %v852_v48  ;;  %v1005_v60 = vunpack.c.h.bf16 %v654_v42  ;;  %v252_v54 = vsel %vm36_vm0, %v995_v52, 0.0 }
  0x46   :  { %v410_v0 = vsel %vm36_vm0, %v323_v19, 0.0  ;;  %v409_v48 = vadd.f32 %v408_v56, %v407_v39  ;;  %v659_v56 = vld [vmem:[%s1245_s0 + $0xd0] sm:$0xff]  }
  0x47   :  { %v237_v3 = vadd.f32 %v236_v26, %v235_v6  ;;  %v325_v26 = vmul.f32 %v859_v55, %v859_v55  ;;  %v1012_v6 = vunpack.c.l.bf16 %v655_v57  ;;  %v254_v58 = vsel %vm36_vm0, %v1005_v60, 0.0 }
  0x48   :  { %v412_v10 = vsel %vm36_vm0, %v324_v23, 0.0  ;;  %v411_v55 = vadd.f32 %v410_v0, %v409_v48 }
  0x49   :  { %v239_v20 = vadd.f32 %v238_v30, %v237_v3  ;;  %v326_v30 = vmul.f32 %v869_v63, %v869_v63  ;;  %v1022_v3 = vunpack.c.h.bf16 %v655_v57  ;;  %v256_v61 = vsel %vm36_vm0, %v1012_v6, 0.0 }
  0x4a   :  { %v414_v5 = vsel %vm36_vm0, %v325_v26, 0.0  ;;  %v413_v63 = vadd.f32 %v412_v10, %v411_v55  ;;  %v660_v10 = vld [vmem:[%s1245_s0 + $0xd8] sm:$0xff]  }
  0x4b   :  { %v241_v28 = vadd.f32 %v240_v33, %v239_v20  ;;  %v327_v33 = vmul.f32 %v876_v9, %v876_v9  ;;  %v1029_v20 = vunpack.c.l.bf16 %v656_v13  ;;  %v258_v1 = vsel %vm36_vm0, %v1022_v3, 0.0 }
  0x4c   :  { %v416_v7 = vsel %vm36_vm0, %v326_v30, 0.0  ;;  %v415_v9 = vadd.f32 %v414_v5, %v413_v63 }
  0x4d   :  { %v243_v35 = vadd.f32 %v242_v37, %v241_v28  ;;  %v328_v37 = vmul.f32 %v886_v4, %v886_v4  ;;  %v1039_v28 = vunpack.c.h.bf16 %v656_v13  ;;  %v260_v11 = vsel %vm36_vm0, %v1029_v20, 0.0 }
  0x4e   :  { %v418_v31 = vsel %vm36_vm0, %v327_v33, 0.0  ;;  %v417_v4 = vadd.f32 %v416_v7, %v415_v9  ;;  %v661_v7 = vld [vmem:[%s1245_s0 + $0xe0] sm:$0xff]  }
  0x4f   :  { %v245_v43 = vadd.f32 %v244_v40, %v243_v35  ;;  %v329_v40 = vmul.f32 %v893_v22, %v893_v22  ;;  %v1046_v35 = vunpack.c.l.bf16 %v657_v25  ;;  %v262_v15 = vsel %vm36_vm0, %v1039_v28, 0.0 }
  0x50   :  { %v420_v16 = vsel %vm36_vm0, %v328_v37, 0.0  ;;  %v419_v22 = vadd.f32 %v418_v31, %v417_v4 }
  0x51   :  { %v247_v50 = vadd.f32 %v246_v44, %v245_v43  ;;  %v330_v44 = vmul.f32 %v903_v29, %v903_v29  ;;  %v1056_v43 = vunpack.c.h.bf16 %v657_v25  ;;  %v264_v24 = vsel %vm36_vm0, %v1046_v35, 0.0 }
  0x52   :  { %v422_v19 = vsel %vm36_vm0, %v329_v40, 0.0  ;;  %v421_v29 = vadd.f32 %v420_v16, %v419_v22  ;;  %v662_v16 = vld [vmem:[%s1245_s0 + $0xe8] sm:$0xff]  }
  0x53   :  { %v249_v59 = vadd.f32 %v248_v47, %v247_v50  ;;  %v331_v47 = vmul.f32 %v910_v38, %v910_v38  ;;  %v1063_v50 = vunpack.c.l.bf16 %v658_v41  ;;  %v266_v32 = vsel %vm36_vm0, %v1056_v43, 0.0 }
  0x54   :  { %v424_v23 = vsel %vm36_vm0, %v330_v44, 0.0  ;;  %v423_v38 = vadd.f32 %v422_v19, %v421_v29 }
  0x55   :  { %v251_v2 = vadd.f32 %v250_v51, %v249_v59  ;;  %v332_v51 = vmul.f32 %v920_v46, %v920_v46  ;;  %v1073_v59 = vunpack.c.h.bf16 %v658_v41  ;;  %v268_v39 = vsel %vm36_vm0, %v1063_v50, 0.0 }
  0x56   :  { %v426_v26 = vsel %vm36_vm0, %v331_v47, 0.0  ;;  %v425_v46 = vadd.f32 %v424_v23, %v423_v38  ;;  %v663_v23 = vld [vmem:[%s1245_s0 + $0xf0] sm:$0xff]  }
  0x57   :  { %v253_v14 = vadd.f32 %v252_v54, %v251_v2  ;;  %v333_v54 = vmul.f32 %v927_v53, %v927_v53  ;;  %v1080_v2 = vunpack.c.l.bf16 %v659_v56  ;;  %v270_v48 = vsel %vm36_vm0, %v1073_v59, 0.0 }
  0x58   :  { %v428_v30 = vsel %vm36_vm0, %v332_v51, 0.0  ;;  %v427_v53 = vadd.f32 %v426_v26, %v425_v46 }
  0x59   :  { %v255_v18 = vadd.f32 %v254_v58, %v253_v14  ;;  %v334_v58 = vmul.f32 %v937_v62, %v937_v62  ;;  %v1090_v14 = vunpack.c.h.bf16 %v659_v56  ;;  %v272_v55 = vsel %vm36_vm0, %v1080_v2, 0.0 }
  0x5a   :  { %v430_v33 = vsel %vm36_vm0, %v333_v54, 0.0  ;;  %v429_v62 = vadd.f32 %v428_v30, %v427_v53  ;;  %v664_v30 = vld [vmem:[%s1245_s0 + $0xf8] sm:$0xff]  }
  0x5b   :  { %v257_v27 = vadd.f32 %v256_v61, %v255_v18  ;;  %v335_v61 = vmul.f32 %v944_v8, %v944_v8  ;;  %v1097_v18 = vunpack.c.l.bf16 %v660_v10  ;;  %v274_v63 = vsel %vm36_vm0, %v1090_v14, 0.0 }
  0x5c   :  { %v432_v37 = vsel %vm36_vm0, %v334_v58, 0.0  ;;  %v431_v8 = vadd.f32 %v430_v33, %v429_v62 }
  0x5d   :  { %v259_v34 = vadd.f32 %v258_v1, %v257_v27  ;;  %v336_v1 = vmul.f32 %v954_v17, %v954_v17  ;;  %v1107_v27 = vunpack.c.h.bf16 %v660_v10  ;;  %v276_v9 = vsel %vm36_vm0, %v1097_v18, 0.0 }
  0x5e   :  { %v434_v40 = vsel %vm36_vm0, %v335_v61, 0.0  ;;  %v433_v17 = vadd.f32 %v432_v37, %v431_v8  ;;  %v345_v8 = vmul.f32 %v1029_v20, %v1029_v20  ;;  %v347_v20 = vmul.f32 %v1046_v35, %v1046_v35 }
  0x5f   :  { %v261_v42 = vadd.f32 %v260_v11, %v259_v34  ;;  %v337_v11 = vmul.f32 %v961_v21, %v961_v21  ;;  %v1114_v34 = vunpack.c.l.bf16 %v661_v7  ;;  %v278_v4 = vsel %vm36_vm0, %v1107_v27, 0.0 }
  0x60   :  { %v436_v44 = vsel %vm36_vm0, %v336_v1, 0.0  ;;  %v435_v21 = vadd.f32 %v434_v40, %v433_v17 }
  0x61   :  { %v263_v49 = vadd.f32 %v262_v15, %v261_v42  ;;  %v338_v15 = vmul.f32 %v971_v12, %v971_v12  ;;  %v1124_v42 = vunpack.c.h.bf16 %v661_v7  ;;  %v280_v22 = vsel %vm36_vm0, %v1114_v34, 0.0 }
  0x62   :  { %v438_v47 = vsel %vm36_vm0, %v337_v11, 0.0  ;;  %v437_v12 = vadd.f32 %v436_v44, %v435_v21  ;;  %v167_v44 = vld [vmem:[%s1243_s1] sm:$0xff] }
  0x63   :  { %v265_v57 = vadd.f32 %v264_v24, %v263_v49  ;;  %v339_v24 = vmul.f32 %v978_v36, %v978_v36  ;;  %v1131_v49 = vunpack.c.l.bf16 %v662_v16  ;;  %v282_v29 = vsel %vm36_vm0, %v1124_v42, 0.0 }
  0x64   :  { %v440_v51 = vsel %vm36_vm0, %v338_v15, 0.0  ;;  %v439_v36 = vadd.f32 %v438_v47, %v437_v12  ;;  %v458_v12 = vsel %vm36_vm0, %v347_v20, 0.0 }
  0x65   :  { %v267_v0 = vadd.f32 %v266_v32, %v265_v57  ;;  %v340_v32 = vmul.f32 %v988_v45, %v988_v45  ;;  %v1141_v57 = vunpack.c.h.bf16 %v662_v16  ;;  %v284_v38 = vsel %vm36_vm0, %v1131_v49, 0.0 }
  0x66   :  { %v442_v54 = vsel %vm36_vm0, %v339_v24, 0.0  ;;  %v441_v45 = vadd.f32 %v440_v51, %v439_v36  ;;  %v454_v16 = vsel %vm36_vm0, %v345_v8, 0.0  ;;  %v351_v51 = vmul.f32 %v1080_v2, %v1080_v2 }
  0x67   :  { %v269_v13 = vadd.f32 %v268_v39, %v267_v0  ;;  %v341_v39 = vmul.f32 %v995_v52, %v995_v52  ;;  %v1148_v0 = vunpack.c.l.bf16 %v663_v23  ;;  %v286_v46 = vsel %vm36_vm0, %v1141_v57, 0.0 }
  0x68   :  { %v444_v58 = vsel %vm36_vm0, %v340_v32, 0.0  ;;  %v443_v52 = vadd.f32 %v442_v54, %v441_v45 }
  0x69   :  { %v271_v5 = vadd.f32 %v270_v48, %v269_v13  ;;  %v342_v48 = vmul.f32 %v1005_v60, %v1005_v60  ;;  %v1158_v13 = vunpack.c.h.bf16 %v663_v23  ;;  %v288_v53 = vsel %vm36_vm0, %v1148_v0, 0.0 }
  0x6a   :  { %v446_v61 = vsel %vm36_vm0, %v341_v39, 0.0  ;;  %v445_v60 = vadd.f32 %v444_v58, %v443_v52  ;;  %v353_v39 = vmul.f32 %v1097_v18, %v1097_v18  ;;  %v356_v58 = vmul.f32 %v1124_v42, %v1124_v42 }
  0x6b   :  { %v273_v25 = vadd.f32 %v272_v55, %v271_v5  ;;  %v343_v55 = vmul.f32 %v1012_v6, %v1012_v6  ;;  %v1165_v5 = vunpack.c.l.bf16 %v664_v30  ;;  %v290_v62 = vsel %vm36_vm0, %v1158_v13, 0.0 }
  0x6c   :  { %v448_v1 = vsel %vm36_vm0, %v342_v48, 0.0  ;;  %v447_v7 = vadd.f32 %v446_v61, %v445_v60  ;;  %v359_v61 = vmul.f32 %v1148_v0, %v1148_v0  ;;  %v360_v60 = vmul.f32 %v1158_v13, %v1158_v13  ;;  %v298_v13 = vld [vmem:[%s1244_s2] sm:$0xff] }
  0x6d   :  { %v275_v31 = vadd.f32 %v274_v63, %v273_v25  ;;  %v344_v63 = vmul.f32 %v1022_v3, %v1022_v3  ;;  %v633_v25 = vunpack.c.h.bf16 %v664_v30  ;;  %v292_v6 = vsel %vm36_vm0, %v1165_v5, 0.0 }
  0x6e   :  { %v449_v40 = vadd.f32 %v448_v1, %v447_v7  ;;  %v346_v3 = vmul.f32 %v1039_v28, %v1039_v28  ;;  %v484_v7 = vsel %vm36_vm0, %v360_v60, 0.0 }
  0x6f   :  { %v277_v41 = vadd.f32 %v276_v9, %v275_v31  ;;  %v450_v9 = vsel %vm36_vm0, %v343_v55, 0.0  ;;  %v294_v31 = vsel %vm36_vm0, %v633_v25, 0.0  ;;  %v452_v17 = vsel %vm36_vm0, %v344_v63, 0.0 }
  0x70   :  { %v451_v15 = vadd.f32 %v450_v9, %v449_v40  ;;  %v456_v28 = vsel %vm36_vm0, %v346_v3, 0.0  ;;  %v361_v63 = vmul.f32 %v1165_v5, %v1165_v5 }
  0x71   :  { %v279_v19 = vadd.f32 %v278_v4, %v277_v41 }
  0x72   :  { %v453_v21 = vadd.f32 %v452_v17, %v451_v15  ;;  %v486_v0 = vsel %vm36_vm0, %v361_v63, 0.0 }
  0x73   :  { %v281_v56 = vadd.f32 %v280_v22, %v279_v19  ;;  %v348_v22 = vmul.f32 %v1056_v43, %v1056_v43  ;;  %v349_v19 = vmul.f32 %v1063_v50, %v1063_v50 }
  0x74   :  { %v455_v47 = vadd.f32 %v454_v16, %v453_v21 }
  0x75   :  { %v283_v26 = vadd.f32 %v282_v29, %v281_v56  ;;  %v350_v29 = vmul.f32 %v1073_v59, %v1073_v59  ;;  %v460_v43 = vsel %vm36_vm0, %v348_v22, 0.0  ;;  %v462_v23 = vsel %vm36_vm0, %v349_v19, 0.0 }
  0x76   :  { %v457_v35 = vadd.f32 %v456_v28, %v455_v47  ;;  %v352_v56 = vmul.f32 %v1090_v14, %v1090_v14  ;;  %v466_v59 = vsel %vm36_vm0, %v351_v51, 0.0  ;;  %v470_v14 = vsel %vm36_vm0, %v353_v39, 0.0 }
  0x77   :  { %v285_v10 = vadd.f32 %v284_v38, %v283_v26  ;;  %v464_v36 = vsel %vm36_vm0, %v350_v29, 0.0  ;;  %v354_v26 = vmul.f32 %v1107_v27, %v1107_v27 }
  0x78   :  { %v459_v32 = vadd.f32 %v458_v12, %v457_v35  ;;  %v468_v2 = vsel %vm36_vm0, %v352_v56, 0.0 }
  0x79   :  { %v287_v33 = vadd.f32 %v286_v46, %v285_v10  ;;  %v355_v46 = vmul.f32 %v1114_v34, %v1114_v34  ;;  %v472_v18 = vsel %vm36_vm0, %v354_v26, 0.0  ;;  %v357_v10 = vmul.f32 %v1131_v49, %v1131_v49 }
  0x7a   :  { %v461_v50 = vadd.f32 %v460_v43, %v459_v32  ;;  %v476_v34 = vsel %vm36_vm0, %v356_v58, 0.0 }
  0x7b   :  { %v289_v37 = vadd.f32 %v288_v53, %v287_v33  ;;  %v474_v27 = vsel %vm36_vm0, %v355_v46, 0.0  ;;  %v358_v53 = vmul.f32 %v1141_v57, %v1141_v57  ;;  %v478_v42 = vsel %vm36_vm0, %v357_v10, 0.0 }
  0x7c   :  { %v463_v38 = vadd.f32 %v462_v23, %v461_v50  ;;  %v482_v57 = vsel %vm36_vm0, %v359_v61, 0.0 }
  0x7d   :  { %v291_v11 = vadd.f32 %v290_v62, %v289_v37  ;;  %v480_v49 = vsel %vm36_vm0, %v358_v53, 0.0  ;;  %v362_v37 = vmul.f32 %v633_v25, %v633_v25 }
  0x7e   :  { %v465_v54 = vadd.f32 %v464_v36, %v463_v38 }
  0x7f   :  { %v293_v4 = vadd.f32 %v292_v6, %v291_v11  ;;  %v488_v9 = vsel %vm36_vm0, %v362_v37, 0.0 }
  0x80   :  { %v467_v45 = vadd.f32 %v466_v59, %v465_v54 }
  0x81   :  { %v295_v41 = vadd.f32 %v294_v31, %v293_v4 }
  0x82   :  { %v469_v48 = vadd.f32 %v468_v2, %v467_v45 }
  0x83   :  { %v296_v24 = vadd.f32 %v295_v41, %v167_v44 }
  0x84   :  { %v471_v30 = vadd.f32 %v470_v14, %v469_v48 }
  0x85   :  { %297 = vst.msk [vmem:[%s1243_s1] sm:$0xff] %vm36_vm0, %v296_v24 }
  0x86   :  { %v473_v52 = vadd.f32 %v472_v18, %v471_v30 }
  0x88   :  { %v475_v55 = vadd.f32 %v474_v27, %v473_v52 }
  0x8a   :  { %v477_v33 = vadd.f32 %v476_v34, %v475_v55 }
  0x8c   :  { %v479_v62 = vadd.f32 %v478_v42, %v477_v33 }
  0x8e   :  { %v481_v1 = vadd.f32 %v480_v49, %v479_v62 }
  0x90   :  { %v483_v6 = vadd.f32 %v482_v57, %v481_v1 }
  0x92   :  { %v485_v8 = vadd.f32 %v484_v7, %v483_v6 }
  0x94   :  { %v487_v11 = vadd.f32 %v486_v0, %v485_v8 }
  0x96   :  { %v489_v40 = vadd.f32 %v488_v9, %v487_v11 }
  0x98   :  { %v490_v31 = vadd.f32 %v489_v40, %v298_v13 }
  0x9a   :  { %491 = vst.msk [vmem:[%s1244_s2] sm:$0xff] %vm36_vm0, %v490_v31 }

// kernel: _lambda_.15
= control target key start
LH: loop header
LB: loop body
LE: loop exit
PB: predicated region body
PF: predicated region fallthrough
CT: control target
= control target key end

     0   :  { %vm520_vm0 = vcmask 130048   ;;  %s2236_s3 = inlined_call_operand.vmem [shape: bf16[16,128], index: 3, kind: input, shape index: {}]   ;;  %s2237_s0 = inlined_call_operand.vmem [shape: bf16[512,16], index: 0, kind: input, shape index: {}]   ;;  %s2238_s1 = inlined_call_operand.vmem [shape: f32[1,16], index: 1, kind: input, shape index: {}]   ;;  %s2239_s2 = inlined_call_operand.vmem [shape: f32[1,16], index: 2, kind: input, shape index: {}]   ;;  %s2240_s4 = inlined_call_operand.vmem [shape: bf16[512,128], index: 4, kind: output, shape index: {}]  }
   0x1   :  { %v1844_v0 = vld [vmem:[%s2236_s3] sm:$0xff]   ;;  %v1681_v6 = vld [vmem:[%s2237_s0 + $0x8] sm:$0xff]   ;;  %v1682_v35 = vld [vmem:[%s2237_s0 + $0x10] sm:$0xff]  }
   0x2   :  { %v1394_v1 = vld [vmem:[%s2237_s0] sm:$0xff]   ;;  %1776 = vmatprep.subr.bf16.mxu0 %v1844_v0  ;;  %1842 = vmatprep.subr.bf16.mxu1 %v1844_v0  ;;  %v1697_v7 = vld [vmem:[%s2237_s0 + $0x88] sm:$0xff]   ;;  %v1399_v11 = vunpack.c.l.bf16 %v1681_v6  ;;  %v1400_v12 = vunpack.c.h.bf16 %v1681_v6  ;;  %v1698_v36 = vld [vmem:[%s2237_s0 + $0x90] sm:$0xff]   ;;  %v1403_v46 = vunpack.c.l.bf16 %v1682_v35  ;;  %v1404_v47 = vunpack.c.h.bf16 %v1682_v35 }
   0x3   :  { %v1879_v2 = vld [vmem:[%s2238_s1] ss:$0 sm:$0xff]  ;;  %v1395_v3 = vunpack.c.l.bf16 %v1394_v1  ;;  %v1396_v4 = vunpack.c.h.bf16 %v1394_v1  ;;  %1777 = vmatpush3.bf16.msra.mxu0 %v1844_v0  ;;  %1843 = vmatpush3.bf16.msra.mxu1 %v1844_v0  ;;  %v1463_v15 = vunpack.c.l.bf16 %v1697_v7  ;;  %v1464_v16 = vunpack.c.h.bf16 %v1697_v7  ;;  %v1683_v49 = vld [vmem:[%s2237_s0 + $0x18] sm:$0xff]  }
   0x4   :  { %v1696_v5 = vld [vmem:[%s2237_s0 + $0x80] sm:$0xff]   ;;  %v155_v19 = vmul.f32 %v1399_v11, %v1879_v2  ;;  %v156_v20 = vmul.f32 %v1400_v12, %v1879_v2  ;;  %v1467_v48 = vunpack.c.l.bf16 %v1698_v36  ;;  %v157_v54 = vmul.f32 %v1403_v46, %v1879_v2 }
   0x5   :  { %v1893_v8 = vld [vmem:[%s2239_s2] ss:$0 sm:$0xff]  ;;  %v1459_v9 = vunpack.c.l.bf16 %v1696_v5  ;;  %v1460_v10 = vunpack.c.h.bf16 %v1696_v5  ;;  %v153_v13 = vmul.f32 %v1395_v3, %v1879_v2  ;;  %v154_v14 = vmul.f32 %v1396_v4, %v1879_v2  ;;  %v1699_v5 = vld [vmem:[%s2237_s0 + $0x98] sm:$0xff]  }
   0x6   :  { %v187_v23 = vmul.f32 %v1463_v15, %v1879_v2  ;;  %v188_v24 = vmul.f32 %v1464_v16, %v1879_v2  ;;  %v226_v27 = vadd.f32 %v1893_v8, %v155_v19  ;;  %v227_v28 = vadd.f32 %v1893_v8, %v156_v20  ;;  %v1684_v16 = vld [vmem:[%s2237_s0 + $0x20] sm:$0xff]  }
   0x7   :  { %v185_v17 = vmul.f32 %v1459_v9, %v1879_v2  ;;  %v186_v18 = vmul.f32 %v1460_v10, %v1879_v2  ;;  %v224_v21 = vadd.f32 %v1893_v8, %v153_v13  ;;  %v225_v22 = vadd.f32 %v1893_v8, %v154_v14 }
   0x8   :  { %vm290_vm5 = vcmp.gt.f32.partialorder %v226_v27, 0.0  ;;  %vm291_vm6 = vcmp.gt.f32.partialorder %v227_v28, 0.0  ;;  %v354_v40 = vmul.f32 0.2, %v226_v27  ;;  %v355_v42 = vmul.f32 0.2, %v227_v28 }
   0x9   :  { %v256_v25 = vadd.f32 %v1893_v8, %v185_v17  ;;  %v257_v26 = vadd.f32 %v1893_v8, %v186_v18  ;;  %vm288_vm1 = vcmp.gt.f32.partialorder %v224_v21, 0.0  ;;  %vm289_vm2 = vcmp.gt.f32.partialorder %v225_v22, 0.0 }
   0xa   :  { %v352_v29 = vmul.f32 0.2, %v224_v21  ;;  %v353_v30 = vmul.f32 0.2, %v225_v22  ;;  %v258_v43 = vadd.f32 %v1893_v8, %v187_v23  ;;  %v259_v44 = vadd.f32 %v1893_v8, %v188_v24 }
   0xb   :  { %vm320_vm3 = vcmp.gt.f32.partialorder %v256_v25, 0.0  ;;  %vm321_vm4 = vcmp.gt.f32.partialorder %v257_v26, 0.0  ;;  %v384_v31 = vmul.f32 0.2, %v256_v25  ;;  %v385_v32 = vmul.f32 0.2, %v257_v26 }
   0xc   :  { %v416_v33 = vsel %vm288_vm1, %v224_v21, %v352_v29  ;;  %v417_v34 = vsel %vm289_vm2, %v225_v22, %v353_v30  ;;  %v418_v45 = vsel %vm290_vm5, %v226_v27, %v354_v40  ;;  %v419_v50 = vsel %vm291_vm6, %v227_v28, %v355_v42  ;;  %v1700_v27 = vld [vmem:[%s2237_s0 + $0xa0] sm:$0xff]   ;;  %v1685_v28 = vld [vmem:[%s2237_s0 + $0x28] sm:$0xff]  }
   0xd   :  { %v480_v37 = vpack.c.bf16 %v417_v34, %v416_v33  ;;  %v448_v38 = vsel %vm320_vm3, %v256_v25, %v384_v31  ;;  %v449_v39 = vsel %vm321_vm4, %v257_v26, %v385_v32  ;;  %vm322_vm7 = vcmp.gt.f32.partialorder %v258_v43, 0.0 }
   0xe   :  { %v496_v41 = vpack.c.bf16 %v449_v39, %v448_v38  ;;  %vm323_vm8 = vcmp.gt.f32.partialorder %v259_v44, 0.0  ;;  %v386_v51 = vmul.f32 0.2, %v258_v43  ;;  %v481_v52 = vpack.c.bf16 %v419_v50, %v418_v45 }
   0xf   :  { %1778 = vmatprep.mubr.msk.bf16.mxu0 %vm520_vm0, %v480_v37  ;;  %v387_v53 = vmul.f32 0.2, %v259_v44  ;;  %v158_v55 = vmul.f32 %v1404_v47, %v1879_v2  ;;  %v1468_v57 = vunpack.c.h.bf16 %v1698_v36  ;;  %v189_v58 = vmul.f32 %v1467_v48, %v1879_v2 }
  0x10   :  { %1810 = vmatprep.mubr.msk.bf16.mxu1 %vm520_vm0, %v496_v41  ;;  %v450_v56 = vsel %vm322_vm7, %v258_v43, %v386_v51  ;;  %v1407_v59 = vunpack.c.l.bf16 %v1683_v49  ;;  %1779 = vmatmul.mubr.msk.bf16.vlgmr.msra.gmra.mrb[0].mxu0 %vm520_vm0, %v481_v52  ;;  %v228_v61 = vadd.f32 %v1893_v8, %v157_v54  ;;  %v1408_v63 = vunpack.c.h.bf16 %v1683_v49 }
  0x11   :  { %v451_v60 = vsel %vm323_vm8, %v259_v44, %v387_v53  ;;  %v229_v62 = vadd.f32 %v1893_v8, %v158_v55  ;;  %v190_v1 = vmul.f32 %v1468_v57, %v1879_v2  ;;  %v260_v3 = vadd.f32 %v1893_v8, %v189_v58 }
  0x12   :  { %v497_v0 = vpack.c.bf16 %v451_v60, %v450_v56  ;;  %v159_v4 = vmul.f32 %v1407_v59, %v1879_v2  ;;  %vm292_vm9 = vcmp.gt.f32.partialorder %v228_v61, 0.0  ;;  %v356_v6 = vmul.f32 0.2, %v228_v61  ;;  %v1701_v56 = vld [vmem:[%s2237_s0 + $0xa8] sm:$0xff]  }
  0x13   :  { %vm293_vm10 = vcmp.gt.f32.partialorder %v229_v62, 0.0  ;;  %v357_v7 = vmul.f32 0.2, %v229_v62  ;;  %v261_v9 = vadd.f32 %v1893_v8, %v190_v1  ;;  %vm324_vm11 = vcmp.gt.f32.partialorder %v260_v3, 0.0 }
  0x14   :  { %1811 = vmatmul.mubr.msk.bf16.vlgmr.msra.gmra.mrb[0].mxu1 %vm520_vm0, %v497_v0  ;;  %v388_v10 = vmul.f32 0.2, %v260_v3  ;;  %v160_v11 = vmul.f32 %v1408_v63, %v1879_v2  ;;  %v420_v12 = vsel %vm292_vm9, %v228_v61, %v356_v6  ;;  %v230_v14 = vadd.f32 %v1893_v8, %v159_v4  ;;  %v1686_v61 = vld [vmem:[%s2237_s0 + $0x30] sm:$0xff]  }
  0x15   :  { %v421_v13 = vsel %vm293_vm10, %v229_v62, %v357_v7  ;;  %v1471_v15 = vunpack.c.l.bf16 %v1699_v5  ;;  %vm325_vm12 = vcmp.gt.f32.partialorder %v261_v9, 0.0  ;;  %v389_v18 = vmul.f32 0.2, %v261_v9 }
  0x16   :  { %v482_v17 = vpack.c.bf16 %v421_v13, %v420_v12  ;;  %v452_v19 = vsel %vm324_vm11, %v260_v3, %v388_v10  ;;  %v231_v20 = vadd.f32 %v1893_v8, %v160_v11  ;;  %vm294_vm13 = vcmp.gt.f32.partialorder %v230_v14, 0.0  ;;  %v1702_v10 = vld [vmem:[%s2237_s0 + $0xb0] sm:$0xff]  }
  0x17   :  { %v358_v21 = vmul.f32 0.2, %v230_v14  ;;  %v1472_v22 = vunpack.c.h.bf16 %v1699_v5  ;;  %v453_v23 = vsel %vm325_vm12, %v261_v9, %v389_v18  ;;  %v191_v24 = vmul.f32 %v1471_v15, %v1879_v2 }
  0x18   :  { %1782 = vmatprep.mubr.msk.bf16.mxu0 %vm520_vm0, %v482_v17  ;;  %v1411_v25 = vunpack.c.l.bf16 %v1684_v16  ;;  %v1412_v26 = vunpack.c.h.bf16 %v1684_v16  ;;  %v498_v29 = vpack.c.bf16 %v453_v23, %v452_v19  ;;  %vm295_vm14 = vcmp.gt.f32.partialorder %v231_v20, 0.0 }
  0x19   :  { %v359_v30 = vmul.f32 0.2, %v231_v20  ;;  %v422_v31 = vsel %vm294_vm13, %v230_v14, %v358_v21  ;;  %v192_v32 = vmul.f32 %v1472_v22, %v1879_v2  ;;  %v262_v33 = vadd.f32 %v1893_v8, %v191_v24 }
  0x1a   :  { %v161_v34 = vmul.f32 %v1411_v25, %v1879_v2  ;;  %v162_v35 = vmul.f32 %v1412_v26, %v1879_v2  ;;  %1814 = vmatprep.mubr.msk.bf16.mxu1 %vm520_vm0, %v498_v29  ;;  %v1475_v37 = vunpack.c.l.bf16 %v1700_v27  ;;  %v1476_v38 = vunpack.c.h.bf16 %v1700_v27  ;;  %v1687_v29 = vld [vmem:[%s2237_s0 + $0x38] sm:$0xff]  }
  0x1b   :  { %v423_v36 = vsel %vm295_vm14, %v231_v20, %v359_v30  ;;  %v1415_v39 = vunpack.c.l.bf16 %v1685_v28  ;;  %v263_v41 = vadd.f32 %v1893_v8, %v192_v32  ;;  %vm326_vm15 = vcmp.gt.f32.partialorder %v262_v33, 0.0 }
  0x1c   :  { %v483_v40 = vpack.c.bf16 %v423_v36, %v422_v31  ;;  %v390_v42 = vmul.f32 0.2, %v262_v33  ;;  %v232_v43 = vadd.f32 %v1893_v8, %v161_v34  ;;  %v233_v44 = vadd.f32 %v1893_v8, %v162_v35 }
  0x1d   :  { %v193_v45 = vmul.f32 %v1475_v37, %v1879_v2  ;;  %v194_v46 = vmul.f32 %v1476_v38, %v1879_v2  ;;  %vm327_vm1 = vcmp.gt.f32.partialorder %v263_v41, 0.0  ;;  %v391_v47 = vmul.f32 0.2, %v263_v41  ;;  %v1703_v38 = vld [vmem:[%s2237_s0 + $0xb8] sm:$0xff]  }
  0x1e   :  { %1783 = vmatmul.mubr.msk.bf16.gmra.mrb[4].mxu0 %vm520_vm0, %v483_v40  ;;  %v454_v48 = vsel %vm326_vm15, %v262_v33, %v390_v42  ;;  %v1416_v49 = vunpack.c.h.bf16 %v1685_v28  ;;  %vm296_vm2 = vcmp.gt.f32.partialorder %v232_v43, 0.0  ;;  %vm297_vm3 = vcmp.gt.f32.partialorder %v233_v44, 0.0 }
  0x1f   :  { %v360_v50 = vmul.f32 0.2, %v232_v43  ;;  %v361_v51 = vmul.f32 0.2, %v233_v44  ;;  %v455_v52 = vsel %vm327_vm1, %v263_v41, %v391_v47  ;;  %v264_v53 = vadd.f32 %v1893_v8, %v193_v45 }
  0x20   :  { %v265_v54 = vadd.f32 %v1893_v8, %v194_v46  ;;  %v163_v55 = vmul.f32 %v1415_v39, %v1879_v2  ;;  %v499_v57 = vpack.c.bf16 %v455_v52, %v454_v48  ;;  %v164_v60 = vmul.f32 %v1416_v49, %v1879_v2 }
  0x21   :  { %v424_v58 = vsel %vm296_vm2, %v232_v43, %v360_v50  ;;  %v425_v59 = vsel %vm297_vm3, %v233_v44, %v361_v51  ;;  %vm328_vm4 = vcmp.gt.f32.partialorder %v264_v53, 0.0  ;;  %v392_v63 = vmul.f32 0.2, %v264_v53  ;;  %v1688_v43 = vld [vmem:[%s2237_s0 + $0x40] sm:$0xff]  }
  0x22   :  { %v484_v62 = vpack.c.bf16 %v425_v59, %v424_v58  ;;  %vm329_vm5 = vcmp.gt.f32.partialorder %v265_v54, 0.0  ;;  %1815 = vmatmul.mubr.msk.bf16.gmra.mrb[4].mxu1 %vm520_vm0, %v499_v57  ;;  %v393_v0 = vmul.f32 0.2, %v265_v54  ;;  %v234_v1 = vadd.f32 %v1893_v8, %v163_v55  ;;  %v1704_v51 = vld [vmem:[%s2237_s0 + $0xc0] sm:$0xff]  }
  0x23   :  { %v235_v3 = vadd.f32 %v1893_v8, %v164_v60  ;;  %v1479_v4 = vunpack.c.l.bf16 %v1701_v56  ;;  %v456_v5 = vsel %vm328_vm4, %v264_v53, %v392_v63  ;;  %v1480_v6 = vunpack.c.h.bf16 %v1701_v56 }
  0x24   :  { %1786 = vmatprep.mubr.msk.bf16.mxu0 %vm520_vm0, %v484_v62  ;;  %v1419_v7 = vunpack.c.l.bf16 %v1686_v61  ;;  %v1420_v9 = vunpack.c.h.bf16 %v1686_v61  ;;  %v457_v11 = vsel %vm329_vm5, %v265_v54, %v393_v0  ;;  %vm298_vm6 = vcmp.gt.f32.partialorder %v234_v1, 0.0 }
  0x25   :  { %vm299_vm7 = vcmp.gt.f32.partialorder %v235_v3, 0.0  ;;  %v362_v12 = vmul.f32 0.2, %v234_v1  ;;  %v500_v13 = vpack.c.bf16 %v457_v11, %v456_v5  ;;  %v363_v14 = vmul.f32 0.2, %v235_v3 }
  0x26   :  { %v195_v15 = vmul.f32 %v1479_v4, %v1879_v2  ;;  %v196_v16 = vmul.f32 %v1480_v6, %v1879_v2  ;;  %v165_v18 = vmul.f32 %v1419_v7, %v1879_v2  ;;  %v166_v19 = vmul.f32 %v1420_v9, %v1879_v2 }
  0x27   :  { %v426_v17 = vsel %vm298_vm6, %v234_v1, %v362_v12  ;;  %v1483_v20 = vunpack.c.l.bf16 %v1702_v10  ;;  %1818 = vmatprep.mubr.msk.bf16.mxu1 %vm520_vm0, %v500_v13  ;;  %v427_v21 = vsel %vm299_vm7, %v235_v3, %v363_v14  ;;  %v1484_v24 = vunpack.c.h.bf16 %v1702_v10 }
  0x28   :  { %v266_v22 = vadd.f32 %v1893_v8, %v195_v15  ;;  %v267_v23 = vadd.f32 %v1893_v8, %v196_v16  ;;  %v485_v25 = vpack.c.bf16 %v427_v21, %v426_v17  ;;  %v236_v26 = vadd.f32 %v1893_v8, %v165_v18  ;;  %v1689_v16 = vld [vmem:[%s2237_s0 + $0x48] sm:$0xff]  }
  0x29   :  { %v237_v27 = vadd.f32 %v1893_v8, %v166_v19  ;;  %v197_v28 = vmul.f32 %v1483_v20, %v1879_v2  ;;  %v198_v36 = vmul.f32 %v1484_v24, %v1879_v2  ;;  %v1423_v42 = vunpack.c.l.bf16 %v1687_v29  ;;  %v1705_v21 = vld [vmem:[%s2237_s0 + $0xc8] sm:$0xff]  }
  0x2a   :  { %vm330_vm8 = vcmp.gt.f32.partialorder %v266_v22, 0.0  ;;  %vm331_vm9 = vcmp.gt.f32.partialorder %v267_v23, 0.0  ;;  %v394_v30 = vmul.f32 0.2, %v266_v22  ;;  %v395_v31 = vmul.f32 0.2, %v267_v23  ;;  %1787 = vmatmul.mubr.msk.bf16.gmra.mrb[8].mxu0 %vm520_vm0, %v485_v25 }
  0x2b   :  { %vm300_vm10 = vcmp.gt.f32.partialorder %v236_v26, 0.0  ;;  %vm301_vm11 = vcmp.gt.f32.partialorder %v237_v27, 0.0  ;;  %v364_v32 = vmul.f32 0.2, %v236_v26  ;;  %v365_v33 = vmul.f32 0.2, %v237_v27 }
  0x2c   :  { %v458_v34 = vsel %vm330_vm8, %v266_v22, %v394_v30  ;;  %v459_v35 = vsel %vm331_vm9, %v267_v23, %v395_v31  ;;  %v268_v37 = vadd.f32 %v1893_v8, %v197_v28  ;;  %v269_v45 = vadd.f32 %v1893_v8, %v198_v36  ;;  %v1690_v22 = vld [vmem:[%s2237_s0 + $0x50] sm:$0xff]  }
  0x2d   :  { %v501_v39 = vpack.c.bf16 %v459_v35, %v458_v34  ;;  %v428_v40 = vsel %vm300_vm10, %v236_v26, %v364_v32  ;;  %v429_v41 = vsel %vm301_vm11, %v237_v27, %v365_v33  ;;  %v1424_v47 = vunpack.c.h.bf16 %v1687_v29 }
  0x2e   :  { %v486_v44 = vpack.c.bf16 %v429_v41, %v428_v40  ;;  %vm332_vm12 = vcmp.gt.f32.partialorder %v268_v37, 0.0  ;;  %v396_v46 = vmul.f32 0.2, %v268_v37  ;;  %v167_v48 = vmul.f32 %v1423_v42, %v1879_v2  ;;  %v1706_v41 = vld [vmem:[%s2237_s0 + $0xd0] sm:$0xff]  }
  0x2f   :  { %1819 = vmatmul.mubr.msk.bf16.gmra.mrb[8].mxu1 %vm520_vm0, %v501_v39  ;;  %v1487_v49 = vunpack.c.l.bf16 %v1703_v38  ;;  %v1488_v50 = vunpack.c.h.bf16 %v1703_v38  ;;  %vm333_vm13 = vcmp.gt.f32.partialorder %v269_v45, 0.0  ;;  %v397_v52 = vmul.f32 0.2, %v269_v45 }
  0x30   :  { %1790 = vmatprep.mubr.msk.bf16.mxu0 %vm520_vm0, %v486_v44  ;;  %v460_v53 = vsel %vm332_vm12, %v268_v37, %v396_v46  ;;  %v1427_v54 = vunpack.c.l.bf16 %v1688_v43  ;;  %v168_v55 = vmul.f32 %v1424_v47, %v1879_v2  ;;  %v238_v56 = vadd.f32 %v1893_v8, %v167_v48 }
  0x31   :  { %v199_v57 = vmul.f32 %v1487_v49, %v1879_v2  ;;  %v200_v58 = vmul.f32 %v1488_v50, %v1879_v2  ;;  %v461_v59 = vsel %vm333_vm13, %v269_v45, %v397_v52  ;;  %v1428_v60 = vunpack.c.h.bf16 %v1688_v43 }
  0x32   :  { %v169_v61 = vmul.f32 %v1427_v54, %v1879_v2  ;;  %v1491_v62 = vunpack.c.l.bf16 %v1704_v51  ;;  %v502_v63 = vpack.c.bf16 %v461_v59, %v460_v53  ;;  %v239_v0 = vadd.f32 %v1893_v8, %v168_v55 }
  0x33   :  { %vm302_vm14 = vcmp.gt.f32.partialorder %v238_v56, 0.0  ;;  %v366_v1 = vmul.f32 0.2, %v238_v56  ;;  %v270_v3 = vadd.f32 %v1893_v8, %v199_v57  ;;  %v271_v4 = vadd.f32 %v1893_v8, %v200_v58 }
  0x34   :  { %v170_v5 = vmul.f32 %v1428_v60, %v1879_v2  ;;  %v240_v6 = vadd.f32 %v1893_v8, %v169_v61  ;;  %1822 = vmatprep.mubr.msk.bf16.mxu1 %vm520_vm0, %v502_v63  ;;  %vm303_vm15 = vcmp.gt.f32.partialorder %v239_v0, 0.0  ;;  %v367_v7 = vmul.f32 0.2, %v239_v0 }
  0x35   :  { %v430_v9 = vsel %vm302_vm14, %v238_v56, %v366_v1  ;;  %v1492_v10 = vunpack.c.h.bf16 %v1704_v51  ;;  %vm334_vm1 = vcmp.gt.f32.partialorder %v270_v3, 0.0  ;;  %vm335_vm2 = vcmp.gt.f32.partialorder %v271_v4, 0.0  ;;  %v1691_v1 = vld [vmem:[%s2237_s0 + $0x58] sm:$0xff]  }
  0x36   :  { %v398_v11 = vmul.f32 0.2, %v270_v3  ;;  %v399_v12 = vmul.f32 0.2, %v271_v4  ;;  %v431_v13 = vsel %vm303_vm15, %v239_v0, %v367_v7  ;;  %v241_v14 = vadd.f32 %v1893_v8, %v170_v5 }
  0x37   :  { %vm304_vm3 = vcmp.gt.f32.partialorder %v240_v6, 0.0  ;;  %v368_v15 = vmul.f32 0.2, %v240_v6  ;;  %v487_v17 = vpack.c.bf16 %v431_v13, %v430_v9  ;;  %v201_v20 = vmul.f32 %v1491_v62, %v1879_v2 }
  0x38   :  { %v462_v18 = vsel %vm334_vm1, %v270_v3, %v398_v11  ;;  %v463_v19 = vsel %vm335_vm2, %v271_v4, %v399_v12  ;;  %vm305_vm4 = vcmp.gt.f32.partialorder %v241_v14, 0.0  ;;  %v369_v24 = vmul.f32 0.2, %v241_v14  ;;  %v1707_v3 = vld [vmem:[%s2237_s0 + $0xd8] sm:$0xff]  }
  0x39   :  { %v503_v23 = vpack.c.bf16 %v463_v19, %v462_v18  ;;  %v432_v25 = vsel %vm304_vm3, %v240_v6, %v368_v15  ;;  %1791 = vmatmul.mubr.msk.bf16.gmra.mrb[12].mxu0 %vm520_vm0, %v487_v17  ;;  %v202_v26 = vmul.f32 %v1492_v10, %v1879_v2  ;;  %v272_v27 = vadd.f32 %v1893_v8, %v201_v20  ;;  %v1692_v19 = vld [vmem:[%s2237_s0 + $0x60] sm:$0xff]  }
  0x3a   :  { %v1431_v28 = vunpack.c.l.bf16 %v1689_v16  ;;  %v1432_v29 = vunpack.c.h.bf16 %v1689_v16  ;;  %v433_v30 = vsel %vm305_vm4, %v241_v14, %v369_v24  ;;  %v1495_v31 = vunpack.c.l.bf16 %v1705_v21 }
  0x3b   :  { %1823 = vmatmul.mubr.msk.bf16.gmra.mrb[12].mxu1 %vm520_vm0, %v503_v23  ;;  %v1496_v32 = vunpack.c.h.bf16 %v1705_v21  ;;  %v1435_v33 = vunpack.c.l.bf16 %v1690_v22  ;;  %v488_v34 = vpack.c.bf16 %v433_v30, %v432_v25  ;;  %v273_v35 = vadd.f32 %v1893_v8, %v202_v26 }
  0x3c   :  { %vm336_vm5 = vcmp.gt.f32.partialorder %v272_v27, 0.0  ;;  %v400_v36 = vmul.f32 0.2, %v272_v27  ;;  %v171_v37 = vmul.f32 %v1431_v28, %v1879_v2  ;;  %v172_v38 = vmul.f32 %v1432_v29, %v1879_v2 }
  0x3d   :  { %v203_v39 = vmul.f32 %v1495_v31, %v1879_v2  ;;  %v204_v40 = vmul.f32 %v1496_v32, %v1879_v2  ;;  %1794 = vmatprep.mubr.msk.bf16.mxu0 %vm520_vm0, %v488_v34  ;;  %vm337_vm6 = vcmp.gt.f32.partialorder %v273_v35, 0.0  ;;  %v401_v42 = vmul.f32 0.2, %v273_v35 }
  0x3e   :  { %v464_v43 = vsel %vm336_vm5, %v272_v27, %v400_v36  ;;  %v1436_v44 = vunpack.c.h.bf16 %v1690_v22  ;;  %v242_v45 = vadd.f32 %v1893_v8, %v171_v37  ;;  %v243_v46 = vadd.f32 %v1893_v8, %v172_v38  ;;  %v1708_v37 = vld [vmem:[%s2237_s0 + $0xe0] sm:$0xff]  }
  0x3f   :  { %v274_v47 = vadd.f32 %v1893_v8, %v203_v39  ;;  %v275_v48 = vadd.f32 %v1893_v8, %v204_v40  ;;  %v465_v49 = vsel %vm337_vm6, %v273_v35, %v401_v42  ;;  %v173_v50 = vmul.f32 %v1435_v33, %v1879_v2 }
  0x40   :  { %v174_v51 = vmul.f32 %v1436_v44, %v1879_v2  ;;  %v1499_v52 = vunpack.c.l.bf16 %v1706_v41  ;;  %v504_v53 = vpack.c.bf16 %v465_v49, %v464_v43  ;;  %vm306_vm7 = vcmp.gt.f32.partialorder %v242_v45, 0.0  ;;  %v1693_v43 = vld [vmem:[%s2237_s0 + $0x68] sm:$0xff]  }
  0x41   :  { %vm307_vm8 = vcmp.gt.f32.partialorder %v243_v46, 0.0  ;;  %v370_v54 = vmul.f32 0.2, %v242_v45  ;;  %v371_v55 = vmul.f32 0.2, %v243_v46  ;;  %vm338_vm9 = vcmp.gt.f32.partialorder %v274_v47, 0.0 }
  0x42   :  { %vm339_vm10 = vcmp.gt.f32.partialorder %v275_v48, 0.0  ;;  %v402_v56 = vmul.f32 0.2, %v274_v47  ;;  %1826 = vmatprep.mubr.msk.bf16.mxu1 %vm520_vm0, %v504_v53  ;;  %v403_v58 = vmul.f32 0.2, %v275_v48  ;;  %v244_v59 = vadd.f32 %v1893_v8, %v173_v50 }
  0x43   :  { %v434_v57 = vsel %vm306_vm7, %v242_v45, %v370_v54  ;;  %v245_v60 = vadd.f32 %v1893_v8, %v174_v51  ;;  %v435_v61 = vsel %vm307_vm8, %v243_v46, %v371_v55  ;;  %v1500_v63 = vunpack.c.h.bf16 %v1706_v41 }
  0x44   :  { %v466_v62 = vsel %vm338_vm9, %v274_v47, %v402_v56  ;;  %v205_v0 = vmul.f32 %v1499_v52, %v1879_v2  ;;  %v489_v4 = vpack.c.bf16 %v435_v61, %v434_v57  ;;  %v467_v5 = vsel %vm339_vm10, %v275_v48, %v403_v58  ;;  %v1709_v56 = vld [vmem:[%s2237_s0 + $0xe8] sm:$0xff]  }
  0x45   :  { %vm308_vm11 = vcmp.gt.f32.partialorder %v244_v59, 0.0  ;;  %vm309_vm12 = vcmp.gt.f32.partialorder %v245_v60, 0.0  ;;  %v505_v6 = vpack.c.bf16 %v467_v5, %v466_v62  ;;  %v372_v7 = vmul.f32 0.2, %v244_v59 }
  0x46   :  { %v373_v9 = vmul.f32 0.2, %v245_v60  ;;  %v206_v10 = vmul.f32 %v1500_v63, %v1879_v2  ;;  %1795 = vmatmul.mubr.msk.bf16.gmra.mrb[16].mxu0 %vm520_vm0, %v489_v4  ;;  %v276_v11 = vadd.f32 %v1893_v8, %v205_v0  ;;  %v1439_v12 = vunpack.c.l.bf16 %v1691_v1 }
  0x47   :  { %v1440_v13 = vunpack.c.h.bf16 %v1691_v1  ;;  %v1503_v14 = vunpack.c.l.bf16 %v1707_v3  ;;  %1827 = vmatmul.mubr.msk.bf16.gmra.mrb[16].mxu1 %vm520_vm0, %v505_v6  ;;  %v436_v15 = vsel %vm308_vm11, %v244_v59, %v372_v7  ;;  %v1504_v18 = vunpack.c.h.bf16 %v1707_v3 }
  0x48   :  { %v437_v16 = vsel %vm309_vm12, %v245_v60, %v373_v9  ;;  %v277_v17 = vadd.f32 %v1893_v8, %v206_v10  ;;  %vm340_vm13 = vcmp.gt.f32.partialorder %v276_v11, 0.0  ;;  %v404_v21 = vmul.f32 0.2, %v276_v11 }
  0x49   :  { %v490_v20 = vpack.c.bf16 %v437_v16, %v436_v15  ;;  %v175_v22 = vmul.f32 %v1439_v12, %v1879_v2  ;;  %v176_v24 = vmul.f32 %v1440_v13, %v1879_v2  ;;  %v207_v25 = vmul.f32 %v1503_v14, %v1879_v2  ;;  %v1710_v15 = vld [vmem:[%s2237_s0 + $0xf0] sm:$0xff]  }
  0x4a   :  { %vm341_vm14 = vcmp.gt.f32.partialorder %v277_v17, 0.0  ;;  %v405_v23 = vmul.f32 0.2, %v277_v17  ;;  %v468_v26 = vsel %vm340_vm13, %v276_v11, %v404_v21  ;;  %v208_v28 = vmul.f32 %v1504_v18, %v1879_v2  ;;  %v1694_v11 = vld [vmem:[%s2237_s0 + $0x70] sm:$0xff]  }
  0x4b   :  { %1798 = vmatprep.mubr.msk.bf16.mxu0 %vm520_vm0, %v490_v20  ;;  %v246_v27 = vadd.f32 %v1893_v8, %v175_v22  ;;  %v1443_v29 = vunpack.c.l.bf16 %v1692_v19  ;;  %v247_v31 = vadd.f32 %v1893_v8, %v176_v24  ;;  %v278_v32 = vadd.f32 %v1893_v8, %v207_v25 }
  0x4c   :  { %v469_v30 = vsel %vm341_vm14, %v277_v17, %v405_v23  ;;  %v1444_v33 = vunpack.c.h.bf16 %v1692_v19  ;;  %v279_v36 = vadd.f32 %v1893_v8, %v208_v28  ;;  %v1507_v47 = vunpack.c.l.bf16 %v1708_v37 }
  0x4d   :  { %v506_v34 = vpack.c.bf16 %v469_v30, %v468_v26  ;;  %vm310_vm15 = vcmp.gt.f32.partialorder %v246_v27, 0.0  ;;  %v374_v35 = vmul.f32 0.2, %v246_v27  ;;  %vm311_vm1 = vcmp.gt.f32.partialorder %v247_v31, 0.0 }
  0x4e   :  { %v375_v38 = vmul.f32 0.2, %v247_v31  ;;  %vm342_vm2 = vcmp.gt.f32.partialorder %v278_v32, 0.0  ;;  %v406_v39 = vmul.f32 0.2, %v278_v32  ;;  %vm343_vm3 = vcmp.gt.f32.partialorder %v279_v36, 0.0 }
  0x4f   :  { %1830 = vmatprep.mubr.msk.bf16.mxu1 %vm520_vm0, %v506_v34  ;;  %v438_v40 = vsel %vm310_vm15, %v246_v27, %v374_v35  ;;  %v407_v41 = vmul.f32 0.2, %v279_v36  ;;  %v177_v42 = vmul.f32 %v1443_v29, %v1879_v2  ;;  %v178_v46 = vmul.f32 %v1444_v33, %v1879_v2 }
  0x50   :  { %v439_v44 = vsel %vm311_vm1, %v247_v31, %v375_v38  ;;  %v470_v45 = vsel %vm342_vm2, %v278_v32, %v406_v39  ;;  %v1508_v51 = vunpack.c.h.bf16 %v1708_v37  ;;  %v209_v54 = vmul.f32 %v1507_v47, %v1879_v2  ;;  %v1695_v31 = vld [vmem:[%s2237_s0 + $0x78] sm:$0xff]  }
  0x51   :  { %v491_v48 = vpack.c.bf16 %v439_v44, %v438_v40  ;;  %v471_v49 = vsel %vm343_vm3, %v279_v36, %v407_v41  ;;  %v248_v50 = vadd.f32 %v1893_v8, %v177_v42  ;;  %v249_v53 = vadd.f32 %v1893_v8, %v178_v46 }
  0x52   :  { %v507_v52 = vpack.c.bf16 %v471_v49, %v470_v45  ;;  %v1447_v55 = vunpack.c.l.bf16 %v1693_v43  ;;  %v210_v58 = vmul.f32 %v1508_v51, %v1879_v2  ;;  %v1448_v59 = vunpack.c.h.bf16 %v1693_v43  ;;  %v1711_v45 = vld [vmem:[%s2237_s0 + $0xf8] sm:$0xff]  }
  0x53   :  { %1799 = vmatmul.mubr.msk.bf16.gmra.mrb[20].mxu0 %vm520_vm0, %v491_v48  ;;  %vm312_vm4 = vcmp.gt.f32.partialorder %v248_v50, 0.0  ;;  %v376_v57 = vmul.f32 0.2, %v248_v50  ;;  %vm313_vm5 = vcmp.gt.f32.partialorder %v249_v53, 0.0  ;;  %v377_v60 = vmul.f32 0.2, %v249_v53 }
  0x54   :  { %1831 = vmatmul.mubr.msk.bf16.gmra.mrb[20].mxu1 %vm520_vm0, %v507_v52  ;;  %v280_v61 = vadd.f32 %v1893_v8, %v209_v54  ;;  %v179_v62 = vmul.f32 %v1447_v55, %v1879_v2  ;;  %v281_v0 = vadd.f32 %v1893_v8, %v210_v58  ;;  %v180_v1 = vmul.f32 %v1448_v59, %v1879_v2 }
  0x55   :  { %v440_v63 = vsel %vm312_vm4, %v248_v50, %v376_v57  ;;  %v1511_v3 = vunpack.c.l.bf16 %v1709_v56  ;;  %v441_v4 = vsel %vm313_vm5, %v249_v53, %v377_v60  ;;  %v1512_v14 = vunpack.c.h.bf16 %v1709_v56 }
  0x56   :  { %vm344_vm6 = vcmp.gt.f32.partialorder %v280_v61, 0.0  ;;  %v408_v5 = vmul.f32 0.2, %v280_v61  ;;  %v250_v6 = vadd.f32 %v1893_v8, %v179_v62  ;;  %v492_v7 = vpack.c.bf16 %v441_v4, %v440_v63 }
  0x57   :  { %vm345_vm7 = vcmp.gt.f32.partialorder %v281_v0, 0.0  ;;  %v409_v9 = vmul.f32 0.2, %v281_v0  ;;  %v251_v10 = vadd.f32 %v1893_v8, %v180_v1  ;;  %v211_v18 = vmul.f32 %v1511_v3, %v1879_v2 }
  0x58   :  { %v472_v12 = vsel %vm344_vm6, %v280_v61, %v408_v5  ;;  %vm314_vm8 = vcmp.gt.f32.partialorder %v250_v6, 0.0  ;;  %v378_v13 = vmul.f32 0.2, %v250_v6  ;;  %1802 = vmatprep.mubr.msk.bf16.mxu0 %vm520_vm0, %v492_v7  ;;  %v212_v21 = vmul.f32 %v1512_v14, %v1879_v2 }
  0x59   :  { %v473_v16 = vsel %vm345_vm7, %v281_v0, %v409_v9  ;;  %vm315_vm9 = vcmp.gt.f32.partialorder %v251_v10, 0.0  ;;  %v379_v17 = vmul.f32 0.2, %v251_v10  ;;  %v1451_v22 = vunpack.c.l.bf16 %v1694_v11 }
  0x5a   :  { %v508_v19 = vpack.c.bf16 %v473_v16, %v472_v12  ;;  %v442_v20 = vsel %vm314_vm8, %v250_v6, %v378_v13  ;;  %v282_v24 = vadd.f32 %v1893_v8, %v211_v18  ;;  %v1452_v25 = vunpack.c.h.bf16 %v1694_v11 }
  0x5b   :  { %v443_v23 = vsel %vm315_vm9, %v251_v10, %v379_v17  ;;  %v1515_v26 = vunpack.c.l.bf16 %v1710_v15  ;;  %v283_v28 = vadd.f32 %v1893_v8, %v212_v21  ;;  %v181_v29 = vmul.f32 %v1451_v22, %v1879_v2 }
  0x5c   :  { %1834 = vmatprep.mubr.msk.bf16.mxu1 %vm520_vm0, %v508_v19  ;;  %v493_v27 = vpack.c.bf16 %v443_v23, %v442_v20  ;;  %v1516_v30 = vunpack.c.h.bf16 %v1710_v15  ;;  %vm346_vm10 = vcmp.gt.f32.partialorder %v282_v24, 0.0  ;;  %v410_v32 = vmul.f32 0.2, %v282_v24 }
  0x5d   :  { %v182_v33 = vmul.f32 %v1452_v25, %v1879_v2  ;;  %v213_v34 = vmul.f32 %v1515_v26, %v1879_v2  ;;  %vm347_vm11 = vcmp.gt.f32.partialorder %v283_v28, 0.0  ;;  %v411_v35 = vmul.f32 0.2, %v283_v28 }
  0x5e   :  { %1803 = vmatmul.mubr.msk.bf16.gmra.mrb[24].mxu0 %vm520_vm0, %v493_v27  ;;  %v252_v36 = vadd.f32 %v1893_v8, %v181_v29  ;;  %v214_v37 = vmul.f32 %v1516_v30, %v1879_v2  ;;  %v474_v38 = vsel %vm346_vm10, %v282_v24, %v410_v32  ;;  %v1455_v41 = vunpack.c.l.bf16 %v1695_v31 }
  0x5f   :  { %v253_v39 = vadd.f32 %v1893_v8, %v182_v33  ;;  %v284_v40 = vadd.f32 %v1893_v8, %v213_v34  ;;  %v475_v42 = vsel %vm347_vm11, %v283_v28, %v411_v35  ;;  %v1456_v52 = vunpack.c.h.bf16 %v1695_v31 }
  0x60   :  { %vm316_vm12 = vcmp.gt.f32.partialorder %v252_v36, 0.0  ;;  %v380_v43 = vmul.f32 0.2, %v252_v36  ;;  %v285_v44 = vadd.f32 %v1893_v8, %v214_v37  ;;  %v509_v46 = vpack.c.bf16 %v475_v42, %v474_v38 }
  0x61   :  { %vm317_vm13 = vcmp.gt.f32.partialorder %v253_v39, 0.0  ;;  %v381_v47 = vmul.f32 0.2, %v253_v39  ;;  %vm348_vm14 = vcmp.gt.f32.partialorder %v284_v40, 0.0  ;;  %v412_v49 = vmul.f32 0.2, %v284_v40 }
  0x62   :  { %v444_v48 = vsel %vm316_vm12, %v252_v36, %v380_v43  ;;  %vm349_vm15 = vcmp.gt.f32.partialorder %v285_v44, 0.0  ;;  %v413_v50 = vmul.f32 0.2, %v285_v44  ;;  %1835 = vmatmul.mubr.msk.bf16.gmra.mrb[24].mxu1 %vm520_vm0, %v509_v46  ;;  %v183_v53 = vmul.f32 %v1455_v41, %v1879_v2 }
  0x63   :  { %v445_v51 = vsel %vm317_vm13, %v253_v39, %v381_v47  ;;  %v1519_v54 = vunpack.c.l.bf16 %v1711_v45  ;;  %v476_v56 = vsel %vm348_vm14, %v284_v40, %v412_v49  ;;  %v1520_v58 = vunpack.c.h.bf16 %v1711_v45 }
  0x64   :  { %v494_v55 = vpack.c.bf16 %v445_v51, %v444_v48  ;;  %v477_v57 = vsel %vm349_vm15, %v285_v44, %v413_v50  ;;  %v184_v60 = vmul.f32 %v1456_v52, %v1879_v2  ;;  %v254_v61 = vadd.f32 %v1893_v8, %v183_v53 }
  0x65   :  { %v510_v59 = vpack.c.bf16 %v477_v57, %v476_v56  ;;  %v215_v62 = vmul.f32 %v1519_v54, %v1879_v2  ;;  %v216_v63 = vmul.f32 %v1520_v58, %v1879_v2 }
  0x66   :  { %1806 = vmatprep.mubr.msk.bf16.mxu0 %vm520_vm0, %v494_v55  ;;  %v255_v0 = vadd.f32 %v1893_v8, %v184_v60  ;;  %vm318_vm1 = vcmp.gt.f32.partialorder %v254_v61, 0.0  ;;  %v382_v1 = vmul.f32 0.2, %v254_v61 }
  0x67   :  { %1838 = vmatprep.mubr.msk.bf16.mxu1 %vm520_vm0, %v510_v59  ;;  %v286_v3 = vadd.f32 %v1893_v8, %v215_v62  ;;  %v287_v4 = vadd.f32 %v1893_v8, %v216_v63 }
  0x68   :  { %vm319_vm2 = vcmp.gt.f32.partialorder %v255_v0, 0.0  ;;  %v383_v5 = vmul.f32 0.2, %v255_v0  ;;  %v446_v6 = vsel %vm318_vm1, %v254_v61, %v382_v1 }
  0x69   :  { %vm350_vm3 = vcmp.gt.f32.partialorder %v286_v3, 0.0  ;;  %vm351_vm4 = vcmp.gt.f32.partialorder %v287_v4, 0.0  ;;  %v414_v7 = vmul.f32 0.2, %v286_v3  ;;  %v415_v9 = vmul.f32 0.2, %v287_v4 }
  0x6a   :  { %v447_v10 = vsel %vm319_vm2, %v255_v0, %v383_v5 }
  0x6b   :  { %v495_v11 = vpack.c.bf16 %v447_v10, %v446_v6  ;;  %v478_v2 = vsel %vm350_vm3, %v286_v3, %v414_v7  ;;  %v479_v12 = vsel %vm351_vm4, %v287_v4, %v415_v9 }
  0x6c   :  { %v511_v13 = vpack.c.bf16 %v479_v12, %v478_v2 }
  0x6d   :  { %1807 = vmatmul.mubr.msk.bf16.gmra.mrb[28].mxu0 %vm520_vm0, %v495_v11 }
  0x6e   :  { %1839 = vmatmul.mubr.msk.bf16.gmra.mrb[28].mxu1 %vm520_vm0, %v511_v13 }
  0xe3   :  { %v1780_v14 = vpop.f32.mrb[0].mxu0 }
  0xe4   :  { %v651_v15 = vpop.f32.mrb[1].mxu0 }
  0xe5   :  { %v1781_v16 = vpop.f32.mrb[2].mxu0 }
  0xe6   :  { %v1529_v17 = vpack.c.bf16 %v1781_v16, %v1780_v14  ;;  %v654_v18 = vpop.f32.mrb[3].mxu0 }
  0xe7   :  { %v1812_v8 = vpop.f32.mrb[0].mxu1  ;;  %v1524_v20 = vpack.c.bf16 %v654_v18, %v651_v15 }
  0xe8   :  { %v779_v19 = vpop.f32.mrb[1].mxu1  ;;  %1712 = vst [vmem:[%s2240_s4 + $0x8] sm:$0xff] %v1529_v17  }
  0xe9   :  { %v1813_v21 = vpop.f32.mrb[2].mxu1  ;;  %1525 = vst [vmem:[%s2240_s4] sm:$0xff] %v1524_v20  }
  0xea   :  { %v1609_v22 = vpack.c.bf16 %v1813_v21, %v1812_v8  ;;  %v782_v23 = vpop.f32.mrb[3].mxu1 }
  0xeb   :  { %v1604_v24 = vpack.c.bf16 %v782_v23, %v779_v19 }
  0xec   :  { %1728 = vst [vmem:[%s2240_s4 + $0x88] sm:$0xff] %v1609_v22  }
  0xed   :  { %1727 = vst [vmem:[%s2240_s4 + $0x80] sm:$0xff] %v1604_v24  }
  0xf1   :  { %v1784_v25 = vpop.f32.mrb[4].mxu0 }
  0xf2   :  { %v667_v26 = vpop.f32.mrb[5].mxu0 }
  0xf3   :  { %v1785_v27 = vpop.f32.mrb[6].mxu0 }
  0xf4   :  { %v1539_v28 = vpack.c.bf16 %v1785_v27, %v1784_v25  ;;  %v670_v29 = vpop.f32.mrb[7].mxu0 }
  0xf5   :  { %v1534_v30 = vpack.c.bf16 %v670_v29, %v667_v26  ;;  %v1816_v31 = vpop.f32.mrb[4].mxu1 }
  0xf6   :  { %1714 = vst [vmem:[%s2240_s4 + $0x18] sm:$0xff] %v1539_v28   ;;  %v795_v32 = vpop.f32.mrb[5].mxu1 }
  0xf7   :  { %1713 = vst [vmem:[%s2240_s4 + $0x10] sm:$0xff] %v1534_v30   ;;  %v1817_v33 = vpop.f32.mrb[6].mxu1 }
  0xf8   :  { %v1619_v34 = vpack.c.bf16 %v1817_v33, %v1816_v31  ;;  %v798_v35 = vpop.f32.mrb[7].mxu1 }
  0xf9   :  { %v1614_v36 = vpack.c.bf16 %v798_v35, %v795_v32 }
  0xfa   :  { %1730 = vst [vmem:[%s2240_s4 + $0x98] sm:$0xff] %v1619_v34  }
  0xfb   :  { %1729 = vst [vmem:[%s2240_s4 + $0x90] sm:$0xff] %v1614_v36  }
  0xfd   :  { %v1788_v37 = vpop.f32.mrb[8].mxu0 }
  0xfe   :  { %v683_v38 = vpop.f32.mrb[9].mxu0 }
  0xff   :  { %v1789_v39 = vpop.f32.mrb[10].mxu0 }
 0x100   :  { %v1549_v40 = vpack.c.bf16 %v1789_v39, %v1788_v37  ;;  %v686_v41 = vpop.f32.mrb[11].mxu0 }
 0x101   :  { %v1544_v43 = vpack.c.bf16 %v686_v41, %v683_v38 }
 0x102   :  { %v1820_v42 = vpop.f32.mrb[8].mxu1  ;;  %1716 = vst [vmem:[%s2240_s4 + $0x28] sm:$0xff] %v1549_v40  }
 0x103   :  { %v811_v44 = vpop.f32.mrb[9].mxu1  ;;  %1715 = vst [vmem:[%s2240_s4 + $0x20] sm:$0xff] %v1544_v43  }
 0x104   :  { %v1821_v45 = vpop.f32.mrb[10].mxu1 }
 0x105   :  { %v1629_v46 = vpack.c.bf16 %v1821_v45, %v1820_v42  ;;  %v814_v47 = vpop.f32.mrb[11].mxu1 }
 0x106   :  { %v1624_v48 = vpack.c.bf16 %v814_v47, %v811_v44 }
 0x107   :  { %1732 = vst [vmem:[%s2240_s4 + $0xa8] sm:$0xff] %v1629_v46  }
 0x108   :  { %1731 = vst [vmem:[%s2240_s4 + $0xa0] sm:$0xff] %v1624_v48  }
 0x10c   :  { %v1792_v49 = vpop.f32.mrb[12].mxu0 }
 0x10d   :  { %v699_v51 = vpop.f32.mrb[13].mxu0 }
 0x10e   :  { %v1824_v50 = vpop.f32.mrb[12].mxu1  ;;  %v1793_v53 = vpop.f32.mrb[14].mxu0 }
 0x10f   :  { %v827_v52 = vpop.f32.mrb[13].mxu1  ;;  %v1559_v54 = vpack.c.bf16 %v1793_v53, %v1792_v49  ;;  %v702_v56 = vpop.f32.mrb[15].mxu0 }
 0x110   :  { %v1825_v55 = vpop.f32.mrb[14].mxu1  ;;  %v1554_v58 = vpack.c.bf16 %v702_v56, %v699_v51 }
 0x111   :  { %v1639_v57 = vpack.c.bf16 %v1825_v55, %v1824_v50  ;;  %v830_v59 = vpop.f32.mrb[15].mxu1  ;;  %1718 = vst [vmem:[%s2240_s4 + $0x38] sm:$0xff] %v1559_v54  }
 0x112   :  { %v1634_v60 = vpack.c.bf16 %v830_v59, %v827_v52  ;;  %1717 = vst [vmem:[%s2240_s4 + $0x30] sm:$0xff] %v1554_v58  }
 0x113   :  { %1734 = vst [vmem:[%s2240_s4 + $0xb8] sm:$0xff] %v1639_v57  }
 0x114   :  { %1733 = vst [vmem:[%s2240_s4 + $0xb0] sm:$0xff] %v1634_v60  }
 0x119   :  { %v1796_v61 = vpop.f32.mrb[16].mxu0 }
 0x11a   :  { %v1828_v62 = vpop.f32.mrb[16].mxu1  ;;  %v715_v63 = vpop.f32.mrb[17].mxu0 }
 0x11b   :  { %v843_v0 = vpop.f32.mrb[17].mxu1  ;;  %v1797_v1 = vpop.f32.mrb[18].mxu0 }
 0x11c   :  { %v1569_v3 = vpack.c.bf16 %v1797_v1, %v1796_v61  ;;  %v1829_v4 = vpop.f32.mrb[18].mxu1  ;;  %v718_v5 = vpop.f32.mrb[19].mxu0 }
 0x11d   :  { %v1649_v6 = vpack.c.bf16 %v1829_v4, %v1828_v62  ;;  %v1564_v7 = vpack.c.bf16 %v718_v5, %v715_v63  ;;  %v846_v9 = vpop.f32.mrb[19].mxu1 }
 0x11e   :  { %1720 = vst [vmem:[%s2240_s4 + $0x48] sm:$0xff] %v1569_v3   ;;  %v1644_v10 = vpack.c.bf16 %v846_v9, %v843_v0 }
 0x11f   :  { %1736 = vst [vmem:[%s2240_s4 + $0xc8] sm:$0xff] %v1649_v6   ;;  %1719 = vst [vmem:[%s2240_s4 + $0x40] sm:$0xff] %v1564_v7  }
 0x120   :  { %1735 = vst [vmem:[%s2240_s4 + $0xc0] sm:$0xff] %v1644_v10  }
 0x126   :  { %v1800_v11 = vpop.f32.mrb[20].mxu0 }
 0x127   :  { %v1832_v2 = vpop.f32.mrb[20].mxu1  ;;  %v731_v12 = vpop.f32.mrb[21].mxu0 }
 0x128   :  { %v859_v13 = vpop.f32.mrb[21].mxu1  ;;  %v1801_v14 = vpop.f32.mrb[22].mxu0 }
 0x129   :  { %v1579_v15 = vpack.c.bf16 %v1801_v14, %v1800_v11  ;;  %v1833_v16 = vpop.f32.mrb[22].mxu1  ;;  %v734_v8 = vpop.f32.mrb[23].mxu0 }
 0x12a   :  { %v1659_v17 = vpack.c.bf16 %v1833_v16, %v1832_v2  ;;  %v1574_v18 = vpack.c.bf16 %v734_v8, %v731_v12  ;;  %v862_v19 = vpop.f32.mrb[23].mxu1 }
 0x12b   :  { %1722 = vst [vmem:[%s2240_s4 + $0x58] sm:$0xff] %v1579_v15   ;;  %v1654_v20 = vpack.c.bf16 %v862_v19, %v859_v13 }
 0x12c   :  { %1738 = vst [vmem:[%s2240_s4 + $0xd8] sm:$0xff] %v1659_v17   ;;  %1721 = vst [vmem:[%s2240_s4 + $0x50] sm:$0xff] %v1574_v18  }
 0x12d   :  { %1737 = vst [vmem:[%s2240_s4 + $0xd0] sm:$0xff] %v1654_v20  }
 0x131   :  { %v1804_v21 = vpop.f32.mrb[24].mxu0 }
 0x132   :  { %v747_v22 = vpop.f32.mrb[25].mxu0 }
 0x133   :  { %v1805_v23 = vpop.f32.mrb[26].mxu0 }
 0x134   :  { %v1589_v24 = vpack.c.bf16 %v1805_v23, %v1804_v21  ;;  %v750_v25 = vpop.f32.mrb[27].mxu0 }
 0x135   :  { %v1584_v26 = vpack.c.bf16 %v750_v25, %v747_v22  ;;  %v1836_v27 = vpop.f32.mrb[24].mxu1 }
 0x136   :  { %1724 = vst [vmem:[%s2240_s4 + $0x68] sm:$0xff] %v1589_v24   ;;  %v875_v28 = vpop.f32.mrb[25].mxu1 }
 0x137   :  { %1723 = vst [vmem:[%s2240_s4 + $0x60] sm:$0xff] %v1584_v26   ;;  %v1837_v29 = vpop.f32.mrb[26].mxu1 }
 0x138   :  { %v1669_v30 = vpack.c.bf16 %v1837_v29, %v1836_v27  ;;  %v878_v31 = vpop.f32.mrb[27].mxu1 }
 0x139   :  { %v1664_v32 = vpack.c.bf16 %v878_v31, %v875_v28 }
 0x13a   :  { %1740 = vst [vmem:[%s2240_s4 + $0xe8] sm:$0xff] %v1669_v30  }
 0x13b   :  { %1739 = vst [vmem:[%s2240_s4 + $0xe0] sm:$0xff] %v1664_v32  }
 0x140   :  { %v1808_v33 = vpop.f32.mrb[28].mxu0 }
 0x141   :  { %v1840_v34 = vpop.f32.mrb[28].mxu1  ;;  %v763_v35 = vpop.f32.mrb[29].mxu0 }
 0x142   :  { %v891_v36 = vpop.f32.mrb[29].mxu1  ;;  %v1809_v37 = vpop.f32.mrb[30].mxu0 }
 0x143   :  { %v1599_v38 = vpack.c.bf16 %v1809_v37, %v1808_v33  ;;  %v1841_v39 = vpop.f32.mrb[30].mxu1  ;;  %v766_v40 = vpop.f32.mrb[31].mxu0 }
 0x144   :  { %v1679_v41 = vpack.c.bf16 %v1841_v39, %v1840_v34  ;;  %v1594_v42 = vpack.c.bf16 %v766_v40, %v763_v35  ;;  %v894_v43 = vpop.f32.mrb[31].mxu1 }
 0x145   :  { %1726 = vst [vmem:[%s2240_s4 + $0x78] sm:$0xff] %v1599_v38   ;;  %v1674_v44 = vpack.c.bf16 %v894_v43, %v891_v36 }
 0x146   :  { %1742 = vst [vmem:[%s2240_s4 + $0xf8] sm:$0xff] %v1679_v41   ;;  %1725 = vst [vmem:[%s2240_s4 + $0x70] sm:$0xff] %v1594_v42  }
 0x147   :  { %1741 = vst [vmem:[%s2240_s4 + $0xf0] sm:$0xff] %v1674_v44  }

// kernel: _lambda_.16
= control target key start
LH: loop header
LB: loop body
LE: loop exit
PB: predicated region body
PF: predicated region fallthrough
CT: control target
= control target key end

     0   :  { %s1569_s9 = smov 0   ;;  %s1571_s10 = smov 0   ;;  %s2581_s0 = inlined_call_operand.vmem [shape: bf16[2048,8], index: 0, kind: input, shape index: {}]   ;;  %s2582_s1 = inlined_call_operand.vmem [shape: f32[16,8], index: 1, kind: output, shape index: {0}]   ;;  %s2583_s2 = inlined_call_operand.vmem [shape: f32[16,8], index: 2, kind: output, shape index: {1}]  }
   0x1   :  { %s1573_s11 = smov 0  }
   0x2 LB: > { %s25_s12 = sadd.s32 1, %s1547_s10  ;;  %p1178_p0 = scmp.ge.s32.totalorder %s1551_s11, 1  ;;  %s1551_s11 = sphi %s1573_s11, %s13_s11   ;;  %s1547_s10 = sphi %s1571_s10, %s2585_s10   ;;  %s1543_s9 = sphi %s1569_s9, %s2584_s9  }
   0x3   : > { %p27_p1 = scmp.ge.s32.totalorder %s25_s12, 2  ;;  %p132_p2 = scmp.lt.s32.totalorder %s1551_s11, 3 }
   0x5   : > { %s2587_s12 = smov (%p27_p1, %s25_s12), 0  ;;  %p133_p3 = pnand %p1178_p0, %p132_p2 }
   0x6   : > { %p166_p4 = scmp.lt.s32.totalorder (!%p133_p3), %s1543_s9, 1  ;;  %vm178_vm0 = vcmask (!%p133_p3), 64512   ;;  %v1553_v0 = vmov (!%p133_p3), 0.0   ;;  %s1179_s21 = sshll.u32 (!%p133_p3), %s1543_s9, 7 }
   0x7   : > { %136 = sbr.rel (%p133_p3) target bundleno = 320 (0x140), region = 24  ;;  %p160_p5 = scmp.lt.s32.totalorder (!%p133_p3), %s1179_s21, 255 }
   0xe   : > { %s167_s13 = scalar_select %p166_p4, %s1543_s9, 1 }
   0xf   : > { %s2589_s21 = smov (!%p160_p5, %s1179_s21), 255 }
  0x10   : > { %s1181_s14 = sshll.u32 %s167_s13, 3  ;;  %s1180_s22 = sshll.u32 %s2589_s21, 2 }
  0x11   : > { %s1590_s17 = scalar_lea.vmem %s2582_s1, %s1181_s14  ;;  %s1595_s20 = scalar_lea.vmem %s2583_s2, %s1181_s14 }
  0x12   : > { %179 = vst.msk [vmem:[%s1590_s17] sm:$0xff] %vm178_vm0, %v1553_v0  ;;  %180 = vst.msk [vmem:[%s1595_s20] sm:$0xff] %vm178_vm0, %v1553_v0  ;;  %s1604_s25 = scalar_lea.vmem %s2581_s0, %s1180_s22 }
  0x13   : > { %v1186_v1 = vld [vmem:[%s1604_s25] sm:$0xff]   ;;  %v1441_v2 = vld [vmem:[%s1604_s25 + $0x8] sm:$0xff]   ;;  %v1442_v6 = vld [vmem:[%s1604_s25 + $0x10] sm:$0xff]  }
  0x14   : > { %v1608_v3 = vunpack.c.l.bf16 %v1186_v1  ;;  %v1610_v4 = vunpack.c.h.bf16 %v1186_v1  ;;  %v1612_v5 = vunpack.c.l.bf16 %v1441_v2  ;;  %v1615_v7 = vunpack.c.h.bf16 %v1441_v2  ;;  %v1443_v14 = vld [vmem:[%s1604_s25 + $0x18] sm:$0xff]   ;;  %v1444_v21 = vld [vmem:[%s1604_s25 + $0x20] sm:$0xff]   ;;  %v1445_v28 = vld [vmem:[%s1604_s25 + $0x28] sm:$0xff]  }
  0x15   : > { %v1623_v12 = vunpack.c.l.bf16 %v1442_v6  ;;  %v1628_v16 = vunpack.c.h.bf16 %v1442_v6  ;;  %v1632_v19 = vunpack.c.l.bf16 %v1443_v14  ;;  %v1637_v23 = vunpack.c.h.bf16 %v1443_v14  ;;  %v1446_v35 = vld [vmem:[%s1604_s25 + $0x30] sm:$0xff]   ;;  %v1447_v42 = vld [vmem:[%s1604_s25 + $0x38] sm:$0xff]   ;;  %v1448_v49 = vld [vmem:[%s1604_s25 + $0x40] sm:$0xff]  }
  0x16   : > { %v439_v8 = vsel %vm178_vm0, %v1608_v3, 0.0  ;;  %v440_v9 = vsel %vm178_vm0, %v1610_v4, 0.0  ;;  %v442_v10 = vsel %vm178_vm0, %v1612_v5, 0.0  ;;  %v444_v13 = vsel %vm178_vm0, %v1615_v7, 0.0  ;;  %v1449_v56 = vld [vmem:[%s1604_s25 + $0x48] sm:$0xff]   ;;  %v1450_v63 = vld [vmem:[%s1604_s25 + $0x50] sm:$0xff]  }
  0x17   : > { %v441_v11 = vadd.f32 %v440_v9, %v439_v8  ;;  %v446_v17 = vsel %vm178_vm0, %v1623_v12, 0.0  ;;  %v448_v20 = vsel %vm178_vm0, %v1628_v16, 0.0  ;;  %v450_v24 = vsel %vm178_vm0, %v1632_v19, 0.0 }
  0x18   : > { %v1641_v26 = vunpack.c.l.bf16 %v1444_v21  ;;  %v452_v27 = vsel %vm178_vm0, %v1637_v23, 0.0  ;;  %v1646_v30 = vunpack.c.h.bf16 %v1444_v21  ;;  %v1650_v33 = vunpack.c.l.bf16 %v1445_v28 }
  0x19   : > { %v443_v15 = vadd.f32 %v442_v10, %v441_v11  ;;  %v1655_v37 = vunpack.c.h.bf16 %v1445_v28  ;;  %v1659_v40 = vunpack.c.l.bf16 %v1446_v35  ;;  %v1664_v44 = vunpack.c.h.bf16 %v1446_v35  ;;  %v1451_v10 = vld [vmem:[%s1604_s25 + $0x58] sm:$0xff]   ;;  %v1453_v28 = vld [vmem:[%s1604_s25 + $0x68] sm:$0xff]  }
  0x1a   : > { %v454_v31 = vsel %vm178_vm0, %v1641_v26, 0.0  ;;  %v456_v34 = vsel %vm178_vm0, %v1646_v30, 0.0  ;;  %v458_v38 = vsel %vm178_vm0, %v1650_v33, 0.0  ;;  %v1668_v47 = vunpack.c.l.bf16 %v1447_v42 }
  0x1b   : > { %v445_v18 = vadd.f32 %v444_v13, %v443_v15  ;;  %v460_v41 = vsel %vm178_vm0, %v1655_v37, 0.0  ;;  %v462_v45 = vsel %vm178_vm0, %v1659_v40, 0.0  ;;  %v464_v48 = vsel %vm178_vm0, %v1664_v44, 0.0 }
  0x1c   : > { %v1673_v51 = vunpack.c.h.bf16 %v1447_v42  ;;  %v466_v52 = vsel %vm178_vm0, %v1668_v47, 0.0  ;;  %v1677_v54 = vunpack.c.l.bf16 %v1448_v49  ;;  %v1682_v58 = vunpack.c.h.bf16 %v1448_v49 }
  0x1d   : > { %v447_v22 = vadd.f32 %v446_v17, %v445_v18  ;;  %v1686_v61 = vunpack.c.l.bf16 %v1449_v56  ;;  %v1691_v1 = vunpack.c.h.bf16 %v1449_v56  ;;  %v1695_v8 = vunpack.c.l.bf16 %v1450_v63 }
  0x1e   : > { %v468_v55 = vsel %vm178_vm0, %v1673_v51, 0.0  ;;  %v470_v59 = vsel %vm178_vm0, %v1677_v54, 0.0  ;;  %v472_v62 = vsel %vm178_vm0, %v1682_v58, 0.0  ;;  %v1700_v13 = vunpack.c.h.bf16 %v1450_v63 }
  0x1f   : > { %v449_v25 = vadd.f32 %v448_v20, %v447_v22  ;;  %v474_v2 = vsel %vm178_vm0, %v1686_v61, 0.0  ;;  %v476_v9 = vsel %vm178_vm0, %v1691_v1, 0.0  ;;  %v478_v14 = vsel %vm178_vm0, %v1695_v8, 0.0  ;;  %v1452_v20 = vld [vmem:[%s1604_s25 + $0x60] sm:$0xff]  }
  0x20   : > { %v1704_v17 = vunpack.c.l.bf16 %v1451_v10  ;;  %v480_v18 = vsel %vm178_vm0, %v1700_v13, 0.0  ;;  %v1709_v22 = vunpack.c.h.bf16 %v1451_v10  ;;  %v697_v35 = vmul.f32 %v1608_v3, %v1608_v3 }
  0x21   : > { %v451_v29 = vadd.f32 %v450_v24, %v449_v25  ;;  %v702_v56 = vmul.f32 %v1628_v16, %v1628_v16 }
  0x22   : > { %v482_v24 = vsel %vm178_vm0, %v1704_v17, 0.0 }
  0x23   : > { %v453_v32 = vadd.f32 %v452_v27, %v451_v29  ;;  %v1713_v27 = vunpack.c.l.bf16 %v1452_v20  ;;  %v484_v29 = vsel %vm178_vm0, %v1709_v22, 0.0 }
  0x25   : > { %v455_v36 = vadd.f32 %v454_v31, %v453_v32  ;;  %v1718_v31 = vunpack.c.h.bf16 %v1452_v20 }
  0x27   : > { %v457_v39 = vadd.f32 %v456_v34, %v455_v36  ;;  %v486_v34 = vsel %vm178_vm0, %v1713_v27, 0.0  ;;  %v698_v36 = vmul.f32 %v1610_v4, %v1610_v4  ;;  %v488_v42 = vsel %vm178_vm0, %v1718_v31, 0.0 }
  0x29   : > { %v459_v43 = vadd.f32 %v458_v38, %v457_v39  ;;  %v699_v38 = vmul.f32 %v1612_v5, %v1612_v5  ;;  %v1728_v39 = vunpack.c.l.bf16 %v1453_v28  ;;  %v701_v5 = vmul.f32 %v1623_v12, %v1623_v12  ;;  %v1455_v12 = vld [vmem:[%s1604_s25 + $0x78] sm:$0xff]  }
  0x2a   : > { %v826_v49 = vsel %vm178_vm0, %v698_v36, 0.0  ;;  %v1759_v10 = vunpack.c.l.bf16 %v1455_v12  ;;  %v1457_v36 = vld [vmem:[%s1604_s25 + $0x88] sm:$0xff]  }
  0x2b   : > { %v461_v46 = vadd.f32 %v460_v41, %v459_v43  ;;  %v700_v43 = vmul.f32 %v1615_v7, %v1615_v7  ;;  %v490_v4 = vsel %vm178_vm0, %v1728_v39, 0.0 }
  0x2d   : > { %v463_v50 = vadd.f32 %v462_v45, %v461_v46  ;;  %v1734_v45 = vunpack.c.h.bf16 %v1453_v28  ;;  %v1454_v46 = vld [vmem:[%s1604_s25 + $0x70] sm:$0xff]  }
  0x2f   : > { %v465_v53 = vadd.f32 %v464_v48, %v463_v50  ;;  %v825_v48 = vsel %vm178_vm0, %v697_v35, 0.0  ;;  %v828_v50 = vsel %vm178_vm0, %v699_v38, 0.0  ;;  %v492_v7 = vsel %vm178_vm0, %v1734_v45, 0.0 }
  0x31   : > { %v467_v57 = vadd.f32 %v466_v52, %v465_v53  ;;  %v827_v53 = vadd.f32 %v826_v49, %v825_v48  ;;  %v708_v48 = vmul.f32 %v1655_v37, %v1655_v37 }
  0x33   : > { %v469_v60 = vadd.f32 %v468_v55, %v467_v57  ;;  %v1744_v55 = vunpack.c.l.bf16 %v1454_v46  ;;  %v830_v57 = vsel %vm178_vm0, %v700_v43, 0.0  ;;  %v707_v43 = vmul.f32 %v1650_v33, %v1650_v33 }
  0x35   : > { %v471_v0 = vadd.f32 %v470_v59, %v469_v60  ;;  %v829_v60 = vadd.f32 %v828_v50, %v827_v53  ;;  %v494_v63 = vsel %vm178_vm0, %v1744_v55, 0.0  ;;  %v1458_v50 = vld [vmem:[%s1604_s25 + $0x90] sm:$0xff]  }
  0x37   : > { %v473_v6 = vadd.f32 %v472_v62, %v471_v0  ;;  %v1752_v62 = vunpack.c.h.bf16 %v1454_v46  ;;  %v703_v0 = vmul.f32 %v1632_v19, %v1632_v19  ;;  %v498_v19 = vsel %vm178_vm0, %v1759_v10, 0.0 }
  0x39   : > { %v475_v11 = vadd.f32 %v474_v2, %v473_v6  ;;  %v832_v2 = vsel %vm178_vm0, %v701_v5, 0.0  ;;  %v496_v16 = vsel %vm178_vm0, %v1752_v62, 0.0  ;;  %v1789_v5 = vunpack.c.l.bf16 %v1457_v36 }
  0x3b   : > { %v477_v15 = vadd.f32 %v476_v9, %v475_v11  ;;  %v831_v9 = vadd.f32 %v830_v57, %v829_v60  ;;  %v704_v11 = vmul.f32 %v1637_v23, %v1637_v23  ;;  %v506_v33 = vsel %vm178_vm0, %v1789_v5, 0.0 }
  0x3c   : > { %v844_v57 = vsel %vm178_vm0, %v707_v43, 0.0  ;;  %v1804_v60 = vunpack.c.l.bf16 %v1458_v50 }
  0x3d   : > { %v479_v21 = vadd.f32 %v478_v14, %v477_v15  ;;  %v834_v14 = vsel %vm178_vm0, %v702_v56, 0.0  ;;  %v1456_v15 = vld [vmem:[%s1604_s25 + $0x80] sm:$0xff]   ;;  %v833_v20 = vadd.f32 %v832_v2, %v831_v9  ;;  %v838_v35 = vsel %vm178_vm0, %v704_v11, 0.0  ;;  %v1459_v2 = vld [vmem:[%s1604_s25 + $0x98] sm:$0xff]  }
  0x3e   : > { %v709_v56 = vmul.f32 %v1659_v40, %v1659_v40  ;;  %v510_v40 = vsel %vm178_vm0, %v1804_v60, 0.0  ;;  %v711_v11 = vmul.f32 %v1668_v47, %v1668_v47 }
  0x3f   : > { %v481_v25 = vadd.f32 %v480_v18, %v479_v21  ;;  %v1767_v21 = vunpack.c.h.bf16 %v1455_v12 }
  0x41   : > { %v483_v32 = vadd.f32 %v482_v24, %v481_v25  ;;  %v705_v24 = vmul.f32 %v1641_v26, %v1641_v26  ;;  %v836_v25 = vsel %vm178_vm0, %v703_v0, 0.0  ;;  %v500_v23 = vsel %vm178_vm0, %v1767_v21, 0.0 }
  0x42   : > { %v846_v0 = vsel %vm178_vm0, %v708_v48, 0.0  ;;  %v715_v48 = vmul.f32 %v1686_v61, %v1686_v61 }
  0x43   : > { %v485_v41 = vadd.f32 %v484_v29, %v483_v32  ;;  %v835_v29 = vadd.f32 %v834_v14, %v833_v20  ;;  %v1774_v32 = vunpack.c.l.bf16 %v1456_v15  ;;  %v840_v46 = vsel %vm178_vm0, %v705_v24, 0.0 }
  0x44   : > { %v848_v14 = vsel %vm178_vm0, %v709_v56, 0.0  ;;  %v1819_v20 = vunpack.c.l.bf16 %v1459_v2 }
  0x45   : > { %v487_v3 = vadd.f32 %v486_v34, %v485_v41  ;;  %v706_v34 = vmul.f32 %v1646_v30, %v1646_v30  ;;  %v837_v41 = vadd.f32 %v836_v25, %v835_v29  ;;  %v502_v26 = vsel %vm178_vm0, %v1774_v32, 0.0  ;;  %v1460_v25 = vld [vmem:[%s1604_s25 + $0xa0] sm:$0xff]  }
  0x46   : > { %v514_v47 = vsel %vm178_vm0, %v1819_v20, 0.0 }
  0x47   : > { %v489_v52 = vadd.f32 %v488_v42, %v487_v3  ;;  %v1782_v42 = vunpack.c.h.bf16 %v1456_v15  ;;  %v842_v49 = vsel %vm178_vm0, %v706_v34, 0.0  ;;  %v713_v34 = vmul.f32 %v1677_v54, %v1677_v54 }
  0x49   : > { %v491_v59 = vadd.f32 %v490_v4, %v489_v52  ;;  %v839_v4 = vadd.f32 %v838_v35, %v837_v41  ;;  %v504_v30 = vsel %vm178_vm0, %v1782_v42, 0.0  ;;  %v852_v35 = vsel %vm178_vm0, %v711_v11, 0.0 }
  0x4a   : > { %v1834_v41 = vunpack.c.l.bf16 %v1460_v25 }
  0x4b   : > { %v493_v6 = vadd.f32 %v492_v7, %v491_v59  ;;  %v841_v53 = vadd.f32 %v840_v46, %v839_v4  ;;  %v1797_v7 = vunpack.c.h.bf16 %v1457_v36  ;;  %v1461_v46 = vld [vmem:[%s1604_s25 + $0xa8] sm:$0xff]  }
  0x4c   : > { %v518_v54 = vsel %vm178_vm0, %v1834_v41, 0.0 }
  0x4d   : > { %v495_v18 = vadd.f32 %v494_v63, %v493_v6  ;;  %v843_v59 = vadd.f32 %v842_v49, %v841_v53  ;;  %v508_v37 = vsel %vm178_vm0, %v1797_v7, 0.0  ;;  %v710_v63 = vmul.f32 %v1664_v44, %v1664_v44 }
  0x4e   : > { %v856_v49 = vsel %vm178_vm0, %v713_v34, 0.0  ;;  %v1849_v53 = vunpack.c.l.bf16 %v1461_v46 }
  0x4f   : > { %v497_v28 = vadd.f32 %v496_v16, %v495_v18  ;;  %v845_v9 = vadd.f32 %v844_v57, %v843_v59  ;;  %v1812_v16 = vunpack.c.h.bf16 %v1458_v50  ;;  %v850_v24 = vsel %vm178_vm0, %v710_v63, 0.0  ;;  %v1462_v57 = vld [vmem:[%s1604_s25 + $0xb0] sm:$0xff]  }
  0x50   : > { %v522_v61 = vsel %vm178_vm0, %v1849_v53, 0.0  ;;  %v717_v63 = vmul.f32 %v1695_v8, %v1695_v8 }
  0x51   : > { %v499_v38 = vadd.f32 %v498_v19, %v497_v28  ;;  %v847_v18 = vadd.f32 %v846_v0, %v845_v9  ;;  %v512_v44 = vsel %vm178_vm0, %v1812_v16, 0.0  ;;  %v712_v19 = vmul.f32 %v1673_v51, %v1673_v51 }
  0x52   : > { %v860_v0 = vsel %vm178_vm0, %v715_v48, 0.0  ;;  %v1864_v9 = vunpack.c.l.bf16 %v1462_v57 }
  0x53   : > { %v501_v3 = vadd.f32 %v500_v23, %v499_v38  ;;  %v849_v29 = vadd.f32 %v848_v14, %v847_v18  ;;  %v1827_v23 = vunpack.c.h.bf16 %v1459_v2  ;;  %v854_v43 = vsel %vm178_vm0, %v712_v19, 0.0  ;;  %v1463_v14 = vld [vmem:[%s1604_s25 + $0xb8] sm:$0xff]  }
  0x54   : > { %v526_v8 = vsel %vm178_vm0, %v1864_v9, 0.0  ;;  %v719_v19 = vmul.f32 %v1704_v17, %v1704_v17 }
  0x55   : > { %v503_v52 = vadd.f32 %v502_v26, %v501_v3  ;;  %v851_v38 = vadd.f32 %v850_v24, %v849_v29  ;;  %v516_v51 = vsel %vm178_vm0, %v1827_v23, 0.0  ;;  %v714_v26 = vmul.f32 %v1682_v58, %v1682_v58 }
  0x56   : > { %v864_v24 = vsel %vm178_vm0, %v717_v63, 0.0  ;;  %v1879_v29 = vunpack.c.l.bf16 %v1463_v14 }
  0x57   : > { %v505_v12 = vadd.f32 %v504_v30, %v503_v52  ;;  %v853_v4 = vadd.f32 %v852_v35, %v851_v38  ;;  %v1842_v30 = vunpack.c.h.bf16 %v1460_v25  ;;  %v858_v56 = vsel %vm178_vm0, %v714_v26, 0.0  ;;  %v1464_v35 = vld [vmem:[%s1604_s25 + $0xc0] sm:$0xff]  }
  0x58   : > { %v530_v17 = vsel %vm178_vm0, %v1879_v29, 0.0  ;;  %v721_v26 = vmul.f32 %v1713_v27, %v1713_v27 }
  0x59   : > { %v507_v6 = vadd.f32 %v506_v33, %v505_v12  ;;  %v855_v52 = vadd.f32 %v854_v43, %v853_v4  ;;  %v520_v58 = vsel %vm178_vm0, %v1842_v30, 0.0  ;;  %v716_v33 = vmul.f32 %v1691_v1, %v1691_v1 }
  0x5a   : > { %v868_v43 = vsel %vm178_vm0, %v719_v19, 0.0  ;;  %v1894_v4 = vunpack.c.l.bf16 %v1464_v35 }
  0x5b   : > { %v509_v15 = vadd.f32 %v508_v37, %v507_v6  ;;  %v857_v59 = vadd.f32 %v856_v49, %v855_v52  ;;  %v1857_v37 = vunpack.c.h.bf16 %v1461_v46  ;;  %v862_v11 = vsel %vm178_vm0, %v716_v33, 0.0  ;;  %v1465_v49 = vld [vmem:[%s1604_s25 + $0xc8] sm:$0xff]  }
  0x5c   : > { %v534_v27 = vsel %vm178_vm0, %v1894_v4, 0.0  ;;  %v723_v33 = vmul.f32 %v1728_v39, %v1728_v39 }
  0x5d   : > { %v511_v28 = vadd.f32 %v510_v40, %v509_v15  ;;  %v859_v6 = vadd.f32 %v858_v56, %v857_v59  ;;  %v524_v1 = vsel %vm178_vm0, %v1857_v37, 0.0  ;;  %v718_v40 = vmul.f32 %v1700_v13, %v1700_v13 }
  0x5e   : > { %v872_v56 = vsel %vm178_vm0, %v721_v26, 0.0  ;;  %v1909_v59 = vunpack.c.l.bf16 %v1465_v49 }
  0x5f   : > { %v513_v36 = vadd.f32 %v512_v44, %v511_v28  ;;  %v861_v18 = vadd.f32 %v860_v0, %v859_v6  ;;  %v1872_v44 = vunpack.c.h.bf16 %v1462_v57  ;;  %v866_v34 = vsel %vm178_vm0, %v718_v40, 0.0  ;;  %v1466_v0 = vld [vmem:[%s1604_s25 + $0xd0] sm:$0xff]  }
  0x60   : > { %v538_v39 = vsel %vm178_vm0, %v1909_v59, 0.0  ;;  %v725_v40 = vmul.f32 %v1744_v55, %v1744_v55 }
  0x61   : > { %v515_v3 = vadd.f32 %v514_v47, %v513_v36  ;;  %v863_v28 = vadd.f32 %v862_v11, %v861_v18  ;;  %v528_v13 = vsel %vm178_vm0, %v1872_v44, 0.0  ;;  %v720_v47 = vmul.f32 %v1709_v22, %v1709_v22 }
  0x62   : > { %v876_v11 = vsel %vm178_vm0, %v723_v33, 0.0  ;;  %v1924_v18 = vunpack.c.l.bf16 %v1466_v0 }
  0x63   : > { %v517_v50 = vadd.f32 %v516_v51, %v515_v3  ;;  %v865_v38 = vadd.f32 %v864_v24, %v863_v28  ;;  %v1887_v51 = vunpack.c.h.bf16 %v1463_v14  ;;  %v870_v48 = vsel %vm178_vm0, %v720_v47, 0.0  ;;  %v1467_v24 = vld [vmem:[%s1604_s25 + $0xd8] sm:$0xff]  }
  0x64   : > { %v542_v55 = vsel %vm178_vm0, %v1924_v18, 0.0  ;;  %v727_v47 = vmul.f32 %v1759_v10, %v1759_v10 }
  0x65   : > { %v519_v12 = vadd.f32 %v518_v54, %v517_v50  ;;  %v867_v3 = vadd.f32 %v866_v34, %v865_v38  ;;  %v532_v22 = vsel %vm178_vm0, %v1887_v51, 0.0  ;;  %v722_v54 = vmul.f32 %v1718_v31, %v1718_v31 }
  0x66   : > { %v880_v34 = vsel %vm178_vm0, %v725_v40, 0.0  ;;  %v1939_v38 = vunpack.c.l.bf16 %v1467_v24 }
  0x67   : > { %v521_v2 = vadd.f32 %v520_v58, %v519_v12  ;;  %v869_v52 = vadd.f32 %v868_v43, %v867_v3  ;;  %v1902_v58 = vunpack.c.h.bf16 %v1464_v35  ;;  %v874_v63 = vsel %vm178_vm0, %v722_v54, 0.0  ;;  %v1468_v43 = vld [vmem:[%s1604_s25 + $0xe0] sm:$0xff]  }
  0x68   : > { %v546_v10 = vsel %vm178_vm0, %v1939_v38, 0.0  ;;  %v729_v54 = vmul.f32 %v1774_v32, %v1774_v32 }
  0x69   : > { %v523_v15 = vadd.f32 %v522_v61, %v521_v2  ;;  %v871_v12 = vadd.f32 %v870_v48, %v869_v52  ;;  %v536_v31 = vsel %vm178_vm0, %v1902_v58, 0.0  ;;  %v724_v61 = vmul.f32 %v1734_v45, %v1734_v45 }
  0x6a   : > { %v884_v48 = vsel %vm178_vm0, %v727_v47, 0.0  ;;  %v1954_v52 = vunpack.c.l.bf16 %v1468_v43 }
  0x6b   : > { %v525_v25 = vadd.f32 %v524_v1, %v523_v15  ;;  %v873_v6 = vadd.f32 %v872_v56, %v871_v12  ;;  %v1917_v1 = vunpack.c.h.bf16 %v1465_v49  ;;  %v878_v19 = vsel %vm178_vm0, %v724_v61, 0.0  ;;  %v1469_v56 = vld [vmem:[%s1604_s25 + $0xe8] sm:$0xff]  }
  0x6c   : > { %v550_v32 = vsel %vm178_vm0, %v1954_v52, 0.0  ;;  %v731_v61 = vmul.f32 %v1789_v5, %v1789_v5 }
  0x6d   : > { %v527_v36 = vadd.f32 %v526_v8, %v525_v25  ;;  %v875_v15 = vadd.f32 %v874_v63, %v873_v6  ;;  %v540_v45 = vsel %vm178_vm0, %v1917_v1, 0.0  ;;  %v726_v8 = vmul.f32 %v1752_v62, %v1752_v62 }
  0x6e   : > { %v888_v63 = vsel %vm178_vm0, %v729_v54, 0.0  ;;  %v1969_v6 = vunpack.c.l.bf16 %v1469_v56 }
  0x6f   : > { %v529_v46 = vadd.f32 %v528_v13, %v527_v36  ;;  %v877_v28 = vadd.f32 %v876_v11, %v875_v15  ;;  %v1932_v13 = vunpack.c.h.bf16 %v1466_v0  ;;  %v882_v26 = vsel %vm178_vm0, %v726_v8, 0.0  ;;  %v1470_v11 = vld [vmem:[%s1604_s25 + $0xf0] sm:$0xff]  }
  0x70   : > { %v554_v5 = vsel %vm178_vm0, %v1969_v6, 0.0  ;;  %v733_v8 = vmul.f32 %v1804_v60, %v1804_v60 }
  0x71   : > { %v531_v50 = vadd.f32 %v530_v17, %v529_v46  ;;  %v879_v36 = vadd.f32 %v878_v19, %v877_v28  ;;  %v544_v62 = vsel %vm178_vm0, %v1932_v13, 0.0  ;;  %v728_v17 = vmul.f32 %v1767_v21, %v1767_v21 }
  0x72   : > { %v892_v19 = vsel %vm178_vm0, %v731_v61, 0.0  ;;  %v1984_v28 = vunpack.c.l.bf16 %v1470_v11  ;;  %v1473_v61 = vld [vmem:[%s1604_s25 + $0x108] sm:$0xff]  }
  0x73   : > { %v533_v57 = vadd.f32 %v532_v22, %v531_v50  ;;  %v881_v3 = vadd.f32 %v880_v34, %v879_v36  ;;  %v1947_v22 = vunpack.c.h.bf16 %v1467_v24  ;;  %v886_v33 = vsel %vm178_vm0, %v728_v17, 0.0  ;;  %v1471_v34 = vld [vmem:[%s1604_s25 + $0xf8] sm:$0xff]  }
  0x74   : > { %v558_v60 = vsel %vm178_vm0, %v1984_v28, 0.0  ;;  %v735_v17 = vmul.f32 %v1819_v20, %v1819_v20 }
  0x75   : > { %v535_v2 = vadd.f32 %v534_v27, %v533_v57  ;;  %v883_v50 = vadd.f32 %v882_v26, %v881_v3  ;;  %v548_v21 = vsel %vm178_vm0, %v1947_v22, 0.0  ;;  %v730_v27 = vmul.f32 %v1782_v42, %v1782_v42 }
  0x76   : > { %v896_v26 = vsel %vm178_vm0, %v733_v8, 0.0  ;;  %v1999_v3 = vunpack.c.l.bf16 %v1471_v34  ;;  %v1474_v8 = vld [vmem:[%s1604_s25 + $0x110] sm:$0xff]  }
  0x77   : > { %v537_v14 = vadd.f32 %v536_v31, %v535_v2  ;;  %v885_v12 = vadd.f32 %v884_v48, %v883_v50  ;;  %v1962_v31 = vunpack.c.h.bf16 %v1468_v43  ;;  %v890_v40 = vsel %vm178_vm0, %v730_v27, 0.0  ;;  %v1472_v48 = vld [vmem:[%s1604_s25 + $0x100] sm:$0xff]  }
  0x78   : > { %v562_v20 = vsel %vm178_vm0, %v1999_v3, 0.0  ;;  %v737_v27 = vmul.f32 %v1834_v41, %v1834_v41 }
  0x79   : > { %v539_v25 = vadd.f32 %v538_v39, %v537_v14  ;;  %v887_v2 = vadd.f32 %v886_v33, %v885_v12  ;;  %v552_v42 = vsel %vm178_vm0, %v1962_v31, 0.0  ;;  %v732_v39 = vmul.f32 %v1797_v7, %v1797_v7 }
  0x7a   : > { %v900_v33 = vsel %vm178_vm0, %v735_v17, 0.0  ;;  %v2014_v12 = vunpack.c.l.bf16 %v1472_v48 }
  0x7b   : > { %v541_v35 = vadd.f32 %v540_v45, %v539_v25  ;;  %v889_v15 = vadd.f32 %v888_v63, %v887_v2  ;;  %v1977_v45 = vunpack.c.h.bf16 %v1469_v56  ;;  %v894_v47 = vsel %vm178_vm0, %v732_v39, 0.0 }
  0x7c   : > { %v2020_v2 = vunpack.c.h.bf16 %v1472_v48  ;;  %v566_v41 = vsel %vm178_vm0, %v2014_v12, 0.0  ;;  %v904_v39 = vsel %vm178_vm0, %v737_v27, 0.0 }
  0x7d   : > { %v543_v46 = vadd.f32 %v542_v55, %v541_v35  ;;  %v891_v25 = vadd.f32 %v890_v40, %v889_v15  ;;  %v556_v7 = vsel %vm178_vm0, %v1977_v45, 0.0  ;;  %v734_v55 = vmul.f32 %v1812_v16, %v1812_v16 }
  0x7e   : > { %v568_v15 = vsel %vm178_vm0, %v2020_v2, 0.0 }
  0x7f   : > { %v545_v49 = vadd.f32 %v544_v62, %v543_v46  ;;  %v893_v36 = vadd.f32 %v892_v19, %v891_v25  ;;  %v1992_v62 = vunpack.c.h.bf16 %v1470_v11  ;;  %v898_v54 = vsel %vm178_vm0, %v734_v55, 0.0 }
  0x80   : > { %v2034_v25 = vunpack.c.h.bf16 %v1473_v61 }
  0x81   : > { %v547_v57 = vadd.f32 %v546_v10, %v545_v49  ;;  %v895_v46 = vadd.f32 %v894_v47, %v893_v36  ;;  %v560_v16 = vsel %vm178_vm0, %v1992_v62, 0.0  ;;  %v736_v10 = vmul.f32 %v1827_v23, %v1827_v23 }
  0x83   : > { %v549_v0 = vadd.f32 %v548_v21, %v547_v57  ;;  %v897_v50 = vadd.f32 %v896_v26, %v895_v46  ;;  %v2007_v21 = vunpack.c.h.bf16 %v1471_v34  ;;  %v2041_v34 = vunpack.c.l.bf16 %v1474_v8 }
  0x84   : > { %v742_v46 = vmul.f32 %v1872_v44, %v1872_v44 }
  0x85   : > { %v551_v14 = vadd.f32 %v550_v32, %v549_v0  ;;  %v899_v57 = vadd.f32 %v898_v54, %v897_v50  ;;  %v564_v23 = vsel %vm178_vm0, %v2007_v21, 0.0  ;;  %v902_v32 = vsel %vm178_vm0, %v736_v10, 0.0 }
  0x87   : > { %v553_v24 = vadd.f32 %v552_v42, %v551_v14  ;;  %v901_v0 = vadd.f32 %v900_v33, %v899_v57  ;;  %v738_v42 = vmul.f32 %v1842_v30, %v1842_v30  ;;  %v2027_v14 = vunpack.c.l.bf16 %v1473_v61 }
  0x88   : > { %v744_v57 = vmul.f32 %v1887_v51, %v1887_v51 }
  0x89   : > { %v555_v35 = vadd.f32 %v554_v5, %v553_v24  ;;  %v903_v11 = vadd.f32 %v902_v32, %v901_v0  ;;  %v739_v5 = vmul.f32 %v1849_v53, %v1849_v53  ;;  %v570_v30 = vsel %vm178_vm0, %v2027_v14, 0.0 }
  0x8a   : > { %v906_v55 = vsel %vm178_vm0, %v738_v42, 0.0  ;;  %v741_v53 = vmul.f32 %v1864_v9, %v1864_v9  ;;  %v745_v0 = vmul.f32 %v1894_v4, %v1894_v4  ;;  %v1477_v42 = vld [vmem:[%s1604_s25 + $0x128] sm:$0xff]  }
  0x8b   : > { %v557_v43 = vadd.f32 %v556_v7, %v555_v35  ;;  %v905_v24 = vadd.f32 %v904_v39, %v903_v11  ;;  %v740_v7 = vmul.f32 %v1857_v37, %v1857_v37  ;;  %v572_v35 = vsel %vm178_vm0, %v2034_v25, 0.0 }
  0x8c   : > { %v908_v36 = vsel %vm178_vm0, %v739_v5, 0.0  ;;  %v574_v37 = vsel %vm178_vm0, %v2041_v34, 0.0  ;;  %v912_v50 = vsel %vm178_vm0, %v741_v53, 0.0  ;;  %v918_v5 = vsel %vm178_vm0, %v744_v57, 0.0 }
  0x8d   : > { %v559_v49 = vadd.f32 %v558_v60, %v557_v43  ;;  %v1475_v60 = vld [vmem:[%s1604_s25 + $0x118] sm:$0xff]   ;;  %v907_v26 = vadd.f32 %v906_v55, %v905_v24  ;;  %v2049_v43 = vunpack.c.h.bf16 %v1474_v8  ;;  %v2086_v24 = vunpack.c.l.bf16 %v1477_v42  ;;  %v1478_v55 = vld [vmem:[%s1604_s25 + $0x130] sm:$0xff]  }
  0x8e   : > { %v2056_v48 = vunpack.c.l.bf16 %v1475_v60  ;;  %v2094_v53 = vunpack.c.h.bf16 %v1477_v42  ;;  %v751_v57 = vmul.f32 %v1939_v38, %v1939_v38 }
  0x8f   : > { %v561_v56 = vadd.f32 %v560_v16, %v559_v49  ;;  %v910_v16 = vsel %vm178_vm0, %v740_v7, 0.0  ;;  %v909_v54 = vadd.f32 %v908_v36, %v907_v26  ;;  %v576_v9 = vsel %vm178_vm0, %v2049_v43, 0.0 }
  0x90   : > { %v743_v49 = vmul.f32 %v1879_v29, %v1879_v29  ;;  %v578_v44 = vsel %vm178_vm0, %v2056_v48, 0.0  ;;  %v920_v7 = vsel %vm178_vm0, %v745_v0, 0.0  ;;  %v748_v36 = vmul.f32 %v1917_v1, %v1917_v1 }
  0x91   : > { %v563_v63 = vadd.f32 %v562_v20, %v561_v56  ;;  %v1476_v20 = vld [vmem:[%s1604_s25 + $0x120] sm:$0xff]   ;;  %v911_v33 = vadd.f32 %v910_v16, %v909_v54  ;;  %v2064_v56 = vunpack.c.h.bf16 %v1475_v60 }
  0x92   : > { %v2079_v11 = vunpack.c.h.bf16 %v1476_v20 }
  0x93   : > { %v565_v40 = vadd.f32 %v564_v23, %v563_v63  ;;  %v914_v23 = vsel %vm178_vm0, %v742_v46, 0.0  ;;  %v913_v61 = vadd.f32 %v912_v50, %v911_v33  ;;  %v2071_v63 = vunpack.c.l.bf16 %v1476_v20 }
  0x94   : > { %v580_v29 = vsel %vm178_vm0, %v2064_v56, 0.0  ;;  %v584_v4 = vsel %vm178_vm0, %v2079_v11, 0.0  ;;  %v749_v46 = vmul.f32 %v1924_v18, %v1924_v18  ;;  %v750_v50 = vmul.f32 %v1932_v13, %v1932_v13 }
  0x95   : > { %v567_v19 = vadd.f32 %v566_v41, %v565_v40  ;;  %v916_v41 = vsel %vm178_vm0, %v743_v49, 0.0  ;;  %v915_v40 = vadd.f32 %v914_v23, %v913_v61  ;;  %v582_v51 = vsel %vm178_vm0, %v2071_v63, 0.0 }
  0x96   : > { %v2109_v49 = vunpack.c.h.bf16 %v1478_v55  ;;  %v926_v20 = vsel %vm178_vm0, %v748_v36, 0.0  ;;  %v928_v23 = vsel %vm178_vm0, %v749_v46, 0.0  ;;  %v930_v42 = vsel %vm178_vm0, %v750_v50, 0.0 }
  0x97   : > { %v569_v47 = vadd.f32 %v568_v15, %v567_v19  ;;  %v746_v15 = vmul.f32 %v1902_v58, %v1902_v58  ;;  %v917_v19 = vadd.f32 %v916_v41, %v915_v40  ;;  %v586_v58 = vsel %vm178_vm0, %v2086_v24, 0.0 }
  0x98   : > { %v592_v18 = vsel %vm178_vm0, %v2109_v49, 0.0  ;;  %v752_v41 = vmul.f32 %v1947_v22, %v1947_v22  ;;  %v755_v36 = vmul.f32 %v1969_v6, %v1969_v6  ;;  %v757_v50 = vmul.f32 %v1984_v28, %v1984_v28 }
  0x99   : > { %v571_v17 = vadd.f32 %v570_v30, %v569_v47  ;;  %v747_v30 = vmul.f32 %v1909_v59, %v1909_v59  ;;  %v922_v60 = vsel %vm178_vm0, %v746_v15, 0.0  ;;  %v588_v59 = vsel %vm178_vm0, %v2094_v53, 0.0 }
  0x9a   : > { %v753_v15 = vmul.f32 %v1954_v52, %v1954_v52 }
  0x9b   : > { %v573_v10 = vadd.f32 %v572_v35, %v571_v17  ;;  %v919_v35 = vadd.f32 %v918_v5, %v917_v19  ;;  %v924_v16 = vsel %vm178_vm0, %v747_v30, 0.0  ;;  %v932_v5 = vsel %vm178_vm0, %v751_v57, 0.0 }
  0x9d   : > { %v575_v27 = vadd.f32 %v574_v37, %v573_v10  ;;  %v921_v26 = vadd.f32 %v920_v7, %v919_v35  ;;  %v2101_v37 = vunpack.c.l.bf16 %v1478_v55  ;;  %v1479_v10 = vld [vmem:[%s1604_s25 + $0x138] sm:$0xff]   ;;  %v754_v7 = vmul.f32 %v1962_v31, %v1962_v31 }
  0x9e   : > { %v2124_v0 = vunpack.c.h.bf16 %v1479_v10  ;;  %v934_v55 = vsel %vm178_vm0, %v752_v41, 0.0  ;;  %v759_v41 = vmul.f32 %v1999_v3, %v1999_v3 }
  0x9f   : > { %v577_v32 = vadd.f32 %v576_v9, %v575_v27  ;;  %v923_v9 = vadd.f32 %v922_v60, %v921_v26  ;;  %v590_v1 = vsel %vm178_vm0, %v2101_v37, 0.0  ;;  %v936_v60 = vsel %vm178_vm0, %v753_v15, 0.0 }
  0xa0   : > { %v596_v38 = vsel %vm178_vm0, %v2124_v0, 0.0 }
  0xa1   : > { %v579_v39 = vadd.f32 %v578_v44, %v577_v32  ;;  %v925_v33 = vadd.f32 %v924_v16, %v923_v9  ;;  %v2116_v44 = vunpack.c.l.bf16 %v1479_v10  ;;  %v1480_v32 = vld [vmem:[%s1604_s25 + $0x140] sm:$0xff]   ;;  %v756_v16 = vmul.f32 %v1977_v45, %v1977_v45 }
  0xa2   : > { %v2139_v30 = vunpack.c.h.bf16 %v1480_v32  ;;  %v938_v10 = vsel %vm178_vm0, %v754_v7, 0.0  ;;  %v761_v7 = vmul.f32 %v2014_v12, %v2014_v12 }
  0xa3   : > { %v581_v8 = vadd.f32 %v580_v29, %v579_v39  ;;  %v927_v29 = vadd.f32 %v926_v20, %v925_v33  ;;  %v594_v13 = vsel %vm178_vm0, %v2116_v44, 0.0  ;;  %v940_v20 = vsel %vm178_vm0, %v755_v36, 0.0 }
  0xa4   : > { %v600_v52 = vsel %vm178_vm0, %v2139_v30, 0.0 }
  0xa5   : > { %v583_v47 = vadd.f32 %v582_v51, %v581_v8  ;;  %v929_v40 = vadd.f32 %v928_v23, %v927_v29  ;;  %v2131_v51 = vunpack.c.l.bf16 %v1480_v32  ;;  %v1481_v8 = vld [vmem:[%s1604_s25 + $0x148] sm:$0xff]   ;;  %v758_v23 = vmul.f32 %v1992_v62, %v1992_v62 }
  0xa6   : > { %v2154_v46 = vunpack.c.h.bf16 %v1481_v8  ;;  %v942_v32 = vsel %vm178_vm0, %v756_v16, 0.0  ;;  %v763_v16 = vmul.f32 %v2027_v14, %v2027_v14 }
  0xa7   : > { %v585_v17 = vadd.f32 %v584_v4, %v583_v47  ;;  %v931_v4 = vadd.f32 %v930_v42, %v929_v40  ;;  %v598_v22 = vsel %vm178_vm0, %v2131_v51, 0.0  ;;  %v944_v42 = vsel %vm178_vm0, %v757_v50, 0.0 }
  0xa8   : > { %v604_v6 = vsel %vm178_vm0, %v2154_v46, 0.0 }
  0xa9   : > { %v587_v54 = vadd.f32 %v586_v58, %v585_v17  ;;  %v933_v35 = vadd.f32 %v932_v5, %v931_v4  ;;  %v2146_v58 = vunpack.c.l.bf16 %v1481_v8  ;;  %v1482_v17 = vld [vmem:[%s1604_s25 + $0x150] sm:$0xff]   ;;  %v760_v5 = vmul.f32 %v2007_v21, %v2007_v21 }
  0xaa   : > { %v2169_v57 = vunpack.c.h.bf16 %v1482_v17  ;;  %v946_v8 = vsel %vm178_vm0, %v758_v23, 0.0  ;;  %v765_v23 = vmul.f32 %v2041_v34, %v2041_v34 }
  0xab   : > { %v589_v27 = vadd.f32 %v588_v59, %v587_v54  ;;  %v935_v59 = vadd.f32 %v934_v55, %v933_v35  ;;  %v602_v31 = vsel %vm178_vm0, %v2146_v58, 0.0  ;;  %v948_v55 = vsel %vm178_vm0, %v759_v41, 0.0 }
  0xac   : > { %v608_v28 = vsel %vm178_vm0, %v2169_v57, 0.0 }
  0xad   : > { %v591_v61 = vadd.f32 %v590_v1, %v589_v27  ;;  %v937_v9 = vadd.f32 %v936_v60, %v935_v59  ;;  %v2161_v1 = vunpack.c.l.bf16 %v1482_v17  ;;  %v1483_v27 = vld [vmem:[%s1604_s25 + $0x158] sm:$0xff]   ;;  %v762_v60 = vmul.f32 %v2020_v2, %v2020_v2 }
  0xae   : > { %v2184_v15 = vunpack.c.h.bf16 %v1483_v27  ;;  %v950_v17 = vsel %vm178_vm0, %v760_v5, 0.0  ;;  %v767_v5 = vmul.f32 %v2056_v48, %v2056_v48 }
  0xaf   : > { %v593_v39 = vadd.f32 %v592_v18, %v591_v61  ;;  %v939_v18 = vadd.f32 %v938_v10, %v937_v9  ;;  %v606_v45 = vsel %vm178_vm0, %v2161_v1, 0.0  ;;  %v952_v10 = vsel %vm178_vm0, %v761_v7, 0.0 }
  0xb0   : > { %v612_v3 = vsel %vm178_vm0, %v2184_v15, 0.0 }
  0xb1   : > { %v595_v19 = vadd.f32 %v594_v13, %v593_v39  ;;  %v941_v29 = vadd.f32 %v940_v20, %v939_v18  ;;  %v2176_v13 = vunpack.c.l.bf16 %v1483_v27  ;;  %v1484_v39 = vld [vmem:[%s1604_s25 + $0x160] sm:$0xff]   ;;  %v764_v20 = vmul.f32 %v2034_v25, %v2034_v25 }
  0xb2   : > { %v2199_v36 = vunpack.c.h.bf16 %v1484_v39  ;;  %v954_v27 = vsel %vm178_vm0, %v762_v60, 0.0  ;;  %v769_v60 = vmul.f32 %v2071_v63, %v2071_v63 }
  0xb3   : > { %v597_v47 = vadd.f32 %v596_v38, %v595_v19  ;;  %v943_v38 = vadd.f32 %v942_v32, %v941_v29  ;;  %v610_v62 = vsel %vm178_vm0, %v2176_v13, 0.0  ;;  %v956_v32 = vsel %vm178_vm0, %v763_v16, 0.0 }
  0xb4   : > { %v616_v12 = vsel %vm178_vm0, %v2199_v36, 0.0 }
  0xb5   : > { %v599_v26 = vadd.f32 %v598_v22, %v597_v47  ;;  %v945_v4 = vadd.f32 %v944_v42, %v943_v38  ;;  %v2191_v22 = vunpack.c.l.bf16 %v1484_v39  ;;  %v1485_v47 = vld [vmem:[%s1604_s25 + $0x168] sm:$0xff]   ;;  %v766_v42 = vmul.f32 %v2049_v43, %v2049_v43 }
  0xb6   : > { %v2214_v50 = vunpack.c.h.bf16 %v1485_v47  ;;  %v958_v39 = vsel %vm178_vm0, %v764_v20, 0.0  ;;  %v771_v20 = vmul.f32 %v2086_v24, %v2086_v24 }
  0xb7   : > { %v601_v54 = vadd.f32 %v600_v52, %v599_v26  ;;  %v947_v52 = vadd.f32 %v946_v8, %v945_v4  ;;  %v614_v21 = vsel %vm178_vm0, %v2191_v22, 0.0  ;;  %v960_v8 = vsel %vm178_vm0, %v765_v23, 0.0 }
  0xb8   : > { %v620_v14 = vsel %vm178_vm0, %v2214_v50, 0.0 }
  0xb9   : > { %v603_v33 = vadd.f32 %v602_v31, %v601_v54  ;;  %v949_v59 = vadd.f32 %v948_v55, %v947_v52  ;;  %v2206_v31 = vunpack.c.l.bf16 %v1485_v47  ;;  %v1486_v54 = vld [vmem:[%s1604_s25 + $0x170] sm:$0xff]   ;;  %v768_v55 = vmul.f32 %v2064_v56, %v2064_v56 }
  0xba   : > { %v2229_v41 = vunpack.c.h.bf16 %v1486_v54  ;;  %v962_v47 = vsel %vm178_vm0, %v766_v42, 0.0  ;;  %v773_v42 = vmul.f32 %v2101_v37, %v2101_v37 }
  0xbb   : > { %v605_v61 = vadd.f32 %v604_v6, %v603_v33  ;;  %v951_v6 = vadd.f32 %v950_v17, %v949_v59  ;;  %v618_v2 = vsel %vm178_vm0, %v2206_v31, 0.0  ;;  %v964_v17 = vsel %vm178_vm0, %v767_v5, 0.0 }
  0xbc   : > { %v624_v34 = vsel %vm178_vm0, %v2229_v41, 0.0 }
  0xbd   : > { %v607_v40 = vadd.f32 %v606_v45, %v605_v61  ;;  %v953_v18 = vadd.f32 %v952_v10, %v951_v6  ;;  %v2221_v45 = vunpack.c.l.bf16 %v1486_v54  ;;  %v1487_v61 = vld [vmem:[%s1604_s25 + $0x178] sm:$0xff]   ;;  %v770_v10 = vmul.f32 %v2079_v11, %v2079_v11 }
  0xbe   : > { %v2244_v7 = vunpack.c.h.bf16 %v1487_v61  ;;  %v966_v54 = vsel %vm178_vm0, %v768_v55, 0.0  ;;  %v775_v55 = vmul.f32 %v2116_v44, %v2116_v44 }
  0xbf   : > { %v609_v19 = vadd.f32 %v608_v28, %v607_v40  ;;  %v955_v28 = vadd.f32 %v954_v27, %v953_v18  ;;  %v622_v25 = vsel %vm178_vm0, %v2221_v45, 0.0  ;;  %v968_v27 = vsel %vm178_vm0, %v769_v60, 0.0 }
  0xc0   : > { %v628_v48 = vsel %vm178_vm0, %v2244_v7, 0.0 }
  0xc1   : > { %v611_v35 = vadd.f32 %v610_v62, %v609_v19  ;;  %v957_v38 = vadd.f32 %v956_v32, %v955_v28  ;;  %v2236_v62 = vunpack.c.l.bf16 %v1487_v61  ;;  %v1488_v19 = vld [vmem:[%s1604_s25 + $0x180] sm:$0xff]   ;;  %v772_v32 = vmul.f32 %v2094_v53, %v2094_v53 }
  0xc2   : > { %v2259_v16 = vunpack.c.h.bf16 %v1488_v19  ;;  %v970_v61 = vsel %vm178_vm0, %v770_v10, 0.0  ;;  %v777_v10 = vmul.f32 %v2131_v51, %v2131_v51 }
  0xc3   : > { %v613_v26 = vadd.f32 %v612_v3, %v611_v35  ;;  %v959_v3 = vadd.f32 %v958_v39, %v957_v38  ;;  %v626_v43 = vsel %vm178_vm0, %v2236_v62, 0.0  ;;  %v972_v39 = vsel %vm178_vm0, %v771_v20, 0.0 }
  0xc4   : > { %v632_v63 = vsel %vm178_vm0, %v2259_v16, 0.0 }
  0xc5   : > { %v615_v9 = vadd.f32 %v614_v21, %v613_v26  ;;  %v961_v52 = vadd.f32 %v960_v8, %v959_v3  ;;  %v2251_v21 = vunpack.c.l.bf16 %v1488_v19  ;;  %v1489_v26 = vld [vmem:[%s1604_s25 + $0x188] sm:$0xff]   ;;  %v774_v8 = vmul.f32 %v2109_v49, %v2109_v49 }
  0xc6   : > { %v2274_v23 = vunpack.c.h.bf16 %v1489_v26  ;;  %v974_v19 = vsel %vm178_vm0, %v772_v32, 0.0  ;;  %v779_v32 = vmul.f32 %v2146_v58, %v2146_v58 }
  0xc7   : > { %v617_v33 = vadd.f32 %v616_v12, %v615_v9  ;;  %v963_v12 = vadd.f32 %v962_v47, %v961_v52  ;;  %v630_v56 = vsel %vm178_vm0, %v2251_v21, 0.0  ;;  %v976_v47 = vsel %vm178_vm0, %v773_v42, 0.0 }
  0xc8   : > { %v636_v24 = vsel %vm178_vm0, %v2274_v23, 0.0 }
  0xc9   : > { %v619_v29 = vadd.f32 %v618_v2, %v617_v33  ;;  %v965_v6 = vadd.f32 %v964_v17, %v963_v12  ;;  %v2266_v2 = vunpack.c.l.bf16 %v1489_v26  ;;  %v1490_v33 = vld [vmem:[%s1604_s25 + $0x190] sm:$0xff]   ;;  %v776_v17 = vmul.f32 %v2124_v0, %v2124_v0 }
  0xca   : > { %v2289_v5 = vunpack.c.h.bf16 %v1490_v33  ;;  %v978_v26 = vsel %vm178_vm0, %v774_v8, 0.0  ;;  %v781_v8 = vmul.f32 %v2161_v1, %v2161_v1 }
  0xcb   : > { %v621_v40 = vadd.f32 %v620_v14, %v619_v29  ;;  %v967_v14 = vadd.f32 %v966_v54, %v965_v6  ;;  %v634_v11 = vsel %vm178_vm0, %v2266_v2, 0.0  ;;  %v980_v54 = vsel %vm178_vm0, %v775_v55, 0.0 }
  0xcc   : > { %v640_v37 = vsel %vm178_vm0, %v2289_v5, 0.0 }
  0xcd   : > { %v623_v4 = vadd.f32 %v622_v25, %v621_v40  ;;  %v969_v28 = vadd.f32 %v968_v27, %v967_v14  ;;  %v2281_v25 = vunpack.c.l.bf16 %v1490_v33  ;;  %v1491_v40 = vld [vmem:[%s1604_s25 + $0x198] sm:$0xff]   ;;  %v778_v27 = vmul.f32 %v2139_v30, %v2139_v30 }
  0xce   : > { %v2304_v60 = vunpack.c.h.bf16 %v1491_v40  ;;  %v982_v33 = vsel %vm178_vm0, %v776_v17, 0.0  ;;  %v783_v17 = vmul.f32 %v2176_v13, %v2176_v13 }
  0xcf   : > { %v625_v35 = vadd.f32 %v624_v34, %v623_v4  ;;  %v971_v34 = vadd.f32 %v970_v61, %v969_v28  ;;  %v638_v53 = vsel %vm178_vm0, %v2281_v25, 0.0  ;;  %v984_v61 = vsel %vm178_vm0, %v777_v10, 0.0 }
  0xd0   : > { %v644_v44 = vsel %vm178_vm0, %v2304_v60, 0.0 }
  0xd1   : > { %v627_v59 = vadd.f32 %v626_v43, %v625_v35  ;;  %v973_v3 = vadd.f32 %v972_v39, %v971_v34  ;;  %v2296_v43 = vunpack.c.l.bf16 %v1491_v40  ;;  %v1492_v35 = vld [vmem:[%s1604_s25 + $0x1a0] sm:$0xff]   ;;  %v780_v39 = vmul.f32 %v2154_v46, %v2154_v46 }
  0xd2   : > { %v2319_v20 = vunpack.c.h.bf16 %v1492_v35  ;;  %v986_v40 = vsel %vm178_vm0, %v778_v27, 0.0  ;;  %v785_v27 = vmul.f32 %v2191_v22, %v2191_v22 }
  0xd3   : > { %v629_v9 = vadd.f32 %v628_v48, %v627_v59  ;;  %v975_v48 = vadd.f32 %v974_v19, %v973_v3  ;;  %v642_v49 = vsel %vm178_vm0, %v2296_v43, 0.0  ;;  %v988_v19 = vsel %vm178_vm0, %v779_v32, 0.0 }
  0xd4   : > { %v648_v51 = vsel %vm178_vm0, %v2319_v20, 0.0 }
  0xd5   : > { %v631_v18 = vadd.f32 %v630_v56, %v629_v9  ;;  %v977_v12 = vadd.f32 %v976_v47, %v975_v48  ;;  %v2311_v56 = vunpack.c.l.bf16 %v1492_v35  ;;  %v1493_v9 = vld [vmem:[%s1604_s25 + $0x1a8] sm:$0xff]   ;;  %v782_v47 = vmul.f32 %v2169_v57, %v2169_v57 }
  0xd6   : > { %v2334_v42 = vunpack.c.h.bf16 %v1493_v9  ;;  %v990_v35 = vsel %vm178_vm0, %v780_v39, 0.0  ;;  %v787_v39 = vmul.f32 %v2206_v31, %v2206_v31 }
  0xd7   : > { %v633_v29 = vadd.f32 %v632_v63, %v631_v18  ;;  %v979_v63 = vadd.f32 %v978_v26, %v977_v12  ;;  %v646_v0 = vsel %vm178_vm0, %v2311_v56, 0.0  ;;  %v992_v26 = vsel %vm178_vm0, %v781_v8, 0.0 }
  0xd8   : > { %v652_v58 = vsel %vm178_vm0, %v2334_v42, 0.0 }
  0xd9   : > { %v635_v38 = vadd.f32 %v634_v11, %v633_v29  ;;  %v981_v14 = vadd.f32 %v980_v54, %v979_v63  ;;  %v2326_v11 = vunpack.c.l.bf16 %v1493_v9  ;;  %v1494_v29 = vld [vmem:[%s1604_s25 + $0x1b0] sm:$0xff]   ;;  %v784_v54 = vmul.f32 %v2184_v15, %v2184_v15 }
  0xda   : > { %v2349_v55 = vunpack.c.h.bf16 %v1494_v29  ;;  %v994_v9 = vsel %vm178_vm0, %v782_v47, 0.0  ;;  %v789_v47 = vmul.f32 %v2221_v45, %v2221_v45 }
  0xdb   : > { %v637_v4 = vadd.f32 %v636_v24, %v635_v38  ;;  %v983_v24 = vadd.f32 %v982_v33, %v981_v14  ;;  %v650_v30 = vsel %vm178_vm0, %v2326_v11, 0.0  ;;  %v996_v33 = vsel %vm178_vm0, %v783_v17, 0.0 }
  0xdc   : > { %v656_v1 = vsel %vm178_vm0, %v2349_v55, 0.0 }
  0xdd   : > { %v639_v52 = vadd.f32 %v638_v53, %v637_v4  ;;  %v985_v34 = vadd.f32 %v984_v61, %v983_v24  ;;  %v2341_v53 = vunpack.c.l.bf16 %v1494_v29  ;;  %v1495_v4 = vld [vmem:[%s1604_s25 + $0x1b8] sm:$0xff]   ;;  %v786_v61 = vmul.f32 %v2199_v36, %v2199_v36 }
  0xde   : > { %v2364_v10 = vunpack.c.h.bf16 %v1495_v4  ;;  %v998_v29 = vsel %vm178_vm0, %v784_v54, 0.0  ;;  %v791_v54 = vmul.f32 %v2236_v62, %v2236_v62 }
  0xdf   : > { %v641_v59 = vadd.f32 %v640_v37, %v639_v52  ;;  %v987_v37 = vadd.f32 %v986_v40, %v985_v34  ;;  %v654_v46 = vsel %vm178_vm0, %v2341_v53, 0.0  ;;  %v1000_v40 = vsel %vm178_vm0, %v785_v27, 0.0 }
  0xe0   : > { %v660_v13 = vsel %vm178_vm0, %v2364_v10, 0.0 }
  0xe1   : > { %v643_v6 = vadd.f32 %v642_v49, %v641_v59  ;;  %v989_v48 = vadd.f32 %v988_v19, %v987_v37  ;;  %v2356_v49 = vunpack.c.l.bf16 %v1495_v4  ;;  %v1496_v59 = vld [vmem:[%s1604_s25 + $0x1c0] sm:$0xff]   ;;  %v788_v19 = vmul.f32 %v2214_v50, %v2214_v50 }
  0xe2   : > { %v2379_v32 = vunpack.c.h.bf16 %v1496_v59  ;;  %v1002_v4 = vsel %vm178_vm0, %v786_v61, 0.0  ;;  %v793_v61 = vmul.f32 %v2251_v21, %v2251_v21 }
  0xe3   : > { %v645_v18 = vadd.f32 %v644_v44, %v643_v6  ;;  %v991_v44 = vadd.f32 %v990_v35, %v989_v48  ;;  %v658_v57 = vsel %vm178_vm0, %v2356_v49, 0.0  ;;  %v1004_v35 = vsel %vm178_vm0, %v787_v39, 0.0 }
  0xe4   : > { %v664_v22 = vsel %vm178_vm0, %v2379_v32, 0.0 }
  0xe5   : > { %v647_v28 = vadd.f32 %v646_v0, %v645_v18  ;;  %v993_v63 = vadd.f32 %v992_v26, %v991_v44  ;;  %v2371_v0 = vunpack.c.l.bf16 %v1496_v59  ;;  %v1497_v18 = vld [vmem:[%s1604_s25 + $0x1c8] sm:$0xff]   ;;  %v790_v26 = vmul.f32 %v2229_v41, %v2229_v41 }
  0xe6   : > { %v2394_v8 = vunpack.c.h.bf16 %v1497_v18  ;;  %v1006_v59 = vsel %vm178_vm0, %v788_v19, 0.0  ;;  %v795_v19 = vmul.f32 %v2266_v2, %v2266_v2 }
  0xe7   : > { %v649_v38 = vadd.f32 %v648_v51, %v647_v28  ;;  %v995_v51 = vadd.f32 %v994_v9, %v993_v63  ;;  %v662_v15 = vsel %vm178_vm0, %v2371_v0, 0.0  ;;  %v1008_v9 = vsel %vm178_vm0, %v789_v47, 0.0 }
  0xe8   : > { %v668_v31 = vsel %vm178_vm0, %v2394_v8, 0.0 }
  0xe9   : > { %v651_v3 = vadd.f32 %v650_v30, %v649_v38  ;;  %v997_v24 = vadd.f32 %v996_v33, %v995_v51  ;;  %v2386_v30 = vunpack.c.l.bf16 %v1497_v18  ;;  %v1498_v38 = vld [vmem:[%s1604_s25 + $0x1d0] sm:$0xff]   ;;  %v792_v33 = vmul.f32 %v2244_v7, %v2244_v7 }
  0xea   : > { %v2409_v17 = vunpack.c.h.bf16 %v1498_v38  ;;  %v1010_v18 = vsel %vm178_vm0, %v790_v26, 0.0  ;;  %v797_v26 = vmul.f32 %v2281_v25, %v2281_v25 }
  0xeb   : > { %v653_v52 = vadd.f32 %v652_v58, %v651_v3  ;;  %v999_v58 = vadd.f32 %v998_v29, %v997_v24  ;;  %v666_v36 = vsel %vm178_vm0, %v2386_v30, 0.0  ;;  %v1012_v29 = vsel %vm178_vm0, %v791_v54, 0.0 }
  0xec   : > { %v672_v45 = vsel %vm178_vm0, %v2409_v17, 0.0 }
  0xed   : > { %v655_v12 = vadd.f32 %v654_v46, %v653_v52  ;;  %v1001_v37 = vadd.f32 %v1000_v40, %v999_v58  ;;  %v2401_v46 = vunpack.c.l.bf16 %v1498_v38  ;;  %v1499_v52 = vld [vmem:[%s1604_s25 + $0x1d8] sm:$0xff]   ;;  %v794_v40 = vmul.f32 %v2259_v16, %v2259_v16 }
  0xee   : > { %v2424_v27 = vunpack.c.h.bf16 %v1499_v52  ;;  %v1014_v38 = vsel %vm178_vm0, %v792_v33, 0.0  ;;  %v799_v33 = vmul.f32 %v2296_v43, %v2296_v43  ;;  %v801_v43 = vmul.f32 %v2311_v56, %v2311_v56 }
  0xef   : > { %v657_v6 = vadd.f32 %v656_v1, %v655_v12  ;;  %v1003_v1 = vadd.f32 %v1002_v4, %v1001_v37  ;;  %v670_v50 = vsel %vm178_vm0, %v2401_v46, 0.0  ;;  %v1016_v4 = vsel %vm178_vm0, %v793_v61, 0.0 }
  0xf0   : > { %v676_v62 = vsel %vm178_vm0, %v2424_v27, 0.0  ;;  %v800_v61 = vmul.f32 %v2304_v60, %v2304_v60  ;;  %v804_v56 = vmul.f32 %v2334_v42, %v2334_v42  ;;  %v807_v42 = vmul.f32 %v2356_v49, %v2356_v49 }
  0xf1   : > { %v659_v14 = vadd.f32 %v658_v57, %v657_v6  ;;  %v1005_v44 = vadd.f32 %v1004_v35, %v1003_v1  ;;  %v2416_v57 = vunpack.c.l.bf16 %v1499_v52  ;;  %v1500_v6 = vld [vmem:[%s1604_s25 + $0x1e0] sm:$0xff]   ;;  %v796_v35 = vmul.f32 %v2274_v23, %v2274_v23 }
  0xf2   : > { %v2439_v39 = vunpack.c.h.bf16 %v1500_v6  ;;  %v1018_v52 = vsel %vm178_vm0, %v794_v40, 0.0  ;;  %v1030_v60 = vsel %vm178_vm0, %v800_v61, 0.0 }
  0xf3   : > { %v661_v28 = vadd.f32 %v660_v13, %v659_v14  ;;  %v1007_v13 = vadd.f32 %v1006_v59, %v1005_v44  ;;  %v674_v41 = vsel %vm178_vm0, %v2416_v57, 0.0  ;;  %v1020_v59 = vsel %vm178_vm0, %v795_v19, 0.0 }
  0xf4   : > { %v680_v21 = vsel %vm178_vm0, %v2439_v39, 0.0  ;;  %v815_v61 = vmul.f32 %v2416_v57, %v2416_v57 }
  0xf5   : > { %v663_v34 = vadd.f32 %v662_v15, %v661_v28  ;;  %v1009_v51 = vadd.f32 %v1008_v9, %v1007_v13  ;;  %v2431_v15 = vunpack.c.l.bf16 %v1500_v6  ;;  %v1501_v28 = vld [vmem:[%s1604_s25 + $0x1e8] sm:$0xff]   ;;  %v798_v9 = vmul.f32 %v2289_v5, %v2289_v5 }
  0xf6   : > { %v2454_v47 = vunpack.c.h.bf16 %v1501_v28  ;;  %v1022_v6 = vsel %vm178_vm0, %v796_v35, 0.0 }
  0xf7   : > { %v665_v3 = vadd.f32 %v664_v22, %v663_v34  ;;  %v1011_v22 = vadd.f32 %v1010_v18, %v1009_v51  ;;  %v678_v7 = vsel %vm178_vm0, %v2431_v15, 0.0  ;;  %v1024_v18 = vsel %vm178_vm0, %v797_v26, 0.0 }
  0xf8   : > { %v684_v2 = vsel %vm178_vm0, %v2454_v47, 0.0 }
  0xf9   : > { %v667_v48 = vadd.f32 %v666_v36, %v665_v3  ;;  %v1013_v58 = vadd.f32 %v1012_v29, %v1011_v22  ;;  %v2446_v36 = vunpack.c.l.bf16 %v1501_v28  ;;  %v1502_v3 = vld [vmem:[%s1604_s25 + $0x1f0] sm:$0xff]   ;;  %v1026_v29 = vsel %vm178_vm0, %v798_v9, 0.0 }
  0xfa   : > { %v2469_v54 = vunpack.c.h.bf16 %v1502_v3  ;;  %v810_v9 = vmul.f32 %v2379_v32, %v2379_v32 }
  0xfb   : > { %v669_v12 = vadd.f32 %v668_v31, %v667_v48  ;;  %v1015_v31 = vadd.f32 %v1014_v38, %v1013_v58  ;;  %v682_v16 = vsel %vm178_vm0, %v2446_v36, 0.0  ;;  %v802_v58 = vmul.f32 %v2319_v20, %v2319_v20 }
  0xfc   : > { %v688_v25 = vsel %vm178_vm0, %v2469_v54, 0.0  ;;  %v805_v20 = vmul.f32 %v2341_v53, %v2341_v53 }
  0xfd   : > { %v671_v63 = vadd.f32 %v670_v50, %v669_v12  ;;  %v1017_v1 = vadd.f32 %v1016_v4, %v1015_v31  ;;  %v2461_v50 = vunpack.c.l.bf16 %v1502_v3  ;;  %v1503_v12 = vld [vmem:[%s1604_s25 + $0x1f8] sm:$0xff]   ;;  %v803_v4 = vmul.f32 %v2326_v11, %v2326_v11 }
  0xfe   : > { %v1032_v3 = vsel %vm178_vm0, %v801_v43, 0.0  ;;  %v806_v11 = vmul.f32 %v2349_v55, %v2349_v55  ;;  %v1040_v26 = vsel %vm178_vm0, %v805_v20, 0.0  ;;  %v1044_v55 = vsel %vm178_vm0, %v807_v42, 0.0 }
  0xff   : > { %v673_v14 = vadd.f32 %v672_v45, %v671_v63  ;;  %v1019_v45 = vadd.f32 %v1018_v52, %v1017_v1  ;;  %v686_v23 = vsel %vm178_vm0, %v2461_v50, 0.0  ;;  %v1036_v52 = vsel %vm178_vm0, %v803_v4, 0.0 }
 0x100   : > { %v1038_v1 = vsel %vm178_vm0, %v804_v56, 0.0  ;;  %v1042_v53 = vsel %vm178_vm0, %v806_v11, 0.0  ;;  %v822_v4 = vmul.f32 %v2469_v54, %v2469_v54 }
 0x101   : > { %v675_v24 = vadd.f32 %v674_v41, %v673_v14  ;;  %v1021_v13 = vadd.f32 %v1020_v59, %v1019_v45  ;;  %v2476_v41 = vunpack.c.l.bf16 %v1503_v12  ;;  %v809_v45 = vmul.f32 %v2371_v0, %v2371_v0 }
 0x102   : > { %v1050_v0 = vsel %vm178_vm0, %v810_v9, 0.0  ;;  %v1074_v56 = vsel %vm178_vm0, %v822_v4, 0.0 }
 0x103   : > { %v677_v34 = vadd.f32 %v676_v62, %v675_v24  ;;  %v1023_v51 = vadd.f32 %v1022_v6, %v1021_v13  ;;  %v2483_v62 = vunpack.c.h.bf16 %v1503_v12  ;;  %v690_v5 = vsel %vm178_vm0, %v2476_v41, 0.0 }
 0x104   : > { %v808_v12 = vmul.f32 %v2364_v10, %v2364_v10  ;;  %v1048_v10 = vsel %vm178_vm0, %v809_v45, 0.0 }
 0x105   : > { %v679_v37 = vadd.f32 %v678_v7, %v677_v34  ;;  %v1025_v24 = vadd.f32 %v1024_v18, %v1023_v51  ;;  %v692_v22 = vsel %vm178_vm0, %v2483_v62, 0.0  ;;  %v1028_v7 = vsel %vm178_vm0, %v799_v33, 0.0  ;;  %v437_v34 = vld [vmem:[%s1590_s17] sm:$0xff] }
 0x106   : > { %v1046_v49 = vsel %vm178_vm0, %v808_v12, 0.0  ;;  %v813_v18 = vmul.f32 %v2401_v46, %v2401_v46  ;;  %v814_v51 = vmul.f32 %v2409_v17, %v2409_v17  ;;  %v1060_v17 = vsel %vm178_vm0, %v815_v61, 0.0 }
 0x107   : > { %v681_v48 = vadd.f32 %v680_v21, %v679_v37  ;;  %v1027_v38 = vadd.f32 %v1026_v29, %v1025_v24 }
 0x108   : > { %v1058_v46 = vsel %vm178_vm0, %v814_v51, 0.0 }
 0x109   : > { %v683_v44 = vadd.f32 %v682_v16, %v681_v48  ;;  %v1029_v19 = vadd.f32 %v1028_v7, %v1027_v38  ;;  %v1034_v16 = vsel %vm178_vm0, %v802_v58, 0.0  ;;  %v818_v7 = vmul.f32 %v2439_v39, %v2439_v39 }
 0x10a   : > { %v819_v38 = vmul.f32 %v2446_v36, %v2446_v36  ;;  %v820_v58 = vmul.f32 %v2454_v47, %v2454_v47  ;;  %v823_v47 = vmul.f32 %v2476_v41, %v2476_v41 }
 0x10b   : > { %v685_v63 = vadd.f32 %v684_v2, %v683_v44  ;;  %v1031_v31 = vadd.f32 %v1030_v60, %v1029_v19 }
 0x10c   : > { %v1068_v39 = vsel %vm178_vm0, %v819_v38, 0.0  ;;  %v1070_v36 = vsel %vm178_vm0, %v820_v58, 0.0 }
 0x10d   : > { %v687_v14 = vadd.f32 %v686_v23, %v685_v63  ;;  %v1033_v35 = vadd.f32 %v1032_v3, %v1031_v31  ;;  %v811_v63 = vmul.f32 %v2386_v30, %v2386_v30 }
 0x10f   : > { %v689_v28 = vadd.f32 %v688_v25, %v687_v14  ;;  %v1035_v48 = vadd.f32 %v1034_v16, %v1033_v35  ;;  %v812_v25 = vmul.f32 %v2394_v8, %v2394_v8  ;;  %v1052_v32 = vsel %vm178_vm0, %v811_v63, 0.0 }
 0x110   : > { %v1056_v8 = vsel %vm178_vm0, %v813_v18, 0.0  ;;  %v1076_v35 = vsel %vm178_vm0, %v823_v47, 0.0 }
 0x111   : > { %v691_v40 = vadd.f32 %v690_v5, %v689_v28  ;;  %v1037_v2 = vadd.f32 %v1036_v52, %v1035_v48  ;;  %v1054_v30 = vsel %vm178_vm0, %v812_v25, 0.0  ;;  %v816_v28 = vmul.f32 %v2424_v27, %v2424_v27  ;;  %v696_v48 = vld [vmem:[%s1595_s20] sm:$0xff] }
 0x113   : > { %v693_v21 = vadd.f32 %v692_v22, %v691_v40  ;;  %v1039_v59 = vadd.f32 %v1038_v1, %v1037_v2  ;;  %v817_v22 = vmul.f32 %v2431_v15, %v2431_v15  ;;  %v1062_v57 = vsel %vm178_vm0, %v816_v28, 0.0 }
 0x114   : > { %v1066_v15 = vsel %vm178_vm0, %v818_v7, 0.0 }
 0x115   : > { %v694_v37 = vadd.f32 %v693_v21, %v437_v34  ;;  %v1041_v44 = vadd.f32 %v1040_v26, %v1039_v59  ;;  %v1064_v27 = vsel %vm178_vm0, %v817_v22, 0.0  ;;  %v821_v21 = vmul.f32 %v2461_v50, %v2461_v50 }
 0x116   : > { %v824_v50 = vmul.f32 %v2483_v62, %v2483_v62 }
 0x117   : > { %695 = vst.msk [vmem:[%s1590_s17] sm:$0xff] %vm178_vm0, %v694_v37  ;;  %v1043_v23 = vadd.f32 %v1042_v53, %v1041_v44  ;;  %v1072_v37 = vsel %vm178_vm0, %v821_v21, 0.0 }
 0x118   : > { %v1078_v54 = vsel %vm178_vm0, %v824_v50, 0.0 }
 0x119   : > { %v1045_v6 = vadd.f32 %v1044_v55, %v1043_v23 }
 0x11b   : > { %v1047_v13 = vadd.f32 %v1046_v49, %v1045_v6 }
 0x11d   : > { %v1049_v33 = vadd.f32 %v1048_v10, %v1047_v13 }
 0x11f   : > { %v1051_v14 = vadd.f32 %v1050_v0, %v1049_v33 }
 0x121   : > { %v1053_v5 = vadd.f32 %v1052_v32, %v1051_v14 }
 0x123   : > { %v1055_v29 = vadd.f32 %v1054_v30, %v1053_v5 }
 0x125   : > { %v1057_v24 = vadd.f32 %v1056_v8, %v1055_v29 }
 0x127   : > { %v1059_v43 = vadd.f32 %v1058_v46, %v1057_v24 }
 0x129   : > { %v1061_v40 = vadd.f32 %v1060_v17, %v1059_v43 }
 0x12b   : > { %v1063_v34 = vadd.f32 %v1062_v57, %v1061_v40 }
 0x12d   : > { %v1065_v60 = vadd.f32 %v1064_v27, %v1063_v34 }
 0x12f   : > { %v1067_v19 = vadd.f32 %v1066_v15, %v1065_v60 }
 0x131   : > { %v1069_v3 = vadd.f32 %v1068_v39, %v1067_v19 }
 0x133   : > { %v1071_v31 = vadd.f32 %v1070_v36, %v1069_v3 }
 0x135   : > { %v1073_v16 = vadd.f32 %v1072_v37, %v1071_v31 }
 0x137   : > { %v1075_v20 = vadd.f32 %v1074_v56, %v1073_v16 }
 0x139   : > { %v1077_v52 = vadd.f32 %v1076_v35, %v1075_v20 }
 0x13b   : > { %v1079_v11 = vadd.f32 %v1078_v54, %v1077_v52 }
 0x13d   : > { %v1080_v1 = vadd.f32 %v1079_v11, %v696_v48 }
 0x13f   : > { %1081 = vst.msk [vmem:[%s1595_s20] sm:$0xff] %vm178_vm0, %v1080_v1 }
 0x140 PF: > { %s13_s11 = sadd.s32 1, %s1551_s11   ;;  %s2584_s9 = smov %s1547_s10 }
 0x141   : > { %p10_p6 = scmp.ge.s32.totalorder %s13_s11, 4   ;;  %s2585_s10 = smov %s2587_s12 }
 0x143   :  { %12 = sbr.rel (!%p10_p6) target bundleno = 2 (0x2), region = 70 }

// kernel: _lambda_.17
= control target key start
LH: loop header
LB: loop body
LE: loop exit
PB: predicated region body
PF: predicated region fallthrough
CT: control target
= control target key end

     0   :  { %s3892_s15 = smov 0   ;;  %s4392_s0 = inlined_call_operand.vmem [shape: bf16[2048,8], index: 0, kind: input, shape index: {}]   ;;  %s4393_s1 = inlined_call_operand.vmem [shape: f32[1,8], index: 1, kind: input, shape index: {}]   ;;  %s4394_s2 = inlined_call_operand.vmem [shape: f32[1,8], index: 2, kind: input, shape index: {}]   ;;  %s4395_s3 = inlined_call_operand.vmem [shape: bf16[8,128], index: 3, kind: input, shape index: {}]   ;;  %s4396_s4 = inlined_call_operand.vmem [shape: bf16[2048,128], index: 4, kind: output, shape index: {}]  }
   0x1 LB: > { %s2615_s16 = sadd.s32 4294967295, %s3865_s15   ;;  %p2619_p0 = scmp.ge.s32.totalorder %s3865_s15, 1  ;;  %s3865_s15 = sphi %s3892_s15, %s14_s15  }
   0x2   : > { %p163_p1 = scmp.lt.s32.totalorder %s3865_s15, 3 }
   0x4   : > { %p164_p2 = pnand %p2619_p0, %p163_p1 }
   0x5   : > { %v1176_v0 = vld [vmem:[%s4395_s3] sm:$0xf] (!%p164_p2)  ;;  %vm1370_vm0 = vcmask (!%p164_p2), 1043456   ;;  %s2620_s19 = sshll.u32 (!%p164_p2), %s2615_s16, 7  ;;  %vm1177_vm1 = vcmask (!%p164_p2), 64512  }
   0x6   : > { %167 = sbr.rel (%p164_p2) target bundleno = 446 (0x1be), region = 36  ;;  %3847 = vmatprep.subr.msk.bf16.mxu0 (!%p164_p2), %vm1370_vm0, %v1176_v0  ;;  %3848 = vmatprep.subr.msk.bf16.mxu1 (!%p164_p2), %vm1370_vm0, %v1176_v0  ;;  %v1372_v1 = vsel (!%p164_p2), %vm1370_vm0, %v1176_v0, 0  ;;  %p190_p3 = scmp.lt.s32.totalorder (!%p164_p2), %s2620_s19, 255  ;;  %v3916_v2 = vld [vmem:[%s4393_s1] ss:$0 sm:$0xff] (!%p164_p2) }
   0x7   : > { %3716 = vmatpush3.bf16.msra.mxu0 (!%p164_p2), %v1372_v1  ;;  %3846 = vmatpush3.bf16.msra.mxu1 (!%p164_p2), %v1372_v1  ;;  %v3925_v11 = vld [vmem:[%s4394_s2] ss:$0 sm:$0xff] (!%p164_p2) }
   0xd   : > { %s4398_s19 = smov (!%p190_p3, %s2620_s19), 255 }
   0xe   : > { %s2621_s20 = sshll.u32 %s4398_s19, 2 }
   0xf   : > { %s3911_s23 = scalar_lea.vmem %s4392_s0, %s2621_s20  ;;  %s4323_s8 = scalar_lea.vmem %s4396_s4, %s2621_s20 }
  0x10   : > { %v2949_v3 = vld [vmem:[%s3911_s23] sm:$0xff]   ;;  %v3524_v5 = vld [vmem:[%s3911_s23 + $0x8] sm:$0xff]   ;;  %v3525_v38 = vld [vmem:[%s3911_s23 + $0x10] sm:$0xff]  }
  0x11   : > { %v3555_v4 = vld [vmem:[%s3911_s23 + $0x100] sm:$0xff]   ;;  %v2950_v6 = vunpack.c.l.bf16 %v2949_v3  ;;  %v2951_v7 = vunpack.c.h.bf16 %v2949_v3  ;;  %v3556_v10 = vld [vmem:[%s3911_s23 + $0x108] sm:$0xff]   ;;  %v2954_v12 = vunpack.c.l.bf16 %v3524_v5  ;;  %v2955_v13 = vunpack.c.h.bf16 %v3524_v5  ;;  %v3557_v43 = vld [vmem:[%s3911_s23 + $0x110] sm:$0xff]  }
  0x12   : > { %v3078_v8 = vunpack.c.l.bf16 %v3555_v4  ;;  %v3079_v9 = vunpack.c.h.bf16 %v3555_v4  ;;  %v3082_v14 = vunpack.c.l.bf16 %v3556_v10  ;;  %v3083_v15 = vunpack.c.h.bf16 %v3556_v10  ;;  %v3526_v54 = vld [vmem:[%s3911_s23 + $0x18] sm:$0xff]  }
  0x13   : > { %v465_v16 = vmul.f32 %v2950_v6, %v3916_v2  ;;  %v466_v17 = vmul.f32 %v2951_v7, %v3916_v2  ;;  %v467_v20 = vmul.f32 %v2954_v12, %v3916_v2  ;;  %v468_v21 = vmul.f32 %v2955_v13, %v3916_v2  ;;  %v3558_v55 = vld [vmem:[%s3911_s23 + $0x118] sm:$0xff]  }
  0x14   : > { %v529_v18 = vmul.f32 %v3078_v8, %v3916_v2  ;;  %v530_v19 = vmul.f32 %v3079_v9, %v3916_v2  ;;  %v531_v22 = vmul.f32 %v3082_v14, %v3916_v2  ;;  %v532_v23 = vmul.f32 %v3083_v15, %v3916_v2 }
  0x15   : > { %v600_v24 = vadd.f32 %v3925_v11, %v465_v16  ;;  %v601_v25 = vadd.f32 %v3925_v11, %v466_v17  ;;  %v602_v28 = vadd.f32 %v3925_v11, %v467_v20  ;;  %v603_v29 = vadd.f32 %v3925_v11, %v468_v21 }
  0x16   : > { %v664_v26 = vadd.f32 %v3925_v11, %v529_v18  ;;  %v665_v27 = vadd.f32 %v3925_v11, %v530_v19  ;;  %v666_v30 = vadd.f32 %v3925_v11, %v531_v22  ;;  %v667_v31 = vadd.f32 %v3925_v11, %v532_v23  ;;  %v3527_v22 = vld [vmem:[%s3911_s23 + $0x20] sm:$0xff]  }
  0x17   : > { %vm728_vm2 = vcmp.gt.f32.partialorder %v600_v24, 0.0  ;;  %vm729_vm3 = vcmp.gt.f32.partialorder %v601_v25, 0.0  ;;  %v856_v32 = vmul.f32 0.2, %v600_v24  ;;  %v857_v33 = vmul.f32 0.2, %v601_v25 }
  0x18   : > { %vm792_vm4 = vcmp.gt.f32.partialorder %v664_v26, 0.0  ;;  %vm793_vm5 = vcmp.gt.f32.partialorder %v665_v27, 0.0  ;;  %v920_v34 = vmul.f32 0.2, %v664_v26  ;;  %v921_v35 = vmul.f32 0.2, %v665_v27 }
  0x19   : > { %v984_v36 = vsel %vm728_vm2, %v600_v24, %v856_v32  ;;  %v985_v37 = vsel %vm729_vm3, %v601_v25, %v857_v33  ;;  %vm730_vm6 = vcmp.gt.f32.partialorder %v602_v28, 0.0  ;;  %vm731_vm7 = vcmp.gt.f32.partialorder %v603_v29, 0.0 }
  0x1a   : > { %v1112_v39 = vpack.c.bf16 %v985_v37, %v984_v36  ;;  %v1048_v40 = vsel %vm792_vm4, %v664_v26, %v920_v34  ;;  %v1049_v41 = vsel %vm793_vm5, %v665_v27, %v921_v35  ;;  %v858_v42 = vmul.f32 0.2, %v602_v28  ;;  %v3559_v26 = vld [vmem:[%s3911_s23 + $0x120] sm:$0xff]  }
  0x1b   : > { %v1144_v44 = vpack.c.bf16 %v1049_v41, %v1048_v40  ;;  %v859_v45 = vmul.f32 0.2, %v603_v29  ;;  %vm794_vm8 = vcmp.gt.f32.partialorder %v666_v30, 0.0  ;;  %vm795_vm9 = vcmp.gt.f32.partialorder %v667_v31, 0.0 }
  0x1c   : > { %3717 = vmatprep.mubr.msk.bf16.mxu0 %vm1177_vm1, %v1112_v39  ;;  %v986_v46 = vsel %vm730_vm6, %v602_v28, %v858_v42  ;;  %v922_v47 = vmul.f32 0.2, %v666_v30  ;;  %v923_v48 = vmul.f32 0.2, %v667_v31  ;;  %v2958_v49 = vunpack.c.l.bf16 %v3525_v38 }
  0x1d   : > { %3781 = vmatprep.mubr.msk.bf16.mxu1 %vm1177_vm1, %v1144_v44  ;;  %v987_v50 = vsel %vm731_vm7, %v603_v29, %v859_v45  ;;  %v2959_v51 = vunpack.c.h.bf16 %v3525_v38  ;;  %v3086_v52 = vunpack.c.l.bf16 %v3557_v43  ;;  %v3087_v53 = vunpack.c.h.bf16 %v3557_v43  ;;  %v3528_v38 = vld [vmem:[%s3911_s23 + $0x28] sm:$0xff]  }
  0x1e   : > { %v1113_v56 = vpack.c.bf16 %v987_v50, %v986_v46  ;;  %v1050_v57 = vsel %vm794_vm8, %v666_v30, %v922_v47  ;;  %v1051_v58 = vsel %vm795_vm9, %v667_v31, %v923_v48  ;;  %v469_v59 = vmul.f32 %v2958_v49, %v3916_v2 }
  0x1f   : > { %v1145_v60 = vpack.c.bf16 %v1051_v58, %v1050_v57  ;;  %v470_v61 = vmul.f32 %v2959_v51, %v3916_v2  ;;  %v533_v62 = vmul.f32 %v3086_v52, %v3916_v2  ;;  %v534_v63 = vmul.f32 %v3087_v53, %v3916_v2  ;;  %v3560_v57 = vld [vmem:[%s3911_s23 + $0x128] sm:$0xff]  }
  0x20   : > { %3718 = vmatmul.mubr.msk.bf16.vlgmr.msra.gmra.mrb[0].mxu0 %vm1177_vm1, %v1113_v56  ;;  %v604_v0 = vadd.f32 %v3925_v11, %v469_v59  ;;  %v2962_v1 = vunpack.c.l.bf16 %v3526_v54  ;;  %v2963_v3 = vunpack.c.h.bf16 %v3526_v54  ;;  %v3090_v4 = vunpack.c.l.bf16 %v3558_v55 }
  0x21   : > { %3782 = vmatmul.mubr.msk.bf16.vlgmr.msra.gmra.mrb[0].mxu1 %vm1177_vm1, %v1145_v60  ;;  %v605_v5 = vadd.f32 %v3925_v11, %v470_v61  ;;  %v668_v6 = vadd.f32 %v3925_v11, %v533_v62  ;;  %v669_v7 = vadd.f32 %v3925_v11, %v534_v63  ;;  %v3091_v8 = vunpack.c.h.bf16 %v3558_v55 }
  0x22   : > { %vm732_vm10 = vcmp.gt.f32.partialorder %v604_v0, 0.0  ;;  %v860_v9 = vmul.f32 0.2, %v604_v0  ;;  %v471_v10 = vmul.f32 %v2962_v1, %v3916_v2  ;;  %v472_v12 = vmul.f32 %v2963_v3, %v3916_v2  ;;  %v3529_v3 = vld [vmem:[%s3911_s23 + $0x30] sm:$0xff]  }
  0x23   : > { %vm733_vm11 = vcmp.gt.f32.partialorder %v605_v5, 0.0  ;;  %v861_v13 = vmul.f32 0.2, %v605_v5  ;;  %vm796_vm12 = vcmp.gt.f32.partialorder %v668_v6, 0.0  ;;  %vm797_vm13 = vcmp.gt.f32.partialorder %v669_v7, 0.0 }
  0x24   : > { %v988_v14 = vsel %vm732_vm10, %v604_v0, %v860_v9  ;;  %v924_v15 = vmul.f32 0.2, %v668_v6  ;;  %v925_v16 = vmul.f32 0.2, %v669_v7  ;;  %v606_v17 = vadd.f32 %v3925_v11, %v471_v10 }
  0x25   : > { %v989_v18 = vsel %vm733_vm11, %v605_v5, %v861_v13  ;;  %v607_v19 = vadd.f32 %v3925_v11, %v472_v12  ;;  %v535_v20 = vmul.f32 %v3090_v4, %v3916_v2  ;;  %v536_v21 = vmul.f32 %v3091_v8, %v3916_v2  ;;  %v3561_v8 = vld [vmem:[%s3911_s23 + $0x130] sm:$0xff]  }
  0x26   : > { %v1114_v23 = vpack.c.bf16 %v989_v18, %v988_v14  ;;  %v1052_v24 = vsel %vm796_vm12, %v668_v6, %v924_v15  ;;  %v1053_v25 = vsel %vm797_vm13, %v669_v7, %v925_v16  ;;  %vm734_vm14 = vcmp.gt.f32.partialorder %v606_v17, 0.0 }
  0x27   : > { %v1146_v27 = vpack.c.bf16 %v1053_v25, %v1052_v24  ;;  %vm735_vm15 = vcmp.gt.f32.partialorder %v607_v19, 0.0  ;;  %v862_v28 = vmul.f32 0.2, %v606_v17  ;;  %v863_v29 = vmul.f32 0.2, %v607_v19  ;;  %v3530_v24 = vld [vmem:[%s3911_s23 + $0x38] sm:$0xff]  }
  0x28   : > { %3721 = vmatprep.mubr.msk.bf16.mxu0 %vm1177_vm1, %v1114_v23  ;;  %v670_v30 = vadd.f32 %v3925_v11, %v535_v20  ;;  %v671_v31 = vadd.f32 %v3925_v11, %v536_v21  ;;  %v2966_v32 = vunpack.c.l.bf16 %v3527_v22  ;;  %v2967_v33 = vunpack.c.h.bf16 %v3527_v22 }
  0x29   : > { %3785 = vmatprep.mubr.msk.bf16.mxu1 %vm1177_vm1, %v1146_v27  ;;  %v990_v34 = vsel %vm734_vm14, %v606_v17, %v862_v28  ;;  %v991_v35 = vsel %vm735_vm15, %v607_v19, %v863_v29  ;;  %v3094_v36 = vunpack.c.l.bf16 %v3559_v26  ;;  %v3095_v37 = vunpack.c.h.bf16 %v3559_v26 }
  0x2a   : > { %v1115_v39 = vpack.c.bf16 %v991_v35, %v990_v34  ;;  %vm798_vm0 = vcmp.gt.f32.partialorder %v670_v30, 0.0  ;;  %vm799_vm2 = vcmp.gt.f32.partialorder %v671_v31, 0.0  ;;  %v926_v40 = vmul.f32 0.2, %v670_v30 }
  0x2b   : > { %v927_v41 = vmul.f32 0.2, %v671_v31  ;;  %v473_v42 = vmul.f32 %v2966_v32, %v3916_v2  ;;  %v474_v43 = vmul.f32 %v2967_v33, %v3916_v2  ;;  %v537_v44 = vmul.f32 %v3094_v36, %v3916_v2 }
  0x2c   : > { %3722 = vmatmul.mubr.msk.bf16.gmra.mrb[4].mxu0 %vm1177_vm1, %v1115_v39  ;;  %v1054_v45 = vsel %vm798_vm0, %v670_v30, %v926_v40  ;;  %v538_v46 = vmul.f32 %v3095_v37, %v3916_v2  ;;  %v2970_v47 = vunpack.c.l.bf16 %v3528_v38  ;;  %v2971_v48 = vunpack.c.h.bf16 %v3528_v38 }
  0x2d   : > { %v1055_v49 = vsel %vm799_vm2, %v671_v31, %v927_v41  ;;  %v608_v50 = vadd.f32 %v3925_v11, %v473_v42  ;;  %v609_v51 = vadd.f32 %v3925_v11, %v474_v43  ;;  %v672_v52 = vadd.f32 %v3925_v11, %v537_v44  ;;  %v3562_v43 = vld [vmem:[%s3911_s23 + $0x138] sm:$0xff]  }
  0x2e   : > { %v1147_v53 = vpack.c.bf16 %v1055_v49, %v1054_v45  ;;  %v673_v54 = vadd.f32 %v3925_v11, %v538_v46  ;;  %v475_v55 = vmul.f32 %v2970_v47, %v3916_v2  ;;  %v476_v56 = vmul.f32 %v2971_v48, %v3916_v2  ;;  %v3531_v48 = vld [vmem:[%s3911_s23 + $0x40] sm:$0xff]  }
  0x2f   : > { %vm736_vm3 = vcmp.gt.f32.partialorder %v608_v50, 0.0  ;;  %vm737_vm4 = vcmp.gt.f32.partialorder %v609_v51, 0.0  ;;  %v864_v58 = vmul.f32 0.2, %v608_v50  ;;  %v865_v59 = vmul.f32 0.2, %v609_v51 }
  0x30   : > { %3786 = vmatmul.mubr.msk.bf16.gmra.mrb[4].mxu1 %vm1177_vm1, %v1147_v53  ;;  %vm800_vm5 = vcmp.gt.f32.partialorder %v672_v52, 0.0  ;;  %vm801_vm6 = vcmp.gt.f32.partialorder %v673_v54, 0.0  ;;  %v928_v60 = vmul.f32 0.2, %v672_v52  ;;  %v929_v61 = vmul.f32 0.2, %v673_v54 }
  0x31   : > { %v992_v62 = vsel %vm736_vm3, %v608_v50, %v864_v58  ;;  %v993_v63 = vsel %vm737_vm4, %v609_v51, %v865_v59  ;;  %v610_v0 = vadd.f32 %v3925_v11, %v475_v55  ;;  %v611_v1 = vadd.f32 %v3925_v11, %v476_v56  ;;  %v3563_v49 = vld [vmem:[%s3911_s23 + $0x140] sm:$0xff]  }
  0x32   : > { %v1116_v4 = vpack.c.bf16 %v993_v63, %v992_v62  ;;  %v1056_v5 = vsel %vm800_vm5, %v672_v52, %v928_v60  ;;  %v1057_v6 = vsel %vm801_vm6, %v673_v54, %v929_v61  ;;  %v3098_v7 = vunpack.c.l.bf16 %v3560_v57 }
  0x33   : > { %v1148_v9 = vpack.c.bf16 %v1057_v6, %v1056_v5  ;;  %vm738_vm7 = vcmp.gt.f32.partialorder %v610_v0, 0.0  ;;  %vm739_vm8 = vcmp.gt.f32.partialorder %v611_v1, 0.0  ;;  %v866_v10 = vmul.f32 0.2, %v610_v0 }
  0x34   : > { %3725 = vmatprep.mubr.msk.bf16.mxu0 %vm1177_vm1, %v1116_v4  ;;  %v867_v12 = vmul.f32 0.2, %v611_v1  ;;  %v3099_v13 = vunpack.c.h.bf16 %v3560_v57  ;;  %v539_v14 = vmul.f32 %v3098_v7, %v3916_v2  ;;  %v2974_v15 = vunpack.c.l.bf16 %v3529_v3 }
  0x35   : > { %3789 = vmatprep.mubr.msk.bf16.mxu1 %vm1177_vm1, %v1148_v9  ;;  %v994_v16 = vsel %vm738_vm7, %v610_v0, %v866_v10  ;;  %v2975_v17 = vunpack.c.h.bf16 %v3529_v3  ;;  %v3102_v18 = vunpack.c.l.bf16 %v3561_v8  ;;  %v3103_v19 = vunpack.c.h.bf16 %v3561_v8 }
  0x36   : > { %v995_v20 = vsel %vm739_vm8, %v611_v1, %v867_v12  ;;  %v540_v21 = vmul.f32 %v3099_v13, %v3916_v2  ;;  %v674_v22 = vadd.f32 %v3925_v11, %v539_v14  ;;  %v477_v23 = vmul.f32 %v2974_v15, %v3916_v2 }
  0x37   : > { %v1117_v25 = vpack.c.bf16 %v995_v20, %v994_v16  ;;  %v478_v26 = vmul.f32 %v2975_v17, %v3916_v2  ;;  %v541_v27 = vmul.f32 %v3102_v18, %v3916_v2  ;;  %v542_v28 = vmul.f32 %v3103_v19, %v3916_v2  ;;  %v3532_v16 = vld [vmem:[%s3911_s23 + $0x48] sm:$0xff]  }
  0x38   : > { %v675_v29 = vadd.f32 %v3925_v11, %v540_v21  ;;  %vm802_vm9 = vcmp.gt.f32.partialorder %v674_v22, 0.0  ;;  %v930_v30 = vmul.f32 0.2, %v674_v22  ;;  %v612_v31 = vadd.f32 %v3925_v11, %v477_v23 }
  0x39   : > { %3726 = vmatmul.mubr.msk.bf16.gmra.mrb[8].mxu0 %vm1177_vm1, %v1117_v25  ;;  %v613_v32 = vadd.f32 %v3925_v11, %v478_v26  ;;  %v676_v33 = vadd.f32 %v3925_v11, %v541_v27  ;;  %v677_v34 = vadd.f32 %v3925_v11, %v542_v28  ;;  %v2978_v35 = vunpack.c.l.bf16 %v3530_v24  ;;  %v3564_v27 = vld [vmem:[%s3911_s23 + $0x148] sm:$0xff]  }
  0x3a   : > { %vm803_vm10 = vcmp.gt.f32.partialorder %v675_v29, 0.0  ;;  %v931_v36 = vmul.f32 0.2, %v675_v29  ;;  %v1058_v37 = vsel %vm802_vm9, %v674_v22, %v930_v30  ;;  %vm740_vm11 = vcmp.gt.f32.partialorder %v612_v31, 0.0 }
  0x3b   : > { %vm741_vm12 = vcmp.gt.f32.partialorder %v613_v32, 0.0  ;;  %v868_v38 = vmul.f32 0.2, %v612_v31  ;;  %v869_v39 = vmul.f32 0.2, %v613_v32  ;;  %vm804_vm13 = vcmp.gt.f32.partialorder %v676_v33, 0.0 }
  0x3c   : > { %v1059_v40 = vsel %vm803_vm10, %v675_v29, %v931_v36  ;;  %vm805_vm14 = vcmp.gt.f32.partialorder %v677_v34, 0.0  ;;  %v932_v41 = vmul.f32 0.2, %v676_v33  ;;  %v933_v42 = vmul.f32 0.2, %v677_v34 }
  0x3d   : > { %v1149_v44 = vpack.c.bf16 %v1059_v40, %v1058_v37  ;;  %v996_v45 = vsel %vm740_vm11, %v612_v31, %v868_v38  ;;  %v997_v46 = vsel %vm741_vm12, %v613_v32, %v869_v39  ;;  %v2979_v47 = vunpack.c.h.bf16 %v3530_v24  ;;  %v3533_v32 = vld [vmem:[%s3911_s23 + $0x50] sm:$0xff]  }
  0x3e   : > { %v1118_v50 = vpack.c.bf16 %v997_v46, %v996_v45  ;;  %v1060_v51 = vsel %vm804_vm13, %v676_v33, %v932_v41  ;;  %v1061_v52 = vsel %vm805_vm14, %v677_v34, %v933_v42  ;;  %v479_v53 = vmul.f32 %v2978_v35, %v3916_v2 }
  0x3f   : > { %3790 = vmatmul.mubr.msk.bf16.gmra.mrb[8].mxu1 %vm1177_vm1, %v1149_v44  ;;  %v1150_v54 = vpack.c.bf16 %v1061_v52, %v1060_v51  ;;  %v480_v55 = vmul.f32 %v2979_v47, %v3916_v2  ;;  %v3106_v56 = vunpack.c.l.bf16 %v3562_v43  ;;  %v3107_v57 = vunpack.c.h.bf16 %v3562_v43  ;;  %v3565_v47 = vld [vmem:[%s3911_s23 + $0x150] sm:$0xff]  }
  0x40   : > { %3729 = vmatprep.mubr.msk.bf16.mxu0 %vm1177_vm1, %v1118_v50  ;;  %v614_v58 = vadd.f32 %v3925_v11, %v479_v53  ;;  %v2982_v59 = vunpack.c.l.bf16 %v3531_v48  ;;  %v2983_v60 = vunpack.c.h.bf16 %v3531_v48  ;;  %v3110_v61 = vunpack.c.l.bf16 %v3563_v49 }
  0x41   : > { %3793 = vmatprep.mubr.msk.bf16.mxu1 %vm1177_vm1, %v1150_v54  ;;  %v615_v62 = vadd.f32 %v3925_v11, %v480_v55  ;;  %v543_v63 = vmul.f32 %v3106_v56, %v3916_v2  ;;  %v544_v0 = vmul.f32 %v3107_v57, %v3916_v2  ;;  %v3111_v1 = vunpack.c.h.bf16 %v3563_v49 }
  0x42   : > { %vm742_vm15 = vcmp.gt.f32.partialorder %v614_v58, 0.0  ;;  %v870_v3 = vmul.f32 0.2, %v614_v58  ;;  %v481_v4 = vmul.f32 %v2982_v59, %v3916_v2  ;;  %v482_v5 = vmul.f32 %v2983_v60, %v3916_v2 }
  0x43   : > { %vm743_vm0 = vcmp.gt.f32.partialorder %v615_v62, 0.0  ;;  %v871_v6 = vmul.f32 0.2, %v615_v62  ;;  %v678_v7 = vadd.f32 %v3925_v11, %v543_v63  ;;  %v679_v8 = vadd.f32 %v3925_v11, %v544_v0  ;;  %v3534_v0 = vld [vmem:[%s3911_s23 + $0x58] sm:$0xff]  }
  0x44   : > { %v998_v9 = vsel %vm742_vm15, %v614_v58, %v870_v3  ;;  %v616_v10 = vadd.f32 %v3925_v11, %v481_v4  ;;  %v617_v12 = vadd.f32 %v3925_v11, %v482_v5  ;;  %v545_v13 = vmul.f32 %v3110_v61, %v3916_v2  ;;  %v3566_v5 = vld [vmem:[%s3911_s23 + $0x158] sm:$0xff]  }
  0x45   : > { %v999_v14 = vsel %vm743_vm0, %v615_v62, %v871_v6  ;;  %vm806_vm2 = vcmp.gt.f32.partialorder %v678_v7, 0.0  ;;  %vm807_vm3 = vcmp.gt.f32.partialorder %v679_v8, 0.0  ;;  %v934_v15 = vmul.f32 0.2, %v678_v7 }
  0x46   : > { %v1119_v17 = vpack.c.bf16 %v999_v14, %v998_v9  ;;  %v935_v18 = vmul.f32 0.2, %v679_v8  ;;  %vm744_vm4 = vcmp.gt.f32.partialorder %v616_v10, 0.0  ;;  %vm745_vm5 = vcmp.gt.f32.partialorder %v617_v12, 0.0 }
  0x47   : > { %v1062_v19 = vsel %vm806_vm2, %v678_v7, %v934_v15  ;;  %v872_v20 = vmul.f32 0.2, %v616_v10  ;;  %v873_v21 = vmul.f32 0.2, %v617_v12  ;;  %v546_v22 = vmul.f32 %v3111_v1, %v3916_v2 }
  0x48   : > { %3730 = vmatmul.mubr.msk.bf16.gmra.mrb[12].mxu0 %vm1177_vm1, %v1119_v17  ;;  %v1063_v23 = vsel %vm807_vm3, %v679_v8, %v935_v18  ;;  %v680_v24 = vadd.f32 %v3925_v11, %v545_v13  ;;  %v2986_v25 = vunpack.c.l.bf16 %v3532_v16  ;;  %v2987_v26 = vunpack.c.h.bf16 %v3532_v16 }
  0x49   : > { %v1151_v28 = vpack.c.bf16 %v1063_v23, %v1062_v19  ;;  %v1000_v29 = vsel %vm744_vm4, %v616_v10, %v872_v20  ;;  %v1001_v30 = vsel %vm745_vm5, %v617_v12, %v873_v21  ;;  %v681_v31 = vadd.f32 %v3925_v11, %v546_v22  ;;  %v3535_v22 = vld [vmem:[%s3911_s23 + $0x60] sm:$0xff]  }
  0x4a   : > { %v1120_v33 = vpack.c.bf16 %v1001_v30, %v1000_v29  ;;  %vm808_vm6 = vcmp.gt.f32.partialorder %v680_v24, 0.0  ;;  %v936_v34 = vmul.f32 0.2, %v680_v24  ;;  %v483_v35 = vmul.f32 %v2986_v25, %v3916_v2 }
  0x4b   : > { %3794 = vmatmul.mubr.msk.bf16.gmra.mrb[12].mxu1 %vm1177_vm1, %v1151_v28  ;;  %vm809_vm7 = vcmp.gt.f32.partialorder %v681_v31, 0.0  ;;  %v937_v36 = vmul.f32 0.2, %v681_v31  ;;  %v484_v37 = vmul.f32 %v2987_v26, %v3916_v2  ;;  %v3114_v38 = vunpack.c.l.bf16 %v3564_v27 }
  0x4c   : > { %3733 = vmatprep.mubr.msk.bf16.mxu0 %vm1177_vm1, %v1120_v33  ;;  %v1064_v39 = vsel %vm808_vm6, %v680_v24, %v936_v34  ;;  %v618_v40 = vadd.f32 %v3925_v11, %v483_v35  ;;  %v3115_v41 = vunpack.c.h.bf16 %v3564_v27  ;;  %v2990_v42 = vunpack.c.l.bf16 %v3533_v32 }
  0x4d   : > { %v1065_v43 = vsel %vm809_vm7, %v681_v31, %v937_v36  ;;  %v619_v44 = vadd.f32 %v3925_v11, %v484_v37  ;;  %v547_v45 = vmul.f32 %v3114_v38, %v3916_v2  ;;  %v2991_v46 = vunpack.c.h.bf16 %v3533_v32  ;;  %v3567_v36 = vld [vmem:[%s3911_s23 + $0x160] sm:$0xff]  }
  0x4e   : > { %v1152_v48 = vpack.c.bf16 %v1065_v43, %v1064_v39  ;;  %vm746_vm8 = vcmp.gt.f32.partialorder %v618_v40, 0.0  ;;  %v874_v49 = vmul.f32 0.2, %v618_v40  ;;  %v548_v50 = vmul.f32 %v3115_v41, %v3916_v2 }
  0x4f   : > { %vm747_vm9 = vcmp.gt.f32.partialorder %v619_v44, 0.0  ;;  %v875_v51 = vmul.f32 0.2, %v619_v44  ;;  %v682_v52 = vadd.f32 %v3925_v11, %v547_v45  ;;  %v485_v53 = vmul.f32 %v2990_v42, %v3916_v2 }
  0x50   : > { %3797 = vmatprep.mubr.msk.bf16.mxu1 %vm1177_vm1, %v1152_v48  ;;  %v1002_v54 = vsel %vm746_vm8, %v618_v40, %v874_v49  ;;  %v683_v55 = vadd.f32 %v3925_v11, %v548_v50  ;;  %v486_v56 = vmul.f32 %v2991_v46, %v3916_v2  ;;  %v3118_v57 = vunpack.c.l.bf16 %v3565_v47  ;;  %v3536_v46 = vld [vmem:[%s3911_s23 + $0x68] sm:$0xff]  }
  0x51   : > { %v1003_v58 = vsel %vm747_vm9, %v619_v44, %v875_v51  ;;  %vm810_vm10 = vcmp.gt.f32.partialorder %v682_v52, 0.0  ;;  %v938_v59 = vmul.f32 0.2, %v682_v52  ;;  %v620_v60 = vadd.f32 %v3925_v11, %v485_v53 }
  0x52   : > { %v1121_v61 = vpack.c.bf16 %v1003_v58, %v1002_v54  ;;  %vm811_vm11 = vcmp.gt.f32.partialorder %v683_v55, 0.0  ;;  %v939_v62 = vmul.f32 0.2, %v683_v55  ;;  %v621_v63 = vadd.f32 %v3925_v11, %v486_v56 }
  0x53   : > { %v1066_v1 = vsel %vm810_vm10, %v682_v52, %v938_v59  ;;  %vm748_vm12 = vcmp.gt.f32.partialorder %v620_v60, 0.0  ;;  %v876_v3 = vmul.f32 0.2, %v620_v60  ;;  %v3119_v4 = vunpack.c.h.bf16 %v3565_v47  ;;  %v3568_v47 = vld [vmem:[%s3911_s23 + $0x168] sm:$0xff]  }
  0x54   : > { %3734 = vmatmul.mubr.msk.bf16.gmra.mrb[16].mxu0 %vm1177_vm1, %v1121_v61  ;;  %v1067_v6 = vsel %vm811_vm11, %v683_v55, %v939_v62  ;;  %vm749_vm13 = vcmp.gt.f32.partialorder %v621_v63, 0.0  ;;  %v877_v7 = vmul.f32 0.2, %v621_v63  ;;  %v549_v8 = vmul.f32 %v3118_v57, %v3916_v2 }
  0x55   : > { %v1153_v9 = vpack.c.bf16 %v1067_v6, %v1066_v1  ;;  %v1004_v10 = vsel %vm748_vm12, %v620_v60, %v876_v3  ;;  %v550_v12 = vmul.f32 %v3119_v4, %v3916_v2  ;;  %v2994_v13 = vunpack.c.l.bf16 %v3534_v0 }
  0x56   : > { %v1005_v14 = vsel %vm749_vm13, %v621_v63, %v877_v7  ;;  %v684_v15 = vadd.f32 %v3925_v11, %v549_v8  ;;  %v2995_v16 = vunpack.c.h.bf16 %v3534_v0  ;;  %v3122_v17 = vunpack.c.l.bf16 %v3566_v5 }
  0x57   : > { %3798 = vmatmul.mubr.msk.bf16.gmra.mrb[16].mxu1 %vm1177_vm1, %v1153_v9  ;;  %v1122_v18 = vpack.c.bf16 %v1005_v14, %v1004_v10  ;;  %v685_v19 = vadd.f32 %v3925_v11, %v550_v12  ;;  %v487_v20 = vmul.f32 %v2994_v13, %v3916_v2  ;;  %v3123_v21 = vunpack.c.h.bf16 %v3566_v5  ;;  %v3537_v14 = vld [vmem:[%s3911_s23 + $0x70] sm:$0xff]  }
  0x58   : > { %vm812_vm14 = vcmp.gt.f32.partialorder %v684_v15, 0.0  ;;  %v940_v23 = vmul.f32 0.2, %v684_v15  ;;  %v488_v24 = vmul.f32 %v2995_v16, %v3916_v2  ;;  %v551_v25 = vmul.f32 %v3122_v17, %v3916_v2 }
  0x59   : > { %3737 = vmatprep.mubr.msk.bf16.mxu0 %vm1177_vm1, %v1122_v18  ;;  %vm813_vm15 = vcmp.gt.f32.partialorder %v685_v19, 0.0  ;;  %v941_v26 = vmul.f32 0.2, %v685_v19  ;;  %v622_v27 = vadd.f32 %v3925_v11, %v487_v20  ;;  %v552_v28 = vmul.f32 %v3123_v21, %v3916_v2  ;;  %v3569_v18 = vld [vmem:[%s3911_s23 + $0x170] sm:$0xff]  }
  0x5a   : > { %v1068_v29 = vsel %vm812_vm14, %v684_v15, %v940_v23  ;;  %v623_v30 = vadd.f32 %v3925_v11, %v488_v24  ;;  %v686_v31 = vadd.f32 %v3925_v11, %v551_v25  ;;  %v2998_v32 = vunpack.c.l.bf16 %v3535_v22 }
  0x5b   : > { %v1069_v33 = vsel %vm813_vm15, %v685_v19, %v941_v26  ;;  %vm750_vm0 = vcmp.gt.f32.partialorder %v622_v27, 0.0  ;;  %v878_v34 = vmul.f32 0.2, %v622_v27  ;;  %v687_v35 = vadd.f32 %v3925_v11, %v552_v28 }
  0x5c   : > { %v1154_v37 = vpack.c.bf16 %v1069_v33, %v1068_v29  ;;  %vm751_vm2 = vcmp.gt.f32.partialorder %v623_v30, 0.0  ;;  %v879_v38 = vmul.f32 0.2, %v623_v30  ;;  %vm814_vm3 = vcmp.gt.f32.partialorder %v686_v31, 0.0 }
  0x5d   : > { %v1006_v39 = vsel %vm750_vm0, %v622_v27, %v878_v34  ;;  %vm815_vm4 = vcmp.gt.f32.partialorder %v687_v35, 0.0  ;;  %v942_v40 = vmul.f32 0.2, %v686_v31  ;;  %v943_v41 = vmul.f32 0.2, %v687_v35 }
  0x5e   : > { %3801 = vmatprep.mubr.msk.bf16.mxu1 %vm1177_vm1, %v1154_v37  ;;  %v1007_v42 = vsel %vm751_vm2, %v623_v30, %v879_v38  ;;  %v2999_v43 = vunpack.c.h.bf16 %v3535_v22  ;;  %v489_v44 = vmul.f32 %v2998_v32, %v3916_v2  ;;  %v3126_v45 = vunpack.c.l.bf16 %v3567_v36  ;;  %v3538_v30 = vld [vmem:[%s3911_s23 + $0x78] sm:$0xff]  }
  0x5f   : > { %v1123_v48 = vpack.c.bf16 %v1007_v42, %v1006_v39  ;;  %v1070_v49 = vsel %vm814_vm3, %v686_v31, %v942_v40  ;;  %v1071_v50 = vsel %vm815_vm4, %v687_v35, %v943_v41  ;;  %v3127_v51 = vunpack.c.h.bf16 %v3567_v36 }
  0x60   : > { %v1155_v52 = vpack.c.bf16 %v1071_v50, %v1070_v49  ;;  %v490_v53 = vmul.f32 %v2999_v43, %v3916_v2  ;;  %v624_v54 = vadd.f32 %v3925_v11, %v489_v44  ;;  %v553_v55 = vmul.f32 %v3126_v45, %v3916_v2  ;;  %v3570_v49 = vld [vmem:[%s3911_s23 + $0x178] sm:$0xff]  }
  0x61   : > { %3738 = vmatmul.mubr.msk.bf16.gmra.mrb[20].mxu0 %vm1177_vm1, %v1123_v48  ;;  %v554_v56 = vmul.f32 %v3127_v51, %v3916_v2  ;;  %v3002_v57 = vunpack.c.l.bf16 %v3536_v46  ;;  %v3003_v58 = vunpack.c.h.bf16 %v3536_v46  ;;  %v3130_v59 = vunpack.c.l.bf16 %v3568_v47 }
  0x62   : > { %3802 = vmatmul.mubr.msk.bf16.gmra.mrb[20].mxu1 %vm1177_vm1, %v1155_v52  ;;  %v625_v60 = vadd.f32 %v3925_v11, %v490_v53  ;;  %vm752_vm5 = vcmp.gt.f32.partialorder %v624_v54, 0.0  ;;  %v880_v61 = vmul.f32 0.2, %v624_v54  ;;  %v688_v62 = vadd.f32 %v3925_v11, %v553_v55 }
  0x63   : > { %v689_v63 = vadd.f32 %v3925_v11, %v554_v56  ;;  %v491_v0 = vmul.f32 %v3002_v57, %v3916_v2  ;;  %v492_v1 = vmul.f32 %v3003_v58, %v3916_v2  ;;  %v3131_v3 = vunpack.c.h.bf16 %v3568_v47  ;;  %v3539_v58 = vld [vmem:[%s3911_s23 + $0x80] sm:$0xff]  }
  0x64   : > { %vm753_vm6 = vcmp.gt.f32.partialorder %v625_v60, 0.0  ;;  %v881_v4 = vmul.f32 0.2, %v625_v60  ;;  %v1008_v5 = vsel %vm752_vm5, %v624_v54, %v880_v61  ;;  %vm816_vm7 = vcmp.gt.f32.partialorder %v688_v62, 0.0 }
  0x65   : > { %vm817_vm8 = vcmp.gt.f32.partialorder %v689_v63, 0.0  ;;  %v944_v6 = vmul.f32 0.2, %v688_v62  ;;  %v945_v7 = vmul.f32 0.2, %v689_v63  ;;  %v626_v8 = vadd.f32 %v3925_v11, %v491_v0 }
  0x66   : > { %v1009_v9 = vsel %vm753_vm6, %v625_v60, %v881_v4  ;;  %v627_v10 = vadd.f32 %v3925_v11, %v492_v1  ;;  %v555_v12 = vmul.f32 %v3130_v59, %v3916_v2  ;;  %v556_v13 = vmul.f32 %v3131_v3, %v3916_v2 }
  0x67   : > { %v1124_v15 = vpack.c.bf16 %v1009_v9, %v1008_v5  ;;  %v1072_v16 = vsel %vm816_vm7, %v688_v62, %v944_v6  ;;  %v1073_v17 = vsel %vm817_vm8, %v689_v63, %v945_v7  ;;  %vm754_vm9 = vcmp.gt.f32.partialorder %v626_v8, 0.0  ;;  %v3571_v63 = vld [vmem:[%s3911_s23 + $0x180] sm:$0xff]  }
  0x68   : > { %v1156_v19 = vpack.c.bf16 %v1073_v17, %v1072_v16  ;;  %vm755_vm10 = vcmp.gt.f32.partialorder %v627_v10, 0.0  ;;  %v882_v20 = vmul.f32 0.2, %v626_v8  ;;  %v883_v21 = vmul.f32 0.2, %v627_v10  ;;  %v3540_v16 = vld [vmem:[%s3911_s23 + $0x88] sm:$0xff]  }
  0x69   : > { %3741 = vmatprep.mubr.msk.bf16.mxu0 %vm1177_vm1, %v1124_v15  ;;  %v690_v22 = vadd.f32 %v3925_v11, %v555_v12  ;;  %v691_v23 = vadd.f32 %v3925_v11, %v556_v13  ;;  %v3006_v24 = vunpack.c.l.bf16 %v3537_v14  ;;  %v3007_v25 = vunpack.c.h.bf16 %v3537_v14 }
  0x6a   : > { %3805 = vmatprep.mubr.msk.bf16.mxu1 %vm1177_vm1, %v1156_v19  ;;  %v1010_v26 = vsel %vm754_vm9, %v626_v8, %v882_v20  ;;  %v1011_v27 = vsel %vm755_vm10, %v627_v10, %v883_v21  ;;  %v3134_v28 = vunpack.c.l.bf16 %v3569_v18  ;;  %v3135_v29 = vunpack.c.h.bf16 %v3569_v18 }
  0x6b   : > { %v1125_v31 = vpack.c.bf16 %v1011_v27, %v1010_v26  ;;  %vm818_vm11 = vcmp.gt.f32.partialorder %v690_v22, 0.0  ;;  %vm819_vm12 = vcmp.gt.f32.partialorder %v691_v23, 0.0  ;;  %v946_v32 = vmul.f32 0.2, %v690_v22 }
  0x6c   : > { %v947_v33 = vmul.f32 0.2, %v691_v23  ;;  %v493_v34 = vmul.f32 %v3006_v24, %v3916_v2  ;;  %v494_v35 = vmul.f32 %v3007_v25, %v3916_v2  ;;  %v557_v36 = vmul.f32 %v3134_v28, %v3916_v2 }
  0x6d   : > { %3742 = vmatmul.mubr.msk.bf16.gmra.mrb[24].mxu0 %vm1177_vm1, %v1125_v31  ;;  %v1074_v37 = vsel %vm818_vm11, %v690_v22, %v946_v32  ;;  %v558_v38 = vmul.f32 %v3135_v29, %v3916_v2  ;;  %v3010_v39 = vunpack.c.l.bf16 %v3538_v30  ;;  %v3011_v40 = vunpack.c.h.bf16 %v3538_v30 }
  0x6e   : > { %v1075_v41 = vsel %vm819_vm12, %v691_v23, %v947_v33  ;;  %v628_v42 = vadd.f32 %v3925_v11, %v493_v34  ;;  %v629_v43 = vadd.f32 %v3925_v11, %v494_v35  ;;  %v692_v44 = vadd.f32 %v3925_v11, %v557_v36  ;;  %v3572_v34 = vld [vmem:[%s3911_s23 + $0x188] sm:$0xff]  }
  0x6f   : > { %v1157_v45 = vpack.c.bf16 %v1075_v41, %v1074_v37  ;;  %v693_v46 = vadd.f32 %v3925_v11, %v558_v38  ;;  %v495_v47 = vmul.f32 %v3010_v39, %v3916_v2  ;;  %v496_v48 = vmul.f32 %v3011_v40, %v3916_v2  ;;  %v3541_v38 = vld [vmem:[%s3911_s23 + $0x90] sm:$0xff]  }
  0x70   : > { %vm756_vm13 = vcmp.gt.f32.partialorder %v628_v42, 0.0  ;;  %vm757_vm14 = vcmp.gt.f32.partialorder %v629_v43, 0.0  ;;  %v884_v50 = vmul.f32 0.2, %v628_v42  ;;  %v885_v51 = vmul.f32 0.2, %v629_v43 }
  0x71   : > { %3806 = vmatmul.mubr.msk.bf16.gmra.mrb[24].mxu1 %vm1177_vm1, %v1157_v45  ;;  %vm820_vm15 = vcmp.gt.f32.partialorder %v692_v44, 0.0  ;;  %vm821_vm0 = vcmp.gt.f32.partialorder %v693_v46, 0.0  ;;  %v948_v52 = vmul.f32 0.2, %v692_v44  ;;  %v949_v53 = vmul.f32 0.2, %v693_v46 }
  0x72   : > { %v1012_v54 = vsel %vm756_vm13, %v628_v42, %v884_v50  ;;  %v1013_v55 = vsel %vm757_vm14, %v629_v43, %v885_v51  ;;  %v630_v56 = vadd.f32 %v3925_v11, %v495_v47  ;;  %v631_v57 = vadd.f32 %v3925_v11, %v496_v48  ;;  %v3573_v39 = vld [vmem:[%s3911_s23 + $0x190] sm:$0xff]   ;;  %v4132_v43 = vld [vmem:[%s4393_s1] ss:$0 sm:$0xff] }
  0x73   : > { %v1126_v59 = vpack.c.bf16 %v1013_v55, %v1012_v54  ;;  %v1076_v60 = vsel %vm820_vm15, %v692_v44, %v948_v52  ;;  %v1077_v61 = vsel %vm821_vm0, %v693_v46, %v949_v53  ;;  %v3138_v62 = vunpack.c.l.bf16 %v3570_v49 }
  0x74   : > { %v1158_v0 = vpack.c.bf16 %v1077_v61, %v1076_v60  ;;  %vm758_vm2 = vcmp.gt.f32.partialorder %v630_v56, 0.0  ;;  %vm759_vm3 = vcmp.gt.f32.partialorder %v631_v57, 0.0  ;;  %v886_v1 = vmul.f32 0.2, %v630_v56 }
  0x75   : > { %3745 = vmatprep.mubr.msk.bf16.mxu0 %vm1177_vm1, %v1126_v59  ;;  %v887_v3 = vmul.f32 0.2, %v631_v57  ;;  %v3139_v4 = vunpack.c.h.bf16 %v3570_v49  ;;  %v559_v5 = vmul.f32 %v3138_v62, %v3916_v2  ;;  %v3014_v6 = vunpack.c.l.bf16 %v3539_v58  ;;  %v4141_v49 = vld [vmem:[%s4394_s2] ss:$0 sm:$0xff] }
  0x76   : > { %3809 = vmatprep.mubr.msk.bf16.mxu1 %vm1177_vm1, %v1158_v0  ;;  %v1014_v7 = vsel %vm758_vm2, %v630_v56, %v886_v1  ;;  %v3015_v8 = vunpack.c.h.bf16 %v3539_v58  ;;  %v3142_v9 = vunpack.c.l.bf16 %v3571_v63  ;;  %v3143_v10 = vunpack.c.h.bf16 %v3571_v63 }
  0x77   : > { %v1015_v12 = vsel %vm759_vm3, %v631_v57, %v887_v3  ;;  %v560_v13 = vmul.f32 %v3139_v4, %v3916_v2  ;;  %v694_v14 = vadd.f32 %v3925_v11, %v559_v5  ;;  %v497_v15 = vmul.f32 %v3014_v6, %v3916_v2 }
  0x78   : > { %v1127_v17 = vpack.c.bf16 %v1015_v12, %v1014_v7  ;;  %v498_v18 = vmul.f32 %v3015_v8, %v3916_v2  ;;  %v561_v19 = vmul.f32 %v3142_v9, %v3916_v2  ;;  %v562_v20 = vmul.f32 %v3143_v10, %v3916_v2  ;;  %v3542_v7 = vld [vmem:[%s3911_s23 + $0x98] sm:$0xff]  }
  0x79   : > { %v695_v21 = vadd.f32 %v3925_v11, %v560_v13  ;;  %vm822_vm4 = vcmp.gt.f32.partialorder %v694_v14, 0.0  ;;  %v950_v22 = vmul.f32 0.2, %v694_v14  ;;  %v632_v23 = vadd.f32 %v3925_v11, %v497_v15 }
  0x7a   : > { %3746 = vmatmul.mubr.msk.bf16.gmra.mrb[28].mxu0 %vm1177_vm1, %v1127_v17  ;;  %v633_v24 = vadd.f32 %v3925_v11, %v498_v18  ;;  %v696_v25 = vadd.f32 %v3925_v11, %v561_v19  ;;  %v697_v26 = vadd.f32 %v3925_v11, %v562_v20  ;;  %v3018_v27 = vunpack.c.l.bf16 %v3540_v16  ;;  %v3574_v19 = vld [vmem:[%s3911_s23 + $0x198] sm:$0xff]  }
  0x7b   : > { %vm823_vm5 = vcmp.gt.f32.partialorder %v695_v21, 0.0  ;;  %v951_v28 = vmul.f32 0.2, %v695_v21  ;;  %v1078_v2 = vsel %vm822_vm4, %v694_v14, %v950_v22  ;;  %vm760_vm6 = vcmp.gt.f32.partialorder %v632_v23, 0.0 }
  0x7c   : > { %vm761_vm7 = vcmp.gt.f32.partialorder %v633_v24, 0.0  ;;  %v888_v29 = vmul.f32 0.2, %v632_v23  ;;  %v889_v30 = vmul.f32 0.2, %v633_v24  ;;  %vm824_vm8 = vcmp.gt.f32.partialorder %v696_v25, 0.0 }
  0x7d   : > { %v1079_v31 = vsel %vm823_vm5, %v695_v21, %v951_v28  ;;  %vm825_vm9 = vcmp.gt.f32.partialorder %v697_v26, 0.0  ;;  %v952_v32 = vmul.f32 0.2, %v696_v25  ;;  %v953_v33 = vmul.f32 0.2, %v697_v26 }
  0x7e   : > { %v1159_v35 = vpack.c.bf16 %v1079_v31, %v1078_v2  ;;  %v1016_v36 = vsel %vm760_vm6, %v632_v23, %v888_v29  ;;  %v1017_v37 = vsel %vm761_vm7, %v633_v24, %v889_v30  ;;  %v3019_v11 = vunpack.c.h.bf16 %v3540_v16  ;;  %v3543_v24 = vld [vmem:[%s3911_s23 + $0xa0] sm:$0xff]  }
  0x7f   : > { %v1128_v40 = vpack.c.bf16 %v1017_v37, %v1016_v36  ;;  %v1080_v41 = vsel %vm824_vm8, %v696_v25, %v952_v32  ;;  %v1081_v42 = vsel %vm825_vm9, %v697_v26, %v953_v33  ;;  %v499_v44 = vmul.f32 %v4132_v43, %v3018_v27 }
  0x80   : > { %3810 = vmatmul.mubr.msk.bf16.gmra.mrb[28].mxu1 %vm1177_vm1, %v1159_v35  ;;  %v1160_v45 = vpack.c.bf16 %v1081_v42, %v1080_v41  ;;  %v500_v46 = vmul.f32 %v4132_v43, %v3019_v11  ;;  %v3146_v47 = vunpack.c.l.bf16 %v3572_v34  ;;  %v3147_v48 = vunpack.c.h.bf16 %v3572_v34  ;;  %v3575_v11 = vld [vmem:[%s3911_s23 + $0x1a0] sm:$0xff]  }
  0x81   : > { %3749 = vmatprep.mubr.msk.bf16.mxu0 %vm1177_vm1, %v1128_v40  ;;  %v634_v50 = vadd.f32 %v4141_v49, %v499_v44  ;;  %v3022_v51 = vunpack.c.l.bf16 %v3541_v38  ;;  %v3023_v52 = vunpack.c.h.bf16 %v3541_v38  ;;  %v3150_v53 = vunpack.c.l.bf16 %v3573_v39 }
  0x82   : > { %3813 = vmatprep.mubr.msk.bf16.mxu1 %vm1177_vm1, %v1160_v45  ;;  %v635_v54 = vadd.f32 %v4141_v49, %v500_v46  ;;  %v563_v55 = vmul.f32 %v4132_v43, %v3146_v47  ;;  %v564_v56 = vmul.f32 %v4132_v43, %v3147_v48  ;;  %v3151_v57 = vunpack.c.h.bf16 %v3573_v39 }
  0x83   : > { %vm762_vm10 = vcmp.gt.f32.partialorder %v634_v50, 0.0  ;;  %v890_v58 = vmul.f32 0.2, %v634_v50  ;;  %v501_v59 = vmul.f32 %v4132_v43, %v3022_v51  ;;  %v502_v60 = vmul.f32 %v4132_v43, %v3023_v52 }
  0x84   : > { %vm763_vm11 = vcmp.gt.f32.partialorder %v635_v54, 0.0  ;;  %v891_v61 = vmul.f32 0.2, %v635_v54  ;;  %v698_v62 = vadd.f32 %v4141_v49, %v563_v55  ;;  %v699_v63 = vadd.f32 %v4141_v49, %v564_v56  ;;  %v3544_v56 = vld [vmem:[%s3911_s23 + $0xa8] sm:$0xff]  }
  0x85   : > { %v1018_v0 = vsel %vm762_vm10, %v634_v50, %v890_v58  ;;  %v636_v1 = vadd.f32 %v4141_v49, %v501_v59  ;;  %v637_v3 = vadd.f32 %v4141_v49, %v502_v60  ;;  %v565_v4 = vmul.f32 %v4132_v43, %v3150_v53  ;;  %v3576_v60 = vld [vmem:[%s3911_s23 + $0x1a8] sm:$0xff]  }
  0x86   : > { %v1019_v5 = vsel %vm763_vm11, %v635_v54, %v891_v61  ;;  %vm826_vm12 = vcmp.gt.f32.partialorder %v698_v62, 0.0  ;;  %vm827_vm13 = vcmp.gt.f32.partialorder %v699_v63, 0.0  ;;  %v954_v6 = vmul.f32 0.2, %v698_v62 }
  0x87   : > { %v1129_v8 = vpack.c.bf16 %v1019_v5, %v1018_v0  ;;  %v955_v9 = vmul.f32 0.2, %v699_v63  ;;  %vm764_vm14 = vcmp.gt.f32.partialorder %v636_v1, 0.0  ;;  %vm765_vm15 = vcmp.gt.f32.partialorder %v637_v3, 0.0 }
  0x88   : > { %v1082_v10 = vsel %vm826_vm12, %v698_v62, %v954_v6  ;;  %v892_v12 = vmul.f32 0.2, %v636_v1  ;;  %v893_v13 = vmul.f32 0.2, %v637_v3  ;;  %v566_v14 = vmul.f32 %v4132_v43, %v3151_v57 }
  0x89   : > { %3750 = vmatmul.mubr.msk.bf16.gmra.mrb[32].mxu0 %vm1177_vm1, %v1129_v8  ;;  %v1083_v15 = vsel %vm827_vm13, %v699_v63, %v955_v9  ;;  %v700_v16 = vadd.f32 %v4141_v49, %v565_v4  ;;  %v3026_v17 = vunpack.c.l.bf16 %v3542_v7  ;;  %v3027_v18 = vunpack.c.h.bf16 %v3542_v7 }
  0x8a   : > { %v1161_v20 = vpack.c.bf16 %v1083_v15, %v1082_v10  ;;  %v1020_v21 = vsel %vm764_vm14, %v636_v1, %v892_v12  ;;  %v1021_v22 = vsel %vm765_vm15, %v637_v3, %v893_v13  ;;  %v701_v23 = vadd.f32 %v4141_v49, %v566_v14  ;;  %v3545_v14 = vld [vmem:[%s3911_s23 + $0xb0] sm:$0xff]  }
  0x8b   : > { %v1130_v25 = vpack.c.bf16 %v1021_v22, %v1020_v21  ;;  %vm828_vm0 = vcmp.gt.f32.partialorder %v700_v16, 0.0  ;;  %v956_v26 = vmul.f32 0.2, %v700_v16  ;;  %v503_v27 = vmul.f32 %v4132_v43, %v3026_v17 }
  0x8c   : > { %3814 = vmatmul.mubr.msk.bf16.gmra.mrb[32].mxu1 %vm1177_vm1, %v1161_v20  ;;  %vm829_vm2 = vcmp.gt.f32.partialorder %v701_v23, 0.0  ;;  %v957_v28 = vmul.f32 0.2, %v701_v23  ;;  %v504_v2 = vmul.f32 %v4132_v43, %v3027_v18  ;;  %v3154_v29 = vunpack.c.l.bf16 %v3574_v19 }
  0x8d   : > { %3753 = vmatprep.mubr.msk.bf16.mxu0 %vm1177_vm1, %v1130_v25  ;;  %v1084_v30 = vsel %vm828_vm0, %v700_v16, %v956_v26  ;;  %v638_v31 = vadd.f32 %v4141_v49, %v503_v27  ;;  %v3155_v32 = vunpack.c.h.bf16 %v3574_v19  ;;  %v3030_v33 = vunpack.c.l.bf16 %v3543_v24 }
  0x8e   : > { %v1085_v34 = vsel %vm829_vm2, %v701_v23, %v957_v28  ;;  %v639_v35 = vadd.f32 %v4141_v49, %v504_v2  ;;  %v567_v36 = vmul.f32 %v4132_v43, %v3154_v29  ;;  %v3031_v37 = vunpack.c.h.bf16 %v3543_v24  ;;  %v3577_v28 = vld [vmem:[%s3911_s23 + $0x1b0] sm:$0xff]  }
  0x8f   : > { %v1162_v38 = vpack.c.bf16 %v1085_v34, %v1084_v30  ;;  %vm766_vm3 = vcmp.gt.f32.partialorder %v638_v31, 0.0  ;;  %v894_v39 = vmul.f32 0.2, %v638_v31  ;;  %v568_v40 = vmul.f32 %v4132_v43, %v3155_v32 }
  0x90   : > { %vm767_vm4 = vcmp.gt.f32.partialorder %v639_v35, 0.0  ;;  %v895_v41 = vmul.f32 0.2, %v639_v35  ;;  %v702_v42 = vadd.f32 %v4141_v49, %v567_v36  ;;  %v505_v44 = vmul.f32 %v4132_v43, %v3030_v33 }
  0x91   : > { %3817 = vmatprep.mubr.msk.bf16.mxu1 %vm1177_vm1, %v1162_v38  ;;  %v1022_v45 = vsel %vm766_vm3, %v638_v31, %v894_v39  ;;  %v703_v46 = vadd.f32 %v4141_v49, %v568_v40  ;;  %v506_v47 = vmul.f32 %v4132_v43, %v3031_v37  ;;  %v3158_v48 = vunpack.c.l.bf16 %v3575_v11  ;;  %v3546_v37 = vld [vmem:[%s3911_s23 + $0xb8] sm:$0xff]  }
  0x92   : > { %v1023_v50 = vsel %vm767_vm4, %v639_v35, %v895_v41  ;;  %vm830_vm5 = vcmp.gt.f32.partialorder %v702_v42, 0.0  ;;  %v958_v51 = vmul.f32 0.2, %v702_v42  ;;  %v640_v52 = vadd.f32 %v4141_v49, %v505_v44 }
  0x93   : > { %v1131_v53 = vpack.c.bf16 %v1023_v50, %v1022_v45  ;;  %vm831_vm6 = vcmp.gt.f32.partialorder %v703_v46, 0.0  ;;  %v959_v54 = vmul.f32 0.2, %v703_v46  ;;  %v641_v55 = vadd.f32 %v4141_v49, %v506_v47 }
  0x94   : > { %v1086_v57 = vsel %vm830_vm5, %v702_v42, %v958_v51  ;;  %vm768_vm7 = vcmp.gt.f32.partialorder %v640_v52, 0.0  ;;  %v896_v58 = vmul.f32 0.2, %v640_v52  ;;  %v3159_v59 = vunpack.c.h.bf16 %v3575_v11  ;;  %v3578_v11 = vld [vmem:[%s3911_s23 + $0x1b8] sm:$0xff]  }
  0x95   : > { %3754 = vmatmul.mubr.msk.bf16.gmra.mrb[36].mxu0 %vm1177_vm1, %v1131_v53  ;;  %v1087_v61 = vsel %vm831_vm6, %v703_v46, %v959_v54  ;;  %vm769_vm8 = vcmp.gt.f32.partialorder %v641_v55, 0.0  ;;  %v897_v62 = vmul.f32 0.2, %v641_v55  ;;  %v569_v63 = vmul.f32 %v4132_v43, %v3158_v48 }
  0x96   : > { %v1163_v0 = vpack.c.bf16 %v1087_v61, %v1086_v57  ;;  %v1024_v1 = vsel %vm768_vm7, %v640_v52, %v896_v58  ;;  %v570_v3 = vmul.f32 %v4132_v43, %v3159_v59  ;;  %v3034_v4 = vunpack.c.l.bf16 %v3544_v56 }
  0x97   : > { %v1025_v5 = vsel %vm769_vm8, %v641_v55, %v897_v62  ;;  %v704_v6 = vadd.f32 %v4141_v49, %v569_v63  ;;  %v3035_v7 = vunpack.c.h.bf16 %v3544_v56  ;;  %v3162_v8 = vunpack.c.l.bf16 %v3576_v60 }
  0x98   : > { %3818 = vmatmul.mubr.msk.bf16.gmra.mrb[36].mxu1 %vm1177_vm1, %v1163_v0  ;;  %v1132_v9 = vpack.c.bf16 %v1025_v5, %v1024_v1  ;;  %v705_v10 = vadd.f32 %v4141_v49, %v570_v3  ;;  %v507_v12 = vmul.f32 %v4132_v43, %v3034_v4  ;;  %v3163_v13 = vunpack.c.h.bf16 %v3576_v60  ;;  %v3547_v5 = vld [vmem:[%s3911_s23 + $0xc0] sm:$0xff]  }
  0x99   : > { %vm832_vm9 = vcmp.gt.f32.partialorder %v704_v6, 0.0  ;;  %v960_v15 = vmul.f32 0.2, %v704_v6  ;;  %v508_v16 = vmul.f32 %v4132_v43, %v3035_v7  ;;  %v571_v17 = vmul.f32 %v4132_v43, %v3162_v8 }
  0x9a   : > { %3757 = vmatprep.mubr.msk.bf16.mxu0 %vm1177_vm1, %v1132_v9  ;;  %vm833_vm10 = vcmp.gt.f32.partialorder %v705_v10, 0.0  ;;  %v961_v18 = vmul.f32 0.2, %v705_v10  ;;  %v642_v19 = vadd.f32 %v4141_v49, %v507_v12  ;;  %v572_v20 = vmul.f32 %v4132_v43, %v3163_v13  ;;  %v3579_v9 = vld [vmem:[%s3911_s23 + $0x1c0] sm:$0xff]  }
  0x9b   : > { %v1088_v21 = vsel %vm832_vm9, %v704_v6, %v960_v15  ;;  %v643_v22 = vadd.f32 %v4141_v49, %v508_v16  ;;  %v706_v23 = vadd.f32 %v4141_v49, %v571_v17  ;;  %v3038_v24 = vunpack.c.l.bf16 %v3545_v14 }
  0x9c   : > { %v1089_v25 = vsel %vm833_vm10, %v705_v10, %v961_v18  ;;  %vm770_vm11 = vcmp.gt.f32.partialorder %v642_v19, 0.0  ;;  %v898_v26 = vmul.f32 0.2, %v642_v19  ;;  %v707_v27 = vadd.f32 %v4141_v49, %v572_v20 }
  0x9d   : > { %v1164_v2 = vpack.c.bf16 %v1089_v25, %v1088_v21  ;;  %vm771_vm12 = vcmp.gt.f32.partialorder %v643_v22, 0.0  ;;  %v899_v29 = vmul.f32 0.2, %v643_v22  ;;  %vm834_vm13 = vcmp.gt.f32.partialorder %v706_v23, 0.0 }
  0x9e   : > { %v1026_v30 = vsel %vm770_vm11, %v642_v19, %v898_v26  ;;  %vm835_vm14 = vcmp.gt.f32.partialorder %v707_v27, 0.0  ;;  %v962_v31 = vmul.f32 0.2, %v706_v23  ;;  %v963_v32 = vmul.f32 0.2, %v707_v27 }
  0x9f   : > { %3821 = vmatprep.mubr.msk.bf16.mxu1 %vm1177_vm1, %v1164_v2  ;;  %v1027_v33 = vsel %vm771_vm12, %v643_v22, %v899_v29  ;;  %v3039_v34 = vunpack.c.h.bf16 %v3545_v14  ;;  %v509_v35 = vmul.f32 %v4132_v43, %v3038_v24  ;;  %v3166_v36 = vunpack.c.l.bf16 %v3577_v28  ;;  %v3548_v22 = vld [vmem:[%s3911_s23 + $0xc8] sm:$0xff]  }
  0xa0   : > { %v1133_v38 = vpack.c.bf16 %v1027_v33, %v1026_v30  ;;  %v1090_v39 = vsel %vm834_vm13, %v706_v23, %v962_v31  ;;  %v1091_v40 = vsel %vm835_vm14, %v707_v27, %v963_v32  ;;  %v3167_v41 = vunpack.c.h.bf16 %v3577_v28 }
  0xa1   : > { %v1165_v42 = vpack.c.bf16 %v1091_v40, %v1090_v39  ;;  %v510_v44 = vmul.f32 %v4132_v43, %v3039_v34  ;;  %v644_v45 = vadd.f32 %v4141_v49, %v509_v35  ;;  %v573_v46 = vmul.f32 %v4132_v43, %v3166_v36  ;;  %v3580_v39 = vld [vmem:[%s3911_s23 + $0x1c8] sm:$0xff]  }
  0xa2   : > { %3758 = vmatmul.mubr.msk.bf16.gmra.mrb[40].mxu0 %vm1177_vm1, %v1133_v38  ;;  %v574_v47 = vmul.f32 %v4132_v43, %v3167_v41  ;;  %v3042_v48 = vunpack.c.l.bf16 %v3546_v37  ;;  %v3043_v50 = vunpack.c.h.bf16 %v3546_v37  ;;  %v3170_v51 = vunpack.c.l.bf16 %v3578_v11 }
  0xa3   : > { %3822 = vmatmul.mubr.msk.bf16.gmra.mrb[40].mxu1 %vm1177_vm1, %v1165_v42  ;;  %v645_v52 = vadd.f32 %v4141_v49, %v510_v44  ;;  %vm772_vm15 = vcmp.gt.f32.partialorder %v644_v45, 0.0  ;;  %v900_v53 = vmul.f32 0.2, %v644_v45  ;;  %v708_v54 = vadd.f32 %v4141_v49, %v573_v46 }
  0xa4   : > { %v709_v55 = vadd.f32 %v4141_v49, %v574_v47  ;;  %v511_v56 = vmul.f32 %v4132_v43, %v3042_v48  ;;  %v512_v57 = vmul.f32 %v4132_v43, %v3043_v50  ;;  %v3171_v58 = vunpack.c.h.bf16 %v3578_v11  ;;  %v3549_v50 = vld [vmem:[%s3911_s23 + $0xd0] sm:$0xff]  }
  0xa5   : > { %vm773_vm0 = vcmp.gt.f32.partialorder %v645_v52, 0.0  ;;  %v901_v59 = vmul.f32 0.2, %v645_v52  ;;  %v1028_v60 = vsel %vm772_vm15, %v644_v45, %v900_v53  ;;  %vm836_vm2 = vcmp.gt.f32.partialorder %v708_v54, 0.0 }
  0xa6   : > { %vm837_vm3 = vcmp.gt.f32.partialorder %v709_v55, 0.0  ;;  %v964_v61 = vmul.f32 0.2, %v708_v54  ;;  %v965_v62 = vmul.f32 0.2, %v709_v55  ;;  %v646_v63 = vadd.f32 %v4141_v49, %v511_v56 }
  0xa7   : > { %v1029_v0 = vsel %vm773_vm0, %v645_v52, %v901_v59  ;;  %v647_v1 = vadd.f32 %v4141_v49, %v512_v57  ;;  %v575_v3 = vmul.f32 %v4132_v43, %v3170_v51  ;;  %v576_v4 = vmul.f32 %v4132_v43, %v3171_v58 }
  0xa8   : > { %v1134_v6 = vpack.c.bf16 %v1029_v0, %v1028_v60  ;;  %v1092_v7 = vsel %vm836_vm2, %v708_v54, %v964_v61  ;;  %v1093_v8 = vsel %vm837_vm3, %v709_v55, %v965_v62  ;;  %vm774_vm4 = vcmp.gt.f32.partialorder %v646_v63, 0.0  ;;  %v3581_v55 = vld [vmem:[%s3911_s23 + $0x1d0] sm:$0xff]  }
  0xa9   : > { %v1166_v10 = vpack.c.bf16 %v1093_v8, %v1092_v7  ;;  %vm775_vm5 = vcmp.gt.f32.partialorder %v647_v1, 0.0  ;;  %v902_v12 = vmul.f32 0.2, %v646_v63  ;;  %v903_v13 = vmul.f32 0.2, %v647_v1  ;;  %v3550_v7 = vld [vmem:[%s3911_s23 + $0xd8] sm:$0xff]  }
  0xaa   : > { %3761 = vmatprep.mubr.msk.bf16.mxu0 %vm1177_vm1, %v1134_v6  ;;  %v710_v14 = vadd.f32 %v4141_v49, %v575_v3  ;;  %v711_v15 = vadd.f32 %v4141_v49, %v576_v4  ;;  %v3046_v16 = vunpack.c.l.bf16 %v3547_v5  ;;  %v3047_v17 = vunpack.c.h.bf16 %v3547_v5 }
  0xab   : > { %3825 = vmatprep.mubr.msk.bf16.mxu1 %vm1177_vm1, %v1166_v10  ;;  %v1030_v18 = vsel %vm774_vm4, %v646_v63, %v902_v12  ;;  %v1031_v19 = vsel %vm775_vm5, %v647_v1, %v903_v13  ;;  %v3174_v20 = vunpack.c.l.bf16 %v3579_v9  ;;  %v3175_v21 = vunpack.c.h.bf16 %v3579_v9 }
  0xac   : > { %v1135_v23 = vpack.c.bf16 %v1031_v19, %v1030_v18  ;;  %vm838_vm6 = vcmp.gt.f32.partialorder %v710_v14, 0.0  ;;  %vm839_vm7 = vcmp.gt.f32.partialorder %v711_v15, 0.0  ;;  %v966_v24 = vmul.f32 0.2, %v710_v14 }
  0xad   : > { %v967_v25 = vmul.f32 0.2, %v711_v15  ;;  %v513_v26 = vmul.f32 %v4132_v43, %v3046_v16  ;;  %v514_v27 = vmul.f32 %v4132_v43, %v3047_v17  ;;  %v577_v28 = vmul.f32 %v4132_v43, %v3174_v20 }
  0xae   : > { %3762 = vmatmul.mubr.msk.bf16.gmra.mrb[44].mxu0 %vm1177_vm1, %v1135_v23  ;;  %v1094_v2 = vsel %vm838_vm6, %v710_v14, %v966_v24  ;;  %v578_v29 = vmul.f32 %v4132_v43, %v3175_v21  ;;  %v3050_v30 = vunpack.c.l.bf16 %v3548_v22  ;;  %v3051_v31 = vunpack.c.h.bf16 %v3548_v22 }
  0xaf   : > { %v1095_v32 = vsel %vm839_vm7, %v711_v15, %v967_v25  ;;  %v648_v33 = vadd.f32 %v4141_v49, %v513_v26  ;;  %v649_v34 = vadd.f32 %v4141_v49, %v514_v27  ;;  %v712_v35 = vadd.f32 %v4141_v49, %v577_v28  ;;  %v3582_v27 = vld [vmem:[%s3911_s23 + $0x1d8] sm:$0xff]  }
  0xb0   : > { %v1167_v36 = vpack.c.bf16 %v1095_v32, %v1094_v2  ;;  %v713_v37 = vadd.f32 %v4141_v49, %v578_v29  ;;  %v515_v11 = vmul.f32 %v4132_v43, %v3050_v30  ;;  %v516_v38 = vmul.f32 %v4132_v43, %v3051_v31  ;;  %v3551_v31 = vld [vmem:[%s3911_s23 + $0xe0] sm:$0xff]  }
  0xb1   : > { %vm776_vm8 = vcmp.gt.f32.partialorder %v648_v33, 0.0  ;;  %vm777_vm9 = vcmp.gt.f32.partialorder %v649_v34, 0.0  ;;  %v904_v40 = vmul.f32 0.2, %v648_v33  ;;  %v905_v41 = vmul.f32 0.2, %v649_v34 }
  0xb2   : > { %3826 = vmatmul.mubr.msk.bf16.gmra.mrb[44].mxu1 %vm1177_vm1, %v1167_v36  ;;  %vm840_vm10 = vcmp.gt.f32.partialorder %v712_v35, 0.0  ;;  %vm841_vm11 = vcmp.gt.f32.partialorder %v713_v37, 0.0  ;;  %v968_v42 = vmul.f32 0.2, %v712_v35  ;;  %v969_v44 = vmul.f32 0.2, %v713_v37 }
  0xb3   : > { %v1032_v45 = vsel %vm776_vm8, %v648_v33, %v904_v40  ;;  %v1033_v46 = vsel %vm777_vm9, %v649_v34, %v905_v41  ;;  %v650_v47 = vadd.f32 %v4141_v49, %v515_v11  ;;  %v651_v48 = vadd.f32 %v4141_v49, %v516_v38  ;;  %v3583_v32 = vld [vmem:[%s3911_s23 + $0x1e0] sm:$0xff]  }
  0xb4   : > { %v1136_v51 = vpack.c.bf16 %v1033_v46, %v1032_v45  ;;  %v1096_v52 = vsel %vm840_vm10, %v712_v35, %v968_v42  ;;  %v1097_v53 = vsel %vm841_vm11, %v713_v37, %v969_v44  ;;  %v3178_v54 = vunpack.c.l.bf16 %v3580_v39 }
  0xb5   : > { %v1168_v56 = vpack.c.bf16 %v1097_v53, %v1096_v52  ;;  %vm778_vm12 = vcmp.gt.f32.partialorder %v650_v47, 0.0  ;;  %vm779_vm13 = vcmp.gt.f32.partialorder %v651_v48, 0.0  ;;  %v906_v57 = vmul.f32 0.2, %v650_v47 }
  0xb6   : > { %3765 = vmatprep.mubr.msk.bf16.mxu0 %vm1177_vm1, %v1136_v51  ;;  %v907_v58 = vmul.f32 0.2, %v651_v48  ;;  %v3179_v59 = vunpack.c.h.bf16 %v3580_v39  ;;  %v579_v60 = vmul.f32 %v4132_v43, %v3178_v54  ;;  %v3054_v61 = vunpack.c.l.bf16 %v3549_v50 }
  0xb7   : > { %3829 = vmatprep.mubr.msk.bf16.mxu1 %vm1177_vm1, %v1168_v56  ;;  %v1034_v62 = vsel %vm778_vm12, %v650_v47, %v906_v57  ;;  %v3055_v63 = vunpack.c.h.bf16 %v3549_v50  ;;  %v3182_v0 = vunpack.c.l.bf16 %v3581_v55  ;;  %v3183_v1 = vunpack.c.h.bf16 %v3581_v55 }
  0xb8   : > { %v1035_v3 = vsel %vm779_vm13, %v651_v48, %v907_v58  ;;  %v580_v4 = vmul.f32 %v4132_v43, %v3179_v59  ;;  %v714_v5 = vadd.f32 %v4141_v49, %v579_v60  ;;  %v517_v6 = vmul.f32 %v4132_v43, %v3054_v61 }
  0xb9   : > { %v1137_v8 = vpack.c.bf16 %v1035_v3, %v1034_v62  ;;  %v518_v9 = vmul.f32 %v4132_v43, %v3055_v63  ;;  %v581_v10 = vmul.f32 %v4132_v43, %v3182_v0  ;;  %v582_v12 = vmul.f32 %v4132_v43, %v3183_v1  ;;  %v3552_v62 = vld [vmem:[%s3911_s23 + $0xe8] sm:$0xff]  }
  0xba   : > { %v715_v13 = vadd.f32 %v4141_v49, %v580_v4  ;;  %vm842_vm14 = vcmp.gt.f32.partialorder %v714_v5, 0.0  ;;  %v970_v14 = vmul.f32 0.2, %v714_v5  ;;  %v652_v15 = vadd.f32 %v4141_v49, %v517_v6 }
  0xbb   : > { %3766 = vmatmul.mubr.msk.bf16.gmra.mrb[48].mxu0 %vm1177_vm1, %v1137_v8  ;;  %v653_v16 = vadd.f32 %v4141_v49, %v518_v9  ;;  %v716_v17 = vadd.f32 %v4141_v49, %v581_v10  ;;  %v717_v18 = vadd.f32 %v4141_v49, %v582_v12  ;;  %v3058_v19 = vunpack.c.l.bf16 %v3550_v7  ;;  %v3584_v10 = vld [vmem:[%s3911_s23 + $0x1e8] sm:$0xff]  }
  0xbc   : > { %vm843_vm15 = vcmp.gt.f32.partialorder %v715_v13, 0.0  ;;  %v971_v20 = vmul.f32 0.2, %v715_v13  ;;  %v1098_v21 = vsel %vm842_vm14, %v714_v5, %v970_v14  ;;  %vm780_vm0 = vcmp.gt.f32.partialorder %v652_v15, 0.0 }
  0xbd   : > { %vm781_vm2 = vcmp.gt.f32.partialorder %v653_v16, 0.0  ;;  %v908_v22 = vmul.f32 0.2, %v652_v15  ;;  %v909_v23 = vmul.f32 0.2, %v653_v16  ;;  %vm844_vm3 = vcmp.gt.f32.partialorder %v716_v17, 0.0 }
  0xbe   : > { %v1099_v24 = vsel %vm843_vm15, %v715_v13, %v971_v20  ;;  %vm845_vm4 = vcmp.gt.f32.partialorder %v717_v18, 0.0  ;;  %v972_v25 = vmul.f32 0.2, %v716_v17  ;;  %v973_v26 = vmul.f32 0.2, %v717_v18 }
  0xbf   : > { %v1169_v28 = vpack.c.bf16 %v1099_v24, %v1098_v21  ;;  %v1036_v2 = vsel %vm780_vm0, %v652_v15, %v908_v22  ;;  %v1037_v29 = vsel %vm781_vm2, %v653_v16, %v909_v23  ;;  %v3059_v30 = vunpack.c.h.bf16 %v3550_v7  ;;  %v3553_v16 = vld [vmem:[%s3911_s23 + $0xf0] sm:$0xff]  }
  0xc0   : > { %v1138_v33 = vpack.c.bf16 %v1037_v29, %v1036_v2  ;;  %v1100_v34 = vsel %vm844_vm3, %v716_v17, %v972_v25  ;;  %v1101_v35 = vsel %vm845_vm4, %v717_v18, %v973_v26  ;;  %v519_v36 = vmul.f32 %v4132_v43, %v3058_v19 }
  0xc1   : > { %3830 = vmatmul.mubr.msk.bf16.gmra.mrb[48].mxu1 %vm1177_vm1, %v1169_v28  ;;  %v1170_v37 = vpack.c.bf16 %v1101_v35, %v1100_v34  ;;  %v520_v11 = vmul.f32 %v4132_v43, %v3059_v30  ;;  %v3186_v38 = vunpack.c.l.bf16 %v3582_v27  ;;  %v3187_v39 = vunpack.c.h.bf16 %v3582_v27  ;;  %v3585_v30 = vld [vmem:[%s3911_s23 + $0x1f0] sm:$0xff]  }
  0xc2   : > { %3769 = vmatprep.mubr.msk.bf16.mxu0 %vm1177_vm1, %v1138_v33  ;;  %v654_v40 = vadd.f32 %v4141_v49, %v519_v36  ;;  %v3062_v41 = vunpack.c.l.bf16 %v3551_v31  ;;  %v3063_v42 = vunpack.c.h.bf16 %v3551_v31  ;;  %v3190_v44 = vunpack.c.l.bf16 %v3583_v32 }
  0xc3   : > { %3833 = vmatprep.mubr.msk.bf16.mxu1 %vm1177_vm1, %v1170_v37  ;;  %v655_v45 = vadd.f32 %v4141_v49, %v520_v11  ;;  %v583_v46 = vmul.f32 %v4132_v43, %v3186_v38  ;;  %v584_v47 = vmul.f32 %v4132_v43, %v3187_v39  ;;  %v3191_v48 = vunpack.c.h.bf16 %v3583_v32 }
  0xc4   : > { %vm782_vm5 = vcmp.gt.f32.partialorder %v654_v40, 0.0  ;;  %v910_v50 = vmul.f32 0.2, %v654_v40  ;;  %v521_v51 = vmul.f32 %v4132_v43, %v3062_v41  ;;  %v522_v52 = vmul.f32 %v4132_v43, %v3063_v42 }
  0xc5   : > { %vm783_vm6 = vcmp.gt.f32.partialorder %v655_v45, 0.0  ;;  %v911_v53 = vmul.f32 0.2, %v655_v45  ;;  %v718_v54 = vadd.f32 %v4141_v49, %v583_v46  ;;  %v719_v55 = vadd.f32 %v4141_v49, %v584_v47  ;;  %v3554_v47 = vld [vmem:[%s3911_s23 + $0xf8] sm:$0xff]  }
  0xc6   : > { %v1038_v56 = vsel %vm782_vm5, %v654_v40, %v910_v50  ;;  %v656_v57 = vadd.f32 %v4141_v49, %v521_v51  ;;  %v657_v58 = vadd.f32 %v4141_v49, %v522_v52  ;;  %v585_v59 = vmul.f32 %v4132_v43, %v3190_v44  ;;  %v3586_v52 = vld [vmem:[%s3911_s23 + $0x1f8] sm:$0xff]  }
  0xc7   : > { %v1039_v60 = vsel %vm783_vm6, %v655_v45, %v911_v53  ;;  %vm846_vm7 = vcmp.gt.f32.partialorder %v718_v54, 0.0  ;;  %vm847_vm8 = vcmp.gt.f32.partialorder %v719_v55, 0.0  ;;  %v974_v61 = vmul.f32 0.2, %v718_v54 }
  0xc8   : > { %v1139_v63 = vpack.c.bf16 %v1039_v60, %v1038_v56  ;;  %v975_v0 = vmul.f32 0.2, %v719_v55  ;;  %vm784_vm9 = vcmp.gt.f32.partialorder %v656_v57, 0.0  ;;  %vm785_vm10 = vcmp.gt.f32.partialorder %v657_v58, 0.0 }
  0xc9   : > { %v1102_v1 = vsel %vm846_vm7, %v718_v54, %v974_v61  ;;  %v912_v3 = vmul.f32 0.2, %v656_v57  ;;  %v913_v4 = vmul.f32 0.2, %v657_v58  ;;  %v586_v5 = vmul.f32 %v4132_v43, %v3191_v48 }
  0xca   : > { %3770 = vmatmul.mubr.msk.bf16.gmra.mrb[52].mxu0 %vm1177_vm1, %v1139_v63  ;;  %v1103_v6 = vsel %vm847_vm8, %v719_v55, %v975_v0  ;;  %v720_v7 = vadd.f32 %v4141_v49, %v585_v59  ;;  %v3066_v8 = vunpack.c.l.bf16 %v3552_v62  ;;  %v3067_v9 = vunpack.c.h.bf16 %v3552_v62 }
  0xcb   : > { %v1171_v12 = vpack.c.bf16 %v1103_v6, %v1102_v1  ;;  %v1040_v13 = vsel %vm784_vm9, %v656_v57, %v912_v3  ;;  %v1041_v14 = vsel %vm785_vm10, %v657_v58, %v913_v4  ;;  %v721_v15 = vadd.f32 %v4141_v49, %v586_v5 }
  0xcc   : > { %v1140_v17 = vpack.c.bf16 %v1041_v14, %v1040_v13  ;;  %vm848_vm11 = vcmp.gt.f32.partialorder %v720_v7, 0.0  ;;  %v976_v18 = vmul.f32 0.2, %v720_v7  ;;  %v523_v19 = vmul.f32 %v4132_v43, %v3066_v8 }
  0xcd   : > { %3834 = vmatmul.mubr.msk.bf16.gmra.mrb[52].mxu1 %vm1177_vm1, %v1171_v12  ;;  %vm849_vm12 = vcmp.gt.f32.partialorder %v721_v15, 0.0  ;;  %v977_v20 = vmul.f32 0.2, %v721_v15  ;;  %v524_v21 = vmul.f32 %v4132_v43, %v3067_v9  ;;  %v3194_v22 = vunpack.c.l.bf16 %v3584_v10 }
  0xce   : > { %3773 = vmatprep.mubr.msk.bf16.mxu0 %vm1177_vm1, %v1140_v17  ;;  %v1104_v23 = vsel %vm848_vm11, %v720_v7, %v976_v18  ;;  %v658_v24 = vadd.f32 %v4141_v49, %v523_v19  ;;  %v3195_v25 = vunpack.c.h.bf16 %v3584_v10  ;;  %v3070_v26 = vunpack.c.l.bf16 %v3553_v16 }
  0xcf   : > { %v1105_v27 = vsel %vm849_vm12, %v721_v15, %v977_v20  ;;  %v659_v28 = vadd.f32 %v4141_v49, %v524_v21  ;;  %v587_v2 = vmul.f32 %v4132_v43, %v3194_v22  ;;  %v3071_v29 = vunpack.c.h.bf16 %v3553_v16 }
  0xd0   : > { %v1172_v31 = vpack.c.bf16 %v1105_v27, %v1104_v23  ;;  %vm786_vm13 = vcmp.gt.f32.partialorder %v658_v24, 0.0  ;;  %v914_v32 = vmul.f32 0.2, %v658_v24  ;;  %v588_v33 = vmul.f32 %v4132_v43, %v3195_v25 }
  0xd1   : > { %vm787_vm14 = vcmp.gt.f32.partialorder %v659_v28, 0.0  ;;  %v915_v34 = vmul.f32 0.2, %v659_v28  ;;  %v722_v35 = vadd.f32 %v4141_v49, %v587_v2  ;;  %v525_v36 = vmul.f32 %v4132_v43, %v3070_v26 }
  0xd2   : > { %3837 = vmatprep.mubr.msk.bf16.mxu1 %vm1177_vm1, %v1172_v31  ;;  %v1042_v37 = vsel %vm786_vm13, %v658_v24, %v914_v32  ;;  %v723_v11 = vadd.f32 %v4141_v49, %v588_v33  ;;  %v526_v38 = vmul.f32 %v4132_v43, %v3071_v29  ;;  %v3198_v39 = vunpack.c.l.bf16 %v3585_v30 }
  0xd3   : > { %v1043_v40 = vsel %vm787_vm14, %v659_v28, %v915_v34  ;;  %vm850_vm15 = vcmp.gt.f32.partialorder %v722_v35, 0.0  ;;  %v978_v41 = vmul.f32 0.2, %v722_v35  ;;  %v660_v42 = vadd.f32 %v4141_v49, %v525_v36 }
  0xd4   : > { %v1141_v44 = vpack.c.bf16 %v1043_v40, %v1042_v37  ;;  %vm851_vm0 = vcmp.gt.f32.partialorder %v723_v11, 0.0  ;;  %v979_v45 = vmul.f32 0.2, %v723_v11  ;;  %v661_v46 = vadd.f32 %v4141_v49, %v526_v38 }
  0xd5   : > { %v1106_v48 = vsel %vm850_vm15, %v722_v35, %v978_v41  ;;  %vm788_vm2 = vcmp.gt.f32.partialorder %v660_v42, 0.0  ;;  %v916_v50 = vmul.f32 0.2, %v660_v42  ;;  %v3199_v51 = vunpack.c.h.bf16 %v3585_v30 }
  0xd6   : > { %3774 = vmatmul.mubr.msk.bf16.gmra.mrb[56].mxu0 %vm1177_vm1, %v1141_v44  ;;  %v1107_v53 = vsel %vm851_vm0, %v723_v11, %v979_v45  ;;  %vm789_vm3 = vcmp.gt.f32.partialorder %v661_v46, 0.0  ;;  %v917_v54 = vmul.f32 0.2, %v661_v46  ;;  %v589_v55 = vmul.f32 %v4132_v43, %v3198_v39 }
  0xd7   : > { %v1173_v56 = vpack.c.bf16 %v1107_v53, %v1106_v48  ;;  %v1044_v57 = vsel %vm788_vm2, %v660_v42, %v916_v50  ;;  %v590_v58 = vmul.f32 %v4132_v43, %v3199_v51  ;;  %v3074_v59 = vunpack.c.l.bf16 %v3554_v47 }
  0xd8   : > { %v1045_v60 = vsel %vm789_vm3, %v661_v46, %v917_v54  ;;  %v724_v61 = vadd.f32 %v4141_v49, %v589_v55  ;;  %v3075_v62 = vunpack.c.h.bf16 %v3554_v47  ;;  %v3202_v63 = vunpack.c.l.bf16 %v3586_v52 }
  0xd9   : > { %3838 = vmatmul.mubr.msk.bf16.gmra.mrb[56].mxu1 %vm1177_vm1, %v1173_v56  ;;  %v1142_v0 = vpack.c.bf16 %v1045_v60, %v1044_v57  ;;  %v725_v1 = vadd.f32 %v4141_v49, %v590_v58  ;;  %v527_v3 = vmul.f32 %v4132_v43, %v3074_v59  ;;  %v3203_v4 = vunpack.c.h.bf16 %v3586_v52 }
  0xda   : > { %vm852_vm4 = vcmp.gt.f32.partialorder %v724_v61, 0.0  ;;  %v980_v5 = vmul.f32 0.2, %v724_v61  ;;  %v528_v6 = vmul.f32 %v4132_v43, %v3075_v62  ;;  %v591_v7 = vmul.f32 %v4132_v43, %v3202_v63 }
  0xdb   : > { %3777 = vmatprep.mubr.msk.bf16.mxu0 %vm1177_vm1, %v1142_v0  ;;  %vm853_vm5 = vcmp.gt.f32.partialorder %v725_v1, 0.0  ;;  %v981_v8 = vmul.f32 0.2, %v725_v1  ;;  %v662_v9 = vadd.f32 %v4141_v49, %v527_v3  ;;  %v592_v10 = vmul.f32 %v4132_v43, %v3203_v4 }
  0xdc   : > { %v1108_v12 = vsel %vm852_vm4, %v724_v61, %v980_v5  ;;  %v663_v13 = vadd.f32 %v4141_v49, %v528_v6  ;;  %v726_v14 = vadd.f32 %v4141_v49, %v591_v7 }
  0xdd   : > { %v1109_v15 = vsel %vm853_vm5, %v725_v1, %v981_v8  ;;  %vm790_vm6 = vcmp.gt.f32.partialorder %v662_v9, 0.0  ;;  %v918_v16 = vmul.f32 0.2, %v662_v9  ;;  %v727_v17 = vadd.f32 %v4141_v49, %v592_v10 }
  0xde   : > { %v1174_v18 = vpack.c.bf16 %v1109_v15, %v1108_v12  ;;  %vm791_vm7 = vcmp.gt.f32.partialorder %v663_v13, 0.0  ;;  %v919_v19 = vmul.f32 0.2, %v663_v13  ;;  %vm854_vm8 = vcmp.gt.f32.partialorder %v726_v14, 0.0 }
  0xdf   : > { %v1046_v20 = vsel %vm790_vm6, %v662_v9, %v918_v16  ;;  %vm855_vm9 = vcmp.gt.f32.partialorder %v727_v17, 0.0  ;;  %v982_v21 = vmul.f32 0.2, %v726_v14  ;;  %v983_v22 = vmul.f32 0.2, %v727_v17 }
  0xe0   : > { %3841 = vmatprep.mubr.msk.bf16.mxu1 %vm1177_vm1, %v1174_v18  ;;  %v1047_v43 = vsel %vm791_vm7, %v663_v13, %v919_v19 }
  0xe1   : > { %v1143_v23 = vpack.c.bf16 %v1047_v43, %v1046_v20  ;;  %v1110_v24 = vsel %vm854_vm8, %v726_v14, %v982_v21  ;;  %v1111_v25 = vsel %vm855_vm9, %v727_v17, %v983_v22 }
  0xe2   : > { %v1175_v26 = vpack.c.bf16 %v1111_v25, %v1110_v24 }
  0xe3   : > { %3778 = vmatmul.mubr.msk.bf16.gmra.mrb[60].mxu0 %vm1177_vm1, %v1143_v23 }
  0xe4   : > { %3842 = vmatmul.mubr.msk.bf16.gmra.mrb[60].mxu1 %vm1177_vm1, %v1175_v26 }
  0xf3   : > { %v3719_v49 = vpop.f32.mrb[0].mxu0 }
  0xf4   : > { %v3783_v27 = vpop.f32.mrb[0].mxu1  ;;  %v1408_v28 = vpop.f32.mrb[1].mxu0 }
  0xf5   : > { %v1664_v2 = vpop.f32.mrb[1].mxu1  ;;  %v3720_v29 = vpop.f32.mrb[2].mxu0 }
  0xf6   : > { %v3212_v30 = vpack.c.bf16 %v3720_v29, %v3719_v49  ;;  %v3784_v31 = vpop.f32.mrb[2].mxu1  ;;  %v1411_v32 = vpop.f32.mrb[3].mxu0 }
  0xf7   : > { %v3372_v33 = vpack.c.bf16 %v3784_v31, %v3783_v27  ;;  %v3207_v34 = vpack.c.bf16 %v1411_v32, %v1408_v28  ;;  %v1667_v35 = vpop.f32.mrb[3].mxu1 }
  0xf8   : > { %3587 = vst [vmem:[%s4323_s8 + $0x8] sm:$0xff] %v3212_v30   ;;  %v3367_v36 = vpack.c.bf16 %v1667_v35, %v1664_v2 }
  0xf9   : > { %3619 = vst [vmem:[%s4323_s8 + $0x108] sm:$0xff] %v3372_v33   ;;  %3208 = vst [vmem:[%s4323_s8] sm:$0xff] %v3207_v34  }
  0xfa   : > { %3618 = vst [vmem:[%s4323_s8 + $0x100] sm:$0xff] %v3367_v36  }
  0xff   : > { %v3723_v37 = vpop.f32.mrb[4].mxu0 }
 0x100   : > { %v1424_v11 = vpop.f32.mrb[5].mxu0 }
 0x101   : > { %v3724_v38 = vpop.f32.mrb[6].mxu0 }
 0x102   : > { %v3222_v39 = vpack.c.bf16 %v3724_v38, %v3723_v37  ;;  %v1427_v40 = vpop.f32.mrb[7].mxu0 }
 0x103   : > { %v3787_v41 = vpop.f32.mrb[4].mxu1  ;;  %v3217_v42 = vpack.c.bf16 %v1427_v40, %v1424_v11 }
 0x104   : > { %v1680_v44 = vpop.f32.mrb[5].mxu1  ;;  %3589 = vst [vmem:[%s4323_s8 + $0x18] sm:$0xff] %v3222_v39  }
 0x105   : > { %v3788_v45 = vpop.f32.mrb[6].mxu1  ;;  %3588 = vst [vmem:[%s4323_s8 + $0x10] sm:$0xff] %v3217_v42  }
 0x106   : > { %v3382_v46 = vpack.c.bf16 %v3788_v45, %v3787_v41  ;;  %v1683_v47 = vpop.f32.mrb[7].mxu1 }
 0x107   : > { %v3377_v48 = vpack.c.bf16 %v1683_v47, %v1680_v44 }
 0x108   : > { %3621 = vst [vmem:[%s4323_s8 + $0x118] sm:$0xff] %v3382_v46  }
 0x109   : > { %3620 = vst [vmem:[%s4323_s8 + $0x110] sm:$0xff] %v3377_v48  }
 0x10c   : > { %v3727_v50 = vpop.f32.mrb[8].mxu0 }
 0x10d   : > { %v1440_v51 = vpop.f32.mrb[9].mxu0 }
 0x10e   : > { %v3728_v52 = vpop.f32.mrb[10].mxu0 }
 0x10f   : > { %v3232_v53 = vpack.c.bf16 %v3728_v52, %v3727_v50  ;;  %v1443_v54 = vpop.f32.mrb[11].mxu0 }
 0x110   : > { %v3227_v55 = vpack.c.bf16 %v1443_v54, %v1440_v51 }
 0x111   : > { %3591 = vst [vmem:[%s4323_s8 + $0x28] sm:$0xff] %v3232_v53  }
 0x112   : > { %v3791_v56 = vpop.f32.mrb[8].mxu1  ;;  %3590 = vst [vmem:[%s4323_s8 + $0x20] sm:$0xff] %v3227_v55  }
 0x113   : > { %v1696_v57 = vpop.f32.mrb[9].mxu1 }
 0x114   : > { %v3792_v58 = vpop.f32.mrb[10].mxu1 }
 0x115   : > { %v3392_v59 = vpack.c.bf16 %v3792_v58, %v3791_v56  ;;  %v1699_v60 = vpop.f32.mrb[11].mxu1 }
 0x116   : > { %v3387_v61 = vpack.c.bf16 %v1699_v60, %v1696_v57 }
 0x117   : > { %3623 = vst [vmem:[%s4323_s8 + $0x128] sm:$0xff] %v3392_v59  }
 0x118   : > { %3622 = vst [vmem:[%s4323_s8 + $0x120] sm:$0xff] %v3387_v61  }
 0x11b   : > { %v3731_v62 = vpop.f32.mrb[12].mxu0 }
 0x11c   : > { %v1456_v63 = vpop.f32.mrb[13].mxu0 }
 0x11d   : > { %v3732_v0 = vpop.f32.mrb[14].mxu0 }
 0x11e   : > { %v3795_v1 = vpop.f32.mrb[12].mxu1  ;;  %v3242_v3 = vpack.c.bf16 %v3732_v0, %v3731_v62  ;;  %v1459_v4 = vpop.f32.mrb[15].mxu0 }
 0x11f   : > { %v1712_v5 = vpop.f32.mrb[13].mxu1  ;;  %v3237_v6 = vpack.c.bf16 %v1459_v4, %v1456_v63 }
 0x120   : > { %3593 = vst [vmem:[%s4323_s8 + $0x38] sm:$0xff] %v3242_v3   ;;  %v3796_v7 = vpop.f32.mrb[14].mxu1 }
 0x121   : > { %v3402_v8 = vpack.c.bf16 %v3796_v7, %v3795_v1  ;;  %3592 = vst [vmem:[%s4323_s8 + $0x30] sm:$0xff] %v3237_v6   ;;  %v1715_v9 = vpop.f32.mrb[15].mxu1 }
 0x122   : > { %v3397_v10 = vpack.c.bf16 %v1715_v9, %v1712_v5 }
 0x123   : > { %3625 = vst [vmem:[%s4323_s8 + $0x138] sm:$0xff] %v3402_v8  }
 0x124   : > { %3624 = vst [vmem:[%s4323_s8 + $0x130] sm:$0xff] %v3397_v10  }
 0x127   : > { %v3735_v12 = vpop.f32.mrb[16].mxu0 }
 0x128   : > { %v1472_v13 = vpop.f32.mrb[17].mxu0 }
 0x129   : > { %v3736_v14 = vpop.f32.mrb[18].mxu0 }
 0x12a   : > { %v3799_v15 = vpop.f32.mrb[16].mxu1  ;;  %v3252_v16 = vpack.c.bf16 %v3736_v14, %v3735_v12  ;;  %v1475_v17 = vpop.f32.mrb[19].mxu0 }
 0x12b   : > { %v1728_v18 = vpop.f32.mrb[17].mxu1  ;;  %v3247_v19 = vpack.c.bf16 %v1475_v17, %v1472_v13 }
 0x12c   : > { %3595 = vst [vmem:[%s4323_s8 + $0x48] sm:$0xff] %v3252_v16   ;;  %v3800_v20 = vpop.f32.mrb[18].mxu1 }
 0x12d   : > { %v3412_v21 = vpack.c.bf16 %v3800_v20, %v3799_v15  ;;  %3594 = vst [vmem:[%s4323_s8 + $0x40] sm:$0xff] %v3247_v19   ;;  %v1731_v22 = vpop.f32.mrb[19].mxu1 }
 0x12e   : > { %v3407_v43 = vpack.c.bf16 %v1731_v22, %v1728_v18 }
 0x12f   : > { %3627 = vst [vmem:[%s4323_s8 + $0x148] sm:$0xff] %v3412_v21  }
 0x130   : > { %3626 = vst [vmem:[%s4323_s8 + $0x140] sm:$0xff] %v3407_v43  }
 0x134   : > { %v3739_v23 = vpop.f32.mrb[20].mxu0 }
 0x135   : > { %v3803_v24 = vpop.f32.mrb[20].mxu1  ;;  %v1488_v25 = vpop.f32.mrb[21].mxu0 }
 0x136   : > { %v1744_v26 = vpop.f32.mrb[21].mxu1  ;;  %v3740_v49 = vpop.f32.mrb[22].mxu0 }
 0x137   : > { %v3262_v27 = vpack.c.bf16 %v3740_v49, %v3739_v23  ;;  %v3804_v28 = vpop.f32.mrb[22].mxu1  ;;  %v1491_v2 = vpop.f32.mrb[23].mxu0 }
 0x138   : > { %v3422_v29 = vpack.c.bf16 %v3804_v28, %v3803_v24  ;;  %v3257_v30 = vpack.c.bf16 %v1491_v2, %v1488_v25  ;;  %v1747_v31 = vpop.f32.mrb[23].mxu1 }
 0x139   : > { %3597 = vst [vmem:[%s4323_s8 + $0x58] sm:$0xff] %v3262_v27   ;;  %v3417_v32 = vpack.c.bf16 %v1747_v31, %v1744_v26 }
 0x13a   : > { %3629 = vst [vmem:[%s4323_s8 + $0x158] sm:$0xff] %v3422_v29   ;;  %3596 = vst [vmem:[%s4323_s8 + $0x50] sm:$0xff] %v3257_v30  }
 0x13b   : > { %3628 = vst [vmem:[%s4323_s8 + $0x150] sm:$0xff] %v3417_v32  }
 0x140   : > { %v3743_v33 = vpop.f32.mrb[24].mxu0 }
 0x141   : > { %v1504_v34 = vpop.f32.mrb[25].mxu0 }
 0x142   : > { %v3744_v35 = vpop.f32.mrb[26].mxu0 }
 0x143   : > { %v3272_v36 = vpack.c.bf16 %v3744_v35, %v3743_v33  ;;  %v1507_v37 = vpop.f32.mrb[27].mxu0 }
 0x144   : > { %v3807_v11 = vpop.f32.mrb[24].mxu1  ;;  %v3267_v38 = vpack.c.bf16 %v1507_v37, %v1504_v34 }
 0x145   : > { %v1760_v39 = vpop.f32.mrb[25].mxu1  ;;  %3599 = vst [vmem:[%s4323_s8 + $0x68] sm:$0xff] %v3272_v36  }
 0x146   : > { %v3808_v40 = vpop.f32.mrb[26].mxu1  ;;  %3598 = vst [vmem:[%s4323_s8 + $0x60] sm:$0xff] %v3267_v38  }
 0x147   : > { %v3432_v41 = vpack.c.bf16 %v3808_v40, %v3807_v11  ;;  %v1763_v42 = vpop.f32.mrb[27].mxu1 }
 0x148   : > { %v3427_v44 = vpack.c.bf16 %v1763_v42, %v1760_v39 }
 0x149   : > { %3631 = vst [vmem:[%s4323_s8 + $0x168] sm:$0xff] %v3432_v41  }
 0x14a   : > { %3630 = vst [vmem:[%s4323_s8 + $0x160] sm:$0xff] %v3427_v44  }
 0x14d   : > { %v3747_v45 = vpop.f32.mrb[28].mxu0 }
 0x14e   : > { %v1520_v46 = vpop.f32.mrb[29].mxu0 }
 0x14f   : > { %v3748_v47 = vpop.f32.mrb[30].mxu0 }
 0x150   : > { %v3282_v48 = vpack.c.bf16 %v3748_v47, %v3747_v45  ;;  %v1523_v50 = vpop.f32.mrb[31].mxu0 }
 0x151   : > { %v3277_v51 = vpack.c.bf16 %v1523_v50, %v1520_v46 }
 0x152   : > { %3601 = vst [vmem:[%s4323_s8 + $0x78] sm:$0xff] %v3282_v48  }
 0x153   : > { %v3811_v52 = vpop.f32.mrb[28].mxu1  ;;  %3600 = vst [vmem:[%s4323_s8 + $0x70] sm:$0xff] %v3277_v51  }
 0x154   : > { %v1776_v53 = vpop.f32.mrb[29].mxu1 }
 0x155   : > { %v3812_v54 = vpop.f32.mrb[30].mxu1 }
 0x156   : > { %v3442_v55 = vpack.c.bf16 %v3812_v54, %v3811_v52  ;;  %v1779_v56 = vpop.f32.mrb[31].mxu1 }
 0x157   : > { %v3437_v57 = vpack.c.bf16 %v1779_v56, %v1776_v53 }
 0x158   : > { %3633 = vst [vmem:[%s4323_s8 + $0x178] sm:$0xff] %v3442_v55  }
 0x159   : > { %3632 = vst [vmem:[%s4323_s8 + $0x170] sm:$0xff] %v3437_v57  }
 0x15c   : > { %v3751_v58 = vpop.f32.mrb[32].mxu0 }
 0x15d   : > { %v1536_v59 = vpop.f32.mrb[33].mxu0 }
 0x15e   : > { %v3752_v60 = vpop.f32.mrb[34].mxu0 }
 0x15f   : > { %v3815_v61 = vpop.f32.mrb[32].mxu1  ;;  %v3292_v62 = vpack.c.bf16 %v3752_v60, %v3751_v58  ;;  %v1539_v63 = vpop.f32.mrb[35].mxu0 }
 0x160   : > { %v1792_v0 = vpop.f32.mrb[33].mxu1  ;;  %v3287_v1 = vpack.c.bf16 %v1539_v63, %v1536_v59 }
 0x161   : > { %3603 = vst [vmem:[%s4323_s8 + $0x88] sm:$0xff] %v3292_v62   ;;  %v3816_v3 = vpop.f32.mrb[34].mxu1 }
 0x162   : > { %v3452_v4 = vpack.c.bf16 %v3816_v3, %v3815_v61  ;;  %3602 = vst [vmem:[%s4323_s8 + $0x80] sm:$0xff] %v3287_v1   ;;  %v1795_v5 = vpop.f32.mrb[35].mxu1 }
 0x163   : > { %v3447_v6 = vpack.c.bf16 %v1795_v5, %v1792_v0 }
 0x164   : > { %3635 = vst [vmem:[%s4323_s8 + $0x188] sm:$0xff] %v3452_v4  }
 0x165   : > { %3634 = vst [vmem:[%s4323_s8 + $0x180] sm:$0xff] %v3447_v6  }
 0x168   : > { %v3755_v7 = vpop.f32.mrb[36].mxu0 }
 0x169   : > { %v1552_v8 = vpop.f32.mrb[37].mxu0 }
 0x16a   : > { %v3756_v9 = vpop.f32.mrb[38].mxu0 }
 0x16b   : > { %v3819_v10 = vpop.f32.mrb[36].mxu1  ;;  %v3302_v12 = vpack.c.bf16 %v3756_v9, %v3755_v7  ;;  %v1555_v13 = vpop.f32.mrb[39].mxu0 }
 0x16c   : > { %v1808_v14 = vpop.f32.mrb[37].mxu1  ;;  %v3297_v15 = vpack.c.bf16 %v1555_v13, %v1552_v8 }
 0x16d   : > { %3605 = vst [vmem:[%s4323_s8 + $0x98] sm:$0xff] %v3302_v12   ;;  %v3820_v16 = vpop.f32.mrb[38].mxu1 }
 0x16e   : > { %v3462_v17 = vpack.c.bf16 %v3820_v16, %v3819_v10  ;;  %3604 = vst [vmem:[%s4323_s8 + $0x90] sm:$0xff] %v3297_v15   ;;  %v1811_v18 = vpop.f32.mrb[39].mxu1 }
 0x16f   : > { %v3457_v19 = vpack.c.bf16 %v1811_v18, %v1808_v14 }
 0x170   : > { %3637 = vst [vmem:[%s4323_s8 + $0x198] sm:$0xff] %v3462_v17  }
 0x171   : > { %3636 = vst [vmem:[%s4323_s8 + $0x190] sm:$0xff] %v3457_v19  }
 0x175   : > { %v3759_v20 = vpop.f32.mrb[40].mxu0 }
 0x176   : > { %v3823_v21 = vpop.f32.mrb[40].mxu1  ;;  %v1568_v22 = vpop.f32.mrb[41].mxu0 }
 0x177   : > { %v1824_v43 = vpop.f32.mrb[41].mxu1  ;;  %v3760_v23 = vpop.f32.mrb[42].mxu0 }
 0x178   : > { %v3312_v24 = vpack.c.bf16 %v3760_v23, %v3759_v20  ;;  %v3824_v25 = vpop.f32.mrb[42].mxu1  ;;  %v1571_v26 = vpop.f32.mrb[43].mxu0 }
 0x179   : > { %v3472_v49 = vpack.c.bf16 %v3824_v25, %v3823_v21  ;;  %v3307_v27 = vpack.c.bf16 %v1571_v26, %v1568_v22  ;;  %v1827_v28 = vpop.f32.mrb[43].mxu1 }
 0x17a   : > { %3607 = vst [vmem:[%s4323_s8 + $0xa8] sm:$0xff] %v3312_v24   ;;  %v3467_v2 = vpack.c.bf16 %v1827_v28, %v1824_v43 }
 0x17b   : > { %3639 = vst [vmem:[%s4323_s8 + $0x1a8] sm:$0xff] %v3472_v49   ;;  %3606 = vst [vmem:[%s4323_s8 + $0xa0] sm:$0xff] %v3307_v27  }
 0x17c   : > { %3638 = vst [vmem:[%s4323_s8 + $0x1a0] sm:$0xff] %v3467_v2  }
 0x181   : > { %v3763_v29 = vpop.f32.mrb[44].mxu0 }
 0x182   : > { %v1584_v30 = vpop.f32.mrb[45].mxu0 }
 0x183   : > { %v3764_v31 = vpop.f32.mrb[46].mxu0 }
 0x184   : > { %v3322_v32 = vpack.c.bf16 %v3764_v31, %v3763_v29  ;;  %v1587_v33 = vpop.f32.mrb[47].mxu0 }
 0x185   : > { %v3827_v34 = vpop.f32.mrb[44].mxu1  ;;  %v3317_v35 = vpack.c.bf16 %v1587_v33, %v1584_v30 }
 0x186   : > { %v1840_v36 = vpop.f32.mrb[45].mxu1  ;;  %3609 = vst [vmem:[%s4323_s8 + $0xb8] sm:$0xff] %v3322_v32  }
 0x187   : > { %v3828_v37 = vpop.f32.mrb[46].mxu1  ;;  %3608 = vst [vmem:[%s4323_s8 + $0xb0] sm:$0xff] %v3317_v35  }
 0x188   : > { %v3482_v11 = vpack.c.bf16 %v3828_v37, %v3827_v34  ;;  %v1843_v38 = vpop.f32.mrb[47].mxu1 }
 0x189   : > { %v3477_v39 = vpack.c.bf16 %v1843_v38, %v1840_v36 }
 0x18a   : > { %3641 = vst [vmem:[%s4323_s8 + $0x1b8] sm:$0xff] %v3482_v11  }
 0x18b   : > { %3640 = vst [vmem:[%s4323_s8 + $0x1b0] sm:$0xff] %v3477_v39  }
 0x18e   : > { %v3767_v40 = vpop.f32.mrb[48].mxu0 }
 0x18f   : > { %v1600_v41 = vpop.f32.mrb[49].mxu0 }
 0x190   : > { %v3768_v42 = vpop.f32.mrb[50].mxu0 }
 0x191   : > { %v3332_v44 = vpack.c.bf16 %v3768_v42, %v3767_v40  ;;  %v1603_v45 = vpop.f32.mrb[51].mxu0 }
 0x192   : > { %v3327_v46 = vpack.c.bf16 %v1603_v45, %v1600_v41 }
 0x193   : > { %3611 = vst [vmem:[%s4323_s8 + $0xc8] sm:$0xff] %v3332_v44  }
 0x194   : > { %v3831_v47 = vpop.f32.mrb[48].mxu1  ;;  %3610 = vst [vmem:[%s4323_s8 + $0xc0] sm:$0xff] %v3327_v46  }
 0x195   : > { %v1856_v48 = vpop.f32.mrb[49].mxu1 }
 0x196   : > { %v3832_v50 = vpop.f32.mrb[50].mxu1 }
 0x197   : > { %v3492_v51 = vpack.c.bf16 %v3832_v50, %v3831_v47  ;;  %v1859_v52 = vpop.f32.mrb[51].mxu1 }
 0x198   : > { %v3487_v53 = vpack.c.bf16 %v1859_v52, %v1856_v48 }
 0x199   : > { %3643 = vst [vmem:[%s4323_s8 + $0x1c8] sm:$0xff] %v3492_v51  }
 0x19a   : > { %3642 = vst [vmem:[%s4323_s8 + $0x1c0] sm:$0xff] %v3487_v53  }
 0x19d   : > { %v3771_v54 = vpop.f32.mrb[52].mxu0 }
 0x19e   : > { %v1616_v55 = vpop.f32.mrb[53].mxu0 }
 0x19f   : > { %v3772_v56 = vpop.f32.mrb[54].mxu0 }
 0x1a0   : > { %v3835_v57 = vpop.f32.mrb[52].mxu1  ;;  %v3342_v58 = vpack.c.bf16 %v3772_v56, %v3771_v54  ;;  %v1619_v59 = vpop.f32.mrb[55].mxu0 }
 0x1a1   : > { %v1872_v60 = vpop.f32.mrb[53].mxu1  ;;  %v3337_v61 = vpack.c.bf16 %v1619_v59, %v1616_v55 }
 0x1a2   : > { %3613 = vst [vmem:[%s4323_s8 + $0xd8] sm:$0xff] %v3342_v58   ;;  %v3836_v62 = vpop.f32.mrb[54].mxu1 }
 0x1a3   : > { %v3502_v63 = vpack.c.bf16 %v3836_v62, %v3835_v57  ;;  %3612 = vst [vmem:[%s4323_s8 + $0xd0] sm:$0xff] %v3337_v61   ;;  %v1875_v0 = vpop.f32.mrb[55].mxu1 }
 0x1a4   : > { %v3497_v1 = vpack.c.bf16 %v1875_v0, %v1872_v60 }
 0x1a5   : > { %3645 = vst [vmem:[%s4323_s8 + $0x1d8] sm:$0xff] %v3502_v63  }
 0x1a6   : > { %3644 = vst [vmem:[%s4323_s8 + $0x1d0] sm:$0xff] %v3497_v1  }
 0x1a9   : > { %v3775_v3 = vpop.f32.mrb[56].mxu0 }
 0x1aa   : > { %v1632_v4 = vpop.f32.mrb[57].mxu0 }
 0x1ab   : > { %v3776_v5 = vpop.f32.mrb[58].mxu0 }
 0x1ac   : > { %v3839_v6 = vpop.f32.mrb[56].mxu1  ;;  %v3352_v7 = vpack.c.bf16 %v3776_v5, %v3775_v3  ;;  %v1635_v8 = vpop.f32.mrb[59].mxu0 }
 0x1ad   : > { %v1888_v9 = vpop.f32.mrb[57].mxu1  ;;  %v3347_v10 = vpack.c.bf16 %v1635_v8, %v1632_v4 }
 0x1ae   : > { %3615 = vst [vmem:[%s4323_s8 + $0xe8] sm:$0xff] %v3352_v7   ;;  %v3840_v12 = vpop.f32.mrb[58].mxu1 }
 0x1af   : > { %v3512_v13 = vpack.c.bf16 %v3840_v12, %v3839_v6  ;;  %3614 = vst [vmem:[%s4323_s8 + $0xe0] sm:$0xff] %v3347_v10   ;;  %v1891_v14 = vpop.f32.mrb[59].mxu1 }
 0x1b0   : > { %v3507_v15 = vpack.c.bf16 %v1891_v14, %v1888_v9 }
 0x1b1   : > { %3647 = vst [vmem:[%s4323_s8 + $0x1e8] sm:$0xff] %v3512_v13  }
 0x1b2   : > { %3646 = vst [vmem:[%s4323_s8 + $0x1e0] sm:$0xff] %v3507_v15  }
 0x1b6   : > { %v3779_v16 = vpop.f32.mrb[60].mxu0 }
 0x1b7   : > { %v3843_v17 = vpop.f32.mrb[60].mxu1  ;;  %v1648_v18 = vpop.f32.mrb[61].mxu0 }
 0x1b8   : > { %v1904_v19 = vpop.f32.mrb[61].mxu1  ;;  %v3780_v20 = vpop.f32.mrb[62].mxu0 }
 0x1b9   : > { %v3362_v21 = vpack.c.bf16 %v3780_v20, %v3779_v16  ;;  %v3844_v22 = vpop.f32.mrb[62].mxu1  ;;  %v1651_v43 = vpop.f32.mrb[63].mxu0 }
 0x1ba   : > { %v3522_v23 = vpack.c.bf16 %v3844_v22, %v3843_v17  ;;  %v3357_v24 = vpack.c.bf16 %v1651_v43, %v1648_v18  ;;  %v1907_v25 = vpop.f32.mrb[63].mxu1 }
 0x1bb   : > { %3617 = vst [vmem:[%s4323_s8 + $0xf8] sm:$0xff] %v3362_v21   ;;  %v3517_v26 = vpack.c.bf16 %v1907_v25, %v1904_v19 }
 0x1bc   : > { %3649 = vst [vmem:[%s4323_s8 + $0x1f8] sm:$0xff] %v3522_v23   ;;  %3616 = vst [vmem:[%s4323_s8 + $0xf0] sm:$0xff] %v3357_v24  }
 0x1bd   : > { %3648 = vst [vmem:[%s4323_s8 + $0x1f0] sm:$0xff] %v3517_v26  }
 0x1be PF: > { %s14_s15 = sadd.s32 1, %s3865_s15  }
 0x1bf   : > { %p11_p4 = scmp.ge.s32.totalorder %s14_s15, 4  }
 0x1c1   :  { %13 = sbr.rel (!%p11_p4) target bundleno = 1 (0x1), region = 66 }

</bundles_post_ra>
